<compile_context>
chip_gen: v6e
topology: v6e:2x2x1
jax: 0.10.0
libtpu: 0.0.40
codegen_flags: <defaults>
</compile_context>

<pallas_src>
import jax
import jax.numpy as jnp
from jax import lax
from jax.experimental import pallas as pl
from jax.experimental.pallas import tpu as pltpu

D_MODEL = 32          # d_model
N_HEAD = 4            # nhead (head split is an exact identity when seq_len == 1)
NUM_LAYERS = 2        # num_layer
DIM_FF = 2048         # PyTorch TransformerEncoderLayer default dim_feedforward
N_MENTIONS = 12       # mention_max_num
LN_EPS = 1e-5         # PyTorch LayerNorm default eps
FF_CHUNK = 512        # DIM_FF processed in 4 chunks (bounded vreg/VMEM pressure)
SLAB_ROWS = 8 + D_MODEL   # 6 bias/LN rows (+2 pad) + 32 fused-Wvo rows
MAX_TILE_G = 64       # 64 groups * 12 mentions = 768 rows = 3 x 256 MXU tiles


def _layer_norm(x, g, b):
    mu = jnp.mean(x, axis=-1, keepdims=True)
    var = jnp.mean((x - mu) ** 2, axis=-1, keepdims=True)
    return (x - mu) * lax.rsqrt(var + LN_EPS) * g + b


def _encoder_kernel(x_ref, slab_ref, w1_ref, bb1_ref, w2_ref, out_ref):
    """One grid step = TILE_G mention groups.

    Shapes:
      x_ref   : (N_MENTIONS, TILE_G, D)  f32   mention-major (tile-preserving reshape)
      slab_ref: (L, 40, D)               f32   rows 0..5 = bvo,g1,be1,b2,g2,be2; 8..39 = Wvo
      w1_ref  : (L, D, DIM_FF)           bf16  lane-dense
      bb1_ref : (L, DIM_FF)              f32
      w2_ref  : (L, DIM_FF, D)           bf16  K-on-sublane (no in-kernel transpose)
      out_ref : (TILE_G, D)              f32   per-group logsumexp pooled
    """
    tg = x_ref.shape[1]
    rows = N_MENTIONS * tg

    # Merge (12, tg, D) -> (12*tg, D); tg % 8 == 0 so (8,128) tiles stay intact.
    x = x_ref[...].astype(jnp.float32).reshape(rows, D_MODEL)

    for l in range(NUM_LAYERS):                       # static unroll (L == 2)
        slab = slab_ref[l]                            # (40, D) f32
        bvo, g1, be1 = slab[0:1], slab[1:2], slab[2:3]
        bb2, g2, be2 = slab[3:4], slab[4:5], slab[5:6]
        wvo = slab[8:8 + D_MODEL]                     # (D, D) fused value->out proj

        # --- self-attention block (post-LN); seq_len == 1 => attn = x @ Wvo + bvo
        attn = jnp.dot(x.astype(jnp.bfloat16), wvo.astype(jnp.bfloat16),
                       preferred_element_type=jnp.float32) + bvo
        x = _layer_norm(x + attn, g1, be1)

        # --- feed-forward block, chunked over DIM_FF: Linear -> ReLU -> Linear
        xb = x.astype(jnp.bfloat16)
        acc = jnp.zeros((rows, D_MODEL), jnp.float32)
        for c in range(DIM_FF // FF_CHUNK):           # static unroll (4 chunks)
            c0 = c * FF_CHUNK
            b1c = bb1_ref[l:l + 1, c0:c0 + FF_CHUNK]  # (1, FF_CHUNK) f32
            h = jnp.maximum(
                jnp.dot(xb, w1_ref[l, :, c0:c0 + FF_CHUNK],
                        preferred_element_type=jnp.float32) + b1c, 0.0)
            acc = acc + jnp.dot(h.astype(jnp.bfloat16),
                                w2_ref[l, c0:c0 + FF_CHUNK, :],
                                preferred_element_type=jnp.float32)
        x = _layer_norm(x + acc + bb2, g2, be2)

    # --- per-group logsumexp pooling over the mention axis (outer axis => VPU only)
    x3 = x.reshape(N_MENTIONS, tg, D_MODEL)
    m = jnp.max(x3, axis=0)                                       # (tg, D)
    lse = m + jnp.log(jnp.sum(jnp.exp(x3 - m[None]), axis=0))     # (tg, D)
    out_ref[...] = lse.astype(out_ref.dtype)


def transformer_encoder_pallas(x, params):
    """x: (12, D) single mention group (module semantics) or (G, 12, D) batched.
    Returns (D,) or (G, D)."""
    slab, w1, bb1, w2 = params
    single = (x.ndim == 2)
    if single:
        x = x[None]
    G = x.shape[0]

    tile_g = min(MAX_TILE_G, 8 * ((G + 7) // 8))                  # multiple of 8
    g_pad = tile_g * ((G + tile_g - 1) // tile_g)

    # Present x mention-major: (12, G_pad, D).  Wrapper-side layout plumbing only.
    xt = jnp.transpose(x.astype(jnp.float32), (1, 0, 2))
    if g_pad != G:
        xt = jnp.pad(xt, ((0, 0), (0, g_pad - G), (0, 0)))

    out = pl.pallas_call(
        _encoder_kernel,
        out_shape=jax.ShapeDtypeStruct((g_pad, D_MODEL), jnp.float32),
        grid_spec=pltpu.PrefetchScalarGridSpec(
            num_scalar_prefetch=0,
            grid=(g_pad // tile_g,),
            in_specs=[
                pl.BlockSpec((N_MENTIONS, tile_g, D_MODEL), lambda g: (0, g, 0)),
                # Weights: constant block index => fetched once, VMEM-resident.
                pl.BlockSpec((NUM_LAYERS, SLAB_ROWS, D_MODEL), lambda g: (0, 0, 0)),
                pl.BlockSpec((NUM_LAYERS, D_MODEL, DIM_FF), lambda g: (0, 0, 0)),
                pl.BlockSpec((NUM_LAYERS, DIM_FF), lambda g: (0, 0)),
                pl.BlockSpec((NUM_LAYERS, DIM_FF, D_MODEL), lambda g: (0, 0, 0)),
            ],
            out_specs=pl.BlockSpec((tile_g, D_MODEL), lambda g: (g, 0)),
        ),
        compiler_params=pltpu.CompilerParams(
            dimension_semantics=("parallel",)),       # shard groups across v7x's 2 TCs
    )(xt, slab, w1, bb1, w2)

    out = out[:G]
    return out[0] if single else out


def make_params(key):
    """Deterministic synthetic weights, PyTorch-Linear convention (out, in),
    pre-fused / pre-transposed / packed for the kernel."""
    slab_l, w1_l, bb1_l, w2_l = [], [], [], []
    for _ in range(NUM_LAYERS):
        key, *ks = jax.random.split(key, 11)
        s = 0.05
        Wv = jax.random.normal(ks[0], (D_MODEL, D_MODEL), jnp.float32) * s
        Bv = jax.random.normal(ks[1], (D_MODEL,), jnp.float32) * s
        Wo = jax.random.normal(ks[2], (D_MODEL, D_MODEL), jnp.float32) * s
        Bo = jax.random.normal(ks[3], (D_MODEL,), jnp.float32) * s
        W1 = jax.random.normal(ks[4], (DIM_FF, D_MODEL), jnp.float32) * s
        B1 = jax.random.normal(ks[5], (DIM_FF,), jnp.float32) * s
        W2 = jax.random.normal(ks[6], (D_MODEL, DIM_FF), jnp.float32) * s
        B2 = jax.random.normal(ks[7], (D_MODEL,), jnp.float32) * s
        g1 = 1.0 + 0.1 * jax.random.normal(ks[8], (D_MODEL,), jnp.float32)
        g2 = 1.0 + 0.1 * jax.random.normal(ks[9], (D_MODEL,), jnp.float32)
        be1 = jnp.zeros((D_MODEL,), jnp.float32)
        be2 = jnp.zeros((D_MODEL,), jnp.float32)

        Wvo = Wv.T @ Wo.T                 # fused value->out projection (seq_len==1)
        bvo = Bv @ Wo.T + Bo

        slab = jnp.zeros((SLAB_ROWS, D_MODEL), jnp.float32)
        slab = slab.at[0].set(bvo).at[1].set(g1).at[2].set(be1)
        slab = slab.at[3].set(B2).at[4].set(g2).at[5].set(be2)
        slab = slab.at[8:].set(Wvo)

        slab_l.append(slab)
        w1_l.append(W1.T.astype(jnp.bfloat16))    # (D, DIM_FF) lane-dense
        bb1_l.append(B1)                          # (DIM_FF,) f32
        w2_l.append(W2.T.astype(jnp.bfloat16))    # (DIM_FF, D) K-on-sublane
    stack = lambda xs: jnp.stack(xs, axis=0)
    return (stack(slab_l), stack(w1_l), stack(bb1_l), stack(w2_l))


def reference_jax(x, params):
    """Pure-JAX reference with identical math/dtypes (sanity check). x: (G, 12, D)."""
    slab, w1, bb1, w2 = params
    if x.ndim == 2:
        x = x[None]
    G = x.shape[0]
    h = x.reshape(G * N_MENTIONS, D_MODEL).astype(jnp.float32)
    for l in range(NUM_LAYERS):
        s = slab[l]
        bvo, g1, be1 = s[0:1], s[1:2], s[2:3]
        bb2, g2, be2 = s[3:4], s[4:5], s[5:6]
        wvo = s[8:8 + D_MODEL]
        attn = jnp.dot(h.astype(jnp.bfloat16), wvo.astype(jnp.bfloat16),
                       preferred_element_type=jnp.float32) + bvo
        h = _layer_norm(h + attn, g1, be1)
        z = jnp.maximum(
            jnp.dot(h.astype(jnp.bfloat16), w1[l],
                    preferred_element_type=jnp.float32) + bb1[l][None, :], 0.0)
        ff = jnp.dot(z.astype(jnp.bfloat16), w2[l],
                     preferred_element_type=jnp.float32)
        h = _layer_norm(h + ff + bb2, g2, be2)
    hg = h.reshape(G, N_MENTIONS, D_MODEL)
    m = jnp.max(hg, axis=1)
    return m + jnp.log(jnp.sum(jnp.exp(hg - m[:, None, :]), axis=1))


if __name__ == "__main__":
    key = jax.random.PRNGKey(0)
    key, kx1, kxb = jax.random.split(key, 3)
    params = make_params(key)

    # 1) Single mention group -- exactly the module's forward semantics.
    x_single = jax.random.normal(kx1, (N_MENTIONS, D_MODEL), jnp.float32)
    out_single = jax.block_until_ready(transformer_encoder_pallas(x_single, params))
    ref_single = reference_jax(x_single, params)[0]
    assert out_single.shape == (D_MODEL,)
    assert bool(jnp.all(jnp.isfinite(out_single)))
    assert bool(jnp.allclose(out_single, ref_single, rtol=2e-3, atol=2e-3))

    # 2) Batched mention groups -- the throughput path (grid over group tiles,
    #    resident weights); non-multiple batch size exercises the padding path.
    G = 100
    x_batch = jax.random.normal(kxb, (G, N_MENTIONS, D_MODEL), jnp.float32)
    out_batch = jax.block_until_ready(transformer_encoder_pallas(x_batch, params))
    ref_batch = reference_jax(x_batch, params)
    assert out_batch.shape == (G, D_MODEL)
    assert bool(jnp.all(jnp.isfinite(out_batch)))
    assert bool(jnp.allclose(out_batch, ref_batch, rtol=2e-3, atol=2e-3))

    print("KERNEL_OK")
</pallas_src>

<mosaic_0001>
module attributes {stable_mosaic.version = 11 : i64} {
  func.func @_encoder_kernel(%arg0: i32, %arg1: memref<12x8x32xf32, #tpu.memory_space<vmem>>, %arg2: memref<2x40x32xf32, #tpu.memory_space<vmem>>, %arg3: memref<2x32x2048xbf16, #tpu.memory_space<vmem>>, %arg4: memref<2x2048xf32, #tpu.memory_space<vmem>>, %arg5: memref<2x2048x32xbf16, #tpu.memory_space<vmem>>, %arg6: memref<8x32xf32, #tpu.memory_space<vmem>>) attributes {dimension_semantics = [#tpu.dimension_semantics<parallel>], iteration_bounds = array<i64: 1>, scalar_prefetch = 0 : i64, scratch_operands = 0 : i64, tpu.core_type = #tpu.core_type<tc>, window_params = [{transform_indices = @transform_0, window_bounds = array<i64: 12, 8, 32>}, {pipeline_mode = #tpu.pipeline_mode<synchronous>, transform_indices = @transform_1, window_bounds = array<i64: 2, 40, 32>}, {pipeline_mode = #tpu.pipeline_mode<synchronous>, transform_indices = @transform_2, window_bounds = array<i64: 2, 32, 2048>}, {pipeline_mode = #tpu.pipeline_mode<synchronous>, transform_indices = @transform_3, window_bounds = array<i64: 2, 2048>}, {pipeline_mode = #tpu.pipeline_mode<synchronous>, transform_indices = @transform_4, window_bounds = array<i64: 2, 2048, 32>}, {transform_indices = @transform_5, window_bounds = array<i64: 8, 32>}]} {
    %c0 = arith.constant 0 : index
    %c0_0 = arith.constant 0 : index
    %c0_1 = arith.constant 0 : index
    %0 = vector.load %arg1[%c0, %c0_0, %c0_1] : memref<12x8x32xf32, #tpu.memory_space<vmem>>, vector<12x8x32xf32>
    %1 = vector.shape_cast %0 : vector<12x8x32xf32> to vector<96x32xf32>
    %c0_2 = arith.constant 0 : index
    %c0_3 = arith.constant 0 : index
    %c0_4 = arith.constant 0 : index
    %2 = vector.load %arg2[%c0_2, %c0_3, %c0_4] : memref<2x40x32xf32, #tpu.memory_space<vmem>>, vector<1x40x32xf32>
    %3 = vector.shape_cast %2 : vector<1x40x32xf32> to vector<40x32xf32>
    %4 = vector.extract_strided_slice %3 {offsets = [0, 0], sizes = [1, 32], strides = [1, 1]} : vector<40x32xf32> to vector<1x32xf32>
    %5 = vector.extract_strided_slice %3 {offsets = [1, 0], sizes = [1, 32], strides = [1, 1]} : vector<40x32xf32> to vector<1x32xf32>
    %6 = vector.extract_strided_slice %3 {offsets = [2, 0], sizes = [1, 32], strides = [1, 1]} : vector<40x32xf32> to vector<1x32xf32>
    %7 = vector.extract_strided_slice %3 {offsets = [3, 0], sizes = [1, 32], strides = [1, 1]} : vector<40x32xf32> to vector<1x32xf32>
    %8 = vector.extract_strided_slice %3 {offsets = [4, 0], sizes = [1, 32], strides = [1, 1]} : vector<40x32xf32> to vector<1x32xf32>
    %9 = vector.extract_strided_slice %3 {offsets = [5, 0], sizes = [1, 32], strides = [1, 1]} : vector<40x32xf32> to vector<1x32xf32>
    %10 = vector.extract_strided_slice %3 {offsets = [8, 0], sizes = [32, 32], strides = [1, 1]} : vector<40x32xf32> to vector<32x32xf32>
    %11 = arith.truncf %1 : vector<96x32xf32> to vector<96x32xbf16>
    %12 = arith.truncf %10 : vector<32x32xf32> to vector<32x32xbf16>
    %cst = arith.constant dense<0.000000e+00> : vector<96x32xf32>
    %13 = tpu.matmul %11, %12, %cst {dimension_numbers = #tpu.dot_dimension_numbers<[1], [0], [0], [1], [0, 0, 1, 1], [], []>} : vector<96x32xbf16>, vector<32x32xbf16>, vector<96x32xf32> -> vector<96x32xf32>
    %14 = vector.broadcast %4 : vector<1x32xf32> to vector<96x32xf32>
    %15 = arith.addf %13, %14 : vector<96x32xf32>
    %16 = arith.addf %1, %15 : vector<96x32xf32>
    %cst_5 = arith.constant dense<0.000000e+00> : vector<96xf32>
    %17 = vector.multi_reduction <add>, %16, %cst_5 [1] : vector<96x32xf32> to vector<96xf32>
    %18 = vector.shape_cast %17 : vector<96xf32> to vector<96x1xf32>
    %cst_6 = arith.constant 3.200000e+01 : f32
    %19 = vector.broadcast %cst_6 : f32 to vector<96x1xf32>
    %20 = arith.divf %18, %19 : vector<96x1xf32>
    %21 = vector.broadcast %20 : vector<96x1xf32> to vector<96x32xf32>
    %22 = arith.subf %16, %21 : vector<96x32xf32>
    %23 = arith.mulf %22, %22 : vector<96x32xf32>
    %cst_7 = arith.constant dense<0.000000e+00> : vector<96xf32>
    %24 = vector.multi_reduction <add>, %23, %cst_7 [1] : vector<96x32xf32> to vector<96xf32>
    %25 = vector.shape_cast %24 : vector<96xf32> to vector<96x1xf32>
    %cst_8 = arith.constant 3.200000e+01 : f32
    %26 = vector.broadcast %cst_8 : f32 to vector<96x1xf32>
    %27 = arith.divf %25, %26 : vector<96x1xf32>
    %28 = vector.broadcast %20 : vector<96x1xf32> to vector<96x32xf32>
    %29 = arith.subf %16, %28 : vector<96x32xf32>
    %cst_9 = arith.constant 9.99999974E-6 : f32
    %30 = vector.broadcast %cst_9 : f32 to vector<96x1xf32>
    %31 = arith.addf %27, %30 : vector<96x1xf32>
    %32 = math.rsqrt %31 : vector<96x1xf32>
    %33 = vector.broadcast %32 : vector<96x1xf32> to vector<96x32xf32>
    %34 = arith.mulf %29, %33 : vector<96x32xf32>
    %35 = vector.broadcast %5 : vector<1x32xf32> to vector<96x32xf32>
    %36 = arith.mulf %34, %35 : vector<96x32xf32>
    %37 = vector.broadcast %6 : vector<1x32xf32> to vector<96x32xf32>
    %38 = arith.addf %36, %37 : vector<96x32xf32>
    %39 = arith.truncf %38 : vector<96x32xf32> to vector<96x32xbf16>
    %cst_10 = arith.constant 0.000000e+00 : f32
    %40 = vector.broadcast %cst_10 : f32 to vector<96x32xf32>
    %c0_11 = arith.constant 0 : index
    %c0_12 = arith.constant 0 : index
    %41 = vector.load %arg4[%c0_11, %c0_12] : memref<2x2048xf32, #tpu.memory_space<vmem>>, vector<1x512xf32>
    %c0_13 = arith.constant 0 : index
    %c0_14 = arith.constant 0 : index
    %c0_15 = arith.constant 0 : index
    %42 = vector.load %arg3[%c0_13, %c0_14, %c0_15] : memref<2x32x2048xbf16, #tpu.memory_space<vmem>>, vector<1x32x512xbf16>
    %43 = vector.shape_cast %42 : vector<1x32x512xbf16> to vector<32x512xbf16>
    %cst_16 = arith.constant dense<0.000000e+00> : vector<96x512xf32>
    %44 = tpu.matmul %39, %43, %cst_16 {dimension_numbers = #tpu.dot_dimension_numbers<[1], [0], [0], [1], [0, 0, 1, 1], [], []>} : vector<96x32xbf16>, vector<32x512xbf16>, vector<96x512xf32> -> vector<96x512xf32>
    %45 = vector.broadcast %41 : vector<1x512xf32> to vector<96x512xf32>
    %46 = arith.addf %44, %45 : vector<96x512xf32>
    %cst_17 = arith.constant 0.000000e+00 : f32
    %47 = vector.broadcast %cst_17 : f32 to vector<96x512xf32>
    %48 = arith.maximumf %46, %47 : vector<96x512xf32>
    %49 = arith.truncf %48 : vector<96x512xf32> to vector<96x512xbf16>
    %c0_18 = arith.constant 0 : index
    %c0_19 = arith.constant 0 : index
    %c0_20 = arith.constant 0 : index
    %50 = vector.load %arg5[%c0_18, %c0_19, %c0_20] : memref<2x2048x32xbf16, #tpu.memory_space<vmem>>, vector<1x512x32xbf16>
    %51 = vector.shape_cast %50 : vector<1x512x32xbf16> to vector<512x32xbf16>
    %cst_21 = arith.constant dense<0.000000e+00> : vector<96x32xf32>
    %52 = tpu.matmul %49, %51, %cst_21 {dimension_numbers = #tpu.dot_dimension_numbers<[1], [0], [0], [1], [0, 0, 1, 1], [], []>} : vector<96x512xbf16>, vector<512x32xbf16>, vector<96x32xf32> -> vector<96x32xf32>
    %53 = arith.addf %40, %52 : vector<96x32xf32>
    %c0_22 = arith.constant 0 : index
    %c512 = arith.constant 512 : index
    %54 = vector.load %arg4[%c0_22, %c512] : memref<2x2048xf32, #tpu.memory_space<vmem>>, vector<1x512xf32>
    %c0_23 = arith.constant 0 : index
    %c0_24 = arith.constant 0 : index
    %c512_25 = arith.constant 512 : index
    %55 = vector.load %arg3[%c0_23, %c0_24, %c512_25] : memref<2x32x2048xbf16, #tpu.memory_space<vmem>>, vector<1x32x512xbf16>
    %56 = vector.shape_cast %55 : vector<1x32x512xbf16> to vector<32x512xbf16>
    %cst_26 = arith.constant dense<0.000000e+00> : vector<96x512xf32>
    %57 = tpu.matmul %39, %56, %cst_26 {dimension_numbers = #tpu.dot_dimension_numbers<[1], [0], [0], [1], [0, 0, 1, 1], [], []>} : vector<96x32xbf16>, vector<32x512xbf16>, vector<96x512xf32> -> vector<96x512xf32>
    %58 = vector.broadcast %54 : vector<1x512xf32> to vector<96x512xf32>
    %59 = arith.addf %57, %58 : vector<96x512xf32>
    %cst_27 = arith.constant 0.000000e+00 : f32
    %60 = vector.broadcast %cst_27 : f32 to vector<96x512xf32>
    %61 = arith.maximumf %59, %60 : vector<96x512xf32>
    %62 = arith.truncf %61 : vector<96x512xf32> to vector<96x512xbf16>
    %c0_28 = arith.constant 0 : index
    %c512_29 = arith.constant 512 : index
    %c0_30 = arith.constant 0 : index
    %63 = vector.load %arg5[%c0_28, %c512_29, %c0_30] : memref<2x2048x32xbf16, #tpu.memory_space<vmem>>, vector<1x512x32xbf16>
    %64 = vector.shape_cast %63 : vector<1x512x32xbf16> to vector<512x32xbf16>
    %cst_31 = arith.constant dense<0.000000e+00> : vector<96x32xf32>
    %65 = tpu.matmul %62, %64, %cst_31 {dimension_numbers = #tpu.dot_dimension_numbers<[1], [0], [0], [1], [0, 0, 1, 1], [], []>} : vector<96x512xbf16>, vector<512x32xbf16>, vector<96x32xf32> -> vector<96x32xf32>
    %66 = arith.addf %53, %65 : vector<96x32xf32>
    %c0_32 = arith.constant 0 : index
    %c1024 = arith.constant 1024 : index
    %67 = vector.load %arg4[%c0_32, %c1024] : memref<2x2048xf32, #tpu.memory_space<vmem>>, vector<1x512xf32>
    %c0_33 = arith.constant 0 : index
    %c0_34 = arith.constant 0 : index
    %c1024_35 = arith.constant 1024 : index
    %68 = vector.load %arg3[%c0_33, %c0_34, %c1024_35] : memref<2x32x2048xbf16, #tpu.memory_space<vmem>>, vector<1x32x512xbf16>
    %69 = vector.shape_cast %68 : vector<1x32x512xbf16> to vector<32x512xbf16>
    %cst_36 = arith.constant dense<0.000000e+00> : vector<96x512xf32>
    %70 = tpu.matmul %39, %69, %cst_36 {dimension_numbers = #tpu.dot_dimension_numbers<[1], [0], [0], [1], [0, 0, 1, 1], [], []>} : vector<96x32xbf16>, vector<32x512xbf16>, vector<96x512xf32> -> vector<96x512xf32>
    %71 = vector.broadcast %67 : vector<1x512xf32> to vector<96x512xf32>
    %72 = arith.addf %70, %71 : vector<96x512xf32>
    %cst_37 = arith.constant 0.000000e+00 : f32
    %73 = vector.broadcast %cst_37 : f32 to vector<96x512xf32>
    %74 = arith.maximumf %72, %73 : vector<96x512xf32>
    %75 = arith.truncf %74 : vector<96x512xf32> to vector<96x512xbf16>
    %c0_38 = arith.constant 0 : index
    %c1024_39 = arith.constant 1024 : index
    %c0_40 = arith.constant 0 : index
    %76 = vector.load %arg5[%c0_38, %c1024_39, %c0_40] : memref<2x2048x32xbf16, #tpu.memory_space<vmem>>, vector<1x512x32xbf16>
    %77 = vector.shape_cast %76 : vector<1x512x32xbf16> to vector<512x32xbf16>
    %cst_41 = arith.constant dense<0.000000e+00> : vector<96x32xf32>
    %78 = tpu.matmul %75, %77, %cst_41 {dimension_numbers = #tpu.dot_dimension_numbers<[1], [0], [0], [1], [0, 0, 1, 1], [], []>} : vector<96x512xbf16>, vector<512x32xbf16>, vector<96x32xf32> -> vector<96x32xf32>
    %79 = arith.addf %66, %78 : vector<96x32xf32>
    %c0_42 = arith.constant 0 : index
    %c1536 = arith.constant 1536 : index
    %80 = vector.load %arg4[%c0_42, %c1536] : memref<2x2048xf32, #tpu.memory_space<vmem>>, vector<1x512xf32>
    %c0_43 = arith.constant 0 : index
    %c0_44 = arith.constant 0 : index
    %c1536_45 = arith.constant 1536 : index
    %81 = vector.load %arg3[%c0_43, %c0_44, %c1536_45] : memref<2x32x2048xbf16, #tpu.memory_space<vmem>>, vector<1x32x512xbf16>
    %82 = vector.shape_cast %81 : vector<1x32x512xbf16> to vector<32x512xbf16>
    %cst_46 = arith.constant dense<0.000000e+00> : vector<96x512xf32>
    %83 = tpu.matmul %39, %82, %cst_46 {dimension_numbers = #tpu.dot_dimension_numbers<[1], [0], [0], [1], [0, 0, 1, 1], [], []>} : vector<96x32xbf16>, vector<32x512xbf16>, vector<96x512xf32> -> vector<96x512xf32>
    %84 = vector.broadcast %80 : vector<1x512xf32> to vector<96x512xf32>
    %85 = arith.addf %83, %84 : vector<96x512xf32>
    %cst_47 = arith.constant 0.000000e+00 : f32
    %86 = vector.broadcast %cst_47 : f32 to vector<96x512xf32>
    %87 = arith.maximumf %85, %86 : vector<96x512xf32>
    %88 = arith.truncf %87 : vector<96x512xf32> to vector<96x512xbf16>
    %c0_48 = arith.constant 0 : index
    %c1536_49 = arith.constant 1536 : index
    %c0_50 = arith.constant 0 : index
    %89 = vector.load %arg5[%c0_48, %c1536_49, %c0_50] : memref<2x2048x32xbf16, #tpu.memory_space<vmem>>, vector<1x512x32xbf16>
    %90 = vector.shape_cast %89 : vector<1x512x32xbf16> to vector<512x32xbf16>
    %cst_51 = arith.constant dense<0.000000e+00> : vector<96x32xf32>
    %91 = tpu.matmul %88, %90, %cst_51 {dimension_numbers = #tpu.dot_dimension_numbers<[1], [0], [0], [1], [0, 0, 1, 1], [], []>} : vector<96x512xbf16>, vector<512x32xbf16>, vector<96x32xf32> -> vector<96x32xf32>
    %92 = arith.addf %79, %91 : vector<96x32xf32>
    %93 = arith.addf %38, %92 : vector<96x32xf32>
    %94 = vector.broadcast %7 : vector<1x32xf32> to vector<96x32xf32>
    %95 = arith.addf %93, %94 : vector<96x32xf32>
    %cst_52 = arith.constant dense<0.000000e+00> : vector<96xf32>
    %96 = vector.multi_reduction <add>, %95, %cst_52 [1] : vector<96x32xf32> to vector<96xf32>
    %97 = vector.shape_cast %96 : vector<96xf32> to vector<96x1xf32>
    %cst_53 = arith.constant 3.200000e+01 : f32
    %98 = vector.broadcast %cst_53 : f32 to vector<96x1xf32>
    %99 = arith.divf %97, %98 : vector<96x1xf32>
    %100 = vector.broadcast %99 : vector<96x1xf32> to vector<96x32xf32>
    %101 = arith.subf %95, %100 : vector<96x32xf32>
    %102 = arith.mulf %101, %101 : vector<96x32xf32>
    %cst_54 = arith.constant dense<0.000000e+00> : vector<96xf32>
    %103 = vector.multi_reduction <add>, %102, %cst_54 [1] : vector<96x32xf32> to vector<96xf32>
    %104 = vector.shape_cast %103 : vector<96xf32> to vector<96x1xf32>
    %cst_55 = arith.constant 3.200000e+01 : f32
    %105 = vector.broadcast %cst_55 : f32 to vector<96x1xf32>
    %106 = arith.divf %104, %105 : vector<96x1xf32>
    %107 = vector.broadcast %99 : vector<96x1xf32> to vector<96x32xf32>
    %108 = arith.subf %95, %107 : vector<96x32xf32>
    %cst_56 = arith.constant 9.99999974E-6 : f32
    %109 = vector.broadcast %cst_56 : f32 to vector<96x1xf32>
    %110 = arith.addf %106, %109 : vector<96x1xf32>
    %111 = math.rsqrt %110 : vector<96x1xf32>
    %112 = vector.broadcast %111 : vector<96x1xf32> to vector<96x32xf32>
    %113 = arith.mulf %108, %112 : vector<96x32xf32>
    %114 = vector.broadcast %8 : vector<1x32xf32> to vector<96x32xf32>
    %115 = arith.mulf %113, %114 : vector<96x32xf32>
    %116 = vector.broadcast %9 : vector<1x32xf32> to vector<96x32xf32>
    %117 = arith.addf %115, %116 : vector<96x32xf32>
    %c1 = arith.constant 1 : index
    %c0_57 = arith.constant 0 : index
    %c0_58 = arith.constant 0 : index
    %118 = vector.load %arg2[%c1, %c0_57, %c0_58] : memref<2x40x32xf32, #tpu.memory_space<vmem>>, vector<1x40x32xf32>
    %119 = vector.shape_cast %118 : vector<1x40x32xf32> to vector<40x32xf32>
    %120 = vector.extract_strided_slice %119 {offsets = [0, 0], sizes = [1, 32], strides = [1, 1]} : vector<40x32xf32> to vector<1x32xf32>
    %121 = vector.extract_strided_slice %119 {offsets = [1, 0], sizes = [1, 32], strides = [1, 1]} : vector<40x32xf32> to vector<1x32xf32>
    %122 = vector.extract_strided_slice %119 {offsets = [2, 0], sizes = [1, 32], strides = [1, 1]} : vector<40x32xf32> to vector<1x32xf32>
    %123 = vector.extract_strided_slice %119 {offsets = [3, 0], sizes = [1, 32], strides = [1, 1]} : vector<40x32xf32> to vector<1x32xf32>
    %124 = vector.extract_strided_slice %119 {offsets = [4, 0], sizes = [1, 32], strides = [1, 1]} : vector<40x32xf32> to vector<1x32xf32>
    %125 = vector.extract_strided_slice %119 {offsets = [5, 0], sizes = [1, 32], strides = [1, 1]} : vector<40x32xf32> to vector<1x32xf32>
    %126 = vector.extract_strided_slice %119 {offsets = [8, 0], sizes = [32, 32], strides = [1, 1]} : vector<40x32xf32> to vector<32x32xf32>
    %127 = arith.truncf %117 : vector<96x32xf32> to vector<96x32xbf16>
    %128 = arith.truncf %126 : vector<32x32xf32> to vector<32x32xbf16>
    %cst_59 = arith.constant dense<0.000000e+00> : vector<96x32xf32>
    %129 = tpu.matmul %127, %128, %cst_59 {dimension_numbers = #tpu.dot_dimension_numbers<[1], [0], [0], [1], [0, 0, 1, 1], [], []>} : vector<96x32xbf16>, vector<32x32xbf16>, vector<96x32xf32> -> vector<96x32xf32>
    %130 = vector.broadcast %120 : vector<1x32xf32> to vector<96x32xf32>
    %131 = arith.addf %129, %130 : vector<96x32xf32>
    %132 = arith.addf %117, %131 : vector<96x32xf32>
    %cst_60 = arith.constant dense<0.000000e+00> : vector<96xf32>
    %133 = vector.multi_reduction <add>, %132, %cst_60 [1] : vector<96x32xf32> to vector<96xf32>
    %134 = vector.shape_cast %133 : vector<96xf32> to vector<96x1xf32>
    %cst_61 = arith.constant 3.200000e+01 : f32
    %135 = vector.broadcast %cst_61 : f32 to vector<96x1xf32>
    %136 = arith.divf %134, %135 : vector<96x1xf32>
    %137 = vector.broadcast %136 : vector<96x1xf32> to vector<96x32xf32>
    %138 = arith.subf %132, %137 : vector<96x32xf32>
    %139 = arith.mulf %138, %138 : vector<96x32xf32>
    %cst_62 = arith.constant dense<0.000000e+00> : vector<96xf32>
    %140 = vector.multi_reduction <add>, %139, %cst_62 [1] : vector<96x32xf32> to vector<96xf32>
    %141 = vector.shape_cast %140 : vector<96xf32> to vector<96x1xf32>
    %cst_63 = arith.constant 3.200000e+01 : f32
    %142 = vector.broadcast %cst_63 : f32 to vector<96x1xf32>
    %143 = arith.divf %141, %142 : vector<96x1xf32>
    %144 = vector.broadcast %136 : vector<96x1xf32> to vector<96x32xf32>
    %145 = arith.subf %132, %144 : vector<96x32xf32>
    %cst_64 = arith.constant 9.99999974E-6 : f32
    %146 = vector.broadcast %cst_64 : f32 to vector<96x1xf32>
    %147 = arith.addf %143, %146 : vector<96x1xf32>
    %148 = math.rsqrt %147 : vector<96x1xf32>
    %149 = vector.broadcast %148 : vector<96x1xf32> to vector<96x32xf32>
    %150 = arith.mulf %145, %149 : vector<96x32xf32>
    %151 = vector.broadcast %121 : vector<1x32xf32> to vector<96x32xf32>
    %152 = arith.mulf %150, %151 : vector<96x32xf32>
    %153 = vector.broadcast %122 : vector<1x32xf32> to vector<96x32xf32>
    %154 = arith.addf %152, %153 : vector<96x32xf32>
    %155 = arith.truncf %154 : vector<96x32xf32> to vector<96x32xbf16>
    %cst_65 = arith.constant 0.000000e+00 : f32
    %156 = vector.broadcast %cst_65 : f32 to vector<96x32xf32>
    %c1_66 = arith.constant 1 : index
    %c0_67 = arith.constant 0 : index
    %157 = vector.load %arg4[%c1_66, %c0_67] : memref<2x2048xf32, #tpu.memory_space<vmem>>, vector<1x512xf32>
    %c1_68 = arith.constant 1 : index
    %c0_69 = arith.constant 0 : index
    %c0_70 = arith.constant 0 : index
    %158 = vector.load %arg3[%c1_68, %c0_69, %c0_70] : memref<2x32x2048xbf16, #tpu.memory_space<vmem>>, vector<1x32x512xbf16>
    %159 = vector.shape_cast %158 : vector<1x32x512xbf16> to vector<32x512xbf16>
    %cst_71 = arith.constant dense<0.000000e+00> : vector<96x512xf32>
    %160 = tpu.matmul %155, %159, %cst_71 {dimension_numbers = #tpu.dot_dimension_numbers<[1], [0], [0], [1], [0, 0, 1, 1], [], []>} : vector<96x32xbf16>, vector<32x512xbf16>, vector<96x512xf32> -> vector<96x512xf32>
    %161 = vector.broadcast %157 : vector<1x512xf32> to vector<96x512xf32>
    %162 = arith.addf %160, %161 : vector<96x512xf32>
    %cst_72 = arith.constant 0.000000e+00 : f32
    %163 = vector.broadcast %cst_72 : f32 to vector<96x512xf32>
    %164 = arith.maximumf %162, %163 : vector<96x512xf32>
    %165 = arith.truncf %164 : vector<96x512xf32> to vector<96x512xbf16>
    %c1_73 = arith.constant 1 : index
    %c0_74 = arith.constant 0 : index
    %c0_75 = arith.constant 0 : index
    %166 = vector.load %arg5[%c1_73, %c0_74, %c0_75] : memref<2x2048x32xbf16, #tpu.memory_space<vmem>>, vector<1x512x32xbf16>
    %167 = vector.shape_cast %166 : vector<1x512x32xbf16> to vector<512x32xbf16>
    %cst_76 = arith.constant dense<0.000000e+00> : vector<96x32xf32>
    %168 = tpu.matmul %165, %167, %cst_76 {dimension_numbers = #tpu.dot_dimension_numbers<[1], [0], [0], [1], [0, 0, 1, 1], [], []>} : vector<96x512xbf16>, vector<512x32xbf16>, vector<96x32xf32> -> vector<96x32xf32>
    %169 = arith.addf %156, %168 : vector<96x32xf32>
    %c1_77 = arith.constant 1 : index
    %c512_78 = arith.constant 512 : index
    %170 = vector.load %arg4[%c1_77, %c512_78] : memref<2x2048xf32, #tpu.memory_space<vmem>>, vector<1x512xf32>
    %c1_79 = arith.constant 1 : index
    %c0_80 = arith.constant 0 : index
    %c512_81 = arith.constant 512 : index
    %171 = vector.load %arg3[%c1_79, %c0_80, %c512_81] : memref<2x32x2048xbf16, #tpu.memory_space<vmem>>, vector<1x32x512xbf16>
    %172 = vector.shape_cast %171 : vector<1x32x512xbf16> to vector<32x512xbf16>
    %cst_82 = arith.constant dense<0.000000e+00> : vector<96x512xf32>
    %173 = tpu.matmul %155, %172, %cst_82 {dimension_numbers = #tpu.dot_dimension_numbers<[1], [0], [0], [1], [0, 0, 1, 1], [], []>} : vector<96x32xbf16>, vector<32x512xbf16>, vector<96x512xf32> -> vector<96x512xf32>
    %174 = vector.broadcast %170 : vector<1x512xf32> to vector<96x512xf32>
    %175 = arith.addf %173, %174 : vector<96x512xf32>
    %cst_83 = arith.constant 0.000000e+00 : f32
    %176 = vector.broadcast %cst_83 : f32 to vector<96x512xf32>
    %177 = arith.maximumf %175, %176 : vector<96x512xf32>
    %178 = arith.truncf %177 : vector<96x512xf32> to vector<96x512xbf16>
    %c1_84 = arith.constant 1 : index
    %c512_85 = arith.constant 512 : index
    %c0_86 = arith.constant 0 : index
    %179 = vector.load %arg5[%c1_84, %c512_85, %c0_86] : memref<2x2048x32xbf16, #tpu.memory_space<vmem>>, vector<1x512x32xbf16>
    %180 = vector.shape_cast %179 : vector<1x512x32xbf16> to vector<512x32xbf16>
    %cst_87 = arith.constant dense<0.000000e+00> : vector<96x32xf32>
    %181 = tpu.matmul %178, %180, %cst_87 {dimension_numbers = #tpu.dot_dimension_numbers<[1], [0], [0], [1], [0, 0, 1, 1], [], []>} : vector<96x512xbf16>, vector<512x32xbf16>, vector<96x32xf32> -> vector<96x32xf32>
    %182 = arith.addf %169, %181 : vector<96x32xf32>
    %c1_88 = arith.constant 1 : index
    %c1024_89 = arith.constant 1024 : index
    %183 = vector.load %arg4[%c1_88, %c1024_89] : memref<2x2048xf32, #tpu.memory_space<vmem>>, vector<1x512xf32>
    %c1_90 = arith.constant 1 : index
    %c0_91 = arith.constant 0 : index
    %c1024_92 = arith.constant 1024 : index
    %184 = vector.load %arg3[%c1_90, %c0_91, %c1024_92] : memref<2x32x2048xbf16, #tpu.memory_space<vmem>>, vector<1x32x512xbf16>
    %185 = vector.shape_cast %184 : vector<1x32x512xbf16> to vector<32x512xbf16>
    %cst_93 = arith.constant dense<0.000000e+00> : vector<96x512xf32>
    %186 = tpu.matmul %155, %185, %cst_93 {dimension_numbers = #tpu.dot_dimension_numbers<[1], [0], [0], [1], [0, 0, 1, 1], [], []>} : vector<96x32xbf16>, vector<32x512xbf16>, vector<96x512xf32> -> vector<96x512xf32>
    %187 = vector.broadcast %183 : vector<1x512xf32> to vector<96x512xf32>
    %188 = arith.addf %186, %187 : vector<96x512xf32>
    %cst_94 = arith.constant 0.000000e+00 : f32
    %189 = vector.broadcast %cst_94 : f32 to vector<96x512xf32>
    %190 = arith.maximumf %188, %189 : vector<96x512xf32>
    %191 = arith.truncf %190 : vector<96x512xf32> to vector<96x512xbf16>
    %c1_95 = arith.constant 1 : index
    %c1024_96 = arith.constant 1024 : index
    %c0_97 = arith.constant 0 : index
    %192 = vector.load %arg5[%c1_95, %c1024_96, %c0_97] : memref<2x2048x32xbf16, #tpu.memory_space<vmem>>, vector<1x512x32xbf16>
    %193 = vector.shape_cast %192 : vector<1x512x32xbf16> to vector<512x32xbf16>
    %cst_98 = arith.constant dense<0.000000e+00> : vector<96x32xf32>
    %194 = tpu.matmul %191, %193, %cst_98 {dimension_numbers = #tpu.dot_dimension_numbers<[1], [0], [0], [1], [0, 0, 1, 1], [], []>} : vector<96x512xbf16>, vector<512x32xbf16>, vector<96x32xf32> -> vector<96x32xf32>
    %195 = arith.addf %182, %194 : vector<96x32xf32>
    %c1_99 = arith.constant 1 : index
    %c1536_100 = arith.constant 1536 : index
    %196 = vector.load %arg4[%c1_99, %c1536_100] : memref<2x2048xf32, #tpu.memory_space<vmem>>, vector<1x512xf32>
    %c1_101 = arith.constant 1 : index
    %c0_102 = arith.constant 0 : index
    %c1536_103 = arith.constant 1536 : index
    %197 = vector.load %arg3[%c1_101, %c0_102, %c1536_103] : memref<2x32x2048xbf16, #tpu.memory_space<vmem>>, vector<1x32x512xbf16>
    %198 = vector.shape_cast %197 : vector<1x32x512xbf16> to vector<32x512xbf16>
    %cst_104 = arith.constant dense<0.000000e+00> : vector<96x512xf32>
    %199 = tpu.matmul %155, %198, %cst_104 {dimension_numbers = #tpu.dot_dimension_numbers<[1], [0], [0], [1], [0, 0, 1, 1], [], []>} : vector<96x32xbf16>, vector<32x512xbf16>, vector<96x512xf32> -> vector<96x512xf32>
    %200 = vector.broadcast %196 : vector<1x512xf32> to vector<96x512xf32>
    %201 = arith.addf %199, %200 : vector<96x512xf32>
    %cst_105 = arith.constant 0.000000e+00 : f32
    %202 = vector.broadcast %cst_105 : f32 to vector<96x512xf32>
    %203 = arith.maximumf %201, %202 : vector<96x512xf32>
    %204 = arith.truncf %203 : vector<96x512xf32> to vector<96x512xbf16>
    %c1_106 = arith.constant 1 : index
    %c1536_107 = arith.constant 1536 : index
    %c0_108 = arith.constant 0 : index
    %205 = vector.load %arg5[%c1_106, %c1536_107, %c0_108] : memref<2x2048x32xbf16, #tpu.memory_space<vmem>>, vector<1x512x32xbf16>
    %206 = vector.shape_cast %205 : vector<1x512x32xbf16> to vector<512x32xbf16>
    %cst_109 = arith.constant dense<0.000000e+00> : vector<96x32xf32>
    %207 = tpu.matmul %204, %206, %cst_109 {dimension_numbers = #tpu.dot_dimension_numbers<[1], [0], [0], [1], [0, 0, 1, 1], [], []>} : vector<96x512xbf16>, vector<512x32xbf16>, vector<96x32xf32> -> vector<96x32xf32>
    %208 = arith.addf %195, %207 : vector<96x32xf32>
    %209 = arith.addf %154, %208 : vector<96x32xf32>
    %210 = vector.broadcast %123 : vector<1x32xf32> to vector<96x32xf32>
    %211 = arith.addf %209, %210 : vector<96x32xf32>
    %cst_110 = arith.constant dense<0.000000e+00> : vector<96xf32>
    %212 = vector.multi_reduction <add>, %211, %cst_110 [1] : vector<96x32xf32> to vector<96xf32>
    %213 = vector.shape_cast %212 : vector<96xf32> to vector<96x1xf32>
    %cst_111 = arith.constant 3.200000e+01 : f32
    %214 = vector.broadcast %cst_111 : f32 to vector<96x1xf32>
    %215 = arith.divf %213, %214 : vector<96x1xf32>
    %216 = vector.broadcast %215 : vector<96x1xf32> to vector<96x32xf32>
    %217 = arith.subf %211, %216 : vector<96x32xf32>
    %218 = arith.mulf %217, %217 : vector<96x32xf32>
    %cst_112 = arith.constant dense<0.000000e+00> : vector<96xf32>
    %219 = vector.multi_reduction <add>, %218, %cst_112 [1] : vector<96x32xf32> to vector<96xf32>
    %220 = vector.shape_cast %219 : vector<96xf32> to vector<96x1xf32>
    %cst_113 = arith.constant 3.200000e+01 : f32
    %221 = vector.broadcast %cst_113 : f32 to vector<96x1xf32>
    %222 = arith.divf %220, %221 : vector<96x1xf32>
    %223 = vector.broadcast %215 : vector<96x1xf32> to vector<96x32xf32>
    %224 = arith.subf %211, %223 : vector<96x32xf32>
    %cst_114 = arith.constant 9.99999974E-6 : f32
    %225 = vector.broadcast %cst_114 : f32 to vector<96x1xf32>
    %226 = arith.addf %222, %225 : vector<96x1xf32>
    %227 = math.rsqrt %226 : vector<96x1xf32>
    %228 = vector.broadcast %227 : vector<96x1xf32> to vector<96x32xf32>
    %229 = arith.mulf %224, %228 : vector<96x32xf32>
    %230 = vector.broadcast %124 : vector<1x32xf32> to vector<96x32xf32>
    %231 = arith.mulf %229, %230 : vector<96x32xf32>
    %232 = vector.broadcast %125 : vector<1x32xf32> to vector<96x32xf32>
    %233 = arith.addf %231, %232 : vector<96x32xf32>
    %234 = vector.shape_cast %233 : vector<96x32xf32> to vector<12x8x32xf32>
    %cst_115 = arith.constant dense<0xFF800000> : vector<8x32xf32>
    %235 = vector.multi_reduction <maximumf>, %234, %cst_115 [0] : vector<12x8x32xf32> to vector<8x32xf32>
    %236 = vector.shape_cast %235 : vector<8x32xf32> to vector<1x8x32xf32>
    %237 = vector.broadcast %236 : vector<1x8x32xf32> to vector<12x8x32xf32>
    %238 = arith.subf %234, %237 : vector<12x8x32xf32>
    %239 = math.exp %238 : vector<12x8x32xf32>
    %cst_116 = arith.constant dense<0.000000e+00> : vector<8x32xf32>
    %240 = vector.multi_reduction <add>, %239, %cst_116 [0] : vector<12x8x32xf32> to vector<8x32xf32>
    %241 = math.log %240 : vector<8x32xf32>
    %242 = arith.addf %235, %241 : vector<8x32xf32>
    %c0_117 = arith.constant 0 : index
    %c0_118 = arith.constant 0 : index
    %243 = vector.load %arg6[%c0_117, %c0_118] : memref<8x32xf32, #tpu.memory_space<vmem>>, vector<8x32xf32>
    tpu.vector_store %arg6[%c0_117, %c0_118], %242 {strides = array<i32>} : memref<8x32xf32, #tpu.memory_space<vmem>>, vector<8x32xf32>,
    return
  }
  func.func @transform_0(%arg0: i32) -> (i32, i32, i32) {
    %c0_i32 = arith.constant 0 : i32
    %c0_i32_0 = arith.constant 0 : i32
    %c0_i32_1 = arith.constant 0 : i32
    return %c0_i32, %arg0, %c0_i32_0 : i32, i32, i32
  }
  func.func @transform_1(%arg0: i32) -> (i32, i32, i32) {
    %c0_i32 = arith.constant 0 : i32
    %c0_i32_0 = arith.constant 0 : i32
    %c0_i32_1 = arith.constant 0 : i32
    %c0_i32_2 = arith.constant 0 : i32
    return %c0_i32, %c0_i32_0, %c0_i32_1 : i32, i32, i32
  }
  func.func @transform_2(%arg0: i32) -> (i32, i32, i32) {
    %c0_i32 = arith.constant 0 : i32
    %c0_i32_0 = arith.constant 0 : i32
    %c0_i32_1 = arith.constant 0 : i32
    %c0_i32_2 = arith.constant 0 : i32
    return %c0_i32, %c0_i32_0, %c0_i32_1 : i32, i32, i32
  }
  func.func @transform_3(%arg0: i32) -> (i32, i32) {
    %c0_i32 = arith.constant 0 : i32
    %c0_i32_0 = arith.constant 0 : i32
    %c0_i32_1 = arith.constant 0 : i32
    return %c0_i32, %c0_i32_0 : i32, i32
  }
  func.func @transform_4(%arg0: i32) -> (i32, i32, i32) {
    %c0_i32 = arith.constant 0 : i32
    %c0_i32_0 = arith.constant 0 : i32
    %c0_i32_1 = arith.constant 0 : i32
    %c0_i32_2 = arith.constant 0 : i32
    return %c0_i32, %c0_i32_0, %c0_i32_1 : i32, i32, i32
  }
  func.func @transform_5(%arg0: i32) -> (i32, i32) {
    %c0_i32 = arith.constant 0 : i32
    %c0_i32_0 = arith.constant 0 : i32
    return %arg0, %c0_i32 : i32, i32
  }
}

</mosaic_0001>

<bundles_post_ra>
// kernel: tpu_custom_call.1
= control target key start
LH: loop header
LB: loop body
LE: loop exit
PB: predicated region body
PF: predicated region fallthrough
CT: control target
= control target key end

     0   :  { %vm51_vm0 = vcmask 261120   ;;  %s12630_s0 = inlined_call_operand.vmem [shape: f32[12,8,32], index: 0, kind: input, shape index: {}]   ;;  %s12631_s1 = inlined_call_operand.vmem [shape: f32[2,40,32], index: 1, kind: input, shape index: {}]   ;;  %s12632_s2 = inlined_call_operand.vmem [shape: bf16[2,32,2048], index: 2, kind: input, shape index: {}]   ;;  %s12633_s3 = inlined_call_operand.vmem [shape: f32[2,2048], index: 3, kind: input, shape index: {}]   ;;  %s12634_s4 = inlined_call_operand.vmem [shape: bf16[2,2048,32], index: 4, kind: input, shape index: {}]   ;;  %s12635_s5 = inlined_call_operand.hbm [shape: f32[8,32], index: 5, kind: output, shape index: {}]  }
   0x1   :  { %v37_v0 = vld [vmem:[%s12631_s1 + $0x18] sm:$0xff]  ;;  %v38_v1 = vld [vmem:[%s12631_s1 + $0x20] sm:$0xff]  ;;  %v35_v2 = vld [vmem:[%s12631_s1 + $0x8] sm:$0xff] }
   0x2   :  { %v46_v3 = vpack.c.bf16 %v38_v1, %v37_v0  ;;  %v36_v4 = vld [vmem:[%s12631_s1 + $0x10] sm:$0xff]  ;;  %v22_v5 = vld [vmem:[%s12630_s0] sm:$0xff]  ;;  %v23_v6 = vld [vmem:[%s12630_s0 + $0x8] sm:$0xff] }
   0x3   :  { %v45_v7 = vpack.c.bf16 %v36_v4, %v35_v2  ;;  %v39_v8 = vpack.c.bf16 %v23_v6, %v22_v5  ;;  %v24_v9 = vld [vmem:[%s12630_s0 + $0x10] sm:$0xff]  ;;  %v25_v10 = vld [vmem:[%s12630_s0 + $0x18] sm:$0xff]  ;;  %v26_v11 = vld [vmem:[%s12630_s0 + $0x20] sm:$0xff] }
   0x4   :  { %8850 = vmatprep.subr.bf16.mxu0 %v46_v3  ;;  %v27_v12 = vld [vmem:[%s12630_s0 + $0x28] sm:$0xff]  ;;  %v40_v13 = vpack.c.bf16 %v25_v10, %v24_v9  ;;  %v28_v15 = vld [vmem:[%s12630_s0 + $0x30] sm:$0xff]  ;;  %v29_v16 = vld [vmem:[%s12630_s0 + $0x38] sm:$0xff] }
   0x5   :  { %8851 = vmatpush3.bf16.msra.mxu0 %v46_v3  ;;  %8854 = vmatprep.mubr.msk.bf16.mxu0 %vm51_vm0, %v39_v8  ;;  %v41_v14 = vpack.c.bf16 %v27_v12, %v26_v11  ;;  %v30_v17 = vld [vmem:[%s12630_s0 + $0x40] sm:$0xff]  ;;  %v31_v18 = vld [vmem:[%s12630_s0 + $0x48] sm:$0xff]  ;;  %v42_v19 = vpack.c.bf16 %v29_v16, %v28_v15  ;;  %v32_v21 = vld [vmem:[%s12630_s0 + $0x50] sm:$0xff] }
   0x6   :  { %8852 = vmatprep.subr.bf16.mxu0 %v45_v7  ;;  %v43_v20 = vpack.c.bf16 %v31_v18, %v30_v17  ;;  %v33_v22 = vld [vmem:[%s12630_s0 + $0x58] sm:$0xff] }
   0x7   :  { %v44_v23 = vpack.c.bf16 %v33_v22, %v32_v21 }
   0x9   :  { %8853 = vmatpush3.bf16.msra.mxu0 %v45_v7 }
   0xc   :  { %8855 = vmatmul.mubr.msk.bf16.vlgmr.msra.gmra.mxu0 %vm51_vm0, %v40_v13 }
   0xd   :  { %8858 = vmatprep.mubr.msk.bf16.mxu0 %vm51_vm0, %v41_v14 }
  0x14   :  { %8859 = vmatmul.mubr.msk.bf16.gmra.mxu0 %vm51_vm0, %v42_v19 }
  0x15   :  { %8862 = vmatprep.mubr.msk.bf16.mxu0 %vm51_vm0, %v43_v20 }
  0x1c   :  { %8863 = vmatmul.mubr.msk.bf16.gmra.mxu0 %vm51_vm0, %v44_v23 }
  0x1d   :  { %10 = vsyncpa [#allocation3], 0  ;;  %v47_v24 = vlaneseq  ;;  %v9392_v27 = vld [vmem:[%s12631_s1] sm:$0xff]  ;;  %v9262_v33 = vld [vmem:[%s12630_s0 + $0x10] sm:$0xff] }
  0x1e   :  { %v9263_v38 = vld [vmem:[%s12630_s0] sm:$0xff]  ;;  %v9264_v43 = vld [vmem:[%s12630_s0 + $0x18] sm:$0xff]  ;;  %v9265_v48 = vld [vmem:[%s12630_s0 + $0x8] sm:$0xff] }
  0x1f   :  { %v9384_v25 = vshrl.u32 %v47_v24, 7  ;;  %v9266_v54 = vld [vmem:[%s12630_s0 + $0x20] sm:$0xff]  ;;  %v9267_v56 = vld [vmem:[%s12630_s0 + $0x30] sm:$0xff]  ;;  %v9268_v0 = vld [vmem:[%s12630_s0 + $0x28] sm:$0xff] }
  0x20   :  { %v9269_v6 = vld [vmem:[%s12630_s0 + $0x38] sm:$0xff]  ;;  %v9270_v10 = vld [vmem:[%s12630_s0 + $0x40] sm:$0xff]  ;;  %v9271_v12 = vld [vmem:[%s12630_s0 + $0x50] sm:$0xff] }
  0x21   :  { %12701 = vst [vmem:[#allocation5_spill] sm:$0xff] %v9384_v25  ;;  %v9387_v26 = vsub.s32 0, %v9384_v25  ;;  %v9272_v18 = vld [vmem:[%s12630_s0 + $0x48] sm:$0xff]  ;;  %v9273_v21 = vld [vmem:[%s12630_s0 + $0x58] sm:$0xff] }
  0x23   :  { %12702 = vst [vmem:[#allocation6_spill] sm:$0xff] %v9387_v26  ;;  %v50_v28 = vrot.slane %v9392_v27, %v9387_v26 }
  0xcc   :  { %v8856_v29 = vpop.f32.mrf.mxu0 }
  0xcd   :  { %v113_v30 = vadd.f32 %v8856_v29, %v50_v28 }
  0xce   :  { %v104_v31 = vpop.f32.mrf.mxu0 }
  0xcf   :  { %v105_v32 = vadd.f32 %v104_v31, %v50_v28  ;;  %v9399_v34 = vadd.f32 %v9262_v33, %v113_v30 }
  0xd0   :  { %v8857_v35 = vpop.f32.mrf.mxu0 }
  0xd1   :  { %v116_v36 = vadd.f32 %v8857_v35, %v50_v28  ;;  %v169_v37 = vsel %vm51_vm0, %v9399_v34, 0.0  ;;  %v9406_v39 = vadd.f32 %v9263_v38, %v105_v32 }
  0xd2   :  { %170 = vadd.xlane.f32.xlu1 %v169_v37  ;;  %v107_v40 = vpop.f32.mrf.mxu0 }
  0xd3   :  { %v108_v41 = vadd.f32 %v107_v40, %v50_v28  ;;  %v163_v42 = vsel %vm51_vm0, %v9406_v39, 0.0  ;;  %v9413_v44 = vadd.f32 %v9264_v43, %v116_v36 }
  0xd4   :  { %v8860_v45 = vpop.f32.mrf.mxu0  ;;  %164 = vadd.xlane.f32.xlu0 %v163_v42 }
  0xd5   :  { %v129_v46 = vadd.f32 %v8860_v45, %v50_v28  ;;  %v172_v47 = vsel %vm51_vm0, %v9413_v44, 0.0  ;;  %v152_v49 = vadd.f32 %v9265_v48, %v108_v41 }
  0xd6   :  { %173 = vadd.xlane.f32.xlu1 %v172_v47  ;;  %v120_v50 = vpop.f32.mrf.mxu0 }
  0xd7   :  { %v121_v51 = vadd.f32 %v120_v50, %v50_v28  ;;  %v166_v52 = vsel %vm51_vm0, %v152_v49, 0.0  ;;  %v9427_v57 = vadd.f32 %v9267_v56, %v129_v46 }
  0xd8   :  { %v8861_v53 = vpop.f32.mrf.mxu0  ;;  %167 = vadd.xlane.f32.xlu0 %v166_v52 }
  0xd9   :  { %v155_v55 = vadd.f32 %v9266_v54, %v121_v51  ;;  %v132_v59 = vadd.f32 %v8861_v53, %v50_v28  ;;  %v181_v2 = vsel %vm51_vm0, %v9427_v57, 0.0 }
  0xda   :  { %v123_v58 = vpop.f32.mrf.mxu0 }
  0xdb   :  { %v124_v60 = vadd.f32 %v123_v58, %v50_v28  ;;  %v175_v61 = vsel %vm51_vm0, %v155_v55, 0.0  ;;  %v9439_v7 = vadd.f32 %v9269_v6, %v132_v59 }
  0xdc   :  { %v8864_v62 = vpop.f32.mrf.mxu0  ;;  %176 = vadd.xlane.f32.xlu0 %v175_v61 }
  0xdd   :  { %v145_v63 = vadd.f32 %v8864_v62, %v50_v28  ;;  %v156_v1 = vadd.f32 %v9268_v0, %v124_v60  ;;  %v184_v16 = vsel %vm51_vm0, %v9439_v7, 0.0 }
  0xde   :  { %v136_v3 = vpop.f32.mrf.mxu0 }
  0xdf   :  { %v137_v4 = vadd.f32 %v136_v3, %v50_v28  ;;  %v178_v5 = vsel %vm51_vm0, %v156_v1, 0.0  ;;  %v9447_v13 = vadd.f32 %v9271_v12, %v145_v63 }
  0xe0   :  { %v8865_v8 = vpop.f32.mrf.mxu0  ;;  %179 = vadd.xlane.f32.xlu1 %v178_v5  ;;  %182 = vadd.xlane.f32.xlu0 %v181_v2 }
  0xe1   :  { %v148_v9 = vadd.f32 %v8865_v8, %v50_v28  ;;  %v159_v11 = vadd.f32 %v9270_v10, %v137_v4  ;;  %v193_v20 = vsel %vm51_vm0, %v9447_v13, 0.0 }
  0xe2   :  { %v139_v14 = vpop.f32.mrf.mxu0 }
  0xe3   :  { %v140_v15 = vadd.f32 %v139_v14, %v50_v28  ;;  %v187_v17 = vsel %vm51_vm0, %v159_v11, 0.0  ;;  %v9462_v22 = vadd.f32 %v9273_v21, %v148_v9 }
  0xe4   :  { %185 = vadd.xlane.f32.xlu1 %v184_v16  ;;  %188 = vadd.xlane.f32.xlu0 %v187_v17 }
  0xe5   :  { %v9455_v19 = vadd.f32 %v9272_v18, %v140_v15  ;;  %v196_v24 = vsel %vm51_vm0, %v9462_v22, 0.0 }
  0xe7   :  { %v190_v23 = vsel %vm51_vm0, %v9455_v19, 0.0 }
  0xe8   :  { %191 = vadd.xlane.f32.xlu1 %v190_v23  ;;  %194 = vadd.xlane.f32.xlu0 %v193_v20 }
  0xec   :  { %197 = vadd.xlane.f32.xlu1 %v196_v24 }
 0x15b   :  { %v171_v28 = vpop.xlane.xlu1 %170 }
 0x15c   :  { %v202_v29 = vmul.f32 0.03125, %v171_v28  ;;  %v364_v28 = vld [vmem:[%s12632_s2 + $0x88] sm:$0xff] }
 0x15d   :  { %v165_v30 = vpop.xlane.xlu0 %164 }
 0x15e   :  { %v200_v31 = vmul.f32 0.03125, %v165_v30  ;;  %v9469_v33 = vsub.f32 %v9399_v34, %v202_v29  ;;  %v363_v29 = vld [vmem:[%s12632_s2 + $0x80] sm:$0xff] }
 0x15f   :  { %v174_v32 = vpop.xlane.xlu1 %173 }
 0x160   :  { %v9472_v35 = vsub.f32 %v9406_v39, %v200_v31  ;;  %v203_v36 = vmul.f32 0.03125, %v174_v32  ;;  %v226_v34 = vmul.f32 %v9469_v33, %v9469_v33  ;;  %v365_v31 = vld [vmem:[%s12632_s2 + $0xc0] sm:$0xff] }
 0x161   :  { %v168_v37 = vpop.xlane.xlu0 %167 }
 0x162   :  { %v201_v38 = vmul.f32 0.03125, %v168_v37  ;;  %v224_v40 = vmul.f32 %v9472_v35, %v9472_v35  ;;  %v9477_v41 = vsub.f32 %v9413_v44, %v203_v36  ;;  %v242_v48 = vsel %vm51_vm0, %v226_v34, 0.0 }
 0x163   :  { %v7285_v36 = vcombine.high %v363_v29, %v365_v31  ;;  %v7284_v37 = vcombine.low %v363_v29, %v365_v31 }
 0x164   :  { %v9479_v42 = vsub.f32 %v152_v49, %v201_v38  ;;  %v236_v43 = vsel %vm51_vm0, %v224_v40, 0.0  ;;  %v227_v49 = vmul.f32 %v9477_v41, %v9477_v41  ;;  %v360_v38 = vld [vmem:[%s12632_s2 + $0x8] sm:$0xff] }
 0x165   :  { %237 = vadd.xlane.f32.xlu0 %v236_v43  ;;  %v177_v45 = vpop.xlane.xlu0 %176  ;;  %v362_v40 = vld [vmem:[%s12632_s2 + $0x48] sm:$0xff]  ;;  %458 = vmatprep.subr.bf16.mxu1 %v7285_v36  ;;  %v359_v43 = vld [vmem:[%s12632_s2] sm:$0xff] }
 0x166   :  { %v204_v39 = vmul.f32 0.03125, %v177_v45  ;;  %v225_v46 = vmul.f32 %v9479_v42, %v9479_v42  ;;  %v245_v58 = vsel %vm51_vm0, %v227_v49, 0.0  ;;  %v7283_v34 = vcombine.high %v360_v38, %v362_v40  ;;  %459 = vmatpush1.bf16.msra.mxu1 %v7284_v37  ;;  %v361_v45 = vld [vmem:[%s12632_s2 + $0x40] sm:$0xff]  ;;  %v9565_v49 = vld [vmem:[%s12632_s2 + $0x90] sm:$0xff] }
 0x168   :  { %v9486_v47 = vsub.f32 %v155_v55, %v204_v39  ;;  %v239_v44 = vsel %vm51_vm0, %v225_v46, 0.0  ;;  %v7282_v39 = vcombine.low %v360_v38, %v362_v40  ;;  %v7281_v46 = vcombine.high %v359_v43, %v361_v45 }
 0x169   :  { %v180_v50 = vpop.xlane.xlu1 %179  ;;  %243 = vadd.xlane.f32.xlu0 %v242_v48  ;;  %240 = vadd.xlane.f32.xlu1 %v239_v44  ;;  %v183_v51 = vpop.xlane.xlu0 %182  ;;  %v7280_v48 = vcombine.low %v359_v43, %v361_v45  ;;  %v12636_v44 = vmov 0  }
 0x16a   :  { %v205_v52 = vmul.f32 0.03125, %v180_v50  ;;  %v206_v53 = vmul.f32 0.03125, %v183_v51  ;;  %v228_v54 = vmul.f32 %v9486_v47, %v9486_v47  ;;  %460 = vmatprep.subr.bf16.mxu1 %v7281_v46  ;;  %478 = vmatprep.mubr.bf16.mxu1 %v12636_v44  ;;  %v9570_v50 = vld [vmem:[%s12632_s2 + $0xd0] sm:$0xff]  ;;  %v9575_v51 = vld [vmem:[%s12632_s2 + $0x98] sm:$0xff] }
 0x16b   :  { %461 = vmatpush1.bf16.msra.mxu1 %v7280_v48  ;;  %571 = vmatprep.mubr.bf16.mxu0 %v12636_v44  ;;  %v770_v48 = vld [vmem:[%s12632_s2 + $0x10] sm:$0xff] }
 0x16c   :  { %v9494_v56 = vsub.f32 %v156_v1, %v205_v52  ;;  %v9497_v55 = vsub.f32 %v9427_v57, %v206_v53  ;;  %v248_v59 = vsel %vm51_vm0, %v228_v54, 0.0  ;;  %v7305_v52 = vcombine.low %v9565_v49, %v9570_v50  ;;  %v9584_v54 = vld [vmem:[%s12632_s2 + $0xd8] sm:$0xff] }
 0x16d   :  { %v186_v60 = vpop.xlane.xlu1 %185  ;;  %246 = vadd.xlane.f32.xlu1 %v245_v58  ;;  %249 = vadd.xlane.f32.xlu0 %v248_v59  ;;  %v189_v61 = vpop.xlane.xlu0 %188  ;;  %v7306_v53 = vcombine.high %v9565_v49, %v9570_v50  ;;  %v7307_v58 = vcombine.low %v9575_v51, %v9584_v54  ;;  %v7308_v59 = vcombine.high %v9575_v51, %v9584_v54 }
 0x16e   :  { %v207_v62 = vmul.f32 0.03125, %v186_v60  ;;  %v208_v63 = vmul.f32 0.03125, %v189_v61  ;;  %v229_v0 = vmul.f32 %v9494_v56, %v9494_v56  ;;  %v230_v1 = vmul.f32 %v9497_v55, %v9497_v55 }
 0x16f   :  { %851 = vmatprep.subr.bf16.mxu1 %v7306_v53 }
 0x170   :  { %v9506_v2 = vsub.f32 %v9439_v7, %v207_v62  ;;  %v9508_v57 = vsub.f32 %v159_v11, %v208_v63  ;;  %v251_v3 = vsel %vm51_vm0, %v229_v0, 0.0  ;;  %v254_v4 = vsel %vm51_vm0, %v230_v1, 0.0 }
 0x171   :  { %v192_v5 = vpop.xlane.xlu1 %191  ;;  %252 = vadd.xlane.f32.xlu1 %v251_v3  ;;  %255 = vadd.xlane.f32.xlu0 %v254_v4  ;;  %v195_v6 = vpop.xlane.xlu0 %194 }
 0x172   :  { %v209_v8 = vmul.f32 0.03125, %v192_v5  ;;  %v210_v9 = vmul.f32 0.03125, %v195_v6  ;;  %v231_v10 = vmul.f32 %v9506_v2, %v9506_v2  ;;  %v232_v12 = vmul.f32 %v9508_v57, %v9508_v57 }
 0x174   :  { %v9517_v7 = vsub.f32 %v9455_v19, %v209_v8  ;;  %v9520_v11 = vsub.f32 %v9447_v13, %v210_v9  ;;  %v257_v14 = vsel %vm51_vm0, %v231_v10, 0.0  ;;  %v260_v15 = vsel %vm51_vm0, %v232_v12, 0.0 }
 0x175   :  { %v198_v16 = vpop.xlane.xlu1 %197  ;;  %258 = vadd.xlane.f32.xlu1 %v257_v14  ;;  %261 = vadd.xlane.f32.xlu0 %v260_v15 }
 0x176   :  { %v211_v17 = vmul.f32 0.03125, %v198_v16  ;;  %v233_v18 = vmul.f32 %v9517_v7, %v9517_v7  ;;  %v234_v20 = vmul.f32 %v9520_v11, %v9520_v11  ;;  %v9591_v16 = vsub.s32 1, %v9384_v25 }
 0x178   :  { %v9529_v19 = vsub.f32 %v9462_v22, %v211_v17  ;;  %v263_v13 = vsel %vm51_vm0, %v233_v18, 0.0  ;;  %v266_v21 = vsel %vm51_vm0, %v234_v20, 0.0  ;;  %v366_v22 = vld [vmem:[%s12632_s2 + $0xc8] sm:$0xff]  ;;  %12703 = vst [vmem:[#allocation7_spill] sm:$0xff] %v9591_v16 }
 0x179   :  { %264 = vadd.xlane.f32.xlu1 %v263_v13  ;;  %267 = vadd.xlane.f32.xlu0 %v266_v21  ;;  %v7287_v30 = vcombine.high %v364_v28, %v366_v22  ;;  %v7286_v32 = vcombine.low %v364_v28, %v366_v22  ;;  %v9595_v28 = vrot.slane %v9392_v27, %v9591_v16  ;;  %v9598_v22 = vsub.s32 2, %v9384_v25 }
 0x17a   :  { %v235_v23 = vmul.f32 %v9529_v19, %v9529_v19 }
 0x17b   :  { %551 = vmatprep.subr.bf16.mxu0 %v7287_v30  ;;  %12704 = vst [vmem:[#allocation8_spill] sm:$0xff] %v9598_v22  ;;  %v9603_v37 = vrot.slane %v9392_v27, %v9598_v22 }
 0x17c   :  { %v269_v24 = vsel %vm51_vm0, %v235_v23, 0.0  ;;  %552 = vmatpush1.bf16.msra.mxu0 %v7286_v32 }
 0x17d   :  { %270 = vadd.xlane.f32.xlu1 %v269_v24  ;;  %553 = vmatprep.subr.bf16.mxu0 %v7283_v34 }
 0x180   :  { %554 = vmatpush1.bf16.msra.mxu0 %v7282_v39 }
 0x181   :  { %944 = vmatprep.subr.bf16.mxu0 %v7308_v59 }
 0x1ee   :  { %v238_v60 = vpop.xlane.xlu0 %237 }
 0x1ef   :  { %v272_v61 = vmul.f32 0.03125, %v238_v60  ;;  %v772_v60 = vld [vmem:[%s12632_s2 + $0x50] sm:$0xff] }
 0x1f1   :  { %v284_v62 = vadd.f32 1e-05, %v272_v61  ;;  %v771_v61 = vld [vmem:[%s12632_s2 + $0x18] sm:$0xff] }
 0x1f2   :  { %v241_v63 = vpop.xlane.xlu1 %240  ;;  %v244_v0 = vpop.xlane.xlu0 %243 }
 0x1f3   :  { %9140 = vrsqrt.f32 %v284_v62  ;;  %v273_v1 = vmul.f32 0.03125, %v241_v63  ;;  %v274_v3 = vmul.f32 0.03125, %v244_v0  ;;  %v773_v62 = vld [vmem:[%s12632_s2 + $0x58] sm:$0xff] }
 0x1f5   :  { %v285_v4 = vadd.f32 1e-05, %v273_v1  ;;  %v286_v5 = vadd.f32 1e-05, %v274_v3  ;;  %v7302_v3 = vcombine.high %v770_v48, %v772_v60 }
 0x1f6   :  { %v247_v6 = vpop.xlane.xlu1 %246  ;;  %v250_v8 = vpop.xlane.xlu0 %249 }
 0x1f7   :  { %9142 = vrsqrt.f32 %v285_v4  ;;  %v275_v9 = vmul.f32 0.03125, %v247_v6  ;;  %v276_v12 = vmul.f32 0.03125, %v250_v8  ;;  %v7304_v4 = vcombine.high %v771_v61, %v773_v62 }
 0x1f8   :  { %9144 = vrsqrt.f32 %v286_v5 }
 0x1f9   :  { %v287_v10 = vadd.f32 1e-05, %v275_v9  ;;  %v288_v17 = vadd.f32 1e-05, %v276_v12  ;;  %v7303_v12 = vcombine.low %v771_v61, %v773_v62  ;;  %v8886_v62 = vld [vmem:[%s12634_s4 + $0x138] sm:$0xff]  }
 0x1fa   :  { %v253_v14 = vpop.xlane.xlu1 %252  ;;  %v256_v20 = vpop.xlane.xlu0 %255 }
 0x1fb   :  { %9146 = vrsqrt.f32 %v287_v10  ;;  %v277_v15 = vmul.f32 0.03125, %v253_v14  ;;  %v278_v24 = vmul.f32 0.03125, %v256_v20  ;;  %v7301_v10 = vcombine.low %v770_v48, %v772_v60 }
 0x1fd   :  { %v289_v18 = vadd.f32 1e-05, %v277_v15  ;;  %v290_v32 = vadd.f32 1e-05, %v278_v24 }
 0x1fe   :  { %v259_v13 = vpop.xlane.xlu1 %258  ;;  %v262_v43 = vpop.xlane.xlu0 %261 }
 0x1ff   :  { %9148 = vrsqrt.f32 %v289_v18  ;;  %v279_v21 = vmul.f32 0.03125, %v259_v13  ;;  %v280_v46 = vmul.f32 0.03125, %v262_v43 }
 0x200   :  { %v9141_v23 = vpop.eup %9140  ;;  %9150 = vrsqrt.f32 %v288_v17 }
 0x201   :  { %v308_v29 = vmul.f32 %v9141_v23, %v9472_v35  ;;  %v291_v30 = vadd.f32 1e-05, %v279_v21  ;;  %v292_v6 = vadd.f32 1e-05, %v280_v46 }
 0x202   :  { %v265_v36 = vpop.xlane.xlu1 %264  ;;  %v268_v9 = vpop.xlane.xlu0 %267 }
 0x203   :  { %v324_v38 = vmul.f32 %v9595_v28, %v308_v29  ;;  %9152 = vrsqrt.f32 %v291_v30  ;;  %v281_v39 = vmul.f32 0.03125, %v265_v36  ;;  %v282_v51 = vmul.f32 0.03125, %v268_v9  ;;  %v8896_v9 = vld [vmem:[%s12634_s4 + $0x160] sm:$0xff]  }
 0x204   :  { %v9143_v31 = vpop.eup %9142  ;;  %9154 = vrsqrt.f32 %v290_v32 }
 0x205   :  { %v309_v40 = vmul.f32 %v9143_v31, %v9479_v42  ;;  %v9145_v34 = vpop.eup %9144  ;;  %v9612_v27 = vadd.f32 %v9603_v37, %v324_v38  ;;  %v293_v0 = vadd.f32 1e-05, %v281_v39  ;;  %v294_v13 = vadd.f32 1e-05, %v282_v51  ;;  %v8902_v51 = vld [vmem:[%s12634_s4 + $0x118] sm:$0xff]  }
 0x206   :  { %v310_v42 = vmul.f32 %v9145_v34, %v9469_v33  ;;  %v271_v1 = vpop.xlane.xlu1 %270 }
 0x207   :  { %v325_v45 = vmul.f32 %v9595_v28, %v309_v40  ;;  %12705 = vst [vmem:[#allocation9_spill] sm:$0xff] %v9612_v27  ;;  %9156 = vrsqrt.f32 %v293_v0  ;;  %v283_v17 = vmul.f32 0.03125, %v271_v1  ;;  %v8888_v0 = vld [vmem:[%s12634_s4 + $0x170] sm:$0xff]  }
 0x208   :  { %v9147_v35 = vpop.eup %9146  ;;  %v326_v5 = vmul.f32 %v9595_v28, %v310_v42  ;;  %9158 = vrsqrt.f32 %v292_v6  ;;  %v8890_v1 = vld [vmem:[%s12634_s4 + $0x130] sm:$0xff]   ;;  %v8894_v6 = vld [vmem:[%s12634_s4 + $0x128] sm:$0xff]  }
 0x209   :  { %v9615_v53 = vadd.f32 %v9603_v37, %v325_v45  ;;  %v311_v59 = vmul.f32 %v9147_v35, %v9477_v41  ;;  %v295_v54 = vadd.f32 1e-05, %v283_v17  ;;  %v8900_v17 = vld [vmem:[%s12634_s4 + $0x158] sm:$0xff]  }
 0x20a   :  { %v9651_v49 = vadd.f32 %v9603_v37, %v326_v5  ;;  %v8893_v5 = vld [vmem:[%s12634_s4 + $0x1e8] sm:$0xff]  }
 0x20b   :  { %12706 = vst [vmem:[#allocation10_spill] sm:$0xff] %v9615_v53  ;;  %v9630_v63 = vpack.c.bf16 %v9615_v53, %v9612_v27  ;;  %v327_v33 = vmul.f32 %v9595_v28, %v311_v59  ;;  %9160 = vrsqrt.f32 %v295_v54  ;;  %v8904_v54 = vld [vmem:[%s12634_s4 + $0x150] sm:$0xff]  }
 0x20c   :  { %v9149_v41 = vpop.eup %9148  ;;  %12709 = vst [vmem:[#allocation13_spill] sm:$0xff] %v9651_v49  ;;  %9162 = vrsqrt.f32 %v294_v13  ;;  %v8908_v13 = vld [vmem:[%s12634_s4 + $0x148] sm:$0xff]  }
 0x20d   :  { %12707 = vst [vmem:[#allocation11_spill] sm:$0xff] %v9630_v63  ;;  %7288 = vmatmul.mubr.msk.bf16.vlgmr.msra.gmra.mxu1 %vm51_vm0, %v9630_v63  ;;  %7294 = vmatmul.mubr.msk.bf16.vlgmr.msra.gmra.mxu0 %vm51_vm0, %v9630_v63  ;;  %v9151_v8 = vpop.eup %9150  ;;  %v9645_v14 = vadd.f32 %v9603_v37, %v327_v33  ;;  %v313_v15 = vmul.f32 %v9149_v41, %v9494_v56  ;;  %v8887_v33 = vld [vmem:[%s12634_s4 + $0x1b8] sm:$0xff]   ;;  %v8889_v41 = vld [vmem:[%s12634_s4 + $0x1f0] sm:$0xff]  }
 0x20e   :  { %852 = vmatpush1.bf16.msra.mxu1 %v7305_v52  ;;  %945 = vmatpush1.bf16.msra.mxu0 %v7307_v58  ;;  %v312_v50 = vmul.f32 %v9151_v8, %v9486_v47  ;;  %v8895_v8 = vld [vmem:[%s12634_s4 + $0x1a8] sm:$0xff]  }
 0x20f   :  { %12708 = vst [vmem:[#allocation12_spill] sm:$0xff] %v9645_v14  ;;  %488 = vmatprep.mubr.bf16.mxu1 %v12636_v44  ;;  %581 = vmatprep.mubr.bf16.mxu0 %v12636_v44  ;;  %v9656_v56 = vpack.c.bf16 %v9645_v14, %v9651_v49  ;;  %v329_v52 = vmul.f32 %v9595_v28, %v313_v15  ;;  %v8899_v15 = vld [vmem:[%s12634_s4 + $0x1a0] sm:$0xff]  }
 0x210   :  { %853 = vmatprep.subr.bf16.mxu1 %v7302_v3  ;;  %946 = vmatprep.subr.bf16.mxu0 %v7304_v4  ;;  %v9153_v58 = vpop.eup %9152  ;;  %v328_v20 = vmul.f32 %v9595_v28, %v312_v50  ;;  %v8891_v3 = vld [vmem:[%s12634_s4 + $0x1b0] sm:$0xff]   ;;  %v8892_v4 = vld [vmem:[%s12634_s4 + $0x168] sm:$0xff]   ;;  %v8901_v50 = vld [vmem:[%s12634_s4 + $0x1d8] sm:$0xff]  }
 0x211   :  { %12710 = vst [vmem:[#allocation14_spill] sm:$0xff] %v9656_v56  ;;  %v9155_v18 = vpop.eup %9154  ;;  %v9667_v47 = vadd.f32 %v9603_v37, %v329_v52  ;;  %v315_v21 = vmul.f32 %v9153_v58, %v9506_v2  ;;  %v8903_v52 = vld [vmem:[%s12634_s4 + $0x198] sm:$0xff]   ;;  %v8905_v58 = vld [vmem:[%s12634_s4 + $0x1d0] sm:$0xff]  }
 0x212   :  { %854 = vmatpush1.bf16.msra.mxu1 %v7301_v10  ;;  %947 = vmatpush1.bf16.msra.mxu0 %v7303_v12  ;;  %v9671_v23 = vadd.f32 %v9603_v37, %v328_v20  ;;  %v314_v24 = vmul.f32 %v9155_v18, %v9497_v55  ;;  %v8897_v10 = vld [vmem:[%s12634_s4 + $0x1e0] sm:$0xff]   ;;  %v8906_v18 = vld [vmem:[%s12634_s4 + $0x110] sm:$0xff]  }
 0x213   :  { %12711 = vst [vmem:[#allocation15_spill] sm:$0xff] %v9667_v47  ;;  %v331_v30 = vmul.f32 %v9595_v28, %v315_v21  ;;  %v8898_v12 = vld [vmem:[%s12634_s4 + $0x120] sm:$0xff]   ;;  %v8907_v20 = vld [vmem:[%s12634_s4 + $0x190] sm:$0xff]   ;;  %v8909_v21 = vld [vmem:[%s12634_s4 + $0x1c8] sm:$0xff]  }
 0x214   :  { %12712 = vst [vmem:[#allocation16_spill] sm:$0xff] %v9671_v23  ;;  %v9676_v29 = vpack.c.bf16 %v9667_v47, %v9671_v23  ;;  %v9157_v31 = vpop.eup %9156  ;;  %v330_v32 = vmul.f32 %v9595_v28, %v314_v24  ;;  %v8910_v24 = vld [vmem:[%s12634_s4 + $0x108] sm:$0xff]  }
 0x215   :  { %7289 = vmatmul.mubr.msk.bf16.gmra.mxu1 %vm51_vm0, %v9656_v56  ;;  %7295 = vmatmul.mubr.msk.bf16.gmra.mxu0 %vm51_vm0, %v9656_v56  ;;  %v9159_v2 = vpop.eup %9158  ;;  %v9687_v55 = vadd.f32 %v9603_v37, %v331_v30  ;;  %v317_v36 = vmul.f32 %v9157_v31, %v9517_v7  ;;  %v8911_v30 = vld [vmem:[%s12634_s4 + $0x188] sm:$0xff]   ;;  %v8912_v31 = vld [vmem:[%s12634_s4 + $0x140] sm:$0xff]  }
 0x216   :  { %498 = vmatprep.mubr.bf16.mxu1 %v12636_v44  ;;  %591 = vmatprep.mubr.bf16.mxu0 %v12636_v44  ;;  %12713 = vst [vmem:[#allocation17_spill] sm:$0xff] %v9676_v29  ;;  %v9691_v38 = vadd.f32 %v9603_v37, %v330_v32  ;;  %v316_v40 = vmul.f32 %v9159_v2, %v9508_v57  ;;  %v8913_v32 = vld [vmem:[%s12634_s4 + $0x1c0] sm:$0xff]  }
 0x217   :  { %12714 = vst [vmem:[#allocation18_spill] sm:$0xff] %v9687_v55  ;;  %v333_v34 = vmul.f32 %v9595_v28, %v317_v36  ;;  %v8914_v2 = vld [vmem:[%s12634_s4 + $0x100] sm:$0xff]  }
 0x218   :  { %12715 = vst [vmem:[#allocation19_spill] sm:$0xff] %v9691_v38  ;;  %v9696_v43 = vpack.c.bf16 %v9687_v55, %v9691_v38  ;;  %v9161_v45 = vpop.eup %9160  ;;  %v332_v39 = vmul.f32 %v9595_v28, %v316_v40  ;;  %v8915_v36 = vld [vmem:[%s12634_s4 + $0x180] sm:$0xff]   ;;  %v8916_v40 = vld [vmem:[%s12634_s4 + $0x78] sm:$0xff]  }
 0x219   :  { %v9163_v7 = vpop.eup %9162  ;;  %v9707_v57 = vadd.f32 %v9603_v37, %v333_v34  ;;  %v319_v35 = vmul.f32 %v9161_v45, %v9529_v19  ;;  %v8917_v34 = vld [vmem:[%s12634_s4 + $0xf8] sm:$0xff]   ;;  %v9881_v45 = vld [vmem:[%s12633_s3] ss:$2 sm:$0xf] }
 0x21a   :  { %12716 = vst [vmem:[#allocation20_spill] sm:$0xff] %v9696_v43  ;;  %v9711_v46 = vadd.f32 %v9603_v37, %v332_v39  ;;  %v318_v48 = vmul.f32 %v9163_v7, %v9520_v11  ;;  %v9885_v39 = vrot.slane %v9881_v45, %v9387_v26  ;;  %v9889_v7 = vrot.slane %v9881_v45, %v9598_v22 }
 0x21b   :  { %12717 = vst [vmem:[#allocation21_spill] sm:$0xff] %v9707_v57  ;;  %v335_v59 = vmul.f32 %v9595_v28, %v319_v35 }
 0x21c   :  { %12718 = vst [vmem:[#allocation22_spill] sm:$0xff] %v9711_v46  ;;  %v9716_v42 = vpack.c.bf16 %v9707_v57, %v9711_v46  ;;  %v334_v60 = vmul.f32 %v9595_v28, %v318_v48  ;;  %v8884_v28 = vld [vmem:[%s12634_s4 + $0x178] sm:$0xff]  }
 0x21d   :  { %7290 = vmatmul.mubr.msk.bf16.gmra.mxu1 %vm51_vm0, %v9676_v29  ;;  %7296 = vmatmul.mubr.msk.bf16.gmra.mxu0 %vm51_vm0, %v9676_v29  ;;  %v9727_v11 = vadd.f32 %v9603_v37, %v335_v59 }
 0x21e   :  { %508 = vmatprep.mubr.bf16.mxu1 %v12636_v44  ;;  %601 = vmatprep.mubr.bf16.mxu0 %v12636_v44  ;;  %12719 = vst [vmem:[#allocation23_spill] sm:$0xff] %v9716_v42  ;;  %v9730_v19 = vadd.f32 %v9603_v37, %v334_v60  ;;  %v8885_v37 = vld [vmem:[%s12634_s4 + $0x1f8] sm:$0xff]  }
 0x21f   :  { %12720 = vst [vmem:[#allocation24_spill] sm:$0xff] %v9727_v11  ;;  %8010 = vmatprep.subr.bf16.mxu1 %v8884_v28  ;;  %8062 = vmatprep.subr.bf16.mxu0 %v8885_v37 }
 0x220   :  { %12721 = vst [vmem:[#allocation25_spill] sm:$0xff] %v9730_v19  ;;  %v9734_v61 = vpack.c.bf16 %v9727_v11, %v9730_v19 }
 0x222   :  { %12722 = vst [vmem:[#allocation26_spill] sm:$0xff] %v9734_v61 }
 0x225   :  { %7291 = vmatmul.mubr.msk.bf16.gmra.mxu1 %vm51_vm0, %v9696_v43  ;;  %7297 = vmatmul.mubr.msk.bf16.gmra.mxu0 %vm51_vm0, %v9696_v43 }
 0x226   :  { %518 = vmatprep.mubr.bf16.mxu1 %v12636_v44  ;;  %611 = vmatprep.mubr.bf16.mxu0 %v12636_v44 }
 0x22d   :  { %7292 = vmatmul.mubr.msk.bf16.gmra.mxu1 %vm51_vm0, %v9716_v42  ;;  %7298 = vmatmul.mubr.msk.bf16.gmra.mxu0 %vm51_vm0, %v9716_v42 }
 0x22e   :  { %528 = vmatprep.mubr.bf16.mxu1 %v12636_v44  ;;  %621 = vmatprep.mubr.bf16.mxu0 %v12636_v44 }
 0x235   :  { %7293 = vmatmul.mubr.msk.bf16.gmra.mxu1 %vm51_vm0, %v9734_v61  ;;  %7299 = vmatmul.mubr.msk.bf16.gmra.mxu0 %vm51_vm0, %v9734_v61 }
 0x236   :  { %871 = vmatprep.mubr.bf16.mxu1 %v12636_v44  ;;  %964 = vmatprep.mubr.bf16.mxu0 %v12636_v44 }
 0x23d   :  { %7309 = vmatmul.mubr.msk.bf16.vlgmr.msra.gmra.mxu1 %vm51_vm0, %v9630_v63  ;;  %7315 = vmatmul.mubr.msk.bf16.vlgmr.msra.gmra.mxu0 %vm51_vm0, %v9630_v63 }
 0x23e   :  { %881 = vmatprep.mubr.bf16.mxu1 %v12636_v44  ;;  %974 = vmatprep.mubr.bf16.mxu0 %v12636_v44 }
 0x23f   :  { %8011 = vmatpush3.bf16.msra.mxu1 %v8886_v62  ;;  %8063 = vmatpush3.bf16.msra.mxu0 %v8887_v33 }
 0x240   :  { %8012 = vmatprep.subr.bf16.mxu1 %v8888_v0  ;;  %8064 = vmatprep.subr.bf16.mxu0 %v8889_v41 }
 0x243   :  { %8013 = vmatpush3.bf16.msra.mxu1 %v8890_v1  ;;  %8065 = vmatpush3.bf16.msra.mxu0 %v8891_v3 }
 0x244   :  { %8014 = vmatprep.subr.bf16.mxu1 %v8892_v4  ;;  %8066 = vmatprep.subr.bf16.mxu0 %v8893_v5 }
 0x245   :  { %7310 = vmatmul.mubr.msk.bf16.gmra.mxu1 %vm51_vm0, %v9656_v56  ;;  %7316 = vmatmul.mubr.msk.bf16.gmra.mxu0 %vm51_vm0, %v9656_v56 }
 0x246   :  { %891 = vmatprep.mubr.bf16.mxu1 %v12636_v44  ;;  %984 = vmatprep.mubr.bf16.mxu0 %v12636_v44 }
 0x247   :  { %8015 = vmatpush3.bf16.msra.mxu1 %v8894_v6  ;;  %8067 = vmatpush3.bf16.msra.mxu0 %v8895_v8 }
 0x248   :  { %8016 = vmatprep.subr.bf16.mxu1 %v8896_v9  ;;  %8068 = vmatprep.subr.bf16.mxu0 %v8897_v10 }
 0x24b   :  { %8017 = vmatpush3.bf16.msra.mxu1 %v8898_v12  ;;  %8069 = vmatpush3.bf16.msra.mxu0 %v8899_v15 }
 0x24c   :  { %8018 = vmatprep.subr.bf16.mxu1 %v8900_v17  ;;  %8070 = vmatprep.subr.bf16.mxu0 %v8901_v50 }
 0x24d   :  { %7311 = vmatmul.mubr.msk.bf16.gmra.mxu1 %vm51_vm0, %v9676_v29  ;;  %7317 = vmatmul.mubr.msk.bf16.gmra.mxu0 %vm51_vm0, %v9676_v29 }
 0x24e   :  { %901 = vmatprep.mubr.bf16.mxu1 %v12636_v44  ;;  %994 = vmatprep.mubr.bf16.mxu0 %v12636_v44 }
 0x24f   :  { %8019 = vmatpush3.bf16.msra.mxu1 %v8902_v51  ;;  %8071 = vmatpush3.bf16.msra.mxu0 %v8903_v52 }
 0x250   :  { %8020 = vmatprep.subr.bf16.mxu1 %v8904_v54  ;;  %8072 = vmatprep.subr.bf16.mxu0 %v8905_v58 }
 0x253   :  { %8021 = vmatpush3.bf16.msra.mxu1 %v8906_v18  ;;  %8073 = vmatpush3.bf16.msra.mxu0 %v8907_v20 }
 0x254   :  { %8022 = vmatprep.subr.bf16.mxu1 %v8908_v13  ;;  %8074 = vmatprep.subr.bf16.mxu0 %v8909_v21 }
 0x255   :  { %7312 = vmatmul.mubr.msk.bf16.gmra.mxu1 %vm51_vm0, %v9696_v43  ;;  %7318 = vmatmul.mubr.msk.bf16.gmra.mxu0 %vm51_vm0, %v9696_v43 }
 0x256   :  { %911 = vmatprep.mubr.bf16.mxu1 %v12636_v44  ;;  %1004 = vmatprep.mubr.bf16.mxu0 %v12636_v44 }
 0x257   :  { %8023 = vmatpush3.bf16.msra.mxu1 %v8910_v24  ;;  %8075 = vmatpush3.bf16.msra.mxu0 %v8911_v30 }
 0x258   :  { %8024 = vmatprep.subr.bf16.mxu1 %v8912_v31  ;;  %8076 = vmatprep.subr.bf16.mxu0 %v8913_v32 }
 0x25b   :  { %8025 = vmatpush3.bf16.msra.mxu1 %v8914_v2  ;;  %8077 = vmatpush3.bf16.msra.mxu0 %v8915_v36 }
 0x25c   :  { %8114 = vmatprep.subr.bf16.mxu1 %v8916_v40  ;;  %8166 = vmatprep.subr.bf16.mxu0 %v8917_v34 }
 0x25d   :  { %7313 = vmatmul.mubr.msk.bf16.gmra.mxu1 %vm51_vm0, %v9716_v42  ;;  %7319 = vmatmul.mubr.msk.bf16.gmra.mxu0 %vm51_vm0, %v9716_v42 }
 0x25e   :  { %921 = vmatprep.mubr.bf16.mxu1 %v12636_v44  ;;  %1014 = vmatprep.mubr.bf16.mxu0 %v12636_v44 }
 0x265   :  { %7314 = vmatmul.mubr.msk.bf16.gmra.mxu1 %vm51_vm0, %v9734_v61  ;;  %7320 = vmatmul.mubr.msk.bf16.gmra.mxu0 %vm51_vm0, %v9734_v61 }
 0x2cd   :  { %v480_v35 = vpop.f32.mrf.mxu1  ;;  %v573_v48 = vpop.f32.mrf.mxu0 }
 0x2ce   :  { %v481_v28 = vadd.f32 %v480_v35, %v9885_v39  ;;  %v574_v37 = vadd.f32 %v573_v48, %v9889_v7 }
 0x2cf   :  { %v9891_v59 = vpop.f32.mrf.mxu1  ;;  %v9893_v60 = vpop.f32.mrf.mxu0 }
 0x2d0   :  { %v632_v4 = vmax.f32 %v481_v28, 0.0  ;;  %v634_v5 = vmax.f32 %v574_v37, 0.0 }
 0x2d1   :  { %v484_v62 = vpop.f32.mrf.mxu1  ;;  %v577_v33 = vpop.f32.mrf.mxu0 }
 0x2d2   :  { %v485_v0 = vadd.f32 %v484_v62, %v9885_v39  ;;  %v578_v41 = vadd.f32 %v577_v33, %v9889_v7 }
 0x2d3   :  { %v9899_v1 = vpop.f32.mrf.mxu1  ;;  %v9901_v3 = vpop.f32.mrf.mxu0 }
 0x2d4   :  { %v636_v6 = vmax.f32 %v485_v0, 0.0  ;;  %v638_v8 = vmax.f32 %v578_v41, 0.0 }
 0x2d5   :  { %v490_v9 = vpop.f32.mrf.mxu1  ;;  %v583_v10 = vpop.f32.mrf.mxu0 }
 0x2d6   :  { %v9903_v12 = vpack.c.bf16 %v636_v6, %v632_v4  ;;  %v9905_v15 = vpack.c.bf16 %v638_v8, %v634_v5  ;;  %v491_v51 = vadd.f32 %v490_v9, %v9885_v39  ;;  %v584_v52 = vadd.f32 %v583_v10, %v9889_v7 }
 0x2d7   :  { %v9907_v17 = vpop.f32.mrf.mxu1  ;;  %v9909_v50 = vpop.f32.mrf.mxu0 }
 0x2d8   :  { %v640_v24 = vmax.f32 %v491_v51, 0.0  ;;  %v642_v30 = vmax.f32 %v584_v52, 0.0 }
 0x2d9   :  { %v494_v54 = vpop.f32.mrf.mxu1  ;;  %v587_v58 = vpop.f32.mrf.mxu0 }
 0x2da   :  { %v495_v18 = vadd.f32 %v494_v54, %v9885_v39  ;;  %v588_v20 = vadd.f32 %v587_v58, %v9889_v7 }
 0x2db   :  { %v9915_v13 = vpop.f32.mrf.mxu1  ;;  %v9917_v21 = vpop.f32.mrf.mxu0 }
 0x2dc   :  { %v644_v31 = vmax.f32 %v495_v18, 0.0  ;;  %v646_v32 = vmax.f32 %v588_v20, 0.0 }
 0x2dd   :  { %v500_v2 = vpop.f32.mrf.mxu1  ;;  %v593_v36 = vpop.f32.mrf.mxu0 }
 0x2de   :  { %v9919_v40 = vpack.c.bf16 %v644_v31, %v640_v24  ;;  %v9921_v34 = vpack.c.bf16 %v646_v32, %v642_v30  ;;  %v501_v28 = vadd.f32 %v500_v2, %v9885_v39  ;;  %v594_v37 = vadd.f32 %v593_v36, %v9889_v7 }
 0x2df   :  { %v9923_v35 = vpop.f32.mrf.mxu1  ;;  %v9925_v48 = vpop.f32.mrf.mxu0 }
 0x2e0   :  { %v648_v6 = vmax.f32 %v501_v28, 0.0  ;;  %v650_v8 = vmax.f32 %v594_v37, 0.0 }
 0x2e1   :  { %v504_v62 = vpop.f32.mrf.mxu1  ;;  %v597_v33 = vpop.f32.mrf.mxu0 }
 0x2e2   :  { %v505_v0 = vadd.f32 %v504_v62, %v9885_v39  ;;  %v598_v41 = vadd.f32 %v597_v33, %v9889_v7 }
 0x2e3   :  { %v9931_v4 = vpop.f32.mrf.mxu1  ;;  %v9933_v5 = vpop.f32.mrf.mxu0 }
 0x2e4   :  { %v652_v9 = vmax.f32 %v505_v0, 0.0  ;;  %v654_v10 = vmax.f32 %v598_v41, 0.0 }
 0x2e5   :  { %v510_v51 = vpop.f32.mrf.mxu1  ;;  %v603_v52 = vpop.f32.mrf.mxu0 }
 0x2e6   :  { %v9935_v54 = vpack.c.bf16 %v652_v9, %v648_v6  ;;  %v9937_v58 = vpack.c.bf16 %v654_v10, %v650_v8  ;;  %v511_v24 = vadd.f32 %v510_v51, %v9885_v39  ;;  %v604_v30 = vadd.f32 %v603_v52, %v9889_v7 }
 0x2e7   :  { %v9939_v18 = vpop.f32.mrf.mxu1  ;;  %v9941_v20 = vpop.f32.mrf.mxu0 }
 0x2e8   :  { %v656_v62 = vmax.f32 %v511_v24, 0.0  ;;  %v658_v33 = vmax.f32 %v604_v30, 0.0 }
 0x2e9   :  { %v514_v31 = vpop.f32.mrf.mxu1  ;;  %v607_v32 = vpop.f32.mrf.mxu0 }
 0x2ea   :  { %v515_v2 = vadd.f32 %v514_v31, %v9885_v39  ;;  %v608_v36 = vadd.f32 %v607_v32, %v9889_v7 }
 0x2eb   :  { %v9947_v28 = vpop.f32.mrf.mxu1  ;;  %v9949_v37 = vpop.f32.mrf.mxu0 }
 0x2ec   :  { %v660_v0 = vmax.f32 %v515_v2, 0.0  ;;  %v662_v41 = vmax.f32 %v608_v36, 0.0 }
 0x2ed   :  { %v520_v6 = vpop.f32.mrf.mxu1  ;;  %v613_v8 = vpop.f32.mrf.mxu0 }
 0x2ee   :  { %v9951_v9 = vpack.c.bf16 %v660_v0, %v656_v62  ;;  %v9953_v10 = vpack.c.bf16 %v662_v41, %v658_v33  ;;  %v521_v31 = vadd.f32 %v520_v6, %v9885_v39  ;;  %v614_v32 = vadd.f32 %v613_v8, %v9889_v7 }
 0x2ef   :  { %v9955_v51 = vpop.f32.mrf.mxu1  ;;  %v9957_v52 = vpop.f32.mrf.mxu0 }
 0x2f0   :  { %12723 = vst [vmem:[#allocation27_spill] sm:$0xff] %v9951_v9  ;;  %12724 = vst [vmem:[#allocation28_spill] sm:$0xff] %v9953_v10  ;;  %v664_v62 = vmax.f32 %v521_v31, 0.0  ;;  %v666_v33 = vmax.f32 %v614_v32, 0.0 }
 0x2f1   :  { %v524_v44 = vpop.f32.mrf.mxu1  ;;  %v617_v11 = vpop.f32.mrf.mxu0 }
 0x2f2   :  { %v525_v24 = vadd.f32 %v524_v44, %v9885_v39  ;;  %v618_v30 = vadd.f32 %v617_v11, %v9889_v7 }
 0x2f3   :  { %v9963_v2 = vpop.f32.mrf.mxu1  ;;  %v9965_v36 = vpop.f32.mrf.mxu0 }
 0x2f4   :  { %v668_v0 = vmax.f32 %v525_v24, 0.0  ;;  %v670_v41 = vmax.f32 %v618_v30, 0.0  ;;  %v9980_v24 = vsub.s32 3, %v9384_v25 }
 0x2f5   :  { %v530_v19 = vpop.f32.mrf.mxu1  ;;  %v623_v57 = vpop.f32.mrf.mxu0 }
 0x2f6   :  { %v9967_v46 = vpack.c.bf16 %v668_v0, %v664_v62  ;;  %v9969_v6 = vpack.c.bf16 %v670_v41, %v666_v33  ;;  %v531_v44 = vadd.f32 %v530_v19, %v9885_v39  ;;  %v624_v11 = vadd.f32 %v623_v57, %v9889_v7  ;;  %v7300_v33 = vld [vmem:[%s12633_s3 + $0x8] ss:$2 sm:$0xf] }
 0x2f7   :  { %v9971_v8 = vpop.f32.mrf.mxu1  ;;  %v9973_v55 = vpop.f32.mrf.mxu0  ;;  %v10000_v25 = vrot.slane %v7300_v33, %v9387_v26 }
 0x2f8   :  { %12725 = vst [vmem:[#allocation29_spill] sm:$0xff] %v9967_v46  ;;  %12726 = vst [vmem:[#allocation30_spill] sm:$0xff] %v9969_v6  ;;  %v672_v19 = vmax.f32 %v531_v44, 0.0  ;;  %v674_v0 = vmax.f32 %v624_v11, 0.0  ;;  %v10003_v44 = vrot.slane %v7300_v33, %v9598_v22 }
 0x2f9   :  { %12727 = vst [vmem:[#allocation31_spill] sm:$0xff] %v9971_v8  ;;  %12728 = vst [vmem:[#allocation32_spill] sm:$0xff] %v9973_v55  ;;  %v534_v38 = vpop.f32.mrf.mxu1  ;;  %v627_v47 = vpop.f32.mrf.mxu0 }
 0x2fa   :  { %v535_v31 = vadd.f32 %v534_v38, %v9885_v39  ;;  %v628_v32 = vadd.f32 %v627_v47, %v9889_v7  ;;  %v9994_v39 = vrot.slane %v7300_v33, %v9591_v16  ;;  %v9997_v7 = vrot.slane %v7300_v33, %v9980_v24 }
 0x2fb   :  { %v9982_v30 = vpop.f32.mrf.mxu1  ;;  %v9984_v62 = vpop.f32.mrf.mxu0 }
 0x2fc   :  { %12729 = vst [vmem:[#allocation33_spill] sm:$0xff] %v9982_v30  ;;  %12730 = vst [vmem:[#allocation34_spill] sm:$0xff] %v9984_v62  ;;  %v676_v57 = vmax.f32 %v535_v31, 0.0  ;;  %v678_v41 = vmax.f32 %v628_v32, 0.0 }
 0x2fd   :  { %v873_v23 = vpop.f32.mrf.mxu1  ;;  %v966_v14 = vpop.f32.mrf.mxu0 }
 0x2fe   :  { %v9989_v38 = vpack.c.bf16 %v676_v57, %v672_v19  ;;  %v9991_v47 = vpack.c.bf16 %v678_v41, %v674_v0  ;;  %v874_v53 = vadd.f32 %v873_v23, %v10000_v25  ;;  %v967_v27 = vadd.f32 %v966_v14, %v10003_v44 }
 0x2ff   :  { %v875_v11 = vpop.f32.mrf.mxu1  ;;  %v968_v31 = vpop.f32.mrf.mxu0 }
 0x300   :  { %12731 = vst [vmem:[#allocation35_spill] sm:$0xff] %v9989_v38  ;;  %12732 = vst [vmem:[#allocation36_spill] sm:$0xff] %v9991_v47  ;;  %v876_v19 = vadd.f32 %v875_v11, %v9994_v39  ;;  %v969_v0 = vadd.f32 %v968_v31, %v9997_v7  ;;  %v1025_v47 = vmax.f32 %v874_v53, 0.0 }
 0x301   :  { %v877_v32 = vpop.f32.mrf.mxu1  ;;  %v970_v49 = vpop.f32.mrf.mxu0 }
 0x302   :  { %v878_v57 = vadd.f32 %v877_v32, %v10000_v25  ;;  %v971_v41 = vadd.f32 %v970_v49, %v10003_v44  ;;  %v1026_v56 = vmax.f32 %v876_v19, 0.0  ;;  %v1028_v31 = vmax.f32 %v969_v0, 0.0 }
 0x303   :  { %v879_v26 = vpop.f32.mrf.mxu1  ;;  %v972_v61 = vpop.f32.mrf.mxu0  ;;  %v1027_v49 = vmax.f32 %v967_v27, 0.0  ;;  %v8921_v27 = vld [vmem:[%s12634_s4 + $0xf0] sm:$0xff]  }
 0x304   :  { %v880_v33 = vadd.f32 %v879_v26, %v9994_v39  ;;  %v973_v22 = vadd.f32 %v972_v61, %v9997_v7  ;;  %v1029_v42 = vmax.f32 %v878_v57, 0.0  ;;  %v1031_v43 = vmax.f32 %v971_v41, 0.0  ;;  %v8918_v26 = vld [vmem:[%s12634_s4 + $0x38] sm:$0xff]  }
 0x305   :  { %v883_v29 = vpop.f32.mrf.mxu1  ;;  %v976_v11 = vpop.f32.mrf.mxu0  ;;  %v8919_v61 = vld [vmem:[%s12634_s4 + $0xb8] sm:$0xff]  }
 0x306   :  { %v1030_v63 = vmax.f32 %v880_v33, 0.0  ;;  %v1032_v32 = vmax.f32 %v973_v22, 0.0  ;;  %v1073_v57 = vpack.c.bf16 %v1029_v42, %v1025_v47  ;;  %v1075_v41 = vpack.c.bf16 %v1031_v43, %v1027_v49  ;;  %v8920_v22 = vld [vmem:[%s12634_s4 + $0x70] sm:$0xff]  }
 0x307   :  { %v885_v38 = vpop.f32.mrf.mxu1  ;;  %v978_v23 = vpop.f32.mrf.mxu0  ;;  %v884_v43 = vadd.f32 %v883_v29, %v10000_v25  ;;  %v977_v42 = vadd.f32 %v976_v11, %v10003_v44  ;;  %v8923_v29 = vld [vmem:[%s12634_s4 + $0xb0] sm:$0xff]  }
 0x308   :  { %v1074_v6 = vpack.c.bf16 %v1030_v63, %v1026_v56  ;;  %v1076_v14 = vpack.c.bf16 %v1032_v32, %v1028_v31  ;;  %v886_v53 = vadd.f32 %v885_v38, %v9994_v39  ;;  %v979_v47 = vadd.f32 %v978_v23, %v9997_v7 }
 0x309   :  { %v887_v19 = vpop.f32.mrf.mxu1  ;;  %v980_v0 = vpop.f32.mrf.mxu0 }
 0x30a   :  { %v888_v63 = vadd.f32 %v887_v19, %v10000_v25  ;;  %v981_v56 = vadd.f32 %v980_v0, %v10003_v44  ;;  %1385 = vmatprep.mubr.bf16.mxu1 %v1074_v6  ;;  %1466 = vmatprep.mubr.bf16.mxu0 %v1076_v14  ;;  %v8922_v6 = vld [vmem:[%s12634_s4 + $0x30] sm:$0xff]   ;;  %v1033_v0 = vmax.f32 %v884_v43, 0.0  ;;  %v8928_v43 = vld [vmem:[%s12634_s4 + $0x60] sm:$0xff]  }
 0x30b   :  { %v889_v33 = vpop.f32.mrf.mxu1  ;;  %v982_v31 = vpop.f32.mrf.mxu0  ;;  %1386 = vmatmul.mubr.bf16.vlgmr.msra.gmra.mxu1 %v1073_v57  ;;  %1467 = vmatmul.mubr.bf16.vlgmr.msra.gmra.mxu0 %v1075_v41  ;;  %v8924_v57 = vld [vmem:[%s12634_s4 + $0x68] sm:$0xff]  }
 0x30c   :  { %v890_v32 = vadd.f32 %v889_v33, %v9994_v39  ;;  %v983_v38 = vadd.f32 %v982_v31, %v9997_v7  ;;  %8115 = vmatpush3.bf16.msra.mxu1 %v8918_v26  ;;  %8167 = vmatpush3.bf16.msra.mxu0 %v8919_v61  ;;  %v1037_v11 = vmax.f32 %v888_v63, 0.0  ;;  %v1039_v49 = vmax.f32 %v981_v56, 0.0  ;;  %v8925_v26 = vld [vmem:[%s12634_s4 + $0xe8] sm:$0xff]  }
 0x30d   :  { %v893_v23 = vpop.f32.mrf.mxu1  ;;  %v986_v14 = vpop.f32.mrf.mxu0  ;;  %8116 = vmatprep.subr.bf16.mxu1 %v8920_v22  ;;  %8168 = vmatprep.subr.bf16.mxu0 %v8921_v27  ;;  %v1034_v61 = vmax.f32 %v886_v53, 0.0  ;;  %v1035_v33 = vmax.f32 %v977_v42, 0.0  ;;  %v1036_v31 = vmax.f32 %v979_v47, 0.0  ;;  %v8926_v27 = vld [vmem:[%s12634_s4 + $0x28] sm:$0xff]  }
 0x30e   :  { %v1038_v41 = vmax.f32 %v890_v32, 0.0  ;;  %v1040_v19 = vmax.f32 %v983_v38, 0.0  ;;  %v1077_v46 = vpack.c.bf16 %v1037_v11, %v1033_v0  ;;  %v8927_v53 = vld [vmem:[%s12634_s4 + $0xa8] sm:$0xff]   ;;  %v987_v11 = vadd.f32 %v986_v14, %v10003_v44 }
 0x30f   :  { %v895_v63 = vpop.f32.mrf.mxu1  ;;  %v988_v56 = vpop.f32.mrf.mxu0  ;;  %v1079_v55 = vpack.c.bf16 %v1039_v49, %v1035_v33 }
 0x310   :  { %8117 = vmatpush3.bf16.msra.mxu1 %v8922_v6  ;;  %8169 = vmatpush3.bf16.msra.mxu0 %v8923_v29  ;;  %v1078_v22 = vpack.c.bf16 %v1038_v41, %v1034_v61  ;;  %v1080_v9 = vpack.c.bf16 %v1040_v19, %v1036_v31  ;;  %v896_v42 = vadd.f32 %v895_v63, %v9994_v39  ;;  %v8929_v6 = vld [vmem:[%s12634_s4 + $0xe0] sm:$0xff]   ;;  %v1043_v63 = vmax.f32 %v987_v11, 0.0  ;;  %v8935_v11 = vld [vmem:[%s12634_s4 + $0x98] sm:$0xff]  }
 0x311   :  { %v897_v10 = vpop.f32.mrf.mxu1  ;;  %v990_v8 = vpop.f32.mrf.mxu0  ;;  %8118 = vmatprep.subr.bf16.mxu1 %v8924_v57  ;;  %8170 = vmatprep.subr.bf16.mxu0 %v8925_v26  ;;  %v989_v47 = vadd.f32 %v988_v56, %v9997_v7  ;;  %v894_v29 = vadd.f32 %v893_v23, %v10000_v25 }
 0x312   :  { %v898_v32 = vadd.f32 %v897_v10, %v10000_v25  ;;  %v991_v38 = vadd.f32 %v990_v8, %v10003_v44  ;;  %1393 = vmatprep.mubr.bf16.mxu1 %v1078_v22  ;;  %1474 = vmatprep.mubr.bf16.mxu0 %v1080_v9  ;;  %v8930_v10 = vld [vmem:[%s12634_s4 + $0x20] sm:$0xff]   ;;  %v8932_v9 = vld [vmem:[%s12634_s4 + $0x58] sm:$0xff]  }
 0x313   :  { %v899_v49 = vpop.f32.mrf.mxu1  ;;  %v992_v57 = vpop.f32.mrf.mxu0  ;;  %1394 = vmatmul.mubr.bf16.gmra.mxu1 %v1077_v46  ;;  %1475 = vmatmul.mubr.bf16.gmra.mxu0 %v1079_v55  ;;  %v8931_v46 = vld [vmem:[%s12634_s4 + $0xa0] sm:$0xff]   ;;  %v1042_v55 = vmax.f32 %v896_v42, 0.0  ;;  %v1044_v14 = vmax.f32 %v989_v47, 0.0  ;;  %v1041_v31 = vmax.f32 %v894_v29, 0.0 }
 0x314   :  { %v900_v26 = vadd.f32 %v899_v49, %v9994_v39  ;;  %v993_v61 = vadd.f32 %v992_v57, %v9997_v7  ;;  %8119 = vmatpush3.bf16.msra.mxu1 %v8926_v27  ;;  %v1045_v8 = vmax.f32 %v898_v32, 0.0  ;;  %v1047_v41 = vmax.f32 %v991_v38, 0.0  ;;  %8171 = vmatpush3.bf16.msra.mxu0 %v8927_v53  ;;  %v8933_v27 = vld [vmem:[%s12634_s4 + $0xd8] sm:$0xff]   ;;  %v8936_v49 = vld [vmem:[%s12634_s4 + $0x50] sm:$0xff]  }
 0x315   :  { %v903_v19 = vpop.f32.mrf.mxu1  ;;  %v996_v23 = vpop.f32.mrf.mxu0  ;;  %8120 = vmatprep.subr.bf16.mxu1 %v8928_v43  ;;  %8172 = vmatprep.subr.bf16.mxu0 %v8929_v6  ;;  %v8934_v32 = vld [vmem:[%s12634_s4 + $0x18] sm:$0xff]  }
 0x316   :  { %v1046_v0 = vmax.f32 %v900_v26, 0.0  ;;  %v1048_v33 = vmax.f32 %v993_v61, 0.0  ;;  %v1081_v42 = vpack.c.bf16 %v1045_v8, %v1041_v31  ;;  %v1083_v47 = vpack.c.bf16 %v1047_v41, %v1043_v63 }
 0x317   :  { %v905_v56 = vpop.f32.mrf.mxu1  ;;  %v998_v22 = vpop.f32.mrf.mxu0  ;;  %v904_v8 = vadd.f32 %v903_v19, %v10000_v25  ;;  %v997_v41 = vadd.f32 %v996_v23, %v10003_v44  ;;  %v8939_v23 = vld [vmem:[%s12634_s4 + $0x90] sm:$0xff]  }
 0x318   :  { %v1082_v53 = vpack.c.bf16 %v1046_v0, %v1042_v55  ;;  %v1084_v43 = vpack.c.bf16 %v1048_v33, %v1044_v14  ;;  %8121 = vmatpush3.bf16.msra.mxu1 %v8930_v10  ;;  %v906_v38 = vadd.f32 %v905_v56, %v9994_v39  ;;  %8173 = vmatpush3.bf16.msra.mxu0 %v8931_v46  ;;  %v8937_v10 = vld [vmem:[%s12634_s4 + $0xd0] sm:$0xff]   ;;  %v8940_v56 = vld [vmem:[%s12634_s4 + $0x48] sm:$0xff]  }
 0x319   :  { %v907_v6 = vpop.f32.mrf.mxu1  ;;  %v1000_v29 = vpop.f32.mrf.mxu0  ;;  %8122 = vmatprep.subr.bf16.mxu1 %v8932_v9  ;;  %v999_v57 = vadd.f32 %v998_v22, %v9997_v7  ;;  %8174 = vmatprep.subr.bf16.mxu0 %v8933_v27  ;;  %v8938_v0 = vld [vmem:[%s12634_s4 + $0x10] sm:$0xff]  }
 0x31a   :  { %v908_v26 = vadd.f32 %v907_v6, %v10000_v25  ;;  %v1001_v61 = vadd.f32 %v1000_v29, %v10003_v44  ;;  %1401 = vmatprep.mubr.bf16.mxu1 %v1082_v53  ;;  %1482 = vmatprep.mubr.bf16.mxu0 %v1084_v43  ;;  %v1050_v22 = vmax.f32 %v906_v38, 0.0  ;;  %v8941_v29 = vld [vmem:[%s12634_s4 + $0xc8] sm:$0xff]  }
 0x31b   :  { %v909_v46 = vpop.f32.mrf.mxu1  ;;  %v1002_v9 = vpop.f32.mrf.mxu0  ;;  %1402 = vmatmul.mubr.bf16.gmra.mxu1 %v1081_v42  ;;  %1483 = vmatmul.mubr.bf16.gmra.mxu0 %v1083_v47  ;;  %v1052_v27 = vmax.f32 %v999_v57, 0.0  ;;  %v1051_v42 = vmax.f32 %v997_v41, 0.0  ;;  %v8943_v41 = vld [vmem:[%s12634_s4 + $0x88] sm:$0xff]  }
 0x31c   :  { %v910_v55 = vadd.f32 %v909_v46, %v9994_v39  ;;  %v1003_v14 = vadd.f32 %v1002_v9, %v9997_v7  ;;  %8123 = vmatpush3.bf16.msra.mxu1 %v8934_v32  ;;  %v1053_v33 = vmax.f32 %v908_v26, 0.0  ;;  %v1055_v31 = vmax.f32 %v1001_v61, 0.0  ;;  %8175 = vmatpush3.bf16.msra.mxu0 %v8935_v11  ;;  %v8942_v26 = vld [vmem:[%s12634_s4 + $0x8] sm:$0xff]   ;;  %v8944_v46 = vld [vmem:[%s12634_s4 + $0x40] sm:$0xff]  }
 0x31d   :  { %v913_v63 = vpop.f32.mrf.mxu1  ;;  %v1006_v19 = vpop.f32.mrf.mxu0  ;;  %8124 = vmatprep.subr.bf16.mxu1 %v8936_v49  ;;  %8176 = vmatprep.subr.bf16.mxu0 %v8937_v10  ;;  %v1049_v32 = vmax.f32 %v904_v8, 0.0 }
 0x31e   :  { %v1054_v53 = vmax.f32 %v910_v55, 0.0  ;;  %v1056_v43 = vmax.f32 %v1003_v14, 0.0  ;;  %v1087_v57 = vpack.c.bf16 %v1055_v31, %v1051_v42  ;;  %v10133_v31 = vld [vmem:[%s12632_s2 + $0xe0] sm:$0xff]  ;;  %v10154_v42 = vrot.slane %v9881_v45, %v9591_v16 }
 0x31f   :  { %v915_v47 = vpop.f32.mrf.mxu1  ;;  %v1008_v6 = vpop.f32.mrf.mxu0  ;;  %v1085_v38 = vpack.c.bf16 %v1053_v33, %v1049_v32  ;;  %v10128_v33 = vld [vmem:[%s12632_s2 + $0xa0] sm:$0xff] }
 0x320   :  { %v1086_v11 = vpack.c.bf16 %v1054_v53, %v1050_v22  ;;  %v1088_v49 = vpack.c.bf16 %v1056_v43, %v1052_v27  ;;  %8125 = vmatpush3.bf16.msra.mxu1 %v8938_v0  ;;  %v916_v61 = vadd.f32 %v915_v47, %v9994_v39  ;;  %8177 = vmatpush3.bf16.msra.mxu0 %v8939_v23  ;;  %v8945_v0 = vld [vmem:[%s12634_s4 + $0xc0] sm:$0xff]  }
 0x321   :  { %v917_v10 = vpop.f32.mrf.mxu1  ;;  %v1010_v8 = vpop.f32.mrf.mxu0  ;;  %8126 = vmatprep.subr.bf16.mxu1 %v8940_v56  ;;  %v1009_v9 = vadd.f32 %v1008_v6, %v9997_v7  ;;  %v914_v23 = vadd.f32 %v913_v63, %v10000_v25  ;;  %v1007_v56 = vadd.f32 %v1006_v19, %v10003_v44  ;;  %8178 = vmatprep.subr.bf16.mxu0 %v8941_v29  ;;  %v8946_v32 = vld [vmem:[%s12634_s4] sm:$0xff]   ;;  %v10145_v63 = vld [vmem:[%s12632_s2 + $0xa8] sm:$0xff] }
 0x322   :  { %v918_v55 = vadd.f32 %v917_v10, %v10000_v25  ;;  %v1011_v14 = vadd.f32 %v1010_v8, %v10003_v44  ;;  %1409 = vmatprep.mubr.bf16.mxu1 %v1086_v11  ;;  %1490 = vmatprep.mubr.bf16.mxu0 %v1088_v49  ;;  %v10150_v19 = vld [vmem:[%s12632_s2 + $0xe8] sm:$0xff]  ;;  %v8947_v49 = vld [vmem:[%s12634_s4 + $0x80] sm:$0xff]   ;;  %v487_v16 = vadd.f32 %v9899_v1, %v10154_v42 }
 0x323   :  { %v919_v22 = vpop.f32.mrf.mxu1  ;;  %v1012_v27 = vpop.f32.mrf.mxu0  ;;  %1410 = vmatmul.mubr.bf16.gmra.mxu1 %v1085_v38  ;;  %1491 = vmatmul.mubr.bf16.gmra.mxu0 %v1087_v57  ;;  %v1058_v38 = vmax.f32 %v916_v61, 0.0  ;;  %v1060_v57 = vmax.f32 %v1009_v9, 0.0 }
 0x324   :  { %v920_v53 = vadd.f32 %v919_v22, %v9994_v39  ;;  %v1013_v43 = vadd.f32 %v1012_v27, %v9997_v7  ;;  %8127 = vmatpush3.bf16.msra.mxu1 %v8942_v26  ;;  %v1061_v47 = vmax.f32 %v918_v55, 0.0  ;;  %v1063_v6 = vmax.f32 %v1011_v14, 0.0  ;;  %8179 = vmatpush3.bf16.msra.mxu0 %v8943_v41 }
 0x325   :  { %v923_v29 = vpop.f32.mrf.mxu1  ;;  %v1016_v11 = vpop.f32.mrf.mxu0  ;;  %8128 = vmatprep.subr.bf16.mxu1 %v8944_v46  ;;  %v7391_v26 = vcombine.high %v10128_v33, %v10133_v31  ;;  %8180 = vmatprep.subr.bf16.mxu0 %v8945_v0  ;;  %v1057_v22 = vmax.f32 %v914_v23, 0.0  ;;  %v1059_v27 = vmax.f32 %v1007_v56, 0.0  ;;  %v7393_v41 = vcombine.high %v10145_v63, %v10150_v19 }
 0x326   :  { %v1062_v10 = vmax.f32 %v920_v53, 0.0  ;;  %v1064_v8 = vmax.f32 %v1013_v43, 0.0  ;;  %v10165_v46 = vrot.slane %v9881_v45, %v9980_v24 }
 0x327   :  { %v925_v55 = vpop.f32.mrf.mxu1  ;;  %v1018_v14 = vpop.f32.mrf.mxu0  ;;  %v1089_v9 = vpack.c.bf16 %v1061_v47, %v1057_v22  ;;  %v1091_v53 = vpack.c.bf16 %v1063_v6, %v1059_v27 }
 0x328   :  { %v1090_v62 = vpack.c.bf16 %v1062_v10, %v1058_v38  ;;  %v1092_v61 = vpack.c.bf16 %v1064_v8, %v1060_v57  ;;  %8129 = vmatpush3.bf16.msra.mxu1 %v8946_v32  ;;  %v926_v0 = vadd.f32 %v925_v55, %v9994_v39  ;;  %8181 = vmatpush3.bf16.msra.mxu0 %v8947_v49 }
 0x329   :  { %v927_v23 = vpop.f32.mrf.mxu1  ;;  %v1020_v56 = vpop.f32.mrf.mxu0  ;;  %1952 = vmatprep.subr.bf16.mxu1 %v7391_v26  ;;  %v1019_v43 = vadd.f32 %v1018_v14, %v9997_v7  ;;  %v580_v1 = vadd.f32 %v9901_v3, %v10165_v46  ;;  %v924_v32 = vadd.f32 %v923_v29, %v10000_v25  ;;  %2045 = vmatprep.subr.bf16.mxu0 %v7393_v41  ;;  %v637_v3 = vmax.f32 %v487_v16, 0.0 }
 0x32a   :  { %v928_v30 = vadd.f32 %v927_v23, %v10000_v25  ;;  %v1021_v45 = vadd.f32 %v1020_v56, %v10003_v44  ;;  %1417 = vmatprep.mubr.bf16.mxu1 %v1090_v62  ;;  %1498 = vmatprep.mubr.bf16.mxu0 %v1092_v61  ;;  %v483_v49 = vadd.f32 %v9891_v59, %v10154_v42  ;;  %v1066_v10 = vmax.f32 %v926_v0, 0.0  ;;  %v1871_v56 = vld [vmem:[%s12632_s2 + $0x20] sm:$0xff] }
 0x32b   :  { %v929_v47 = vpop.f32.mrf.mxu1  ;;  %v1022_v6 = vpop.f32.mrf.mxu0  ;;  %1418 = vmatmul.mubr.bf16.gmra.mxu1 %v1089_v9  ;;  %v1017_v26 = vadd.f32 %v1016_v11, %v10003_v44  ;;  %1499 = vmatmul.mubr.bf16.gmra.mxu0 %v1091_v53  ;;  %v576_v62 = vadd.f32 %v9893_v60, %v10165_v46  ;;  %v1068_v29 = vmax.f32 %v1019_v43, 0.0  ;;  %v639_v55 = vmax.f32 %v580_v1, 0.0 }
 0x32c   :  { %v930_v38 = vadd.f32 %v929_v47, %v9994_v39  ;;  %v1023_v57 = vadd.f32 %v1022_v6, %v9997_v7  ;;  %v1069_v25 = vmax.f32 %v928_v30, 0.0  ;;  %v1071_v8 = vmax.f32 %v1021_v45, 0.0 }
 0x32d   :  { %v1065_v14 = vmax.f32 %v924_v32, 0.0  ;;  %v633_v59 = vmax.f32 %v483_v49, 0.0  ;;  %v1067_v41 = vmax.f32 %v1017_v26, 0.0  ;;  %v635_v39 = vmax.f32 %v576_v62, 0.0 }
 0x32e   :  { %v1070_v22 = vmax.f32 %v930_v38, 0.0  ;;  %v1072_v27 = vmax.f32 %v1023_v57, 0.0  ;;  %v497_v16 = vadd.f32 %v9915_v13, %v10154_v42  ;;  %v590_v30 = vadd.f32 %v9917_v21, %v10165_v46  ;;  %v1873_v13 = vld [vmem:[%s12632_s2 + $0x60] sm:$0xff] }
 0x32f   :  { %v1093_v61 = vpack.c.bf16 %v1069_v25, %v1065_v14  ;;  %v1095_v7 = vpack.c.bf16 %v1071_v8, %v1067_v41  ;;  %v681_v9 = vpack.c.bf16 %v637_v3, %v633_v59  ;;  %v683_v60 = vpack.c.bf16 %v639_v55, %v635_v39  ;;  %v12733_v41 = vld [vmem:[#allocation33_spill] sm:$0xff]  ;;  %v12735_v39 = vld [vmem:[#allocation27_spill] sm:$0xff] }
 0x330   :  { %v1094_v44 = vpack.c.bf16 %v1070_v22, %v1066_v10  ;;  %v1096_v11 = vpack.c.bf16 %v1072_v27, %v1068_v29  ;;  %v493_v53 = vadd.f32 %v9907_v17, %v10154_v42  ;;  %v586_v0 = vadd.f32 %v9909_v50, %v10165_v46  ;;  %v1872_v17 = vld [vmem:[%s12632_s2 + $0x28] sm:$0xff] }
 0x331   :  { %v645_v23 = vmax.f32 %v497_v16, 0.0  ;;  %v647_v43 = vmax.f32 %v590_v30, 0.0  ;;  %v7390_v21 = vcombine.low %v10128_v33, %v10133_v31  ;;  %v1874_v50 = vld [vmem:[%s12632_s2 + $0x68] sm:$0xff]  ;;  %v7392_v1 = vcombine.low %v10145_v63, %v10150_v19 }
 0x332   :  { %1425 = vmatprep.mubr.bf16.mxu1 %v1094_v44  ;;  %1506 = vmatprep.mubr.bf16.mxu0 %v1096_v11  ;;  %v641_v45 = vmax.f32 %v493_v53, 0.0  ;;  %v643_v32 = vmax.f32 %v586_v0, 0.0  ;;  %v507_v47 = vadd.f32 %v9931_v4, %v10154_v42  ;;  %v7387_v6 = vcombine.high %v1871_v56, %v1873_v13 }
 0x333   :  { %1426 = vmatmul.mubr.bf16.gmra.mxu1 %v1093_v61  ;;  %1507 = vmatmul.mubr.bf16.gmra.mxu0 %v1095_v7  ;;  %v600_v33 = vadd.f32 %v9933_v5, %v10165_v46  ;;  %v7389_v49 = vcombine.high %v1872_v17, %v1874_v50  ;;  %v503_v26 = vadd.f32 %v9923_v35, %v10154_v42  ;;  %v12737_v7 = vld [vmem:[#allocation28_spill] sm:$0xff] }
 0x334   :  { %1739 = vmatprep.mubr.bf16.mxu1 %v681_v9  ;;  %1820 = vmatprep.mubr.bf16.mxu0 %v683_v60  ;;  %v685_v31 = vpack.c.bf16 %v645_v23, %v641_v45  ;;  %v687_v38 = vpack.c.bf16 %v647_v43, %v643_v32  ;;  %v7386_v63 = vcombine.low %v1871_v56, %v1873_v13  ;;  %v653_v57 = vmax.f32 %v507_v47, 0.0  ;;  %v12739_v23 = vld [vmem:[#allocation29_spill] sm:$0xff]  ;;  %v12740_v13 = vld [vmem:[#allocation30_spill] sm:$0xff]  ;;  %v12742_v43 = vld [vmem:[#allocation36_spill] sm:$0xff] }
 0x335   :  { %v596_v19 = vadd.f32 %v9925_v48, %v10165_v46  ;;  %v7388_v4 = vcombine.low %v1872_v17, %v1874_v50  ;;  %v649_v5 = vmax.f32 %v503_v26, 0.0  ;;  %v610_v3 = vadd.f32 %v9949_v37, %v10165_v46  ;;  %v12745_v17 = vld [vmem:[#allocation14_spill] sm:$0xff]  ;;  %v12746_v50 = vld [vmem:[#allocation17_spill] sm:$0xff]  ;;  %v12747_v45 = vld [vmem:[#allocation20_spill] sm:$0xff] }
 0x336   :  { %v513_v10 = vadd.f32 %v9939_v18, %v10154_v42  ;;  %v606_v25 = vadd.f32 %v9941_v20, %v10165_v46  ;;  %v527_v37 = vadd.f32 %v9963_v2, %v10154_v42  ;;  %v616_v20 = vadd.f32 %v9957_v52, %v10165_v46  ;;  %v12738_v52 = vld [vmem:[#allocation32_spill] sm:$0xff]  ;;  %v8949_v32 = vld [vmem:[%s12634_s4 + $0x2f8] sm:$0xff]   ;;  %v8954_v26 = vld [vmem:[%s12634_s4 + $0x230] sm:$0xff]  }
 0x337   :  { %v651_v62 = vmax.f32 %v596_v19, 0.0  ;;  %v689_v35 = vpack.c.bf16 %v653_v57, %v649_v5  ;;  %v663_v8 = vmax.f32 %v610_v3, 0.0  ;;  %v626_v9 = vadd.f32 %v12738_v52, %v10165_v46  ;;  %v12748_v47 = vld [vmem:[#allocation23_spill] sm:$0xff]  ;;  %v8956_v19 = vld [vmem:[%s12634_s4 + $0x268] sm:$0xff]   ;;  %v8960_v5 = vld [vmem:[%s12634_s4 + $0x260] sm:$0xff]  }
 0x338   :  { %v659_v22 = vmax.f32 %v606_v25, 0.0  ;;  %v669_v55 = vmax.f32 %v527_v37, 0.0  ;;  %v667_v59 = vmax.f32 %v616_v20, 0.0  ;;  %v8958_v57 = vld [vmem:[%s12634_s4 + $0x228] sm:$0xff]   ;;  %v8964_v3 = vld [vmem:[%s12634_s4 + $0x258] sm:$0xff]   ;;  %v8977_v20 = vld [vmem:[%s12634_s4 + $0x2c0] sm:$0xff]  }
 0x339   :  { %v675_v53 = vmax.f32 %v626_v9, 0.0  ;;  %v8967_v25 = vld [vmem:[%s12634_s4 + $0x298] sm:$0xff]   ;;  %v8972_v37 = vld [vmem:[%s12634_s4 + $0x248] sm:$0xff]  }
 0x33a   :  { %v695_v18 = vpack.c.bf16 %v663_v8, %v659_v22  ;;  %v8969_v8 = vld [vmem:[%s12634_s4 + $0x2d0] sm:$0xff]  }
 0x33b   :  { %1740 = vmatmul.mubr.bf16.vlgmr.msra.gmra.mxu1 %v9903_v12  ;;  %1821 = vmatmul.mubr.bf16.vlgmr.msra.gmra.mxu0 %v9905_v15  ;;  %v655_v12 = vmax.f32 %v600_v33, 0.0  ;;  %v517_v15 = vadd.f32 %v9947_v28, %v10154_v42  ;;  %v657_v28 = vmax.f32 %v513_v10, 0.0  ;;  %v8951_v33 = vld [vmem:[%s12634_s4 + $0x2b8] sm:$0xff]   ;;  %v8971_v22 = vld [vmem:[%s12634_s4 + $0x290] sm:$0xff]  }
 0x33c   :  { %1953 = vmatpush1.bf16.msra.mxu1 %v7390_v21  ;;  %2046 = vmatpush1.bf16.msra.mxu0 %v7392_v1  ;;  %v12743_v21 = vmov 0   ;;  %v8948_v1 = vld [vmem:[%s12634_s4 + $0x278] sm:$0xff]  }
 0x33d   :  { %1747 = vmatprep.mubr.bf16.mxu1 %v685_v31  ;;  %1828 = vmatprep.mubr.bf16.mxu0 %v687_v38  ;;  %v691_v48 = vpack.c.bf16 %v655_v12, %v651_v62  ;;  %v661_v29 = vmax.f32 %v517_v15, 0.0  ;;  %v8952_v31 = vld [vmem:[%s12634_s4 + $0x270] sm:$0xff]   ;;  %v8959_v12 = vld [vmem:[%s12634_s4 + $0x2a8] sm:$0xff]   ;;  %v8961_v62 = vld [vmem:[%s12634_s4 + $0x2e0] sm:$0xff]  }
 0x33e   :  { %1954 = vmatprep.subr.bf16.mxu1 %v7387_v6  ;;  %2047 = vmatprep.subr.bf16.mxu0 %v7389_v49  ;;  %v8950_v6 = vld [vmem:[%s12634_s4 + $0x238] sm:$0xff]   ;;  %v8953_v49 = vld [vmem:[%s12634_s4 + $0x2f0] sm:$0xff]   ;;  %v8962_v15 = vld [vmem:[%s12634_s4 + $0x220] sm:$0xff]  }
 0x33f   :  { %v693_v27 = vpack.c.bf16 %v661_v29, %v657_v28  ;;  %v12749_v38 = vld [vmem:[#allocation26_spill] sm:$0xff]  ;;  %v8966_v10 = vld [vmem:[%s12634_s4 + $0x218] sm:$0xff]  }
 0x340   :  { %1955 = vmatpush1.bf16.msra.mxu1 %v7386_v63  ;;  %2048 = vmatpush1.bf16.msra.mxu0 %v7388_v4  ;;  %v8955_v63 = vld [vmem:[%s12634_s4 + $0x2b0] sm:$0xff]   ;;  %v8957_v4 = vld [vmem:[%s12634_s4 + $0x2e8] sm:$0xff]  }
 0x341   :  { %8218 = vmatprep.subr.bf16.mxu1 %v8948_v1  ;;  %8270 = vmatprep.subr.bf16.mxu0 %v8949_v32  ;;  %v8968_v29 = vld [vmem:[%s12634_s4 + $0x250] sm:$0xff]  }
 0x342   :  { %v8970_v28 = vld [vmem:[%s12634_s4 + $0x210] sm:$0xff]  }
 0x343   :  { %1748 = vmatmul.mubr.bf16.gmra.mxu1 %v9919_v40  ;;  %1829 = vmatmul.mubr.bf16.gmra.mxu0 %v9921_v34  ;;  %v620_v40 = vadd.f32 %v9965_v36, %v10165_v46  ;;  %v523_v34 = vadd.f32 %v9955_v51, %v10154_v42  ;;  %v537_v36 = vadd.f32 %v12733_v41, %v10154_v42  ;;  %v10396_v41 = vld [vmem:[%s12632_s2 + $0xb8] sm:$0xff] }
 0x344   :  { %1755 = vmatprep.mubr.bf16.mxu1 %v689_v35  ;;  %1836 = vmatprep.mubr.bf16.mxu0 %v691_v48  ;;  %v8963_v35 = vld [vmem:[%s12634_s4 + $0x2a0] sm:$0xff]   ;;  %v8965_v48 = vld [vmem:[%s12634_s4 + $0x2d8] sm:$0xff]  }
 0x345   :  { %v671_v14 = vmax.f32 %v620_v40, 0.0  ;;  %v665_v2 = vmax.f32 %v523_v34, 0.0  ;;  %v677_v16 = vmax.f32 %v537_v36, 0.0  ;;  %v8974_v40 = vld [vmem:[%s12634_s4 + $0x208] sm:$0xff]   ;;  %v8976_v34 = vld [vmem:[%s12634_s4 + $0x240] sm:$0xff]  }
 0x347   :  { %v697_v44 = vpack.c.bf16 %v669_v55, %v665_v2  ;;  %v699_v51 = vpack.c.bf16 %v671_v14, %v667_v59  ;;  %v8978_v55 = vld [vmem:[%s12634_s4 + $0x200] sm:$0xff]   ;;  %v10386_v2 = vld [vmem:[%s12632_s2 + $0xb0] sm:$0xff] }
 0x348   :  { %v8979_v14 = vld [vmem:[%s12634_s4 + $0x280] sm:$0xff]   ;;  %v10391_v59 = vld [vmem:[%s12632_s2 + $0xf0] sm:$0xff] }
 0x349   :  { %v7443_v36 = vcombine.low %v10386_v2, %v10391_v59 }
 0x34b   :  { %1756 = vmatmul.mubr.bf16.gmra.mxu1 %v9935_v54  ;;  %1837 = vmatmul.mubr.bf16.gmra.mxu0 %v9937_v58  ;;  %v12734_v54 = vld [vmem:[#allocation34_spill] sm:$0xff]  ;;  %v12736_v58 = vld [vmem:[#allocation31_spill] sm:$0xff] }
 0x34c   :  { %1763 = vmatprep.mubr.bf16.mxu1 %v693_v27  ;;  %1844 = vmatprep.mubr.bf16.mxu0 %v695_v18  ;;  %v630_v11 = vadd.f32 %v12734_v54, %v10165_v46  ;;  %v533_v61 = vadd.f32 %v12736_v58, %v10154_v42  ;;  %v12741_v42 = vld [vmem:[#allocation35_spill] sm:$0xff]  ;;  %v8973_v27 = vld [vmem:[%s12634_s4 + $0x2c8] sm:$0xff]  }
 0x34d   :  { %v12744_v46 = vld [vmem:[#allocation11_spill] sm:$0xff]  ;;  %v8975_v18 = vld [vmem:[%s12634_s4 + $0x288] sm:$0xff]  }
 0x34e   :  { %v679_v60 = vmax.f32 %v630_v11, 0.0  ;;  %v673_v30 = vmax.f32 %v533_v61, 0.0  ;;  %v10405_v54 = vld [vmem:[%s12632_s2 + $0xf8] sm:$0xff] }
 0x34f   :  { %v7445_v11 = vcombine.low %v10396_v41, %v10405_v54 }
 0x350   :  { %v701_v0 = vpack.c.bf16 %v677_v16, %v673_v30  ;;  %v703_v56 = vpack.c.bf16 %v679_v60, %v675_v53 }
 0x353   :  { %1764 = vmatmul.mubr.bf16.gmra.mxu1 %v12735_v39  ;;  %1845 = vmatmul.mubr.bf16.gmra.mxu0 %v12737_v7  ;;  %v7446_v39 = vcombine.high %v10396_v41, %v10405_v54 }
 0x354   :  { %1771 = vmatprep.mubr.bf16.mxu1 %v697_v44  ;;  %1852 = vmatprep.mubr.bf16.mxu0 %v699_v51  ;;  %v7444_v44 = vcombine.high %v10386_v2, %v10391_v59 }
 0x35b   :  { %1772 = vmatmul.mubr.bf16.gmra.mxu1 %v12739_v23  ;;  %1853 = vmatmul.mubr.bf16.gmra.mxu0 %v12740_v13 }
 0x35c   :  { %1779 = vmatprep.mubr.bf16.mxu1 %v701_v0  ;;  %1860 = vmatprep.mubr.bf16.mxu0 %v703_v56 }
 0x363   :  { %1780 = vmatmul.mubr.bf16.gmra.mxu1 %v12741_v42  ;;  %1861 = vmatmul.mubr.bf16.gmra.mxu0 %v12742_v43 }
 0x364   :  { %1972 = vmatprep.mubr.bf16.mxu1 %v12743_v21  ;;  %2065 = vmatprep.mubr.bf16.mxu0 %v12743_v21 }
 0x36b   :  { %7394 = vmatmul.mubr.msk.bf16.vlgmr.msra.gmra.mxu1 %vm51_vm0, %v12744_v46  ;;  %7400 = vmatmul.mubr.msk.bf16.vlgmr.msra.gmra.mxu0 %vm51_vm0, %v12744_v46 }
 0x36c   :  { %1982 = vmatprep.mubr.bf16.mxu1 %v12743_v21  ;;  %2075 = vmatprep.mubr.bf16.mxu0 %v12743_v21 }
 0x36d   :  { %8219 = vmatpush3.bf16.msra.mxu1 %v8950_v6  ;;  %8271 = vmatpush3.bf16.msra.mxu0 %v8951_v33 }
 0x36e   :  { %8220 = vmatprep.subr.bf16.mxu1 %v8952_v31  ;;  %8272 = vmatprep.subr.bf16.mxu0 %v8953_v49 }
 0x371   :  { %8221 = vmatpush3.bf16.msra.mxu1 %v8954_v26  ;;  %8273 = vmatpush3.bf16.msra.mxu0 %v8955_v63 }
 0x372   :  { %8222 = vmatprep.subr.bf16.mxu1 %v8956_v19  ;;  %8274 = vmatprep.subr.bf16.mxu0 %v8957_v4 }
 0x373   :  { %7395 = vmatmul.mubr.msk.bf16.gmra.mxu1 %vm51_vm0, %v12745_v17  ;;  %7401 = vmatmul.mubr.msk.bf16.gmra.mxu0 %vm51_vm0, %v12745_v17 }
 0x374   :  { %1992 = vmatprep.mubr.bf16.mxu1 %v12743_v21  ;;  %2085 = vmatprep.mubr.bf16.mxu0 %v12743_v21 }
 0x375   :  { %8223 = vmatpush3.bf16.msra.mxu1 %v8958_v57  ;;  %8275 = vmatpush3.bf16.msra.mxu0 %v8959_v12 }
 0x376   :  { %8224 = vmatprep.subr.bf16.mxu1 %v8960_v5  ;;  %8276 = vmatprep.subr.bf16.mxu0 %v8961_v62 }
 0x379   :  { %8225 = vmatpush3.bf16.msra.mxu1 %v8962_v15  ;;  %8277 = vmatpush3.bf16.msra.mxu0 %v8963_v35 }
 0x37a   :  { %8226 = vmatprep.subr.bf16.mxu1 %v8964_v3  ;;  %8278 = vmatprep.subr.bf16.mxu0 %v8965_v48 }
 0x37b   :  { %7396 = vmatmul.mubr.msk.bf16.gmra.mxu1 %vm51_vm0, %v12746_v50  ;;  %7402 = vmatmul.mubr.msk.bf16.gmra.mxu0 %vm51_vm0, %v12746_v50 }
 0x37c   :  { %2002 = vmatprep.mubr.bf16.mxu1 %v12743_v21  ;;  %2095 = vmatprep.mubr.bf16.mxu0 %v12743_v21 }
 0x37d   :  { %8227 = vmatpush3.bf16.msra.mxu1 %v8966_v10  ;;  %8279 = vmatpush3.bf16.msra.mxu0 %v8967_v25 }
 0x37e   :  { %8228 = vmatprep.subr.bf16.mxu1 %v8968_v29  ;;  %8280 = vmatprep.subr.bf16.mxu0 %v8969_v8 }
 0x381   :  { %8229 = vmatpush3.bf16.msra.mxu1 %v8970_v28  ;;  %8281 = vmatpush3.bf16.msra.mxu0 %v8971_v22 }
 0x382   :  { %8230 = vmatprep.subr.bf16.mxu1 %v8972_v37  ;;  %8282 = vmatprep.subr.bf16.mxu0 %v8973_v27 }
 0x383   :  { %7397 = vmatmul.mubr.msk.bf16.gmra.mxu1 %vm51_vm0, %v12747_v45  ;;  %7403 = vmatmul.mubr.msk.bf16.gmra.mxu0 %vm51_vm0, %v12747_v45 }
 0x384   :  { %2012 = vmatprep.mubr.bf16.mxu1 %v12743_v21  ;;  %2105 = vmatprep.mubr.bf16.mxu0 %v12743_v21 }
 0x385   :  { %8231 = vmatpush3.bf16.msra.mxu1 %v8974_v40  ;;  %8283 = vmatpush3.bf16.msra.mxu0 %v8975_v18 }
 0x386   :  { %8232 = vmatprep.subr.bf16.mxu1 %v8976_v34  ;;  %8284 = vmatprep.subr.bf16.mxu0 %v8977_v20 }
 0x389   :  { %8233 = vmatpush3.bf16.msra.mxu1 %v8978_v55  ;;  %8285 = vmatpush3.bf16.msra.mxu0 %v8979_v14 }
 0x38a   :  { %2711 = vmatprep.subr.bf16.mxu1 %v7444_v44  ;;  %2804 = vmatprep.subr.bf16.mxu0 %v7446_v39 }
 0x38b   :  { %7398 = vmatmul.mubr.msk.bf16.gmra.mxu1 %vm51_vm0, %v12748_v47  ;;  %7404 = vmatmul.mubr.msk.bf16.gmra.mxu0 %vm51_vm0, %v12748_v47 }
 0x38c   :  { %2022 = vmatprep.mubr.bf16.mxu1 %v12743_v21  ;;  %2115 = vmatprep.mubr.bf16.mxu0 %v12743_v21 }
 0x393   :  { %7399 = vmatmul.mubr.msk.bf16.gmra.mxu1 %vm51_vm0, %v12749_v38  ;;  %7405 = vmatmul.mubr.msk.bf16.gmra.mxu0 %vm51_vm0, %v12749_v38 }
 0x3cb   :  { %v8026_v51 = vpop.f32.mrf.mxu1  ;;  %v8078_v58 = vpop.f32.mrf.mxu0 }
 0x3cd   :  { %v8027_v61 = vpop.f32.mrf.mxu1  ;;  %v8079_v7 = vpop.f32.mrf.mxu0 }
 0x3ce   :  { %v8028_v52 = vadd.f32 %v8027_v61, %v8026_v51  ;;  %v8080_v9 = vadd.f32 %v8079_v7, %v8078_v58 }
 0x3cf   :  { %v8029_v16 = vpop.f32.mrf.mxu1  ;;  %v8081_v60 = vpop.f32.mrf.mxu0 }
 0x3d0   :  { %v10411_v30 = vadd.f32 %v8080_v9, %v8028_v52 }
 0x3d1   :  { %v8030_v53 = vpop.f32.mrf.mxu1  ;;  %v8082_v0 = vpop.f32.mrf.mxu0 }
 0x3d2   :  { %v8031_v23 = vadd.f32 %v8030_v53, %v8029_v16  ;;  %v8083_v56 = vadd.f32 %v8082_v0, %v8081_v60 }
 0x3d3   :  { %v8032_v13 = vpop.f32.mrf.mxu1  ;;  %v8084_v43 = vpop.f32.mrf.mxu0 }
 0x3d4   :  { %v10413_v42 = vadd.f32 %v8083_v56, %v8031_v23 }
 0x3d5   :  { %v8033_v1 = vpop.f32.mrf.mxu1  ;;  %v8085_v6 = vpop.f32.mrf.mxu0 }
 0x3d6   :  { %v8034_v32 = vadd.f32 %v8033_v1, %v8032_v13  ;;  %v8086_v33 = vadd.f32 %v8085_v6, %v8084_v43 }
 0x3d7   :  { %v8035_v31 = vpop.f32.mrf.mxu1  ;;  %v8087_v49 = vpop.f32.mrf.mxu0 }
 0x3d8   :  { %v10415_v26 = vadd.f32 %v8086_v33, %v8034_v32 }
 0x3d9   :  { %v8036_v63 = vpop.f32.mrf.mxu1  ;;  %v8088_v4 = vpop.f32.mrf.mxu0 }
 0x3da   :  { %v8037_v19 = vadd.f32 %v8036_v63, %v8035_v31  ;;  %v8089_v57 = vadd.f32 %v8088_v4, %v8087_v49 }
 0x3db   :  { %v8038_v12 = vpop.f32.mrf.mxu1  ;;  %v8090_v5 = vpop.f32.mrf.mxu0 }
 0x3dc   :  { %v10417_v62 = vadd.f32 %v8089_v57, %v8037_v19 }
 0x3dd   :  { %v8039_v15 = vpop.f32.mrf.mxu1  ;;  %v8091_v3 = vpop.f32.mrf.mxu0 }
 0x3de   :  { %v8040_v35 = vadd.f32 %v8039_v15, %v8038_v12  ;;  %v8092_v48 = vadd.f32 %v8091_v3, %v8090_v5 }
 0x3df   :  { %v8041_v10 = vpop.f32.mrf.mxu1  ;;  %v8093_v25 = vpop.f32.mrf.mxu0 }
 0x3e0   :  { %v10419_v29 = vadd.f32 %v8092_v48, %v8040_v35 }
 0x3e1   :  { %v8042_v8 = vpop.f32.mrf.mxu1  ;;  %v8094_v22 = vpop.f32.mrf.mxu0 }
 0x3e2   :  { %v8043_v28 = vadd.f32 %v8042_v8, %v8041_v10  ;;  %v8095_v37 = vadd.f32 %v8094_v22, %v8093_v25 }
 0x3e3   :  { %v8044_v27 = vpop.f32.mrf.mxu1  ;;  %v8096_v40 = vpop.f32.mrf.mxu0 }
 0x3e4   :  { %v10421_v18 = vadd.f32 %v8095_v37, %v8043_v28 }
 0x3e5   :  { %v8045_v34 = vpop.f32.mrf.mxu1  ;;  %v8097_v55 = vpop.f32.mrf.mxu0 }
 0x3e6   :  { %v8046_v20 = vadd.f32 %v8045_v34, %v8044_v27  ;;  %v8098_v14 = vadd.f32 %v8097_v55, %v8096_v40 }
 0x3e7   :  { %v8047_v44 = vpop.f32.mrf.mxu1  ;;  %v8099_v39 = vpop.f32.mrf.mxu0 }
 0x3e8   :  { %v10423_v51 = vadd.f32 %v8098_v14, %v8046_v20 }
 0x3e9   :  { %v8048_v58 = vpop.f32.mrf.mxu1  ;;  %v8100_v7 = vpop.f32.mrf.mxu0 }
 0x3ea   :  { %v8049_v61 = vadd.f32 %v8048_v58, %v8047_v44  ;;  %v8101_v52 = vadd.f32 %v8100_v7, %v8099_v39 }
 0x3eb   :  { %v8050_v9 = vpop.f32.mrf.mxu1  ;;  %v8102_v16 = vpop.f32.mrf.mxu0 }
 0x3ec   :  { %v10425_v60 = vadd.f32 %v8101_v52, %v8049_v61 }
 0x3ed   :  { %v8051_v53 = vpop.f32.mrf.mxu1  ;;  %v8103_v23 = vpop.f32.mrf.mxu0 }
 0x3ee   :  { %v8052_v0 = vadd.f32 %v8051_v53, %v8050_v9  ;;  %v8104_v56 = vadd.f32 %v8103_v23, %v8102_v16 }
 0x3ef   :  { %v8053_v13 = vpop.f32.mrf.mxu1  ;;  %v8105_v43 = vpop.f32.mrf.mxu0 }
 0x3f0   :  { %v10427_v1 = vadd.f32 %v8104_v56, %v8052_v0 }
 0x3f1   :  { %v8054_v32 = vpop.f32.mrf.mxu1  ;;  %v8106_v33 = vpop.f32.mrf.mxu0 }
 0x3f2   :  { %v8055_v6 = vadd.f32 %v8054_v32, %v8053_v13  ;;  %v8107_v31 = vadd.f32 %v8106_v33, %v8105_v43 }
 0x3f3   :  { %v8056_v49 = vpop.f32.mrf.mxu1  ;;  %v8108_v63 = vpop.f32.mrf.mxu0 }
 0x3f4   :  { %v10429_v19 = vadd.f32 %v8107_v31, %v8055_v6 }
 0x3f5   :  { %v8057_v4 = vpop.f32.mrf.mxu1  ;;  %v8109_v12 = vpop.f32.mrf.mxu0 }
 0x3f6   :  { %v8058_v57 = vadd.f32 %v8057_v4, %v8056_v49  ;;  %v8110_v5 = vadd.f32 %v8109_v12, %v8108_v63 }
 0x3f7   :  { %v8059_v15 = vpop.f32.mrf.mxu1  ;;  %v8111_v35 = vpop.f32.mrf.mxu0 }
 0x3f8   :  { %v10431_v3 = vadd.f32 %v8110_v5, %v8058_v57 }
 0x3f9   :  { %v8060_v48 = vpop.f32.mrf.mxu1  ;;  %v8112_v25 = vpop.f32.mrf.mxu0 }
 0x3fa   :  { %v8061_v10 = vadd.f32 %v8060_v48, %v8059_v15  ;;  %v8113_v8 = vadd.f32 %v8112_v25, %v8111_v35 }
 0x3fb   :  { %v8130_v28 = vpop.f32.mrf.mxu1  ;;  %v8182_v22 = vpop.f32.mrf.mxu0 }
 0x3fc   :  { %v10433_v37 = vadd.f32 %v8113_v8, %v8061_v10 }
 0x3fd   :  { %v8131_v27 = vpop.f32.mrf.mxu1  ;;  %v8183_v34 = vpop.f32.mrf.mxu0 }
 0x3fe   :  { %v8132_v40 = vadd.f32 %v8131_v27, %v8130_v28  ;;  %v8184_v20 = vadd.f32 %v8183_v34, %v8182_v22 }
 0x3ff   :  { %v8133_v55 = vpop.f32.mrf.mxu1  ;;  %v8185_v44 = vpop.f32.mrf.mxu0 }
 0x400   :  { %v1742_v14 = vadd.f32 %v8132_v40, %v10411_v30 }
 0x401   :  { %v8134_v39 = vpop.f32.mrf.mxu1  ;;  %v8186_v7 = vpop.f32.mrf.mxu0 }
 0x402   :  { %v10436_v58 = vadd.f32 %v8184_v20, %v1742_v14  ;;  %v8135_v61 = vadd.f32 %v8134_v39, %v8133_v55  ;;  %v8187_v16 = vadd.f32 %v8186_v7, %v8185_v44 }
 0x403   :  { %v8136_v52 = vpop.f32.mrf.mxu1  ;;  %v8188_v53 = vpop.f32.mrf.mxu0 }
 0x404   :  { %v1745_v9 = vadd.f32 %v8135_v61, %v10413_v42 }
 0x405   :  { %v8137_v0 = vpop.f32.mrf.mxu1  ;;  %v8189_v13 = vpop.f32.mrf.mxu0 }
 0x406   :  { %v10439_v23 = vadd.f32 %v8187_v16, %v1745_v9  ;;  %v8138_v56 = vadd.f32 %v8137_v0, %v8136_v52  ;;  %v8190_v43 = vadd.f32 %v8189_v13, %v8188_v53 }
 0x407   :  { %v8139_v32 = vpop.f32.mrf.mxu1  ;;  %v8191_v6 = vpop.f32.mrf.mxu0 }
 0x408   :  { %v1750_v30 = vadd.f32 %v8138_v56, %v10415_v26 }
 0x409   :  { %v8140_v33 = vpop.f32.mrf.mxu1  ;;  %v8192_v63 = vpop.f32.mrf.mxu0 }
 0x40a   :  { %v10442_v31 = vadd.f32 %v8190_v43, %v1750_v30  ;;  %v8141_v49 = vadd.f32 %v8140_v33, %v8139_v32  ;;  %v8193_v57 = vadd.f32 %v8192_v63, %v8191_v6 }
 0x40b   :  { %v8142_v4 = vpop.f32.mrf.mxu1  ;;  %v8194_v12 = vpop.f32.mrf.mxu0 }
 0x40c   :  { %v1753_v42 = vadd.f32 %v8141_v49, %v10417_v62 }
 0x40d   :  { %v8143_v5 = vpop.f32.mrf.mxu1  ;;  %v8195_v48 = vpop.f32.mrf.mxu0 }
 0x40e   :  { %v10445_v15 = vadd.f32 %v8193_v57, %v1753_v42  ;;  %v8144_v35 = vadd.f32 %v8143_v5, %v8142_v4  ;;  %v8196_v10 = vadd.f32 %v8195_v48, %v8194_v12 }
 0x40f   :  { %v8145_v25 = vpop.f32.mrf.mxu1  ;;  %v8197_v8 = vpop.f32.mrf.mxu0 }
 0x410   :  { %v1758_v26 = vadd.f32 %v8144_v35, %v10419_v29 }
 0x411   :  { %v8146_v28 = vpop.f32.mrf.mxu1  ;;  %v8198_v40 = vpop.f32.mrf.mxu0 }
 0x412   :  { %v10448_v22 = vadd.f32 %v8196_v10, %v1758_v26  ;;  %v8147_v27 = vadd.f32 %v8146_v28, %v8145_v25  ;;  %v8199_v20 = vadd.f32 %v8198_v40, %v8197_v8 }
 0x413   :  { %v8148_v34 = vpop.f32.mrf.mxu1  ;;  %v8200_v55 = vpop.f32.mrf.mxu0 }
 0x414   :  { %v1761_v62 = vadd.f32 %v8147_v27, %v10421_v18 }
 0x415   :  { %v8149_v14 = vpop.f32.mrf.mxu1  ;;  %v8201_v61 = vpop.f32.mrf.mxu0 }
 0x416   :  { %v10451_v44 = vadd.f32 %v8199_v20, %v1761_v62  ;;  %v8150_v39 = vadd.f32 %v8149_v14, %v8148_v34  ;;  %v8202_v7 = vadd.f32 %v8201_v61, %v8200_v55 }
 0x417   :  { %v8151_v52 = vpop.f32.mrf.mxu1  ;;  %v8203_v9 = vpop.f32.mrf.mxu0 }
 0x418   :  { %v1766_v29 = vadd.f32 %v8150_v39, %v10423_v51 }
 0x419   :  { %v8152_v16 = vpop.f32.mrf.mxu1  ;;  %v8204_v56 = vpop.f32.mrf.mxu0 }
 0x41a   :  { %v10454_v53 = vadd.f32 %v8202_v7, %v1766_v29  ;;  %v8153_v0 = vadd.f32 %v8152_v16, %v8151_v52  ;;  %v8205_v43 = vadd.f32 %v8204_v56, %v8203_v9  ;;  %v12750_v9 = vld [vmem:[#allocation7_spill] sm:$0xff] }
 0x41b   :  { %v8154_v13 = vpop.f32.mrf.mxu1  ;;  %v8206_v32 = vpop.f32.mrf.mxu0 }
 0x41c   :  { %v1769_v18 = vadd.f32 %v8153_v0, %v10425_v60  ;;  %v12751_v0 = vld [vmem:[#allocation6_spill] sm:$0xff] }
 0x41d   :  { %v8155_v30 = vpop.f32.mrf.mxu1  ;;  %v8207_v49 = vpop.f32.mrf.mxu0 }
 0x41e   :  { %v10457_v6 = vadd.f32 %v8205_v43, %v1769_v18  ;;  %v8156_v33 = vadd.f32 %v8155_v30, %v8154_v13  ;;  %v8208_v63 = vadd.f32 %v8207_v49, %v8206_v32  ;;  %v12752_v43 = vld [vmem:[#allocation8_spill] sm:$0xff] }
 0x41f   :  { %v8157_v4 = vpop.f32.mrf.mxu1  ;;  %v8209_v42 = vpop.f32.mrf.mxu0 }
 0x420   :  { %v1774_v51 = vadd.f32 %v8156_v33, %v10427_v1 }
 0x421   :  { %v8158_v57 = vpop.f32.mrf.mxu1  ;;  %v8210_v35 = vpop.f32.mrf.mxu0 }
 0x422   :  { %v10460_v12 = vadd.f32 %v8208_v63, %v1774_v51  ;;  %v8159_v5 = vadd.f32 %v8158_v57, %v8157_v4  ;;  %v8211_v10 = vadd.f32 %v8210_v35, %v8209_v42 }
 0x423   :  { %v8160_v48 = vpop.f32.mrf.mxu1  ;;  %v8212_v25 = vpop.f32.mrf.mxu0 }
 0x424   :  { %v1777_v60 = vadd.f32 %v8159_v5, %v10429_v19  ;;  %v7385_v19 = vld [vmem:[%s12633_s3 + $0x10] ss:$2 sm:$0xf] }
 0x425   :  { %v8161_v26 = vpop.f32.mrf.mxu1  ;;  %v8213_v27 = vpop.f32.mrf.mxu0  ;;  %v10473_v16 = vrot.slane %v7385_v19, %v12750_v9  ;;  %v10479_v13 = vrot.slane %v7385_v19, %v9980_v24  ;;  %v10484_v32 = vrot.slane %v7385_v19, %v12752_v43 }
 0x426   :  { %v10463_v8 = vadd.f32 %v8211_v10, %v1777_v60  ;;  %v8162_v28 = vadd.f32 %v8161_v26, %v8160_v48  ;;  %v8214_v40 = vadd.f32 %v8213_v27, %v8212_v25 }
 0x427   :  { %v8163_v34 = vpop.f32.mrf.mxu1  ;;  %v8215_v62 = vpop.f32.mrf.mxu0 }
 0x428   :  { %v1782_v1 = vadd.f32 %v8162_v28, %v10431_v3  ;;  %v10476_v3 = vrot.slane %v7385_v19, %v12751_v0  ;;  %v2631_v19 = vld [vmem:[%s12632_s2 + $0x38] sm:$0xff] }
 0x429   :  { %v8164_v20 = vpop.f32.mrf.mxu1  ;;  %v8216_v39 = vpop.f32.mrf.mxu0 }
 0x42a   :  { %v10466_v55 = vadd.f32 %v8214_v40, %v1782_v1  ;;  %v8165_v14 = vadd.f32 %v8164_v20, %v8163_v34  ;;  %v8217_v52 = vadd.f32 %v8216_v39, %v8215_v62  ;;  %v2630_v34 = vld [vmem:[%s12632_s2 + $0x30] sm:$0xff] }
 0x42b   :  { %v1974_v61 = vpop.f32.mrf.mxu1  ;;  %v2067_v29 = vpop.f32.mrf.mxu0  ;;  %v2632_v1 = vld [vmem:[%s12632_s2 + $0x70] sm:$0xff] }
 0x42c   :  { %v1785_v7 = vadd.f32 %v8165_v14, %v10433_v37  ;;  %v1975_v4 = vadd.f32 %v1974_v61, %v10476_v3  ;;  %v2068_v5 = vadd.f32 %v2067_v29, %v10484_v32  ;;  %v2633_v61 = vld [vmem:[%s12632_s2 + $0x78] sm:$0xff] }
 0x42d   :  { %v1976_v56 = vpop.f32.mrf.mxu1  ;;  %v2069_v30 = vpop.f32.mrf.mxu0 }
 0x42e   :  { %v10481_v18 = vadd.f32 %v8217_v52, %v1785_v7  ;;  %v1977_v37 = vadd.f32 %v1976_v56, %v10473_v16  ;;  %v2070_v51 = vadd.f32 %v2069_v30, %v10479_v13  ;;  %v2126_v62 = vmax.f32 %v1975_v4, 0.0 }
 0x42f   :  { %v1978_v33 = vpop.f32.mrf.mxu1  ;;  %v2071_v63 = vpop.f32.mrf.mxu0  ;;  %v2128_v7 = vmax.f32 %v2068_v5, 0.0 }
 0x430   :  { %v1979_v49 = vadd.f32 %v1978_v33, %v10476_v3  ;;  %v2072_v42 = vadd.f32 %v2071_v63, %v10484_v32  ;;  %v2127_v26 = vmax.f32 %v1977_v37, 0.0  ;;  %v2129_v20 = vmax.f32 %v2070_v51, 0.0 }
 0x431   :  { %v1980_v57 = vpop.f32.mrf.mxu1  ;;  %v2073_v48 = vpop.f32.mrf.mxu0  ;;  %v7440_v37 = vcombine.high %v2630_v34, %v2632_v1 }
 0x432   :  { %v1981_v35 = vadd.f32 %v1980_v57, %v10473_v16  ;;  %v2130_v60 = vmax.f32 %v1979_v49, 0.0  ;;  %v2074_v10 = vadd.f32 %v2073_v48, %v10479_v13  ;;  %v2132_v28 = vmax.f32 %v2072_v42, 0.0 }
 0x433   :  { %v1984_v25 = vpop.f32.mrf.mxu1  ;;  %v2077_v40 = vpop.f32.mrf.mxu0  ;;  %v7442_v42 = vcombine.high %v2631_v19, %v2633_v61 }
 0x434   :  { %v2131_v27 = vmax.f32 %v1981_v35, 0.0  ;;  %v2133_v14 = vmax.f32 %v2074_v10, 0.0  ;;  %v2174_v56 = vpack.c.bf16 %v2130_v60, %v2126_v62  ;;  %v2176_v49 = vpack.c.bf16 %v2132_v28, %v2128_v7 }
 0x435   :  { %v1986_v39 = vpop.f32.mrf.mxu1  ;;  %v2079_v52 = vpop.f32.mrf.mxu0  ;;  %v1985_v57 = vadd.f32 %v1984_v25, %v10476_v3  ;;  %v2078_v60 = vadd.f32 %v2077_v40, %v10484_v32  ;;  %v7439_v28 = vcombine.low %v2630_v34, %v2632_v1 }
 0x436   :  { %v2175_v29 = vpack.c.bf16 %v2131_v27, %v2127_v26  ;;  %v2177_v33 = vpack.c.bf16 %v2133_v14, %v2129_v20  ;;  %v1987_v63 = vadd.f32 %v1986_v39, %v10473_v16  ;;  %v2080_v35 = vadd.f32 %v2079_v52, %v10479_v13 }
 0x437   :  { %v1988_v30 = vpop.f32.mrf.mxu1  ;;  %v2081_v51 = vpop.f32.mrf.mxu0  ;;  %v7441_v20 = vcombine.low %v2631_v19, %v2633_v61  ;;  %v2134_v52 = vmax.f32 %v1985_v57, 0.0 }
 0x438   :  { %v1989_v4 = vadd.f32 %v1988_v30, %v10476_v3  ;;  %2486 = vmatprep.mubr.bf16.mxu1 %v2175_v29  ;;  %v2082_v5 = vadd.f32 %v2081_v51, %v10484_v32  ;;  %2567 = vmatprep.mubr.bf16.mxu0 %v2177_v33  ;;  %v2135_v40 = vmax.f32 %v1987_v63, 0.0  ;;  %v2137_v29 = vmax.f32 %v2080_v35, 0.0 }
 0x439   :  { %v1990_v48 = vpop.f32.mrf.mxu1  ;;  %2487 = vmatmul.mubr.bf16.vlgmr.msra.gmra.mxu1 %v2174_v56  ;;  %v2083_v26 = vpop.f32.mrf.mxu0  ;;  %2568 = vmatmul.mubr.bf16.vlgmr.msra.gmra.mxu0 %v2176_v49 }
 0x43a   :  { %v1991_v10 = vadd.f32 %v1990_v48, %v10473_v16  ;;  %2712 = vmatpush1.bf16.msra.mxu1 %v7443_v36  ;;  %v2138_v27 = vmax.f32 %v1989_v4, 0.0  ;;  %v2084_v25 = vadd.f32 %v2083_v26, %v10479_v13  ;;  %2805 = vmatpush1.bf16.msra.mxu0 %v7445_v11  ;;  %v2140_v14 = vmax.f32 %v2082_v5, 0.0 }
 0x43b   :  { %v1994_v62 = vpop.f32.mrf.mxu1  ;;  %2713 = vmatprep.subr.bf16.mxu1 %v7440_v37  ;;  %v2087_v7 = vpop.f32.mrf.mxu0  ;;  %2806 = vmatprep.subr.bf16.mxu0 %v7442_v42  ;;  %v2136_v36 = vmax.f32 %v2078_v60, 0.0 }
 0x43c   :  { %v2139_v39 = vmax.f32 %v1991_v10, 0.0  ;;  %v2141_v2 = vmax.f32 %v2084_v25, 0.0  ;;  %v2178_v56 = vpack.c.bf16 %v2138_v27, %v2134_v52  ;;  %v1995_v33 = vadd.f32 %v1994_v62, %v10476_v3 }
 0x43d   :  { %v1996_v59 = vpop.f32.mrf.mxu1  ;;  %v2089_v34 = vpop.f32.mrf.mxu0  ;;  %v2180_v54 = vpack.c.bf16 %v2140_v14, %v2136_v36  ;;  %v2088_v4 = vadd.f32 %v2087_v7, %v10484_v32 }
 0x43e   :  { %v2179_v1 = vpack.c.bf16 %v2139_v39, %v2135_v40  ;;  %2714 = vmatpush1.bf16.msra.mxu1 %v7439_v28  ;;  %v2181_v41 = vpack.c.bf16 %v2141_v2, %v2137_v29  ;;  %2807 = vmatpush1.bf16.msra.mxu0 %v7441_v20  ;;  %v1997_v11 = vadd.f32 %v1996_v59, %v10473_v16  ;;  %v2142_v28 = vmax.f32 %v1995_v33, 0.0 }
 0x43f   :  { %v1998_v30 = vpop.f32.mrf.mxu1  ;;  %v2091_v61 = vpop.f32.mrf.mxu0  ;;  %v2090_v37 = vadd.f32 %v2089_v34, %v10479_v13  ;;  %v2144_v20 = vmax.f32 %v2088_v4, 0.0 }
 0x440   :  { %v1999_v19 = vadd.f32 %v1998_v30, %v10476_v3  ;;  %2494 = vmatprep.mubr.bf16.mxu1 %v2179_v1  ;;  %v2092_v49 = vadd.f32 %v2091_v61, %v10484_v32  ;;  %2575 = vmatprep.mubr.bf16.mxu0 %v2181_v41  ;;  %v2143_v48 = vmax.f32 %v1997_v11, 0.0 }
 0x441   :  { %v2000_v63 = vpop.f32.mrf.mxu1  ;;  %2495 = vmatmul.mubr.bf16.gmra.mxu1 %v2178_v56  ;;  %v2093_v42 = vpop.f32.mrf.mxu0  ;;  %2576 = vmatmul.mubr.bf16.gmra.mxu0 %v2180_v54  ;;  %v2145_v27 = vmax.f32 %v2090_v37, 0.0 }
 0x442   :  { %v2001_v51 = vadd.f32 %v2000_v63, %v10473_v16  ;;  %v2146_v57 = vmax.f32 %v1999_v19, 0.0  ;;  %v2094_v35 = vadd.f32 %v2093_v42, %v10479_v13  ;;  %v2148_v60 = vmax.f32 %v2092_v49, 0.0 }
 0x443   :  { %v2004_v5 = vpop.f32.mrf.mxu1  ;;  %v2097_v26 = vpop.f32.mrf.mxu0 }
 0x444   :  { %v2147_v10 = vmax.f32 %v2001_v51, 0.0  ;;  %v2149_v25 = vmax.f32 %v2094_v35, 0.0  ;;  %v2182_v39 = vpack.c.bf16 %v2146_v57, %v2142_v28  ;;  %v2184_v29 = vpack.c.bf16 %v2148_v60, %v2144_v20 }
 0x445   :  { %v2006_v62 = vpop.f32.mrf.mxu1  ;;  %v2099_v40 = vpop.f32.mrf.mxu0  ;;  %v2005_v34 = vadd.f32 %v2004_v5, %v10476_v3  ;;  %v2098_v41 = vadd.f32 %v2097_v26, %v10484_v32 }
 0x446   :  { %v2183_v14 = vpack.c.bf16 %v2147_v10, %v2143_v48  ;;  %v2185_v52 = vpack.c.bf16 %v2149_v25, %v2145_v27  ;;  %v2007_v2 = vadd.f32 %v2006_v62, %v10473_v16  ;;  %v2100_v1 = vadd.f32 %v2099_v40, %v10479_v13 }
 0x447   :  { %v2008_v7 = vpop.f32.mrf.mxu1  ;;  %v2101_v36 = vpop.f32.mrf.mxu0  ;;  %v2150_v51 = vmax.f32 %v2005_v34, 0.0  ;;  %v2152_v5 = vmax.f32 %v2098_v41, 0.0 }
 0x448   :  { %v2009_v59 = vadd.f32 %v2008_v7, %v10476_v3  ;;  %2502 = vmatprep.mubr.bf16.mxu1 %v2183_v14  ;;  %v2102_v56 = vadd.f32 %v2101_v36, %v10484_v32  ;;  %2583 = vmatprep.mubr.bf16.mxu0 %v2185_v52  ;;  %v2151_v37 = vmax.f32 %v2007_v2, 0.0  ;;  %v2153_v42 = vmax.f32 %v2100_v1, 0.0 }
 0x449   :  { %v2010_v30 = vpop.f32.mrf.mxu1  ;;  %2503 = vmatmul.mubr.bf16.gmra.mxu1 %v2182_v39  ;;  %v2103_v11 = vpop.f32.mrf.mxu0  ;;  %2584 = vmatmul.mubr.bf16.gmra.mxu0 %v2184_v29 }
 0x44a   :  { %v2011_v54 = vadd.f32 %v2010_v30, %v10473_v16  ;;  %v2154_v19 = vmax.f32 %v2009_v59, 0.0  ;;  %v2104_v61 = vadd.f32 %v2103_v11, %v10479_v13  ;;  %v2156_v49 = vmax.f32 %v2102_v56, 0.0 }
 0x44b   :  { %v2014_v33 = vpop.f32.mrf.mxu1  ;;  %v2107_v4 = vpop.f32.mrf.mxu0 }
 0x44c   :  { %v2155_v63 = vmax.f32 %v2011_v54, 0.0  ;;  %v2157_v57 = vmax.f32 %v2104_v61, 0.0  ;;  %v2186_v10 = vpack.c.bf16 %v2154_v19, %v2150_v51  ;;  %v2188_v27 = vpack.c.bf16 %v2156_v49, %v2152_v5 }
 0x44d   :  { %v2016_v35 = vpop.f32.mrf.mxu1  ;;  %v2109_v48 = vpop.f32.mrf.mxu0  ;;  %v2015_v40 = vadd.f32 %v2014_v33, %v10476_v3  ;;  %v2108_v52 = vadd.f32 %v2107_v4, %v10484_v32 }
 0x44e   :  { %v2187_v60 = vpack.c.bf16 %v2155_v63, %v2151_v37  ;;  %v2189_v28 = vpack.c.bf16 %v2157_v57, %v2153_v42  ;;  %v2017_v25 = vadd.f32 %v2016_v35, %v10473_v16  ;;  %v2110_v14 = vadd.f32 %v2109_v48, %v10479_v13 }
 0x44f   :  { %v2018_v26 = vpop.f32.mrf.mxu1  ;;  %v2111_v20 = vpop.f32.mrf.mxu0  ;;  %v2158_v54 = vmax.f32 %v2015_v40, 0.0  ;;  %v2160_v33 = vmax.f32 %v2108_v52, 0.0 }
 0x450   :  { %v2019_v62 = vadd.f32 %v2018_v26, %v10476_v3  ;;  %2510 = vmatprep.mubr.bf16.mxu1 %v2187_v60  ;;  %v2112_v39 = vadd.f32 %v2111_v20, %v10484_v32  ;;  %2591 = vmatprep.mubr.bf16.mxu0 %v2189_v28  ;;  %v2159_v1 = vmax.f32 %v2017_v25, 0.0  ;;  %v2161_v11 = vmax.f32 %v2110_v14, 0.0 }
 0x451   :  { %v2020_v7 = vpop.f32.mrf.mxu1  ;;  %2511 = vmatmul.mubr.bf16.gmra.mxu1 %v2186_v10  ;;  %v2113_v2 = vpop.f32.mrf.mxu0  ;;  %2592 = vmatmul.mubr.bf16.gmra.mxu0 %v2188_v27 }
 0x452   :  { %v2021_v29 = vadd.f32 %v2020_v7, %v10473_v16  ;;  %v2162_v59 = vmax.f32 %v2019_v62, 0.0  ;;  %v2114_v36 = vadd.f32 %v2113_v2, %v10479_v13  ;;  %v2164_v56 = vmax.f32 %v2112_v39, 0.0 }
 0x453   :  { %v2024_v34 = vpop.f32.mrf.mxu1  ;;  %v2117_v41 = vpop.f32.mrf.mxu0 }
 0x454   :  { %v2163_v30 = vmax.f32 %v2021_v29, 0.0  ;;  %v2165_v19 = vmax.f32 %v2114_v36, 0.0  ;;  %v2190_v63 = vpack.c.bf16 %v2162_v59, %v2158_v54  ;;  %v2192_v42 = vpack.c.bf16 %v2164_v56, %v2160_v33  ;;  %v8989_v56 = vld [vmem:[%s12634_s4 + $0x3e8] sm:$0xff]   ;;  %v8993_v54 = vld [vmem:[%s12634_s4 + $0x3e0] sm:$0xff]   ;;  %v8997_v33 = vld [vmem:[%s12634_s4 + $0x3d8] sm:$0xff]  }
 0x455   :  { %v2026_v61 = vpop.f32.mrf.mxu1  ;;  %v2119_v37 = vpop.f32.mrf.mxu0  ;;  %v2025_v48 = vadd.f32 %v2024_v34, %v10476_v3  ;;  %v2118_v28 = vadd.f32 %v2117_v41, %v10484_v32  ;;  %v8992_v41 = vld [vmem:[%s12634_s4 + $0x360] sm:$0xff]  }
 0x456   :  { %v2191_v49 = vpack.c.bf16 %v2163_v30, %v2159_v1  ;;  %v2193_v51 = vpack.c.bf16 %v2165_v19, %v2161_v11  ;;  %v2027_v57 = vadd.f32 %v2026_v61, %v10473_v16  ;;  %v2120_v60 = vadd.f32 %v2119_v37, %v10479_v13  ;;  %v8988_v1 = vld [vmem:[%s12634_s4 + $0x368] sm:$0xff]   ;;  %v8994_v11 = vld [vmem:[%s12634_s4 + $0x320] sm:$0xff]   ;;  %v8996_v61 = vld [vmem:[%s12634_s4 + $0x358] sm:$0xff]  }
 0x457   :  { %v2028_v4 = vpop.f32.mrf.mxu1  ;;  %v2121_v5 = vpop.f32.mrf.mxu0  ;;  %v2168_v29 = vmax.f32 %v2118_v28, 0.0  ;;  %v8991_v30 = vld [vmem:[%s12634_s4 + $0x3a8] sm:$0xff]   ;;  %v8995_v19 = vld [vmem:[%s12634_s4 + $0x3a0] sm:$0xff]   ;;  %v8998_v37 = vld [vmem:[%s12634_s4 + $0x318] sm:$0xff]  }
 0x458   :  { %v2029_v35 = vadd.f32 %v2028_v4, %v10476_v3  ;;  %2518 = vmatprep.mubr.bf16.mxu1 %v2191_v49  ;;  %v2122_v10 = vadd.f32 %v2121_v5, %v10484_v32  ;;  %2599 = vmatprep.mubr.bf16.mxu0 %v2193_v51  ;;  %v2167_v40 = vmax.f32 %v2027_v57, 0.0  ;;  %v2166_v3 = vmax.f32 %v2025_v48, 0.0  ;;  %v8987_v32 = vld [vmem:[%s12634_s4 + $0x3b0] sm:$0xff]   ;;  %v8999_v49 = vld [vmem:[%s12634_s4 + $0x398] sm:$0xff]   ;;  %v9004_v57 = vld [vmem:[%s12634_s4 + $0x348] sm:$0xff]  }
 0x459   :  { %v2030_v26 = vpop.f32.mrf.mxu1  ;;  %2519 = vmatmul.mubr.bf16.gmra.mxu1 %v2190_v63  ;;  %v2123_v25 = vpop.f32.mrf.mxu0  ;;  %2600 = vmatmul.mubr.bf16.gmra.mxu0 %v2192_v42  ;;  %v2169_v7 = vmax.f32 %v2120_v60, 0.0  ;;  %v9000_v63 = vld [vmem:[%s12634_s4 + $0x350] sm:$0xff]   ;;  %v9006_v5 = vld [vmem:[%s12634_s4 + $0x308] sm:$0xff]   ;;  %v9008_v60 = vld [vmem:[%s12634_s4 + $0x340] sm:$0xff]  }
 0x45a   :  { %v2031_v27 = vadd.f32 %v2030_v26, %v10473_v16  ;;  %v2170_v62 = vmax.f32 %v2029_v35, 0.0  ;;  %v2124_v20 = vadd.f32 %v2123_v25, %v10479_v13  ;;  %v2172_v14 = vmax.f32 %v2122_v10, 0.0  ;;  %v8985_v16 = vld [vmem:[%s12634_s4 + $0x3f0] sm:$0xff]   ;;  %v9005_v35 = vld [vmem:[%s12634_s4 + $0x3c8] sm:$0xff]   ;;  %v9009_v10 = vld [vmem:[%s12634_s4 + $0x3c0] sm:$0xff]  }
 0x45b   :  { %v8986_v13 = vld [vmem:[%s12634_s4 + $0x330] sm:$0xff]   ;;  %v9007_v48 = vld [vmem:[%s12634_s4 + $0x388] sm:$0xff]   ;;  %v9010_v26 = vld [vmem:[%s12634_s4 + $0x300] sm:$0xff]  }
 0x45c   :  { %v2171_v39 = vmax.f32 %v2031_v27, 0.0  ;;  %v2173_v52 = vmax.f32 %v2124_v20, 0.0  ;;  %v2194_v59 = vpack.c.bf16 %v2170_v62, %v2166_v3  ;;  %v2196_v34 = vpack.c.bf16 %v2172_v14, %v2168_v29  ;;  %v9001_v4 = vld [vmem:[%s12634_s4 + $0x3d0] sm:$0xff]   ;;  %v9011_v28 = vld [vmem:[%s12634_s4 + $0x380] sm:$0xff]  }
 0x45d   :  { %v9002_v51 = vld [vmem:[%s12634_s4 + $0x310] sm:$0xff]  }
 0x45e   :  { %v2195_v2 = vpack.c.bf16 %v2171_v39, %v2167_v40  ;;  %v2197_v36 = vpack.c.bf16 %v2173_v52, %v2169_v7  ;;  %v9003_v42 = vld [vmem:[%s12634_s4 + $0x390] sm:$0xff]  }
 0x460   :  { %2526 = vmatprep.mubr.bf16.mxu1 %v2195_v2  ;;  %2607 = vmatprep.mubr.bf16.mxu0 %v2197_v36 }
 0x461   :  { %2527 = vmatmul.mubr.bf16.gmra.mxu1 %v2194_v59  ;;  %2608 = vmatmul.mubr.bf16.gmra.mxu0 %v2196_v34 }
 0x462   :  { %2731 = vmatprep.mubr.bf16.mxu1 %v12743_v21  ;;  %2824 = vmatprep.mubr.bf16.mxu0 %v12743_v21 }
 0x469   :  { %7447 = vmatmul.mubr.msk.bf16.vlgmr.msra.gmra.mxu1 %vm51_vm0, %v12744_v46  ;;  %7453 = vmatmul.mubr.msk.bf16.vlgmr.msra.gmra.mxu0 %vm51_vm0, %v12744_v46  ;;  %v8980_v46 = vld [vmem:[%s12634_s4 + $0x378] sm:$0xff]  }
 0x46a   :  { %2741 = vmatprep.mubr.bf16.mxu1 %v12743_v21  ;;  %2834 = vmatprep.mubr.bf16.mxu0 %v12743_v21 }
 0x46b   :  { %8322 = vmatprep.subr.bf16.mxu1 %v8980_v46 }
 0x471   :  { %7448 = vmatmul.mubr.msk.bf16.gmra.mxu1 %vm51_vm0, %v12745_v17  ;;  %7454 = vmatmul.mubr.msk.bf16.gmra.mxu0 %vm51_vm0, %v12745_v17  ;;  %v8981_v17 = vld [vmem:[%s12634_s4 + $0x3f8] sm:$0xff]  }
 0x472   :  { %2751 = vmatprep.mubr.bf16.mxu1 %v12743_v21  ;;  %2844 = vmatprep.mubr.bf16.mxu0 %v12743_v21 }
 0x473   :  { %8374 = vmatprep.subr.bf16.mxu0 %v8981_v17 }
 0x479   :  { %7449 = vmatmul.mubr.msk.bf16.gmra.mxu1 %vm51_vm0, %v12746_v50  ;;  %7455 = vmatmul.mubr.msk.bf16.gmra.mxu0 %vm51_vm0, %v12746_v50  ;;  %v8982_v50 = vld [vmem:[%s12634_s4 + $0x338] sm:$0xff]  }
 0x47a   :  { %2761 = vmatprep.mubr.bf16.mxu1 %v12743_v21  ;;  %2854 = vmatprep.mubr.bf16.mxu0 %v12743_v21 }
 0x47b   :  { %8323 = vmatpush3.bf16.msra.mxu1 %v8982_v50 }
 0x481   :  { %7450 = vmatmul.mubr.msk.bf16.gmra.mxu1 %vm51_vm0, %v12747_v45  ;;  %7456 = vmatmul.mubr.msk.bf16.gmra.mxu0 %vm51_vm0, %v12747_v45  ;;  %v8983_v45 = vld [vmem:[%s12634_s4 + $0x3b8] sm:$0xff]  }
 0x482   :  { %2771 = vmatprep.mubr.bf16.mxu1 %v12743_v21  ;;  %2864 = vmatprep.mubr.bf16.mxu0 %v12743_v21 }
 0x483   :  { %8375 = vmatpush3.bf16.msra.mxu0 %v8983_v45 }
 0x484   :  { %8376 = vmatprep.subr.bf16.mxu0 %v8985_v16 }
 0x487   :  { %8377 = vmatpush3.bf16.msra.mxu0 %v8987_v32 }
 0x488   :  { %8378 = vmatprep.subr.bf16.mxu0 %v8989_v56 }
 0x489   :  { %7451 = vmatmul.mubr.msk.bf16.gmra.mxu1 %vm51_vm0, %v12748_v47  ;;  %7457 = vmatmul.mubr.msk.bf16.gmra.mxu0 %vm51_vm0, %v12748_v47  ;;  %v8984_v47 = vld [vmem:[%s12634_s4 + $0x370] sm:$0xff]  }
 0x48a   :  { %2781 = vmatprep.mubr.bf16.mxu1 %v12743_v21  ;;  %2874 = vmatprep.mubr.bf16.mxu0 %v12743_v21 }
 0x48b   :  { %8324 = vmatprep.subr.bf16.mxu1 %v8984_v47  ;;  %8379 = vmatpush3.bf16.msra.mxu0 %v8991_v30 }
 0x48c   :  { %8325 = vmatpush3.bf16.msra.mxu1 %v8986_v13  ;;  %8380 = vmatprep.subr.bf16.mxu0 %v8993_v54 }
 0x48d   :  { %8326 = vmatprep.subr.bf16.mxu1 %v8988_v1 }
 0x48f   :  { %8381 = vmatpush3.bf16.msra.mxu0 %v8995_v19 }
 0x490   :  { %8382 = vmatprep.subr.bf16.mxu0 %v8997_v33 }
 0x491   :  { %7452 = vmatmul.mubr.msk.bf16.gmra.mxu1 %vm51_vm0, %v12749_v38  ;;  %7458 = vmatmul.mubr.msk.bf16.gmra.mxu0 %vm51_vm0, %v12749_v38  ;;  %v8990_v38 = vld [vmem:[%s12634_s4 + $0x328] sm:$0xff]  }
 0x492   :  { %8327 = vmatpush3.bf16.msra.mxu1 %v8990_v38 }
 0x493   :  { %8328 = vmatprep.subr.bf16.mxu1 %v8992_v41  ;;  %8383 = vmatpush3.bf16.msra.mxu0 %v8999_v49 }
 0x494   :  { %8384 = vmatprep.subr.bf16.mxu0 %v9001_v4 }
 0x496   :  { %8329 = vmatpush3.bf16.msra.mxu1 %v8994_v11 }
 0x497   :  { %8330 = vmatprep.subr.bf16.mxu1 %v8996_v61  ;;  %8385 = vmatpush3.bf16.msra.mxu0 %v9003_v42 }
 0x498   :  { %8386 = vmatprep.subr.bf16.mxu0 %v9005_v35 }
 0x49a   :  { %8331 = vmatpush3.bf16.msra.mxu1 %v8998_v37 }
 0x49b   :  { %8332 = vmatprep.subr.bf16.mxu1 %v9000_v63  ;;  %8387 = vmatpush3.bf16.msra.mxu0 %v9007_v48 }
 0x49c   :  { %8388 = vmatprep.subr.bf16.mxu0 %v9009_v10 }
 0x49e   :  { %8333 = vmatpush3.bf16.msra.mxu1 %v9002_v51 }
 0x49f   :  { %8334 = vmatprep.subr.bf16.mxu1 %v9004_v57  ;;  %8389 = vmatpush3.bf16.msra.mxu0 %v9011_v28 }
 0x4a2   :  { %8335 = vmatpush3.bf16.msra.mxu1 %v9006_v5 }
 0x4a3   :  { %8336 = vmatprep.subr.bf16.mxu1 %v9008_v60 }
 0x4a6   :  { %8337 = vmatpush3.bf16.msra.mxu1 %v9010_v26 }
 0x4f9   :  { %v8234_v27 = vpop.f32.mrf.mxu1  ;;  %v8286_v25 = vpop.f32.mrf.mxu0 }
 0x4fb   :  { %v8235_v62 = vpop.f32.mrf.mxu1  ;;  %v8287_v40 = vpop.f32.mrf.mxu0 }
 0x4fc   :  { %v8236_v20 = vadd.f32 %v8235_v62, %v8234_v27  ;;  %v8288_v14 = vadd.f32 %v8287_v40, %v8286_v25 }
 0x4fd   :  { %v8237_v39 = vpop.f32.mrf.mxu1  ;;  %v8289_v3 = vpop.f32.mrf.mxu0 }
 0x4fe   :  { %v2570_v7 = vadd.f32 %v8288_v14, %v8236_v20 }
 0x4ff   :  { %v8238_v52 = vpop.f32.mrf.mxu1  ;;  %v8290_v2 = vpop.f32.mrf.mxu0 }
 0x500   :  { %v8239_v29 = vadd.f32 %v8238_v52, %v8237_v39  ;;  %v10685_v59 = vadd.f32 %v2570_v7, %v10436_v58  ;;  %v8291_v36 = vadd.f32 %v8290_v2, %v8289_v3 }
 0x501   :  { %v8240_v34 = vpop.f32.mrf.mxu1  ;;  %v8292_v46 = vpop.f32.mrf.mxu0 }
 0x502   :  { %v2573_v17 = vadd.f32 %v8291_v36, %v8239_v29 }
 0x503   :  { %v8241_v50 = vpop.f32.mrf.mxu1  ;;  %v8293_v47 = vpop.f32.mrf.mxu0 }
 0x504   :  { %v8242_v45 = vadd.f32 %v8241_v50, %v8240_v34  ;;  %v10688_v16 = vadd.f32 %v2573_v17, %v10439_v23  ;;  %v8294_v13 = vadd.f32 %v8293_v47, %v8292_v46 }
 0x505   :  { %v8243_v32 = vpop.f32.mrf.mxu1  ;;  %v8295_v1 = vpop.f32.mrf.mxu0 }
 0x506   :  { %v2578_v56 = vadd.f32 %v8294_v13, %v8242_v45 }
 0x507   :  { %v8244_v38 = vpop.f32.mrf.mxu1  ;;  %v8296_v41 = vpop.f32.mrf.mxu0 }
 0x508   :  { %v8245_v30 = vadd.f32 %v8244_v38, %v8243_v32  ;;  %v10691_v58 = vadd.f32 %v2578_v56, %v10442_v31  ;;  %v8297_v54 = vadd.f32 %v8296_v41, %v8295_v1 }
 0x509   :  { %v8246_v11 = vpop.f32.mrf.mxu1  ;;  %v8298_v19 = vpop.f32.mrf.mxu0 }
 0x50a   :  { %v2581_v61 = vadd.f32 %v8297_v54, %v8245_v30 }
 0x50b   :  { %v8247_v33 = vpop.f32.mrf.mxu1  ;;  %v8299_v49 = vpop.f32.mrf.mxu0 }
 0x50c   :  { %v8248_v37 = vadd.f32 %v8247_v33, %v8246_v11  ;;  %v10694_v23 = vadd.f32 %v2581_v61, %v10445_v15  ;;  %v8300_v63 = vadd.f32 %v8299_v49, %v8298_v19 }
 0x50d   :  { %v8249_v4 = vpop.f32.mrf.mxu1  ;;  %v8301_v51 = vpop.f32.mrf.mxu0 }
 0x50e   :  { %v2586_v42 = vadd.f32 %v8300_v63, %v8248_v37 }
 0x50f   :  { %v8250_v57 = vpop.f32.mrf.mxu1  ;;  %v8302_v5 = vpop.f32.mrf.mxu0 }
 0x510   :  { %v8251_v35 = vadd.f32 %v8250_v57, %v8249_v4  ;;  %v10697_v31 = vadd.f32 %v2586_v42, %v10448_v22  ;;  %v8303_v48 = vadd.f32 %v8302_v5, %v8301_v51 }
 0x511   :  { %v8252_v60 = vpop.f32.mrf.mxu1  ;;  %v8304_v10 = vpop.f32.mrf.mxu0 }
 0x512   :  { %v2589_v26 = vadd.f32 %v8303_v48, %v8251_v35 }
 0x513   :  { %v8253_v28 = vpop.f32.mrf.mxu1  ;;  %v8305_v25 = vpop.f32.mrf.mxu0 }
 0x514   :  { %v8254_v27 = vadd.f32 %v8253_v28, %v8252_v60  ;;  %v10700_v15 = vadd.f32 %v2589_v26, %v10451_v44  ;;  %v8306_v62 = vadd.f32 %v8305_v25, %v8304_v10 }
 0x515   :  { %v8255_v20 = vpop.f32.mrf.mxu1  ;;  %v8307_v40 = vpop.f32.mrf.mxu0 }
 0x516   :  { %v2594_v14 = vadd.f32 %v8306_v62, %v8254_v27 }
 0x517   :  { %v8256_v39 = vpop.f32.mrf.mxu1  ;;  %v8308_v7 = vpop.f32.mrf.mxu0 }
 0x518   :  { %v8257_v3 = vadd.f32 %v8256_v39, %v8255_v20  ;;  %v10703_v22 = vadd.f32 %v2594_v14, %v10454_v53  ;;  %v8309_v52 = vadd.f32 %v8308_v7, %v8307_v40 }
 0x519   :  { %v8258_v29 = vpop.f32.mrf.mxu1  ;;  %v8310_v2 = vpop.f32.mrf.mxu0 }
 0x51a   :  { %v2597_v36 = vadd.f32 %v8309_v52, %v8257_v3 }
 0x51b   :  { %v8259_v34 = vpop.f32.mrf.mxu1  ;;  %v8311_v17 = vpop.f32.mrf.mxu0 }
 0x51c   :  { %v8260_v46 = vadd.f32 %v8259_v34, %v8258_v29  ;;  %v10706_v44 = vadd.f32 %v2597_v36, %v10457_v6  ;;  %v8312_v50 = vadd.f32 %v8311_v17, %v8310_v2 }
 0x51d   :  { %v8261_v45 = vpop.f32.mrf.mxu1  ;;  %v8313_v47 = vpop.f32.mrf.mxu0 }
 0x51e   :  { %v2602_v13 = vadd.f32 %v8312_v50, %v8260_v46 }
 0x51f   :  { %v8262_v32 = vpop.f32.mrf.mxu1  ;;  %v8314_v56 = vpop.f32.mrf.mxu0 }
 0x520   :  { %v8263_v1 = vadd.f32 %v8262_v32, %v8261_v45  ;;  %v10709_v53 = vadd.f32 %v2602_v13, %v10460_v12  ;;  %v8315_v38 = vadd.f32 %v8314_v56, %v8313_v47  ;;  %v7438_v12 = vld [vmem:[%s12633_s3 + $0x18] ss:$2 sm:$0xf] }
 0x521   :  { %v8264_v30 = vpop.f32.mrf.mxu1  ;;  %v8316_v41 = vpop.f32.mrf.mxu0  ;;  %v10724_v10 = vrot.slane %v7438_v12, %v12751_v0  ;;  %v10727_v28 = vrot.slane %v7438_v12, %v9980_v24  ;;  %v10730_v27 = vrot.slane %v7438_v12, %v12752_v43 }
 0x522   :  { %v2605_v54 = vadd.f32 %v8315_v38, %v8263_v1 }
 0x523   :  { %v8265_v11 = vpop.f32.mrf.mxu1  ;;  %v8317_v61 = vpop.f32.mrf.mxu0 }
 0x524   :  { %v8266_v19 = vadd.f32 %v8265_v11, %v8264_v30  ;;  %v10712_v6 = vadd.f32 %v2605_v54, %v10463_v8  ;;  %v8318_v33 = vadd.f32 %v8317_v61, %v8316_v41  ;;  %v10721_v8 = vrot.slane %v7438_v12, %v12750_v9 }
 0x525   :  { %v8267_v37 = vpop.f32.mrf.mxu1  ;;  %v8319_v49 = vpop.f32.mrf.mxu0 }
 0x526   :  { %v2610_v63 = vadd.f32 %v8318_v33, %v8266_v19 }
 0x527   :  { %v8268_v4 = vpop.f32.mrf.mxu1  ;;  %v8320_v42 = vpop.f32.mrf.mxu0 }
 0x528   :  { %v8269_v51 = vadd.f32 %v8268_v4, %v8267_v37  ;;  %v10718_v57 = vadd.f32 %v2610_v63, %v10466_v55  ;;  %v8321_v35 = vadd.f32 %v8320_v42, %v8319_v49 }
 0x529   :  { %v2733_v5 = vpop.f32.mrf.mxu1  ;;  %v2826_v48 = vpop.f32.mrf.mxu0 }
 0x52a   :  { %v2613_v60 = vadd.f32 %v8321_v35, %v8269_v51  ;;  %v2734_v39 = vadd.f32 %v2733_v5, %v10724_v10  ;;  %v2827_v29 = vadd.f32 %v2826_v48, %v10730_v27 }
 0x52b   :  { %v2735_v26 = vpop.f32.mrf.mxu1  ;;  %v2828_v25 = vpop.f32.mrf.mxu0 }
 0x52c   :  { %v10733_v55 = vadd.f32 %v2613_v60, %v10481_v18  ;;  %v2736_v20 = vadd.f32 %v2735_v26, %v10721_v8  ;;  %v2829_v3 = vadd.f32 %v2828_v25, %v10727_v28  ;;  %v2885_v13 = vmax.f32 %v2734_v39, 0.0 }
 0x52d   :  { %v2737_v62 = vpop.f32.mrf.mxu1  ;;  %v2830_v14 = vpop.f32.mrf.mxu0  ;;  %v2887_v38 = vmax.f32 %v2827_v29, 0.0 }
 0x52e   :  { %v2738_v40 = vadd.f32 %v2737_v62, %v10724_v10  ;;  %v2831_v7 = vadd.f32 %v2830_v14, %v10730_v27  ;;  %v2886_v17 = vmax.f32 %v2736_v20, 0.0  ;;  %v2888_v32 = vmax.f32 %v2829_v3, 0.0 }
 0x52f   :  { %v2739_v52 = vpop.f32.mrf.mxu1  ;;  %v2832_v36 = vpop.f32.mrf.mxu0 }
 0x530   :  { %v2740_v2 = vadd.f32 %v2739_v52, %v10721_v8  ;;  %v2889_v18 = vmax.f32 %v2738_v40, 0.0  ;;  %v2833_v34 = vadd.f32 %v2832_v36, %v10727_v28  ;;  %v2891_v50 = vmax.f32 %v2831_v7, 0.0 }
 0x531   :  { %v2743_v46 = vpop.f32.mrf.mxu1  ;;  %v2836_v47 = vpop.f32.mrf.mxu0 }
 0x532   :  { %v2890_v45 = vmax.f32 %v2740_v2, 0.0  ;;  %v2892_v1 = vmax.f32 %v2833_v34, 0.0  ;;  %v2933_v54 = vpack.c.bf16 %v2889_v18, %v2885_v13  ;;  %v2935_v61 = vpack.c.bf16 %v2891_v50, %v2887_v38 }
 0x533   :  { %v2745_v56 = vpop.f32.mrf.mxu1  ;;  %v2838_v30 = vpop.f32.mrf.mxu0  ;;  %v2744_v63 = vadd.f32 %v2743_v46, %v10724_v10  ;;  %v2837_v12 = vadd.f32 %v2836_v47, %v10730_v27 }
 0x534   :  { %v2934_v41 = vpack.c.bf16 %v2890_v45, %v2886_v17  ;;  %v2936_v19 = vpack.c.bf16 %v2892_v1, %v2888_v32  ;;  %v2746_v33 = vadd.f32 %v2745_v56, %v10721_v8  ;;  %v2839_v4 = vadd.f32 %v2838_v30, %v10727_v28 }
 0x535   :  { %v2747_v11 = vpop.f32.mrf.mxu1  ;;  %v2840_v49 = vpop.f32.mrf.mxu0  ;;  %v2893_v14 = vmax.f32 %v2744_v63, 0.0  ;;  %v2895_v52 = vmax.f32 %v2837_v12, 0.0 }
 0x536   :  { %v2748_v37 = vadd.f32 %v2747_v11, %v10724_v10  ;;  %3245 = vmatprep.mubr.bf16.mxu1 %v2934_v41  ;;  %v2841_v51 = vadd.f32 %v2840_v49, %v10730_v27  ;;  %3326 = vmatprep.mubr.bf16.mxu0 %v2936_v19  ;;  %v2894_v25 = vmax.f32 %v2746_v33, 0.0  ;;  %v2896_v39 = vmax.f32 %v2839_v4, 0.0 }
 0x537   :  { %v2749_v42 = vpop.f32.mrf.mxu1  ;;  %3246 = vmatmul.mubr.bf16.vlgmr.msra.gmra.mxu1 %v2933_v54  ;;  %v2842_v5 = vpop.f32.mrf.mxu0  ;;  %3327 = vmatmul.mubr.bf16.vlgmr.msra.gmra.mxu0 %v2935_v61 }
 0x538   :  { %v2750_v35 = vadd.f32 %v2749_v42, %v10721_v8  ;;  %v2897_v48 = vmax.f32 %v2748_v37, 0.0  ;;  %v2843_v60 = vadd.f32 %v2842_v5, %v10727_v28  ;;  %v2899_v62 = vmax.f32 %v2841_v51, 0.0 }
 0x539   :  { %v2753_v26 = vpop.f32.mrf.mxu1  ;;  %v2846_v40 = vpop.f32.mrf.mxu0 }
 0x53a   :  { %v2898_v20 = vmax.f32 %v2750_v35, 0.0  ;;  %v2900_v3 = vmax.f32 %v2843_v60, 0.0  ;;  %v2937_v36 = vpack.c.bf16 %v2897_v48, %v2893_v14  ;;  %v2939_v46 = vpack.c.bf16 %v2899_v62, %v2895_v52 }
 0x53b   :  { %v2755_v7 = vpop.f32.mrf.mxu1  ;;  %v2848_v29 = vpop.f32.mrf.mxu0  ;;  %v2754_v47 = vadd.f32 %v2753_v26, %v10724_v10  ;;  %v2847_v56 = vadd.f32 %v2846_v40, %v10730_v27 }
 0x53c   :  { %v2938_v2 = vpack.c.bf16 %v2898_v20, %v2894_v25  ;;  %v2940_v34 = vpack.c.bf16 %v2900_v3, %v2896_v39  ;;  %v2756_v17 = vadd.f32 %v2755_v7, %v10721_v8  ;;  %v2849_v13 = vadd.f32 %v2848_v29, %v10727_v28 }
 0x53d   :  { %v2757_v18 = vpop.f32.mrf.mxu1  ;;  %v2850_v45 = vpop.f32.mrf.mxu0  ;;  %v2901_v49 = vmax.f32 %v2754_v47, 0.0  ;;  %v2903_v42 = vmax.f32 %v2847_v56, 0.0 }
 0x53e   :  { %v2758_v50 = vadd.f32 %v2757_v18, %v10724_v10  ;;  %3253 = vmatprep.mubr.bf16.mxu1 %v2938_v2  ;;  %v2851_v32 = vadd.f32 %v2850_v45, %v10730_v27  ;;  %3334 = vmatprep.mubr.bf16.mxu0 %v2940_v34  ;;  %v2902_v19 = vmax.f32 %v2756_v17, 0.0  ;;  %v2904_v63 = vmax.f32 %v2849_v13, 0.0 }
 0x53f   :  { %v2759_v1 = vpop.f32.mrf.mxu1  ;;  %3254 = vmatmul.mubr.bf16.gmra.mxu1 %v2937_v36  ;;  %v2852_v30 = vpop.f32.mrf.mxu0  ;;  %3335 = vmatmul.mubr.bf16.gmra.mxu0 %v2939_v46 }
 0x540   :  { %v2760_v38 = vadd.f32 %v2759_v1, %v10721_v8  ;;  %v2905_v41 = vmax.f32 %v2758_v50, 0.0  ;;  %v2853_v54 = vadd.f32 %v2852_v30, %v10727_v28  ;;  %v2907_v61 = vmax.f32 %v2851_v32, 0.0 }
 0x541   :  { %v2763_v11 = vpop.f32.mrf.mxu1  ;;  %v2856_v37 = vpop.f32.mrf.mxu0 }
 0x542   :  { %v2906_v33 = vmax.f32 %v2760_v38, 0.0  ;;  %v2908_v4 = vmax.f32 %v2853_v54, 0.0  ;;  %v2941_v5 = vpack.c.bf16 %v2905_v41, %v2901_v49  ;;  %v2943_v26 = vpack.c.bf16 %v2907_v61, %v2903_v42 }
 0x543   :  { %v2765_v51 = vpop.f32.mrf.mxu1  ;;  %v2858_v12 = vpop.f32.mrf.mxu0  ;;  %v2764_v40 = vadd.f32 %v2763_v11, %v10724_v10  ;;  %v2857_v7 = vadd.f32 %v2856_v37, %v10730_v27 }
 0x544   :  { %v2942_v35 = vpack.c.bf16 %v2906_v33, %v2902_v19  ;;  %v2944_v60 = vpack.c.bf16 %v2908_v4, %v2904_v63  ;;  %v2766_v25 = vadd.f32 %v2765_v51, %v10721_v8  ;;  %v2859_v14 = vadd.f32 %v2858_v12, %v10727_v28 }
 0x545   :  { %v2767_v48 = vpop.f32.mrf.mxu1  ;;  %v2860_v20 = vpop.f32.mrf.mxu0  ;;  %v2909_v45 = vmax.f32 %v2764_v40, 0.0  ;;  %v2911_v1 = vmax.f32 %v2857_v7, 0.0 }
 0x546   :  { %v2768_v62 = vadd.f32 %v2767_v48, %v10724_v10  ;;  %3261 = vmatprep.mubr.bf16.mxu1 %v2942_v35  ;;  %v2861_v39 = vadd.f32 %v2860_v20, %v10730_v27  ;;  %3342 = vmatprep.mubr.bf16.mxu0 %v2944_v60  ;;  %v2910_v34 = vmax.f32 %v2766_v25, 0.0  ;;  %v2912_v47 = vmax.f32 %v2859_v14, 0.0 }
 0x547   :  { %v2769_v3 = vpop.f32.mrf.mxu1  ;;  %3262 = vmatmul.mubr.bf16.gmra.mxu1 %v2941_v5  ;;  %v2862_v29 = vpop.f32.mrf.mxu0  ;;  %3343 = vmatmul.mubr.bf16.gmra.mxu0 %v2943_v26 }
 0x548   :  { %v2770_v52 = vadd.f32 %v2769_v3, %v10721_v8  ;;  %v2913_v2 = vmax.f32 %v2768_v62, 0.0  ;;  %v2863_v36 = vadd.f32 %v2862_v29, %v10727_v28  ;;  %v2915_v46 = vmax.f32 %v2861_v39, 0.0 }
 0x549   :  { %v2773_v18 = vpop.f32.mrf.mxu1  ;;  %v2866_v50 = vpop.f32.mrf.mxu0 }
 0x54a   :  { %v2914_v17 = vmax.f32 %v2770_v52, 0.0  ;;  %v2916_v13 = vmax.f32 %v2863_v36, 0.0  ;;  %v2945_v30 = vpack.c.bf16 %v2913_v2, %v2909_v45  ;;  %v2947_v11 = vpack.c.bf16 %v2915_v46, %v2911_v1 }
 0x54b   :  { %v2775_v32 = vpop.f32.mrf.mxu1  ;;  %v2868_v56 = vpop.f32.mrf.mxu0  ;;  %v2774_v37 = vadd.f32 %v2773_v18, %v10724_v10  ;;  %v2867_v51 = vadd.f32 %v2866_v50, %v10730_v27 }
 0x54c   :  { %v2946_v38 = vpack.c.bf16 %v2914_v17, %v2910_v34  ;;  %v2948_v54 = vpack.c.bf16 %v2916_v13, %v2912_v47  ;;  %v2776_v19 = vadd.f32 %v2775_v32, %v10721_v8  ;;  %v2869_v49 = vadd.f32 %v2868_v56, %v10727_v28 }
 0x54d   :  { %v2777_v41 = vpop.f32.mrf.mxu1  ;;  %v2870_v33 = vpop.f32.mrf.mxu0  ;;  %v2917_v20 = vmax.f32 %v2774_v37, 0.0  ;;  %v2919_v3 = vmax.f32 %v2867_v51, 0.0 }
 0x54e   :  { %v2778_v61 = vadd.f32 %v2777_v41, %v10724_v10  ;;  %3269 = vmatprep.mubr.bf16.mxu1 %v2946_v38  ;;  %v2871_v63 = vadd.f32 %v2870_v33, %v10730_v27  ;;  %3350 = vmatprep.mubr.bf16.mxu0 %v2948_v54  ;;  %v2918_v60 = vmax.f32 %v2776_v19, 0.0  ;;  %v2920_v40 = vmax.f32 %v2869_v49, 0.0 }
 0x54f   :  { %v2779_v4 = vpop.f32.mrf.mxu1  ;;  %3270 = vmatmul.mubr.bf16.gmra.mxu1 %v2945_v30  ;;  %v2872_v12 = vpop.f32.mrf.mxu0  ;;  %3351 = vmatmul.mubr.bf16.gmra.mxu0 %v2947_v11 }
 0x550   :  { %v2780_v42 = vadd.f32 %v2779_v4, %v10721_v8  ;;  %v2921_v35 = vmax.f32 %v2778_v61, 0.0  ;;  %v2873_v5 = vadd.f32 %v2872_v12, %v10727_v28  ;;  %v2923_v26 = vmax.f32 %v2871_v63, 0.0 }
 0x551   :  { %v2783_v48 = vpop.f32.mrf.mxu1  ;;  %v2876_v62 = vpop.f32.mrf.mxu0 }
 0x552   :  { %v2922_v25 = vmax.f32 %v2780_v42, 0.0  ;;  %v2924_v14 = vmax.f32 %v2873_v5, 0.0  ;;  %v2949_v29 = vpack.c.bf16 %v2921_v35, %v2917_v20  ;;  %v2951_v18 = vpack.c.bf16 %v2923_v26, %v2919_v3 }
 0x553   :  { %v2785_v39 = vpop.f32.mrf.mxu1  ;;  %v2878_v7 = vpop.f32.mrf.mxu0  ;;  %v2784_v50 = vadd.f32 %v2783_v48, %v10724_v10  ;;  %v2877_v32 = vadd.f32 %v2876_v62, %v10730_v27 }
 0x554   :  { %v2950_v52 = vpack.c.bf16 %v2922_v25, %v2918_v60  ;;  %v2952_v36 = vpack.c.bf16 %v2924_v14, %v2920_v40  ;;  %v2786_v34 = vadd.f32 %v2785_v39, %v10721_v8  ;;  %v2879_v45 = vadd.f32 %v2878_v7, %v10727_v28  ;;  %v10788_v14 = vld [vmem:[%s12631_s1] sm:$0xff] }
 0x555   :  { %v2787_v2 = vpop.f32.mrf.mxu1  ;;  %v2880_v17 = vpop.f32.mrf.mxu0  ;;  %v2927_v33 = vmax.f32 %v2877_v32, 0.0  ;;  %v10792_v39 = vrot.slane %v10788_v14, %v9980_v24  ;;  %v12754_v32 = vld [vmem:[#allocation10_spill] sm:$0xff] }
 0x556   :  { %v2788_v46 = vadd.f32 %v2787_v2, %v10724_v10  ;;  %3277 = vmatprep.mubr.bf16.mxu1 %v2950_v52  ;;  %v2881_v47 = vadd.f32 %v2880_v17, %v10730_v27  ;;  %3358 = vmatprep.mubr.bf16.mxu0 %v2952_v36  ;;  %v2926_v41 = vmax.f32 %v2786_v34, 0.0  ;;  %v2925_v10 = vmax.f32 %v2784_v50, 0.0 }
 0x557   :  { %v2789_v13 = vpop.f32.mrf.mxu1  ;;  %3278 = vmatmul.mubr.bf16.gmra.mxu1 %v2949_v29  ;;  %v2882_v56 = vpop.f32.mrf.mxu0  ;;  %3359 = vmatmul.mubr.bf16.gmra.mxu0 %v2951_v18  ;;  %v2928_v19 = vmax.f32 %v2879_v45, 0.0  ;;  %v12753_v29 = vld [vmem:[#allocation9_spill] sm:$0xff] }
 0x558   :  { %v2790_v1 = vadd.f32 %v2789_v13, %v10721_v8  ;;  %v2929_v38 = vmax.f32 %v2788_v46, 0.0  ;;  %v2883_v30 = vadd.f32 %v2882_v56, %v10727_v28  ;;  %v2931_v54 = vmax.f32 %v2881_v47, 0.0 }
 0x55a   :  { %v2930_v11 = vmax.f32 %v2790_v1, 0.0  ;;  %v2932_v61 = vmax.f32 %v2883_v30, 0.0  ;;  %v2953_v49 = vpack.c.bf16 %v2929_v38, %v2925_v10  ;;  %v2955_v4 = vpack.c.bf16 %v2931_v54, %v2927_v33  ;;  %v12755_v33 = vld [vmem:[#allocation13_spill] sm:$0xff] }
 0x55c   :  { %v2954_v37 = vpack.c.bf16 %v2930_v11, %v2926_v41  ;;  %v2956_v63 = vpack.c.bf16 %v2932_v61, %v2928_v19 }
 0x55e   :  { %3285 = vmatprep.mubr.bf16.mxu1 %v2954_v37  ;;  %3366 = vmatprep.mubr.bf16.mxu0 %v2956_v63 }
 0x55f   :  { %3286 = vmatmul.mubr.bf16.gmra.mxu1 %v2953_v49  ;;  %3367 = vmatmul.mubr.bf16.gmra.mxu0 %v2955_v4 }
 0x560   :  { %4048 = vmatprep.mubr.bf16.mxu0 %v12743_v21 }
 0x5f7   :  { %v8338_v8 = vpop.f32.mrf.mxu1  ;;  %v8390_v27 = vpop.f32.mrf.mxu0 }
 0x5f9   :  { %v8339_v28 = vpop.f32.mrf.mxu1  ;;  %v8391_v42 = vpop.f32.mrf.mxu0 }
 0x5fa   :  { %v8340_v51 = vadd.f32 %v8339_v28, %v8338_v8  ;;  %v8392_v12 = vadd.f32 %v8391_v42, %v8390_v27 }
 0x5fb   :  { %v8341_v35 = vpop.f32.mrf.mxu1  ;;  %v8393_v5 = vpop.f32.mrf.mxu0 }
 0x5fc   :  { %v3329_v48 = vadd.f32 %v8392_v12, %v8340_v51 }
 0x5fd   :  { %v8342_v60 = vpop.f32.mrf.mxu1  ;;  %v8394_v25 = vpop.f32.mrf.mxu0 }
 0x5fe   :  { %v8343_v26 = vadd.f32 %v8342_v60, %v8341_v35  ;;  %v3375_v62 = vadd.f32 %v3329_v48, %v10685_v59  ;;  %v8395_v20 = vadd.f32 %v8394_v25, %v8393_v5  ;;  %v12756_v35 = vld [vmem:[#allocation12_spill] sm:$0xff] }
 0x5ff   :  { %v8344_v40 = vpop.f32.mrf.mxu1  ;;  %v8396_v3 = vpop.f32.mrf.mxu0 }
 0x600   :  { %v3332_v7 = vadd.f32 %v8395_v20, %v8343_v26  ;;  %v3387_v2 = vadd.f32 %v3375_v62, %v12753_v29 }
 0x601   :  { %v8345_v52 = vpop.f32.mrf.mxu1  ;;  %v8397_v18 = vpop.f32.mrf.mxu0 }
 0x602   :  { %v8346_v36 = vadd.f32 %v8345_v52, %v8344_v40  ;;  %v3376_v59 = vadd.f32 %v3332_v7, %v10688_v16  ;;  %v8398_v34 = vadd.f32 %v8397_v18, %v8396_v3  ;;  %v10797_v17 = vadd.f32 %v10792_v39, %v3387_v2  ;;  %v12757_v52 = vld [vmem:[#allocation16_spill] sm:$0xff] }
 0x603   :  { %v8347_v46 = vpop.f32.mrf.mxu1  ;;  %v8399_v50 = vpop.f32.mrf.mxu0 }
 0x604   :  { %v3337_v45 = vadd.f32 %v8398_v34, %v8346_v36  ;;  %v3415_v13 = vsel %vm51_vm0, %v10797_v17, 0.0  ;;  %v3388_v1 = vadd.f32 %v3376_v59, %v12754_v32 }
 0x605   :  { %v8348_v47 = vpop.f32.mrf.mxu1  ;;  %v8400_v38 = vpop.f32.mrf.mxu0  ;;  %3416 = vadd.xlane.f32.xlu0 %v3415_v13  ;;  %v12758_v13 = vld [vmem:[#allocation15_spill] sm:$0xff] }
 0x606   :  { %v8349_v56 = vadd.f32 %v8348_v47, %v8347_v46  ;;  %v3377_v30 = vadd.f32 %v3337_v45, %v10691_v58  ;;  %v8401_v41 = vadd.f32 %v8400_v38, %v8399_v50  ;;  %v10804_v54 = vadd.f32 %v10792_v39, %v3388_v1 }
 0x607   :  { %v8350_v16 = vpop.f32.mrf.mxu1  ;;  %v8402_v11 = vpop.f32.mrf.mxu0 }
 0x608   :  { %v3340_v10 = vadd.f32 %v8401_v41, %v8349_v56  ;;  %v3418_v61 = vsel %vm51_vm0, %v10804_v54, 0.0  ;;  %v3389_v37 = vadd.f32 %v3377_v30, %v12755_v33 }
 0x609   :  { %v8351_v19 = vpop.f32.mrf.mxu1  ;;  %v8403_v63 = vpop.f32.mrf.mxu0  ;;  %3419 = vadd.xlane.f32.xlu1 %v3418_v61  ;;  %v12759_v61 = vld [vmem:[#allocation19_spill] sm:$0xff] }
 0x60a   :  { %v8352_v49 = vadd.f32 %v8351_v19, %v8350_v16  ;;  %v3378_v4 = vadd.f32 %v3340_v10, %v10694_v23  ;;  %v8404_v8 = vadd.f32 %v8403_v63, %v8402_v11  ;;  %v10811_v27 = vadd.f32 %v10792_v39, %v3389_v37 }
 0x60b   :  { %v8353_v58 = vpop.f32.mrf.mxu1  ;;  %v8405_v28 = vpop.f32.mrf.mxu0 }
 0x60c   :  { %v3345_v51 = vadd.f32 %v8404_v8, %v8352_v49  ;;  %v3421_v12 = vsel %vm51_vm0, %v10811_v27, 0.0  ;;  %v3390_v5 = vadd.f32 %v3378_v4, %v12756_v35 }
 0x60d   :  { %v8354_v42 = vpop.f32.mrf.mxu1  ;;  %v8406_v60 = vpop.f32.mrf.mxu0  ;;  %3422 = vadd.xlane.f32.xlu0 %v3421_v12  ;;  %v12760_v12 = vld [vmem:[#allocation18_spill] sm:$0xff] }
 0x60e   :  { %v8355_v48 = vadd.f32 %v8354_v42, %v8353_v58  ;;  %v3379_v26 = vadd.f32 %v3345_v51, %v10697_v31  ;;  %v8407_v25 = vadd.f32 %v8406_v60, %v8405_v28  ;;  %v10818_v62 = vadd.f32 %v10792_v39, %v3390_v5 }
 0x60f   :  { %v8356_v23 = vpop.f32.mrf.mxu1  ;;  %v8408_v20 = vpop.f32.mrf.mxu0 }
 0x610   :  { %v3348_v40 = vadd.f32 %v8407_v25, %v8355_v48  ;;  %v3424_v7 = vsel %vm51_vm0, %v10818_v62, 0.0  ;;  %v3391_v29 = vadd.f32 %v3379_v26, %v12757_v52 }
 0x611   :  { %v8357_v3 = vpop.f32.mrf.mxu1  ;;  %v8409_v36 = vpop.f32.mrf.mxu0  ;;  %3425 = vadd.xlane.f32.xlu1 %v3424_v7  ;;  %v12761_v7 = vld [vmem:[#allocation22_spill] sm:$0xff] }
 0x612   :  { %v8358_v2 = vadd.f32 %v8357_v3, %v8356_v23  ;;  %v3380_v18 = vadd.f32 %v3348_v40, %v10700_v15  ;;  %v8410_v59 = vadd.f32 %v8409_v36, %v8408_v20  ;;  %v10825_v34 = vadd.f32 %v10792_v39, %v3391_v29 }
 0x613   :  { %v8359_v31 = vpop.f32.mrf.mxu1  ;;  %v8411_v46 = vpop.f32.mrf.mxu0 }
 0x614   :  { %v3353_v50 = vadd.f32 %v8410_v59, %v8358_v2  ;;  %v3427_v47 = vsel %vm51_vm0, %v10825_v34, 0.0  ;;  %v3392_v32 = vadd.f32 %v3380_v18, %v12758_v13 }
 0x615   :  { %v8360_v45 = vpop.f32.mrf.mxu1  ;;  %v8412_v56 = vpop.f32.mrf.mxu0  ;;  %3428 = vadd.xlane.f32.xlu0 %v3427_v47  ;;  %v12762_v47 = vld [vmem:[#allocation21_spill] sm:$0xff] }
 0x616   :  { %v8361_v1 = vadd.f32 %v8360_v45, %v8359_v31  ;;  %v3381_v38 = vadd.f32 %v3353_v50, %v10703_v22  ;;  %v8413_v30 = vadd.f32 %v8412_v56, %v8411_v46  ;;  %v10832_v41 = vadd.f32 %v10792_v39, %v3392_v32 }
 0x617   :  { %v8362_v15 = vpop.f32.mrf.mxu1  ;;  %v8414_v16 = vpop.f32.mrf.mxu0 }
 0x618   :  { %v3356_v11 = vadd.f32 %v8413_v30, %v8361_v1  ;;  %v3430_v19 = vsel %vm51_vm0, %v10832_v41, 0.0  ;;  %v3393_v33 = vadd.f32 %v3381_v38, %v12759_v61 }
 0x619   :  { %v8363_v10 = vpop.f32.mrf.mxu1  ;;  %v8415_v49 = vpop.f32.mrf.mxu0  ;;  %3431 = vadd.xlane.f32.xlu1 %v3430_v19 }
 0x61a   :  { %v8364_v37 = vadd.f32 %v8363_v10, %v8362_v15  ;;  %v3382_v63 = vadd.f32 %v3356_v11, %v10706_v44  ;;  %v8416_v4 = vadd.f32 %v8415_v49, %v8414_v16  ;;  %v10839_v8 = vadd.f32 %v10792_v39, %v3393_v33  ;;  %v12763_v16 = vld [vmem:[#allocation25_spill] sm:$0xff] }
 0x61b   :  { %v8365_v22 = vpop.f32.mrf.mxu1  ;;  %v8417_v58 = vpop.f32.mrf.mxu0 }
 0x61c   :  { %v3361_v28 = vadd.f32 %v8416_v4, %v8364_v37  ;;  %v3433_v42 = vsel %vm51_vm0, %v10839_v8, 0.0  ;;  %v3394_v35 = vadd.f32 %v3382_v63, %v12760_v12  ;;  %v7495_v63 = vld [vmem:[%s12631_s1 + $0x48] sm:$0xff] }
 0x61d   :  { %v8366_v51 = vpop.f32.mrf.mxu1  ;;  %v8418_v48 = vpop.f32.mrf.mxu0  ;;  %3434 = vadd.xlane.f32.xlu0 %v3433_v42 }
 0x61e   :  { %v8367_v5 = vadd.f32 %v8366_v51, %v8365_v22  ;;  %v3383_v60 = vadd.f32 %v3361_v28, %v10709_v53  ;;  %v8419_v26 = vadd.f32 %v8418_v48, %v8417_v58  ;;  %v10846_v25 = vadd.f32 %v10792_v39, %v3394_v35 }
 0x61f   :  { %v8368_v44 = vpop.f32.mrf.mxu1  ;;  %v8420_v23 = vpop.f32.mrf.mxu0 }
 0x620   :  { %v3364_v20 = vadd.f32 %v8419_v26, %v8367_v5  ;;  %v3436_v3 = vsel %vm51_vm0, %v10846_v25, 0.0  ;;  %v3395_v52 = vadd.f32 %v3383_v60, %v12761_v7 }
 0x621   :  { %v8369_v40 = vpop.f32.mrf.mxu1  ;;  %v8421_v2 = vpop.f32.mrf.mxu0  ;;  %3437 = vadd.xlane.f32.xlu1 %v3436_v3 }
 0x622   :  { %v8370_v29 = vadd.f32 %v8369_v40, %v8368_v44  ;;  %v3384_v36 = vadd.f32 %v3364_v20, %v10712_v6  ;;  %v8422_v18 = vadd.f32 %v8421_v2, %v8420_v23  ;;  %v10853_v59 = vadd.f32 %v10792_v39, %v3395_v52 }
 0x623   :  { %v8371_v53 = vpop.f32.mrf.mxu1  ;;  %v8423_v31 = vpop.f32.mrf.mxu0 }
 0x624   :  { %v3369_v46 = vadd.f32 %v8422_v18, %v8370_v29  ;;  %v3439_v45 = vsel %vm51_vm0, %v10853_v59, 0.0  ;;  %v3396_v13 = vadd.f32 %v3384_v36, %v12762_v47 }
 0x625   :  { %v8372_v50 = vpop.f32.mrf.mxu1  ;;  %v8424_v1 = vpop.f32.mrf.mxu0  ;;  %3440 = vadd.xlane.f32.xlu0 %v3439_v45 }
 0x626   :  { %v8373_v32 = vadd.f32 %v8372_v50, %v8371_v53  ;;  %v3385_v56 = vadd.f32 %v3369_v46, %v10718_v57  ;;  %v8425_v38 = vadd.f32 %v8424_v1, %v8423_v31  ;;  %v10860_v6 = vadd.f32 %v10792_v39, %v3396_v13  ;;  %v12764_v57 = vld [vmem:[#allocation24_spill] sm:$0xff] }
 0x628   :  { %v3372_v30 = vadd.f32 %v8425_v38, %v8373_v32  ;;  %v3442_v15 = vsel %vm51_vm0, %v10860_v6, 0.0  ;;  %v3397_v11 = vadd.f32 %v3385_v56, %v12763_v16 }
 0x629   :  { %3443 = vadd.xlane.f32.xlu1 %v3442_v15 }
 0x62a   :  { %v3386_v10 = vadd.f32 %v3372_v30, %v10733_v55  ;;  %v10867_v19 = vadd.f32 %v10792_v39, %v3397_v11  ;;  %v7494_v55 = vld [vmem:[%s12631_s1 + $0x40] sm:$0xff] }
 0x62b   :  { %v3616_v4 = vpack.c.bf16 %v7495_v63, %v7494_v55 }
 0x62c   :  { %v3445_v61 = vsel %vm51_vm0, %v10867_v19, 0.0  ;;  %v3398_v33 = vadd.f32 %v3386_v10, %v12764_v57 }
 0x62d   :  { %3446 = vadd.xlane.f32.xlu0 %v3445_v61  ;;  %8866 = vmatprep.subr.bf16.mxu1 %v3616_v4 }
 0x62e   :  { %v10873_v37 = vadd.f32 %v10792_v39, %v3398_v33  ;;  %8867 = vmatpush3.bf16.msra.mxu1 %v3616_v4 }
 0x630   :  { %v3448_v49 = vsel %vm51_vm0, %v10873_v37, 0.0 }
 0x631   :  { %3449 = vadd.xlane.f32.xlu1 %v3448_v49 }
 0x68e   :  { %v3417_v22 = vpop.xlane.xlu0 %3416 }
 0x68f   :  { %v3451_v58 = vmul.f32 0.03125, %v3417_v22 }
 0x691   :  { %v10884_v39 = vsub.f32 %v10797_v17, %v3451_v58 }
 0x692   :  { %v3420_v28 = vpop.xlane.xlu1 %3419 }
 0x693   :  { %v3452_v51 = vmul.f32 0.03125, %v3420_v28  ;;  %v3475_v42 = vmul.f32 %v10884_v39, %v10884_v39 }
 0x695   :  { %v10889_v12 = vsub.f32 %v10804_v54, %v3452_v51  ;;  %v3487_v35 = vsel %vm51_vm0, %v3475_v42, 0.0  ;;  %v7493_v51 = vld [vmem:[%s12631_s1 + $0x38] sm:$0xff] }
 0x696   :  { %v3423_v5 = vpop.xlane.xlu0 %3422  ;;  %3488 = vadd.xlane.f32.xlu0 %v3487_v35 }
 0x697   :  { %v3453_v48 = vmul.f32 0.03125, %v3423_v5  ;;  %v3476_v60 = vmul.f32 %v10889_v12, %v10889_v12 }
 0x699   :  { %v10895_v26 = vsub.f32 %v10811_v27, %v3453_v48  ;;  %v3490_v17 = vsel %vm51_vm0, %v3476_v60, 0.0 }
 0x69a   :  { %v3426_v44 = vpop.xlane.xlu1 %3425  ;;  %3491 = vadd.xlane.f32.xlu1 %v3490_v17 }
 0x69b   :  { %v3454_v23 = vmul.f32 0.03125, %v3426_v44  ;;  %v3477_v54 = vmul.f32 %v10895_v26, %v10895_v26 }
 0x69d   :  { %v10901_v20 = vsub.f32 %v10818_v62, %v3454_v23  ;;  %v3493_v40 = vsel %vm51_vm0, %v3477_v54, 0.0 }
 0x69e   :  { %v3429_v3 = vpop.xlane.xlu0 %3428  ;;  %3494 = vadd.xlane.f32.xlu0 %v3493_v40 }
 0x69f   :  { %v3455_v7 = vmul.f32 0.03125, %v3429_v3  ;;  %v3478_v27 = vmul.f32 %v10901_v20, %v10901_v20 }
 0x6a1   :  { %v10907_v52 = vsub.f32 %v10825_v34, %v3455_v7  ;;  %v3496_v29 = vsel %vm51_vm0, %v3478_v27, 0.0  ;;  %v12765_v27 = vld [vmem:[#allocation5_spill] sm:$0xff] }
 0x6a2   :  { %v3432_v2 = vpop.xlane.xlu1 %3431  ;;  %3497 = vadd.xlane.f32.xlu1 %v3496_v29  ;;  %v12671_v29 = vsub.s32 4, %v12765_v27 }
 0x6a3   :  { %v3456_v36 = vmul.f32 0.03125, %v3432_v2  ;;  %v3479_v62 = vmul.f32 %v10907_v52, %v10907_v52 }
 0x6a5   :  { %v10913_v18 = vsub.f32 %v10832_v41, %v3456_v36  ;;  %v3499_v53 = vsel %vm51_vm0, %v3479_v62, 0.0 }
 0x6a6   :  { %v3435_v31 = vpop.xlane.xlu0 %3434  ;;  %3500 = vadd.xlane.f32.xlu0 %v3499_v53 }
 0x6a7   :  { %v3457_v46 = vmul.f32 0.03125, %v3435_v31  ;;  %v3480_v34 = vmul.f32 %v10913_v18, %v10913_v18  ;;  %v10965_v31 = vrot.slane %v10788_v14, %v12671_v29 }
 0x6a9   :  { %v10919_v50 = vsub.f32 %v10839_v8, %v3457_v46  ;;  %v3502_v45 = vsel %vm51_vm0, %v3480_v34, 0.0  ;;  %v12670_v46 = vsub.s32 5, %v12765_v27 }
 0x6aa   :  { %v3438_v47 = vpop.xlane.xlu1 %3437  ;;  %3503 = vadd.xlane.f32.xlu1 %v3502_v45 }
 0x6ab   :  { %v3458_v13 = vmul.f32 0.03125, %v3438_v47  ;;  %v3481_v41 = vmul.f32 %v10919_v50, %v10919_v50 }
 0x6ad   :  { %v10925_v32 = vsub.f32 %v10846_v25, %v3458_v13  ;;  %v3505_v1 = vsel %vm51_vm0, %v3481_v41, 0.0 }
 0x6ae   :  { %v3441_v56 = vpop.xlane.xlu0 %3440  ;;  %3506 = vadd.xlane.f32.xlu0 %v3505_v1  ;;  %v10972_v1 = vrot.slane %v10788_v14, %v12670_v46 }
 0x6af   :  { %v3459_v38 = vmul.f32 0.03125, %v3441_v56  ;;  %v3482_v8 = vmul.f32 %v10925_v32, %v10925_v32 }
 0x6b1   :  { %v10931_v30 = vsub.f32 %v10853_v59, %v3459_v38  ;;  %v3508_v15 = vsel %vm51_vm0, %v3482_v8, 0.0 }
 0x6b2   :  { %v3444_v16 = vpop.xlane.xlu1 %3443  ;;  %3509 = vadd.xlane.f32.xlu1 %v3508_v15 }
 0x6b3   :  { %v3460_v11 = vmul.f32 0.03125, %v3444_v16  ;;  %v3483_v25 = vmul.f32 %v10931_v30, %v10931_v30 }
 0x6b5   :  { %v10937_v10 = vsub.f32 %v10860_v6, %v3460_v11  ;;  %v3511_v61 = vsel %vm51_vm0, %v3483_v25, 0.0 }
 0x6b6   :  { %3512 = vadd.xlane.f32.xlu0 %v3511_v61  ;;  %v3447_v57 = vpop.xlane.xlu0 %3446 }
 0x6b7   :  { %v3461_v33 = vmul.f32 0.03125, %v3447_v57  ;;  %v3484_v59 = vmul.f32 %v10937_v10, %v10937_v10 }
 0x6b9   :  { %v10943_v49 = vsub.f32 %v10867_v19, %v3461_v33  ;;  %v3514_v55 = vsel %vm51_vm0, %v3484_v59, 0.0  ;;  %v7492_v19 = vld [vmem:[%s12631_s1 + $0x30] sm:$0xff] }
 0x6ba   :  { %3515 = vadd.xlane.f32.xlu1 %v3514_v55  ;;  %v3450_v63 = vpop.xlane.xlu1 %3449  ;;  %v3615_v35 = vpack.c.bf16 %v7493_v51, %v7492_v19 }
 0x6bb   :  { %v3462_v4 = vmul.f32 0.03125, %v3450_v63  ;;  %v3485_v6 = vmul.f32 %v10943_v49, %v10943_v49 }
 0x6bc   :  { %8868 = vmatprep.subr.bf16.mxu1 %v3615_v35 }
 0x6bd   :  { %v10949_v22 = vsub.f32 %v10873_v37, %v3462_v4  ;;  %v3517_v58 = vsel %vm51_vm0, %v3485_v6, 0.0  ;;  %8869 = vmatpush3.bf16.msra.mxu1 %v3615_v35 }
 0x6be   :  { %3518 = vadd.xlane.f32.xlu0 %v3517_v58 }
 0x6bf   :  { %v3486_v28 = vmul.f32 %v10949_v22, %v10949_v22 }
 0x6c1   :  { %v3520_v42 = vsel %vm51_vm0, %v3486_v28, 0.0 }
 0x6c2   :  { %3521 = vadd.xlane.f32.xlu1 %v3520_v42 }
 0x71f   :  { %v3489_v37 = vpop.xlane.xlu0 %3488 }
 0x720   :  { %v3523_v5 = vmul.f32 0.03125, %v3489_v37 }
 0x722   :  { %v3535_v48 = vadd.f32 1e-05, %v3523_v5 }
 0x723   :  { %v3492_v60 = vpop.xlane.xlu1 %3491 }
 0x724   :  { %9164 = vrsqrt.f32 %v3535_v48  ;;  %v3524_v17 = vmul.f32 0.03125, %v3492_v60 }
 0x726   :  { %v3536_v44 = vadd.f32 1e-05, %v3524_v17 }
 0x727   :  { %v3495_v23 = vpop.xlane.xlu0 %3494 }
 0x728   :  { %9166 = vrsqrt.f32 %v3536_v44  ;;  %v3525_v54 = vmul.f32 0.03125, %v3495_v23 }
 0x72a   :  { %v3537_v40 = vadd.f32 1e-05, %v3525_v54 }
 0x72b   :  { %v3498_v3 = vpop.xlane.xlu1 %3497 }
 0x72c   :  { %9168 = vrsqrt.f32 %v3537_v40  ;;  %v3526_v7 = vmul.f32 0.03125, %v3498_v3 }
 0x72e   :  { %v3538_v2 = vadd.f32 1e-05, %v3526_v7 }
 0x72f   :  { %v3501_v36 = vpop.xlane.xlu0 %3500 }
 0x730   :  { %9170 = vrsqrt.f32 %v3538_v2  ;;  %v3527_v62 = vmul.f32 0.03125, %v3501_v36 }
 0x731   :  { %v9165_v53 = vpop.eup %9164 }
 0x732   :  { %v3539_v34 = vadd.f32 1e-05, %v3527_v62  ;;  %v3559_v45 = vmul.f32 %v9165_v53, %v10884_v39 }
 0x733   :  { %v3504_v47 = vpop.xlane.xlu1 %3503 }
 0x734   :  { %9172 = vrsqrt.f32 %v3539_v34  ;;  %v3528_v13 = vmul.f32 0.03125, %v3504_v47  ;;  %v3575_v8 = vmul.f32 %v10965_v31, %v3559_v45 }
 0x735   :  { %v9167_v41 = vpop.eup %9166 }
 0x736   :  { %v3540_v56 = vadd.f32 1e-05, %v3528_v13  ;;  %v3560_v38 = vmul.f32 %v9167_v41, %v10889_v12  ;;  %v10979_v57 = vadd.f32 %v10972_v1, %v3575_v8 }
 0x737   :  { %v3507_v15 = vpop.xlane.xlu0 %3506 }
 0x738   :  { %9174 = vrsqrt.f32 %v3540_v56  ;;  %v3529_v16 = vmul.f32 0.03125, %v3507_v15  ;;  %v3576_v11 = vmul.f32 %v10965_v31, %v3560_v38 }
 0x739   :  { %v9169_v39 = vpop.eup %9168 }
 0x73a   :  { %v3561_v25 = vmul.f32 %v9169_v39, %v10895_v26  ;;  %v3541_v61 = vadd.f32 1e-05, %v3529_v16  ;;  %v10982_v14 = vadd.f32 %v10972_v1, %v3576_v11 }
 0x73b   :  { %v3510_v33 = vpop.xlane.xlu1 %3509 }
 0x73c   :  { %9176 = vrsqrt.f32 %v3541_v61  ;;  %v3530_v12 = vmul.f32 0.03125, %v3510_v33  ;;  %v3609_v59 = vpack.c.bf16 %v10982_v14, %v10979_v57  ;;  %v3577_v63 = vmul.f32 %v10965_v31, %v3561_v25 }
 0x73d   :  { %v9171_v55 = vpop.eup %9170 }
 0x73e   :  { %v3562_v4 = vmul.f32 %v9171_v55, %v10901_v20  ;;  %v3542_v6 = vadd.f32 1e-05, %v3530_v12  ;;  %8870 = vmatprep.mubr.msk.bf16.mxu1 %vm51_vm0, %v3609_v59  ;;  %v10991_v51 = vadd.f32 %v10972_v1, %v3577_v63 }
 0x73f   :  { %v3513_v26 = vpop.xlane.xlu0 %3512 }
 0x740   :  { %v3578_v58 = vmul.f32 %v10965_v31, %v3562_v4  ;;  %9178 = vrsqrt.f32 %v3542_v6  ;;  %v3531_v28 = vmul.f32 0.03125, %v3513_v26 }
 0x741   :  { %v9173_v19 = vpop.eup %9172 }
 0x742   :  { %v10994_v42 = vadd.f32 %v10972_v1, %v3578_v58  ;;  %v3543_v35 = vadd.f32 1e-05, %v3531_v28  ;;  %v3563_v37 = vmul.f32 %v9173_v19, %v10907_v52  ;;  %v11040_v58 = vld [vmem:[%s12631_s1 + $0x28] sm:$0xff] }
 0x743   :  { %v3516_v5 = vpop.xlane.xlu1 %3515 }
 0x744   :  { %v3610_v20 = vpack.c.bf16 %v10994_v42, %v10991_v51  ;;  %9180 = vrsqrt.f32 %v3543_v35  ;;  %v3532_v48 = vmul.f32 0.03125, %v3516_v5  ;;  %v3579_v23 = vmul.f32 %v10965_v31, %v3563_v37 }
 0x745   :  { %v9175_v60 = vpop.eup %9174 }
 0x746   :  { %v3544_v17 = vadd.f32 1e-05, %v3532_v48  ;;  %8871 = vmatmul.mubr.msk.bf16.vlgmr.msra.gmra.mxu1 %vm51_vm0, %v3610_v20  ;;  %v3564_v44 = vmul.f32 %v9175_v60, %v10913_v18  ;;  %v11005_v36 = vadd.f32 %v10972_v1, %v3579_v23 }
 0x747   :  { %v3519_v54 = vpop.xlane.xlu0 %3518 }
 0x748   :  { %9182 = vrsqrt.f32 %v3544_v17  ;;  %v3533_v40 = vmul.f32 0.03125, %v3519_v54  ;;  %v3580_v3 = vmul.f32 %v10965_v31, %v3564_v44 }
 0x749   :  { %v9177_v52 = vpop.eup %9176 }
 0x74a   :  { %v3565_v7 = vmul.f32 %v9177_v52, %v10919_v50  ;;  %v3545_v2 = vadd.f32 1e-05, %v3533_v40  ;;  %v11008_v62 = vadd.f32 %v10972_v1, %v3580_v3 }
 0x74b   :  { %v3522_v53 = vpop.xlane.xlu1 %3521 }
 0x74c   :  { %9184 = vrsqrt.f32 %v3545_v2  ;;  %v3534_v18 = vmul.f32 0.03125, %v3522_v53  ;;  %v3611_v34 = vpack.c.bf16 %v11008_v62, %v11005_v36  ;;  %v3581_v50 = vmul.f32 %v10965_v31, %v3565_v7 }
 0x74d   :  { %v9179_v45 = vpop.eup %9178 }
 0x74e   :  { %v3566_v47 = vmul.f32 %v9179_v45, %v10925_v32  ;;  %v3546_v13 = vadd.f32 1e-05, %v3534_v18  ;;  %8874 = vmatprep.mubr.msk.bf16.mxu1 %vm51_vm0, %v3611_v34  ;;  %v3597_v38 = vadd.f32 %v10972_v1, %v3581_v50 }
 0x750   :  { %9186 = vrsqrt.f32 %v3546_v13  ;;  %v3582_v41 = vmul.f32 %v10965_v31, %v3566_v47 }
 0x751   :  { %v9181_v56 = vpop.eup %9180 }
 0x752   :  { %v3598_v8 = vadd.f32 %v10972_v1, %v3582_v41  ;;  %v3567_v15 = vmul.f32 %v9181_v56, %v10931_v30 }
 0x754   :  { %v3612_v16 = vpack.c.bf16 %v3598_v8, %v3597_v38  ;;  %v3583_v39 = vmul.f32 %v10965_v31, %v3567_v15 }
 0x755   :  { %v9183_v11 = vpop.eup %9182 }
 0x756   :  { %8875 = vmatmul.mubr.msk.bf16.gmra.mxu1 %vm51_vm0, %v3612_v16  ;;  %v3568_v32 = vmul.f32 %v9183_v11, %v10937_v10  ;;  %v3599_v12 = vadd.f32 %v10972_v1, %v3583_v39 }
 0x758   :  { %v3584_v25 = vmul.f32 %v10965_v31, %v3568_v32 }
 0x759   :  { %v9185_v61 = vpop.eup %9184 }
 0x75a   :  { %v3569_v33 = vmul.f32 %v9185_v61, %v10943_v49  ;;  %v11026_v59 = vadd.f32 %v10972_v1, %v3584_v25 }
 0x75c   :  { %v3613_v30 = vpack.c.bf16 %v11026_v59, %v3599_v12  ;;  %v3585_v10 = vmul.f32 %v10965_v31, %v3569_v33 }
 0x75d   :  { %v9187_v55 = vpop.eup %9186 }
 0x75e   :  { %v3570_v63 = vmul.f32 %v9187_v55, %v10949_v22  ;;  %8878 = vmatprep.mubr.msk.bf16.mxu1 %vm51_vm0, %v3613_v30  ;;  %v3601_v6 = vadd.f32 %v10972_v1, %v3585_v10  ;;  %v3620_v22 = vrot.slane %v11040_v58, %v12751_v0  ;;  %v7507_v10 = vld [vmem:[%s12632_s2 + $0x180] sm:$0xff] }
 0x760   :  { %v3586_v4 = vmul.f32 %v10965_v31, %v3570_v63 }
 0x762   :  { %v3602_v49 = vadd.f32 %v10972_v1, %v3586_v4 }
 0x764   :  { %v3614_v26 = vpack.c.bf16 %v3602_v49, %v3601_v6 }
 0x766   :  { %8879 = vmatmul.mubr.msk.bf16.gmra.mxu1 %vm51_vm0, %v3614_v26 }
 0x767   :  { %4141 = vmatprep.mubr.bf16.mxu1 %v12743_v21 }
 0x806   :  { %v8872_v28 = vpop.f32.mrf.mxu1 }
 0x807   :  { %v3682_v31 = vadd.f32 %v8872_v28, %v3620_v22 }
 0x808   :  { %v3673_v19 = vpop.f32.mrf.mxu1 }
 0x809   :  { %v3674_v35 = vadd.f32 %v3673_v19, %v3620_v22  ;;  %v11050_v17 = vadd.f32 %v3682_v31, %v10991_v51 }
 0x80a   :  { %v8873_v37 = vpop.f32.mrf.mxu1 }
 0x80b   :  { %v11045_v1 = vadd.f32 %v3674_v35, %v10979_v57  ;;  %v3685_v20 = vadd.f32 %v8873_v37, %v3620_v22  ;;  %v3738_v54 = vsel %vm51_vm0, %v11050_v17, 0.0 }
 0x80c   :  { %v3676_v5 = vpop.f32.mrf.mxu1 }
 0x80d   :  { %v3677_v48 = vadd.f32 %v3676_v5, %v3620_v22  ;;  %v3732_v60 = vsel %vm51_vm0, %v11045_v1, 0.0  ;;  %v11057_v57 = vadd.f32 %v3685_v20, %v10994_v42 }
 0x80e   :  { %3733 = vadd.xlane.f32.xlu0 %v3732_v60 }
 0x80f   :  { %v3721_v44 = vadd.f32 %v3677_v48, %v10982_v14  ;;  %v3741_v40 = vsel %vm51_vm0, %v11057_v57, 0.0 }
 0x811   :  { %v3735_v23 = vsel %vm51_vm0, %v3721_v44, 0.0 }
 0x812   :  { %3736 = vadd.xlane.f32.xlu1 %v3735_v23  ;;  %3739 = vadd.xlane.f32.xlu0 %v3738_v54 }
 0x816   :  { %3742 = vadd.xlane.f32.xlu1 %v3741_v40  ;;  %v8876_v3 = vpop.f32.mrf.mxu1 }
 0x817   :  { %v3698_v52 = vadd.f32 %v8876_v3, %v3620_v22 }
 0x818   :  { %v3689_v51 = vpop.f32.mrf.mxu1 }
 0x819   :  { %v3690_v7 = vadd.f32 %v3689_v51, %v3620_v22  ;;  %v11066_v45 = vadd.f32 %v3698_v52, %v3597_v38 }
 0x81a   :  { %v8877_v2 = vpop.f32.mrf.mxu1 }
 0x81b   :  { %v11062_v14 = vadd.f32 %v3690_v7, %v11005_v36  ;;  %v3701_v18 = vadd.f32 %v8877_v2, %v3620_v22  ;;  %v3750_v50 = vsel %vm51_vm0, %v11066_v45, 0.0 }
 0x81c   :  { %v3692_v53 = vpop.f32.mrf.mxu1 }
 0x81d   :  { %v3693_v34 = vadd.f32 %v3692_v53, %v3620_v22  ;;  %v3744_v42 = vsel %vm51_vm0, %v11062_v14, 0.0  ;;  %v11075_v36 = vadd.f32 %v3701_v18, %v3598_v8 }
 0x81e   :  { %3745 = vadd.xlane.f32.xlu0 %v3744_v42 }
 0x81f   :  { %v11069_v47 = vadd.f32 %v3693_v34, %v11008_v62  ;;  %v3753_v41 = vsel %vm51_vm0, %v11075_v36, 0.0 }
 0x821   :  { %v3747_v13 = vsel %vm51_vm0, %v11069_v47, 0.0 }
 0x822   :  { %3748 = vadd.xlane.f32.xlu1 %v3747_v13  ;;  %3751 = vadd.xlane.f32.xlu0 %v3750_v50 }
 0x826   :  { %3754 = vadd.xlane.f32.xlu1 %v3753_v41  ;;  %v8880_v56 = vpop.f32.mrf.mxu1 }
 0x827   :  { %v3714_v15 = vadd.f32 %v8880_v56, %v3620_v22 }
 0x828   :  { %v3705_v38 = vpop.f32.mrf.mxu1 }
 0x829   :  { %v3706_v16 = vadd.f32 %v3705_v38, %v3620_v22  ;;  %v11083_v61 = vadd.f32 %v3714_v15, %v3601_v6 }
 0x82a   :  { %v8881_v62 = vpop.f32.mrf.mxu1 }
 0x82b   :  { %v11079_v11 = vadd.f32 %v3706_v16, %v3599_v12  ;;  %v3717_v39 = vadd.f32 %v8881_v62, %v3620_v22  ;;  %v3762_v55 = vsel %vm51_vm0, %v11083_v61, 0.0 }
 0x82c   :  { %v3708_v32 = vpop.f32.mrf.mxu1 }
 0x82d   :  { %v3709_v25 = vadd.f32 %v3708_v32, %v3620_v22  ;;  %v3756_v8 = vsel %vm51_vm0, %v11079_v11, 0.0  ;;  %v11092_v12 = vadd.f32 %v3717_v39, %v3602_v49 }
 0x82e   :  { %3757 = vadd.xlane.f32.xlu0 %v3756_v8 }
 0x82f   :  { %v11086_v33 = vadd.f32 %v3709_v25, %v11026_v59  ;;  %v3765_v63 = vsel %vm51_vm0, %v11092_v12, 0.0  ;;  %v7509_v59 = vld [vmem:[%s12632_s2 + $0x1c0] sm:$0xff] }
 0x830   :  { %v7515_v4 = vcombine.low %v7507_v10, %v7509_v59  ;;  %v7516_v6 = vcombine.high %v7507_v10, %v7509_v59  ;;  %v7508_v59 = vld [vmem:[%s12632_s2 + $0x188] sm:$0xff] }
 0x831   :  { %v3759_v30 = vsel %vm51_vm0, %v11086_v33, 0.0 }
 0x832   :  { %3760 = vadd.xlane.f32.xlu1 %v3759_v30  ;;  %3763 = vadd.xlane.f32.xlu0 %v3762_v55 }
 0x833   :  { %4028 = vmatprep.subr.bf16.mxu0 %v7516_v6 }
 0x834   :  { %4029 = vmatpush1.bf16.msra.mxu0 %v7515_v4  ;;  %v7510_v4 = vld [vmem:[%s12632_s2 + $0x1c8] sm:$0xff] }
 0x836   :  { %3766 = vadd.xlane.f32.xlu1 %v3765_v63 }
 0x897   :  { %v3734_v49 = vpop.xlane.xlu0 %3733 }
 0x898   :  { %v3768_v26 = vmul.f32 0.03125, %v3734_v49 }
 0x89a   :  { %v11103_v22 = vsub.f32 %v11045_v1, %v3768_v26  ;;  %v7518_v26 = vcombine.high %v7508_v59, %v7510_v4 }
 0x89b   :  { %v3737_v28 = vpop.xlane.xlu1 %3736  ;;  %v3740_v19 = vpop.xlane.xlu0 %3739 }
 0x89c   :  { %v3769_v31 = vmul.f32 0.03125, %v3737_v28  ;;  %v3770_v35 = vmul.f32 0.03125, %v3740_v19  ;;  %v3792_v37 = vmul.f32 %v11103_v22, %v11103_v22  ;;  %v7517_v19 = vcombine.low %v7508_v59, %v7510_v4  ;;  %4121 = vmatprep.subr.bf16.mxu1 %v7518_v26 }
 0x89d   :  { %v11221_v4 = vrot.slane %v11040_v58, %v12750_v9 }
 0x89e   :  { %v11107_v5 = vsub.f32 %v3721_v44, %v3769_v31  ;;  %v11110_v20 = vsub.f32 %v11050_v17, %v3770_v35  ;;  %v3804_v48 = vsel %vm51_vm0, %v3792_v37, 0.0  ;;  %4122 = vmatpush1.bf16.msra.mxu1 %v7517_v19 }
 0x89f   :  { %v3743_v60 = vpop.xlane.xlu1 %3742  ;;  %3805 = vadd.xlane.f32.xlu0 %v3804_v48  ;;  %v7504_v48 = vld [vmem:[%s12632_s2 + $0x108] sm:$0xff] }
 0x8a0   :  { %v3771_v23 = vmul.f32 0.03125, %v3743_v60  ;;  %v3793_v1 = vmul.f32 %v11107_v5, %v11107_v5  ;;  %v3794_v54 = vmul.f32 %v11110_v20, %v11110_v20 }
 0x8a2   :  { %v11118_v40 = vsub.f32 %v11057_v57, %v3771_v23  ;;  %v3807_v44 = vsel %vm51_vm0, %v3793_v1, 0.0  ;;  %v3810_v3 = vsel %vm51_vm0, %v3794_v54, 0.0 }
 0x8a3   :  { %3808 = vadd.xlane.f32.xlu1 %v3807_v44  ;;  %3811 = vadd.xlane.f32.xlu0 %v3810_v3  ;;  %v7506_v44 = vld [vmem:[%s12632_s2 + $0x148] sm:$0xff] }
 0x8a4   :  { %v3795_v17 = vmul.f32 %v11118_v40, %v11118_v40 }
 0x8a6   :  { %v3813_v51 = vsel %vm51_vm0, %v3795_v17, 0.0  ;;  %v7513_v17 = vcombine.low %v7504_v48, %v7506_v44 }
 0x8a7   :  { %3814 = vadd.xlane.f32.xlu1 %v3813_v51  ;;  %v3746_v52 = vpop.xlane.xlu0 %3745  ;;  %v7514_v51 = vcombine.high %v7504_v48, %v7506_v44 }
 0x8a8   :  { %v3772_v7 = vmul.f32 0.03125, %v3746_v52 }
 0x8a9   :  { %4123 = vmatprep.subr.bf16.mxu1 %v7514_v51 }
 0x8aa   :  { %v11126_v2 = vsub.f32 %v11062_v14, %v3772_v7  ;;  %4124 = vmatpush1.bf16.msra.mxu1 %v7513_v17  ;;  %v11194_v7 = vld [vmem:[%s12632_s2 + $0x190] sm:$0xff] }
 0x8ab   :  { %v3749_v53 = vpop.xlane.xlu1 %3748  ;;  %v3752_v57 = vpop.xlane.xlu0 %3751 }
 0x8ac   :  { %v3773_v18 = vmul.f32 0.03125, %v3749_v53  ;;  %v3774_v34 = vmul.f32 0.03125, %v3752_v57  ;;  %v3796_v42 = vmul.f32 %v11126_v2, %v11126_v2  ;;  %v11199_v53 = vld [vmem:[%s12632_s2 + $0x1d0] sm:$0xff]  ;;  %v11204_v57 = vld [vmem:[%s12632_s2 + $0x198] sm:$0xff] }
 0x8ae   :  { %v11131_v13 = vsub.f32 %v11069_v47, %v3773_v18  ;;  %v11134_v50 = vsub.f32 %v11066_v45, %v3774_v34  ;;  %v3816_v41 = vsel %vm51_vm0, %v3796_v42, 0.0  ;;  %v7608_v18 = vcombine.low %v11194_v7, %v11199_v53  ;;  %v11213_v42 = vld [vmem:[%s12632_s2 + $0x1d8] sm:$0xff] }
 0x8af   :  { %v3755_v56 = vpop.xlane.xlu1 %3754  ;;  %3817 = vadd.xlane.f32.xlu0 %v3816_v41  ;;  %v7609_v34 = vcombine.high %v11194_v7, %v11199_v53  ;;  %v7610_v41 = vcombine.low %v11204_v57, %v11213_v42 }
 0x8b0   :  { %v3775_v38 = vmul.f32 0.03125, %v3755_v56  ;;  %v3797_v14 = vmul.f32 %v11131_v13, %v11131_v13  ;;  %v3798_v15 = vmul.f32 %v11134_v50, %v11134_v50  ;;  %v7611_v56 = vcombine.high %v11204_v57, %v11213_v42  ;;  %v7597_v42 = vld [vmem:[%s12632_s2 + $0x118] sm:$0xff] }
 0x8b2   :  { %v11142_v16 = vsub.f32 %v11075_v36, %v3775_v38  ;;  %v3819_v47 = vsel %vm51_vm0, %v3797_v14, 0.0  ;;  %v3822_v62 = vsel %vm51_vm0, %v3798_v15, 0.0  ;;  %4515 = vmatprep.subr.bf16.mxu1 %v7611_v56  ;;  %v7599_v56 = vld [vmem:[%s12632_s2 + $0x158] sm:$0xff] }
 0x8b3   :  { %3820 = vadd.xlane.f32.xlu1 %v3819_v47  ;;  %3823 = vadd.xlane.f32.xlu0 %v3822_v62 }
 0x8b4   :  { %v3799_v45 = vmul.f32 %v11142_v16, %v11142_v16 }
 0x8b6   :  { %v3825_v32 = vsel %vm51_vm0, %v3799_v45, 0.0 }
 0x8b7   :  { %3826 = vadd.xlane.f32.xlu1 %v3825_v32  ;;  %v3758_v39 = vpop.xlane.xlu0 %3757 }
 0x8b8   :  { %v3776_v25 = vmul.f32 0.03125, %v3758_v39 }
 0x8ba   :  { %v11150_v8 = vsub.f32 %v11079_v11, %v3776_v25 }
 0x8bb   :  { %v3761_v30 = vpop.xlane.xlu1 %3760  ;;  %v3764_v36 = vpop.xlane.xlu0 %3763 }
 0x8bc   :  { %v3777_v55 = vmul.f32 0.03125, %v3761_v30  ;;  %v3778_v63 = vmul.f32 0.03125, %v3764_v36  ;;  %v3800_v10 = vmul.f32 %v11150_v8, %v11150_v8 }
 0x8be   :  { %v11161_v6 = vsub.f32 %v11086_v33, %v3777_v55  ;;  %v11164_v11 = vsub.f32 %v11083_v61, %v3778_v63  ;;  %v3828_v49 = vsel %vm51_vm0, %v3800_v10, 0.0  ;;  %v7503_v33 = vld [vmem:[%s12632_s2 + $0x100] sm:$0xff] }
 0x8bf   :  { %v3767_v28 = vpop.xlane.xlu1 %3766  ;;  %3829 = vadd.xlane.f32.xlu0 %v3828_v49  ;;  %v7505_v61 = vld [vmem:[%s12632_s2 + $0x140] sm:$0xff] }
 0x8c0   :  { %v3779_v31 = vmul.f32 0.03125, %v3767_v28  ;;  %v3801_v35 = vmul.f32 %v11161_v6, %v11161_v6  ;;  %v3802_v37 = vmul.f32 %v11164_v11, %v11164_v11  ;;  %v7512_v54 = vcombine.high %v7503_v33, %v7505_v61 }
 0x8c1   :  { %v7511_v3 = vcombine.low %v7503_v33, %v7505_v61  ;;  %v11226_v33 = vrot.slane %v11040_v58, %v12752_v43  ;;  %v7596_v58 = vld [vmem:[%s12632_s2 + $0x110] sm:$0xff] }
 0x8c2   :  { %v11181_v60 = vsub.f32 %v11092_v12, %v3779_v31  ;;  %v3831_v23 = vsel %vm51_vm0, %v3801_v35, 0.0  ;;  %v3834_v1 = vsel %vm51_vm0, %v3802_v37, 0.0  ;;  %4030 = vmatprep.subr.bf16.mxu0 %v7512_v54 }
 0x8c3   :  { %3832 = vadd.xlane.f32.xlu1 %v3831_v23  ;;  %3835 = vadd.xlane.f32.xlu0 %v3834_v1 }
 0x8c4   :  { %v3803_v52 = vmul.f32 %v11181_v60, %v11181_v60  ;;  %4031 = vmatpush1.bf16.msra.mxu0 %v7511_v3 }
 0x8c5   :  { %4422 = vmatprep.subr.bf16.mxu0 %v7609_v34  ;;  %v7598_v34 = vld [vmem:[%s12632_s2 + $0x150] sm:$0xff] }
 0x8c6   :  { %v3837_v12 = vsel %vm51_vm0, %v3803_v52, 0.0 }
 0x8c7   :  { %3838 = vadd.xlane.f32.xlu1 %v3837_v12 }
 0x928   :  { %v3806_v38 = vpop.xlane.xlu0 %3805 }
 0x929   :  { %v3840_v14 = vmul.f32 0.03125, %v3806_v38 }
 0x92b   :  { %v3852_v15 = vadd.f32 1e-05, %v3840_v14  ;;  %v7607_v14 = vcombine.high %v7597_v42, %v7599_v56 }
 0x92c   :  { %v3809_v47 = vpop.xlane.xlu1 %3808  ;;  %v3812_v62 = vpop.xlane.xlu0 %3811 }
 0x92d   :  { %9188 = vrsqrt.f32 %v3852_v15  ;;  %v3841_v45 = vmul.f32 0.03125, %v3809_v47  ;;  %v3842_v32 = vmul.f32 0.03125, %v3812_v62  ;;  %v7604_v62 = vcombine.low %v7596_v58, %v7598_v34 }
 0x92f   :  { %v3853_v39 = vadd.f32 1e-05, %v3841_v45  ;;  %v3854_v25 = vadd.f32 1e-05, %v3842_v32  ;;  %v7606_v45 = vcombine.low %v7597_v42, %v7599_v56 }
 0x930   :  { %v3815_v30 = vpop.xlane.xlu1 %3814 }
 0x931   :  { %9190 = vrsqrt.f32 %v3853_v39  ;;  %v3843_v36 = vmul.f32 0.03125, %v3815_v30 }
 0x932   :  { %9192 = vrsqrt.f32 %v3854_v25 }
 0x933   :  { %v3855_v55 = vadd.f32 1e-05, %v3843_v36 }
 0x935   :  { %9194 = vrsqrt.f32 %v3855_v55 }
 0x938   :  { %v3818_v63 = vpop.xlane.xlu0 %3817 }
 0x939   :  { %v3844_v10 = vmul.f32 0.03125, %v3818_v63 }
 0x93a   :  { %v9189_v59 = vpop.eup %9188 }
 0x93b   :  { %v3876_v49 = vmul.f32 %v9189_v59, %v11103_v22  ;;  %v3856_v26 = vadd.f32 1e-05, %v3844_v10 }
 0x93c   :  { %v3821_v28 = vpop.xlane.xlu1 %3820  ;;  %v3824_v19 = vpop.xlane.xlu0 %3823 }
 0x93d   :  { %9196 = vrsqrt.f32 %v3856_v26  ;;  %v3845_v31 = vmul.f32 0.03125, %v3821_v28  ;;  %v3846_v35 = vmul.f32 0.03125, %v3824_v19  ;;  %v3892_v61 = vmul.f32 %v11221_v4, %v3876_v49 }
 0x93e   :  { %v9191_v37 = vpop.eup %9190 }
 0x93f   :  { %v3877_v48 = vmul.f32 %v9191_v37, %v11107_v5  ;;  %v3857_v23 = vadd.f32 1e-05, %v3845_v31  ;;  %v3858_v1 = vadd.f32 1e-05, %v3846_v35  ;;  %v9193_v54 = vpop.eup %9192  ;;  %v11232_v51 = vadd.f32 %v11226_v33, %v3892_v61 }
 0x940   :  { %v3827_v44 = vpop.xlane.xlu1 %3826  ;;  %v3878_v5 = vmul.f32 %v9193_v54, %v11110_v20 }
 0x941   :  { %v3893_v22 = vmul.f32 %v11221_v4, %v3877_v48  ;;  %9198 = vrsqrt.f32 %v3857_v23  ;;  %v3847_v3 = vmul.f32 0.03125, %v3827_v44  ;;  %12766 = vst [vmem:[#allocation33_spill] sm:$0xff] %v11232_v51 }
 0x942   :  { %v9195_v17 = vpop.eup %9194  ;;  %9200 = vrsqrt.f32 %v3858_v1  ;;  %v3894_v15 = vmul.f32 %v11221_v4, %v3878_v5 }
 0x943   :  { %v11238_v52 = vadd.f32 %v11226_v33, %v3893_v22  ;;  %v3879_v12 = vmul.f32 %v9195_v17, %v11118_v40  ;;  %v3859_v57 = vadd.f32 1e-05, %v3847_v3  ;;  %v7605_v40 = vcombine.high %v7596_v58, %v7598_v34 }
 0x944   :  { %v11270_v30 = vadd.f32 %v11226_v33, %v3894_v15 }
 0x945   :  { %12767 = vst [vmem:[#allocation34_spill] sm:$0xff] %v11238_v52  ;;  %v11253_v38 = vpack.c.bf16 %v11238_v52, %v11232_v51  ;;  %v3895_v20 = vmul.f32 %v11221_v4, %v3879_v12  ;;  %9202 = vrsqrt.f32 %v3859_v57 }
 0x946   :  { %12770 = vst [vmem:[#allocation28_spill] sm:$0xff] %v11270_v30 }
 0x947   :  { %12768 = vst [vmem:[#allocation27_spill] sm:$0xff] %v11253_v38  ;;  %7519 = vmatmul.mubr.msk.bf16.vlgmr.msra.gmra.mxu0 %vm51_vm0, %v11253_v38  ;;  %7525 = vmatmul.mubr.msk.bf16.vlgmr.msra.gmra.mxu1 %vm51_vm0, %v11253_v38  ;;  %v11265_v32 = vadd.f32 %v11226_v33, %v3895_v20 }
 0x948   :  { %4423 = vmatpush1.bf16.msra.mxu0 %v7608_v18  ;;  %4516 = vmatpush1.bf16.msra.mxu1 %v7610_v41  ;;  %v3830_v47 = vpop.xlane.xlu0 %3829 }
 0x949   :  { %12769 = vst [vmem:[#allocation31_spill] sm:$0xff] %v11265_v32  ;;  %v3848_v39 = vmul.f32 0.03125, %v3830_v47  ;;  %4058 = vmatprep.mubr.bf16.mxu0 %v12743_v21  ;;  %4151 = vmatprep.mubr.bf16.mxu1 %v12743_v21  ;;  %v11275_v36 = vpack.c.bf16 %v11265_v32, %v11270_v30 }
 0x94a   :  { %v9197_v25 = vpop.eup %9196  ;;  %4424 = vmatprep.subr.bf16.mxu0 %v7605_v40  ;;  %4517 = vmatprep.subr.bf16.mxu1 %v7607_v14 }
 0x94b   :  { %v3880_v7 = vmul.f32 %v9197_v25, %v11126_v2  ;;  %v3860_v53 = vadd.f32 1e-05, %v3848_v39  ;;  %12771 = vst [vmem:[#allocation32_spill] sm:$0xff] %v11275_v36  ;;  %v9015_v39 = vld [vmem:[%s12634_s4 + $0x5b8] sm:$0xff]   ;;  %v9016_v25 = vld [vmem:[%s12634_s4 + $0x570] sm:$0xff]  }
 0x94c   :  { %v3833_v18 = vpop.xlane.xlu1 %3832  ;;  %v3836_v41 = vpop.xlane.xlu0 %3835  ;;  %4425 = vmatpush1.bf16.msra.mxu0 %v7604_v62  ;;  %4518 = vmatpush1.bf16.msra.mxu1 %v7606_v45  ;;  %v9014_v45 = vld [vmem:[%s12634_s4 + $0x538] sm:$0xff]  }
 0x94d   :  { %9204 = vrsqrt.f32 %v3860_v53  ;;  %v3849_v55 = vmul.f32 0.03125, %v3833_v18  ;;  %v3850_v63 = vmul.f32 0.03125, %v3836_v41  ;;  %v3896_v59 = vmul.f32 %v11221_v4, %v3880_v7  ;;  %v9017_v7 = vld [vmem:[%s12634_s4 + $0x5f0] sm:$0xff]   ;;  %v9020_v41 = vld [vmem:[%s12634_s4 + $0x568] sm:$0xff]  }
 0x94e   :  { %v9199_v10 = vpop.eup %9198  ;;  %v9018_v53 = vld [vmem:[%s12634_s4 + $0x530] sm:$0xff]  }
 0x94f   :  { %v9201_v49 = vpop.eup %9200  ;;  %v3881_v26 = vmul.f32 %v9199_v10, %v11131_v13  ;;  %v3861_v28 = vadd.f32 1e-05, %v3849_v55  ;;  %v3862_v2 = vadd.f32 1e-05, %v3850_v63  ;;  %7520 = vmatmul.mubr.msk.bf16.gmra.mxu0 %vm51_vm0, %v11275_v36  ;;  %7526 = vmatmul.mubr.msk.bf16.gmra.mxu1 %vm51_vm0, %v11275_v36  ;;  %v11287_v13 = vadd.f32 %v11226_v33, %v3896_v59  ;;  %v9019_v18 = vld [vmem:[%s12634_s4 + $0x5b0] sm:$0xff]   ;;  %v9021_v55 = vld [vmem:[%s12634_s4 + $0x5e8] sm:$0xff]  }
 0x950   :  { %v3839_v19 = vpop.xlane.xlu1 %3838  ;;  %4068 = vmatprep.mubr.bf16.mxu0 %v12743_v21  ;;  %4161 = vmatprep.mubr.bf16.mxu1 %v12743_v21  ;;  %v3882_v61 = vmul.f32 %v9201_v49, %v11134_v50  ;;  %v9022_v63 = vld [vmem:[%s12634_s4 + $0x528] sm:$0xff]   ;;  %v9024_v59 = vld [vmem:[%s12634_s4 + $0x560] sm:$0xff]  }
 0x951   :  { %v3897_v31 = vmul.f32 %v11221_v4, %v3881_v26  ;;  %9206 = vrsqrt.f32 %v3861_v28  ;;  %v3851_v35 = vmul.f32 0.03125, %v3839_v19  ;;  %12772 = vst [vmem:[#allocation29_spill] sm:$0xff] %v11287_v13  ;;  %v9023_v10 = vld [vmem:[%s12634_s4 + $0x5a8] sm:$0xff]   ;;  %v9025_v49 = vld [vmem:[%s12634_s4 + $0x5e0] sm:$0xff]   ;;  %v9029_v19 = vld [vmem:[%s12634_s4 + $0x5d8] sm:$0xff]  }
 0x952   :  { %v9203_v37 = vpop.eup %9202  ;;  %9208 = vrsqrt.f32 %v3862_v2  ;;  %v3898_v22 = vmul.f32 %v11221_v4, %v3882_v61  ;;  %v9026_v26 = vld [vmem:[%s12634_s4 + $0x520] sm:$0xff]   ;;  %v9028_v2 = vld [vmem:[%s12634_s4 + $0x558] sm:$0xff]   ;;  %v9033_v61 = vld [vmem:[%s12634_s4 + $0x5d0] sm:$0xff]  }
 0x953   :  { %v11291_v48 = vadd.f32 %v11226_v33, %v3897_v31  ;;  %v3883_v23 = vmul.f32 %v9203_v37, %v11142_v16  ;;  %v3863_v1 = vadd.f32 1e-05, %v3851_v35  ;;  %v9027_v28 = vld [vmem:[%s12634_s4 + $0x5a0] sm:$0xff]   ;;  %v9030_v31 = vld [vmem:[%s12634_s4 + $0x518] sm:$0xff]   ;;  %v9032_v37 = vld [vmem:[%s12634_s4 + $0x550] sm:$0xff]  }
 0x954   :  { %v11310_v3 = vadd.f32 %v11226_v33, %v3898_v22  ;;  %v9031_v35 = vld [vmem:[%s12634_s4 + $0x598] sm:$0xff]   ;;  %v9037_v22 = vld [vmem:[%s12634_s4 + $0x5c8] sm:$0xff]  }
 0x955   :  { %12773 = vst [vmem:[#allocation30_spill] sm:$0xff] %v11291_v48  ;;  %v11296_v54 = vpack.c.bf16 %v11291_v48, %v11287_v13  ;;  %v3899_v44 = vmul.f32 %v11221_v4, %v3883_v23  ;;  %9210 = vrsqrt.f32 %v3863_v1  ;;  %v9034_v23 = vld [vmem:[%s12634_s4 + $0x510] sm:$0xff]  }
 0x956   :  { %12776 = vst [vmem:[#allocation11_spill] sm:$0xff] %v11310_v3  ;;  %v9035_v1 = vld [vmem:[%s12634_s4 + $0x590] sm:$0xff]  }
 0x957   :  { %12774 = vst [vmem:[#allocation35_spill] sm:$0xff] %v11296_v54  ;;  %7521 = vmatmul.mubr.msk.bf16.gmra.mxu0 %vm51_vm0, %v11296_v54  ;;  %7527 = vmatmul.mubr.msk.bf16.gmra.mxu1 %vm51_vm0, %v11296_v54  ;;  %v11307_v50 = vadd.f32 %v11226_v33, %v3899_v44  ;;  %v9036_v44 = vld [vmem:[%s12634_s4 + $0x548] sm:$0xff]  }
 0x958   :  { %4078 = vmatprep.mubr.bf16.mxu0 %v12743_v21  ;;  %4171 = vmatprep.mubr.bf16.mxu1 %v12743_v21 }
 0x959   :  { %12775 = vst [vmem:[#allocation36_spill] sm:$0xff] %v11307_v50  ;;  %v11315_v58 = vpack.c.bf16 %v11307_v50, %v11310_v3 }
 0x95a   :  { %v9205_v16 = vpop.eup %9204 }
 0x95b   :  { %v3884_v17 = vmul.f32 %v9205_v16, %v11150_v8  ;;  %12777 = vst [vmem:[#allocation14_spill] sm:$0xff] %v11315_v58  ;;  %v9038_v16 = vld [vmem:[%s12634_s4 + $0x508] sm:$0xff]  }
 0x95d   :  { %v3900_v12 = vmul.f32 %v11221_v4, %v3884_v17  ;;  %v9039_v17 = vld [vmem:[%s12634_s4 + $0x588] sm:$0xff]  }
 0x95e   :  { %v9207_v5 = vpop.eup %9206 }
 0x95f   :  { %v3885_v57 = vmul.f32 %v9207_v5, %v11161_v6  ;;  %7522 = vmatmul.mubr.msk.bf16.gmra.mxu0 %vm51_vm0, %v11315_v58  ;;  %7528 = vmatmul.mubr.msk.bf16.gmra.mxu1 %vm51_vm0, %v11315_v58  ;;  %v9209_v34 = vpop.eup %9208  ;;  %v11327_v56 = vadd.f32 %v11226_v33, %v3900_v12  ;;  %v9040_v5 = vld [vmem:[%s12634_s4 + $0x540] sm:$0xff]  }
 0x960   :  { %4088 = vmatprep.mubr.bf16.mxu0 %v12743_v21  ;;  %4181 = vmatprep.mubr.bf16.mxu1 %v12743_v21  ;;  %v3886_v6 = vmul.f32 %v9209_v34, %v11164_v11  ;;  %v9041_v12 = vld [vmem:[%s12634_s4 + $0x5c0] sm:$0xff]  }
 0x961   :  { %v3901_v8 = vmul.f32 %v11221_v4, %v3885_v57  ;;  %12778 = vst [vmem:[#allocation17_spill] sm:$0xff] %v11327_v56  ;;  %v9042_v57 = vld [vmem:[%s12634_s4 + $0x500] sm:$0xff]  }
 0x962   :  { %v9211_v42 = vpop.eup %9210  ;;  %v3902_v47 = vmul.f32 %v11221_v4, %v3886_v6  ;;  %v9043_v34 = vld [vmem:[%s12634_s4 + $0x580] sm:$0xff]  }
 0x963   :  { %v11330_v20 = vadd.f32 %v11226_v33, %v3901_v8  ;;  %v3887_v40 = vmul.f32 %v9211_v42, %v11181_v60  ;;  %v9044_v8 = vld [vmem:[%s12634_s4 + $0x478] sm:$0xff]   ;;  %v11501_v6 = vld [vmem:[%s12633_s3 + $0x1] ss:$2 sm:$0xf] }
 0x964   :  { %v11350_v60 = vadd.f32 %v11226_v33, %v3902_v47  ;;  %v9045_v42 = vld [vmem:[%s12634_s4 + $0x4f8] sm:$0xff]  }
 0x965   :  { %12779 = vst [vmem:[#allocation20_spill] sm:$0xff] %v11330_v20  ;;  %v11336_v14 = vpack.c.bf16 %v11330_v20, %v11327_v56  ;;  %v3903_v15 = vmul.f32 %v11221_v4, %v3887_v40  ;;  %v9012_v4 = vld [vmem:[%s12634_s4 + $0x578] sm:$0xff]   ;;  %v11505_v40 = vrot.slane %v11501_v6, %v12751_v0 }
 0x966   :  { %12782 = vst [vmem:[#allocation9_spill] sm:$0xff] %v11350_v60  ;;  %8434 = vmatprep.subr.bf16.mxu0 %v9012_v4 }
 0x967   :  { %12780 = vst [vmem:[#allocation23_spill] sm:$0xff] %v11336_v14  ;;  %7523 = vmatmul.mubr.msk.bf16.gmra.mxu0 %vm51_vm0, %v11336_v14  ;;  %7529 = vmatmul.mubr.msk.bf16.gmra.mxu1 %vm51_vm0, %v11336_v14  ;;  %v11347_v11 = vadd.f32 %v11226_v33, %v3903_v15  ;;  %v9013_v33 = vld [vmem:[%s12634_s4 + $0x5f8] sm:$0xff]   ;;  %v11509_v15 = vrot.slane %v11501_v6, %v12752_v43 }
 0x968   :  { %4098 = vmatprep.mubr.bf16.mxu0 %v12743_v21  ;;  %4191 = vmatprep.mubr.bf16.mxu1 %v12743_v21 }
 0x969   :  { %12781 = vst [vmem:[#allocation26_spill] sm:$0xff] %v11347_v11  ;;  %v11354_v62 = vpack.c.bf16 %v11347_v11, %v11350_v60  ;;  %8486 = vmatprep.subr.bf16.mxu1 %v9013_v33 }
 0x96b   :  { %12783 = vst [vmem:[#allocation10_spill] sm:$0xff] %v11354_v62 }
 0x96f   :  { %7524 = vmatmul.mubr.msk.bf16.gmra.mxu0 %vm51_vm0, %v11354_v62  ;;  %7530 = vmatmul.mubr.msk.bf16.gmra.mxu1 %vm51_vm0, %v11354_v62 }
 0x970   :  { %4442 = vmatprep.mubr.bf16.mxu0 %v12743_v21  ;;  %4535 = vmatprep.mubr.bf16.mxu1 %v12743_v21 }
 0x977   :  { %7612 = vmatmul.mubr.msk.bf16.vlgmr.msra.gmra.mxu0 %vm51_vm0, %v11253_v38  ;;  %7618 = vmatmul.mubr.msk.bf16.vlgmr.msra.gmra.mxu1 %vm51_vm0, %v11253_v38 }
 0x978   :  { %4452 = vmatprep.mubr.bf16.mxu0 %v12743_v21  ;;  %4545 = vmatprep.mubr.bf16.mxu1 %v12743_v21 }
 0x979   :  { %8435 = vmatpush3.bf16.msra.mxu0 %v9014_v45  ;;  %8487 = vmatpush3.bf16.msra.mxu1 %v9015_v39 }
 0x97a   :  { %8436 = vmatprep.subr.bf16.mxu0 %v9016_v25  ;;  %8488 = vmatprep.subr.bf16.mxu1 %v9017_v7 }
 0x97d   :  { %8437 = vmatpush3.bf16.msra.mxu0 %v9018_v53  ;;  %8489 = vmatpush3.bf16.msra.mxu1 %v9019_v18 }
 0x97e   :  { %8438 = vmatprep.subr.bf16.mxu0 %v9020_v41  ;;  %8490 = vmatprep.subr.bf16.mxu1 %v9021_v55 }
 0x97f   :  { %7613 = vmatmul.mubr.msk.bf16.gmra.mxu0 %vm51_vm0, %v11275_v36  ;;  %7619 = vmatmul.mubr.msk.bf16.gmra.mxu1 %vm51_vm0, %v11275_v36 }
 0x980   :  { %4462 = vmatprep.mubr.bf16.mxu0 %v12743_v21  ;;  %4555 = vmatprep.mubr.bf16.mxu1 %v12743_v21 }
 0x981   :  { %8439 = vmatpush3.bf16.msra.mxu0 %v9022_v63  ;;  %8491 = vmatpush3.bf16.msra.mxu1 %v9023_v10 }
 0x982   :  { %8440 = vmatprep.subr.bf16.mxu0 %v9024_v59  ;;  %8492 = vmatprep.subr.bf16.mxu1 %v9025_v49 }
 0x985   :  { %8441 = vmatpush3.bf16.msra.mxu0 %v9026_v26  ;;  %8493 = vmatpush3.bf16.msra.mxu1 %v9027_v28 }
 0x986   :  { %8442 = vmatprep.subr.bf16.mxu0 %v9028_v2  ;;  %8494 = vmatprep.subr.bf16.mxu1 %v9029_v19 }
 0x987   :  { %7614 = vmatmul.mubr.msk.bf16.gmra.mxu0 %vm51_vm0, %v11296_v54  ;;  %7620 = vmatmul.mubr.msk.bf16.gmra.mxu1 %vm51_vm0, %v11296_v54 }
 0x988   :  { %4472 = vmatprep.mubr.bf16.mxu0 %v12743_v21  ;;  %4565 = vmatprep.mubr.bf16.mxu1 %v12743_v21 }
 0x989   :  { %8443 = vmatpush3.bf16.msra.mxu0 %v9030_v31  ;;  %8495 = vmatpush3.bf16.msra.mxu1 %v9031_v35 }
 0x98a   :  { %8444 = vmatprep.subr.bf16.mxu0 %v9032_v37  ;;  %8496 = vmatprep.subr.bf16.mxu1 %v9033_v61 }
 0x98d   :  { %8445 = vmatpush3.bf16.msra.mxu0 %v9034_v23  ;;  %8497 = vmatpush3.bf16.msra.mxu1 %v9035_v1 }
 0x98e   :  { %8446 = vmatprep.subr.bf16.mxu0 %v9036_v44  ;;  %8498 = vmatprep.subr.bf16.mxu1 %v9037_v22 }
 0x98f   :  { %7615 = vmatmul.mubr.msk.bf16.gmra.mxu0 %vm51_vm0, %v11315_v58  ;;  %7621 = vmatmul.mubr.msk.bf16.gmra.mxu1 %vm51_vm0, %v11315_v58 }
 0x990   :  { %4482 = vmatprep.mubr.bf16.mxu0 %v12743_v21  ;;  %4575 = vmatprep.mubr.bf16.mxu1 %v12743_v21 }
 0x991   :  { %8447 = vmatpush3.bf16.msra.mxu0 %v9038_v16  ;;  %8499 = vmatpush3.bf16.msra.mxu1 %v9039_v17 }
 0x992   :  { %8448 = vmatprep.subr.bf16.mxu0 %v9040_v5  ;;  %8500 = vmatprep.subr.bf16.mxu1 %v9041_v12 }
 0x995   :  { %8449 = vmatpush3.bf16.msra.mxu0 %v9042_v57  ;;  %8501 = vmatpush3.bf16.msra.mxu1 %v9043_v34 }
 0x996   :  { %8538 = vmatprep.subr.bf16.mxu0 %v9044_v8  ;;  %8590 = vmatprep.subr.bf16.mxu1 %v9045_v42 }
 0x997   :  { %7616 = vmatmul.mubr.msk.bf16.gmra.mxu0 %vm51_vm0, %v11336_v14  ;;  %7622 = vmatmul.mubr.msk.bf16.gmra.mxu1 %vm51_vm0, %v11336_v14 }
 0x998   :  { %4492 = vmatprep.mubr.bf16.mxu0 %v12743_v21  ;;  %4585 = vmatprep.mubr.bf16.mxu1 %v12743_v21 }
 0x99f   :  { %7617 = vmatmul.mubr.msk.bf16.gmra.mxu0 %vm51_vm0, %v11354_v62  ;;  %7623 = vmatmul.mubr.msk.bf16.gmra.mxu1 %vm51_vm0, %v11354_v62 }
 0xa07   :  { %v4050_v47 = vpop.f32.mrf.mxu0  ;;  %v4143_v4 = vpop.f32.mrf.mxu1 }
 0xa08   :  { %v4051_v39 = vadd.f32 %v4050_v47, %v11505_v40  ;;  %v4144_v25 = vadd.f32 %v4143_v4, %v11509_v15 }
 0xa09   :  { %v11511_v33 = vpop.f32.mrf.mxu0  ;;  %v11513_v45 = vpop.f32.mrf.mxu1 }
 0xa0a   :  { %v4202_v10 = vmax.f32 %v4051_v39, 0.0  ;;  %v4204_v59 = vmax.f32 %v4144_v25, 0.0 }
 0xa0b   :  { %v4054_v7 = vpop.f32.mrf.mxu0  ;;  %v4147_v53 = vpop.f32.mrf.mxu1 }
 0xa0c   :  { %v4055_v18 = vadd.f32 %v4054_v7, %v11505_v40  ;;  %v4148_v41 = vadd.f32 %v4147_v53, %v11509_v15 }
 0xa0d   :  { %v11519_v55 = vpop.f32.mrf.mxu0  ;;  %v11521_v63 = vpop.f32.mrf.mxu1 }
 0xa0e   :  { %v4206_v49 = vmax.f32 %v4055_v18, 0.0  ;;  %v4208_v26 = vmax.f32 %v4148_v41, 0.0 }
 0xa0f   :  { %v4060_v28 = vpop.f32.mrf.mxu0  ;;  %v4153_v2 = vpop.f32.mrf.mxu1 }
 0xa10   :  { %v11523_v19 = vpack.c.bf16 %v4206_v49, %v4202_v10  ;;  %v11525_v31 = vpack.c.bf16 %v4208_v26, %v4204_v59  ;;  %v4061_v61 = vadd.f32 %v4060_v28, %v11505_v40  ;;  %v4154_v23 = vadd.f32 %v4153_v2, %v11509_v15 }
 0xa11   :  { %v11527_v35 = vpop.f32.mrf.mxu0  ;;  %v11529_v37 = vpop.f32.mrf.mxu1 }
 0xa12   :  { %v4210_v12 = vmax.f32 %v4061_v61, 0.0  ;;  %v4212_v57 = vmax.f32 %v4154_v23, 0.0 }
 0xa13   :  { %v4064_v1 = vpop.f32.mrf.mxu0  ;;  %v4157_v44 = vpop.f32.mrf.mxu1 }
 0xa14   :  { %v4065_v22 = vadd.f32 %v4064_v1, %v11505_v40  ;;  %v4158_v16 = vadd.f32 %v4157_v44, %v11509_v15 }
 0xa15   :  { %v11535_v17 = vpop.f32.mrf.mxu0  ;;  %v11537_v5 = vpop.f32.mrf.mxu1 }
 0xa16   :  { %v4214_v34 = vmax.f32 %v4065_v22, 0.0  ;;  %v4216_v8 = vmax.f32 %v4158_v16, 0.0 }
 0xa17   :  { %v4070_v42 = vpop.f32.mrf.mxu0  ;;  %v4163_v47 = vpop.f32.mrf.mxu1 }
 0xa18   :  { %v11539_v4 = vpack.c.bf16 %v4214_v34, %v4210_v12  ;;  %v11541_v39 = vpack.c.bf16 %v4216_v8, %v4212_v57  ;;  %v4071_v53 = vadd.f32 %v4070_v42, %v11505_v40  ;;  %v4164_v18 = vadd.f32 %v4163_v47, %v11509_v15 }
 0xa19   :  { %v11543_v25 = vpop.f32.mrf.mxu0  ;;  %v11545_v7 = vpop.f32.mrf.mxu1 }
 0xa1a   :  { %v4218_v2 = vmax.f32 %v4071_v53, 0.0  ;;  %v4220_v61 = vmax.f32 %v4164_v18, 0.0 }
 0xa1b   :  { %v4074_v41 = vpop.f32.mrf.mxu0  ;;  %v4167_v10 = vpop.f32.mrf.mxu1 }
 0xa1c   :  { %v4075_v59 = vadd.f32 %v4074_v41, %v11505_v40  ;;  %v4168_v49 = vadd.f32 %v4167_v10, %v11509_v15 }
 0xa1d   :  { %v11551_v26 = vpop.f32.mrf.mxu0  ;;  %v11553_v28 = vpop.f32.mrf.mxu1 }
 0xa1e   :  { %v4222_v23 = vmax.f32 %v4075_v59, 0.0  ;;  %v4224_v1 = vmax.f32 %v4168_v49, 0.0 }
 0xa1f   :  { %v4080_v44 = vpop.f32.mrf.mxu0  ;;  %v4173_v22 = vpop.f32.mrf.mxu1 }
 0xa20   :  { %v11555_v16 = vpack.c.bf16 %v4222_v23, %v4218_v2  ;;  %v11557_v12 = vpack.c.bf16 %v4224_v1, %v4220_v61  ;;  %v4081_v8 = vadd.f32 %v4080_v44, %v11505_v40  ;;  %v4174_v42 = vadd.f32 %v4173_v22, %v11509_v15 }
 0xa21   :  { %v11559_v57 = vpop.f32.mrf.mxu0  ;;  %v11561_v34 = vpop.f32.mrf.mxu1 }
 0xa22   :  { %v4226_v49 = vmax.f32 %v4081_v8, 0.0  ;;  %v4228_v2 = vmax.f32 %v4174_v42, 0.0 }
 0xa23   :  { %v4084_v47 = vpop.f32.mrf.mxu0  ;;  %v4177_v41 = vpop.f32.mrf.mxu1 }
 0xa24   :  { %v4085_v53 = vadd.f32 %v4084_v47, %v11505_v40  ;;  %v4178_v18 = vadd.f32 %v4177_v41, %v11509_v15 }
 0xa25   :  { %v11567_v10 = vpop.f32.mrf.mxu0  ;;  %v11569_v59 = vpop.f32.mrf.mxu1 }
 0xa26   :  { %v4230_v61 = vmax.f32 %v4085_v53, 0.0  ;;  %v4232_v23 = vmax.f32 %v4178_v18, 0.0 }
 0xa27   :  { %v4090_v1 = vpop.f32.mrf.mxu0  ;;  %v4183_v46 = vpop.f32.mrf.mxu1 }
 0xa28   :  { %v11571_v29 = vpack.c.bf16 %v4230_v61, %v4226_v49  ;;  %v11573_v44 = vpack.c.bf16 %v4232_v23, %v4228_v2  ;;  %v4091_v47 = vadd.f32 %v4090_v1, %v11505_v40  ;;  %v4184_v41 = vadd.f32 %v4183_v46, %v11509_v15 }
 0xa29   :  { %v11575_v22 = vpop.f32.mrf.mxu0  ;;  %v11577_v27 = vpop.f32.mrf.mxu1 }
 0xa2a   :  { %12784 = vst [vmem:[#allocation13_spill] sm:$0xff] %v11571_v29  ;;  %12785 = vst [vmem:[#allocation12_spill] sm:$0xff] %v11573_v44  ;;  %v4234_v49 = vmax.f32 %v4091_v47, 0.0  ;;  %v4236_v2 = vmax.f32 %v4184_v41, 0.0 }
 0xa2b   :  { %v4094_v11 = vpop.f32.mrf.mxu0  ;;  %v4187_v60 = vpop.f32.mrf.mxu1 }
 0xa2c   :  { %v4095_v8 = vadd.f32 %v4094_v11, %v11505_v40  ;;  %v4188_v42 = vadd.f32 %v4187_v60, %v11509_v15 }
 0xa2d   :  { %v11583_v53 = vpop.f32.mrf.mxu0  ;;  %v11585_v18 = vpop.f32.mrf.mxu1 }
 0xa2e   :  { %v4238_v61 = vmax.f32 %v4095_v8, 0.0  ;;  %v4240_v23 = vmax.f32 %v4188_v42, 0.0 }
 0xa2f   :  { %v4100_v20 = vpop.f32.mrf.mxu0  ;;  %v4193_v56 = vpop.f32.mrf.mxu1 }
 0xa30   :  { %v11587_v50 = vpack.c.bf16 %v4238_v61, %v4234_v49  ;;  %v11589_v1 = vpack.c.bf16 %v4240_v23, %v4236_v2  ;;  %v4101_v11 = vadd.f32 %v4100_v20, %v11505_v40  ;;  %v4194_v60 = vadd.f32 %v4193_v56, %v11509_v15  ;;  %v7595_v49 = vld [vmem:[%s12633_s3 + $0x9] ss:$2 sm:$0xf] }
 0xa31   :  { %v11591_v46 = vpop.f32.mrf.mxu0  ;;  %v11593_v3 = vpop.f32.mrf.mxu1 }
 0xa32   :  { %12786 = vst [vmem:[#allocation16_spill] sm:$0xff] %v11587_v50  ;;  %12787 = vst [vmem:[#allocation15_spill] sm:$0xff] %v11589_v1  ;;  %v4242_v2 = vmax.f32 %v4101_v11, 0.0  ;;  %v4244_v61 = vmax.f32 %v4194_v60, 0.0 }
 0xa33   :  { %12788 = vst [vmem:[#allocation19_spill] sm:$0xff] %v11591_v46  ;;  %12789 = vst [vmem:[#allocation18_spill] sm:$0xff] %v11593_v3  ;;  %v4104_v48 = vpop.f32.mrf.mxu0  ;;  %v4197_v13 = vpop.f32.mrf.mxu1 }
 0xa34   :  { %v4105_v47 = vadd.f32 %v4104_v48, %v11505_v40  ;;  %v4198_v41 = vadd.f32 %v4197_v13, %v11509_v15  ;;  %v11611_v13 = vrot.slane %v7595_v49, %v12750_v9  ;;  %v11614_v48 = vrot.slane %v7595_v49, %v9980_v24 }
 0xa35   :  { %v11599_v8 = vpop.f32.mrf.mxu0  ;;  %v11601_v42 = vpop.f32.mrf.mxu1  ;;  %v11617_v40 = vrot.slane %v7595_v49, %v12751_v0  ;;  %v11620_v15 = vrot.slane %v7595_v49, %v12752_v43 }
 0xa36   :  { %12790 = vst [vmem:[#allocation22_spill] sm:$0xff] %v11599_v8  ;;  %12791 = vst [vmem:[#allocation21_spill] sm:$0xff] %v11601_v42  ;;  %v4246_v23 = vmax.f32 %v4105_v47, 0.0  ;;  %v4248_v20 = vmax.f32 %v4198_v41, 0.0 }
 0xa37   :  { %v4444_v32 = vpop.f32.mrf.mxu0  ;;  %v4537_v56 = vpop.f32.mrf.mxu1 }
 0xa38   :  { %v11606_v30 = vpack.c.bf16 %v4246_v23, %v4242_v2  ;;  %v11608_v52 = vpack.c.bf16 %v4248_v20, %v4244_v61  ;;  %v4445_v51 = vadd.f32 %v4444_v32, %v11617_v40  ;;  %v4538_v0 = vadd.f32 %v4537_v56, %v11620_v15 }
 0xa39   :  { %v4446_v11 = vpop.f32.mrf.mxu0  ;;  %v4539_v60 = vpop.f32.mrf.mxu1 }
 0xa3a   :  { %12792 = vst [vmem:[#allocation25_spill] sm:$0xff] %v11606_v30  ;;  %12793 = vst [vmem:[#allocation24_spill] sm:$0xff] %v11608_v52  ;;  %v4447_v2 = vadd.f32 %v4446_v11, %v11611_v13  ;;  %v4540_v61 = vadd.f32 %v4539_v60, %v11614_v48  ;;  %v4596_v52 = vmax.f32 %v4445_v51, 0.0 }
 0xa3b   :  { %v4448_v47 = vpop.f32.mrf.mxu0  ;;  %v4541_v41 = vpop.f32.mrf.mxu1 }
 0xa3c   :  { %v4449_v23 = vadd.f32 %v4448_v47, %v11617_v40  ;;  %v4542_v20 = vadd.f32 %v4541_v41, %v11620_v15  ;;  %v4597_v38 = vmax.f32 %v4447_v2, 0.0  ;;  %v4599_v60 = vmax.f32 %v4540_v61, 0.0 }
 0xa3d   :  { %v4450_v62 = vpop.f32.mrf.mxu0  ;;  %v4543_v14 = vpop.f32.mrf.mxu1  ;;  %v4598_v41 = vmax.f32 %v4538_v0, 0.0  ;;  %v9048_v0 = vld [vmem:[%s12634_s4 + $0x470] sm:$0xff]  }
 0xa3e   :  { %v4451_v49 = vadd.f32 %v4450_v62, %v11611_v13  ;;  %v4544_v43 = vadd.f32 %v4543_v14, %v11614_v48  ;;  %v4600_v58 = vmax.f32 %v4449_v23, 0.0  ;;  %v4602_v54 = vmax.f32 %v4542_v20, 0.0  ;;  %v9046_v62 = vld [vmem:[%s12634_s4 + $0x438] sm:$0xff]  }
 0xa3f   :  { %v4454_v36 = vpop.f32.mrf.mxu0  ;;  %v4547_v11 = vpop.f32.mrf.mxu1  ;;  %v9047_v14 = vld [vmem:[%s12634_s4 + $0x4b8] sm:$0xff]  }
 0xa40   :  { %v4601_v21 = vmax.f32 %v4451_v49, 0.0  ;;  %v4603_v47 = vmax.f32 %v4544_v43, 0.0  ;;  %v4644_v23 = vpack.c.bf16 %v4600_v58, %v4596_v52  ;;  %v4646_v20 = vpack.c.bf16 %v4602_v54, %v4598_v41 }
 0xa41   :  { %v4456_v30 = vpop.f32.mrf.mxu0  ;;  %v4549_v32 = vpop.f32.mrf.mxu1  ;;  %v4455_v52 = vadd.f32 %v4454_v36, %v11617_v40  ;;  %v4548_v54 = vadd.f32 %v4547_v11, %v11620_v15  ;;  %v9051_v36 = vld [vmem:[%s12634_s4 + $0x4b0] sm:$0xff]  }
 0xa42   :  { %v4645_v1 = vpack.c.bf16 %v4601_v21, %v4597_v38  ;;  %v4647_v56 = vpack.c.bf16 %v4603_v47, %v4599_v60  ;;  %v9049_v21 = vld [vmem:[%s12634_s4 + $0x4f0] sm:$0xff]   ;;  %v4457_v43 = vadd.f32 %v4456_v30, %v11611_v13  ;;  %v4550_v58 = vadd.f32 %v4549_v32, %v11614_v48 }
 0xa43   :  { %v4458_v2 = vpop.f32.mrf.mxu0  ;;  %v4551_v61 = vpop.f32.mrf.mxu1 }
 0xa44   :  { %v4459_v51 = vadd.f32 %v4458_v2, %v11617_v40  ;;  %v4552_v38 = vadd.f32 %v4551_v61, %v11620_v15  ;;  %4956 = vmatprep.mubr.bf16.mxu0 %v4645_v1  ;;  %5037 = vmatprep.mubr.bf16.mxu1 %v4647_v56  ;;  %v9050_v1 = vld [vmem:[%s12634_s4 + $0x430] sm:$0xff]   ;;  %v4604_v61 = vmax.f32 %v4455_v52, 0.0  ;;  %v9056_v52 = vld [vmem:[%s12634_s4 + $0x460] sm:$0xff]  }
 0xa45   :  { %v4460_v49 = vpop.f32.mrf.mxu0  ;;  %v4553_v60 = vpop.f32.mrf.mxu1  ;;  %4957 = vmatmul.mubr.bf16.vlgmr.msra.gmra.mxu0 %v4644_v23  ;;  %5038 = vmatmul.mubr.bf16.vlgmr.msra.gmra.mxu1 %v4646_v20  ;;  %v9052_v23 = vld [vmem:[%s12634_s4 + $0x468] sm:$0xff]  }
 0xa46   :  { %v4461_v47 = vadd.f32 %v4460_v49, %v11611_v13  ;;  %v4554_v30 = vadd.f32 %v4553_v60, %v11614_v48  ;;  %8539 = vmatpush3.bf16.msra.mxu0 %v9046_v62  ;;  %8591 = vmatpush3.bf16.msra.mxu1 %v9047_v14  ;;  %v4608_v11 = vmax.f32 %v4459_v51, 0.0  ;;  %v4610_v41 = vmax.f32 %v4552_v38, 0.0  ;;  %v9053_v62 = vld [vmem:[%s12634_s4 + $0x4e8] sm:$0xff]  }
 0xa47   :  { %v4464_v32 = vpop.f32.mrf.mxu0  ;;  %v4557_v56 = vpop.f32.mrf.mxu1  ;;  %8540 = vmatprep.subr.bf16.mxu0 %v9048_v0  ;;  %8592 = vmatprep.subr.bf16.mxu1 %v9049_v21  ;;  %v4605_v14 = vmax.f32 %v4457_v43, 0.0  ;;  %v4606_v49 = vmax.f32 %v4548_v54, 0.0  ;;  %v4607_v60 = vmax.f32 %v4550_v58, 0.0  ;;  %v9054_v21 = vld [vmem:[%s12634_s4 + $0x428] sm:$0xff]  }
 0xa48   :  { %v4609_v20 = vmax.f32 %v4461_v47, 0.0  ;;  %v4611_v2 = vmax.f32 %v4554_v30, 0.0  ;;  %v4648_v50 = vpack.c.bf16 %v4608_v11, %v4604_v61  ;;  %v9055_v43 = vld [vmem:[%s12634_s4 + $0x4a8] sm:$0xff]   ;;  %v4558_v11 = vadd.f32 %v4557_v56, %v11620_v15 }
 0xa49   :  { %v4466_v51 = vpop.f32.mrf.mxu0  ;;  %v4559_v38 = vpop.f32.mrf.mxu1  ;;  %v4650_v3 = vpack.c.bf16 %v4610_v41, %v4606_v49 }
 0xa4a   :  { %8541 = vmatpush3.bf16.msra.mxu0 %v9050_v1  ;;  %8593 = vmatpush3.bf16.msra.mxu1 %v9051_v36  ;;  %v4649_v0 = vpack.c.bf16 %v4609_v20, %v4605_v14  ;;  %v4651_v29 = vpack.c.bf16 %v4611_v2, %v4607_v60  ;;  %v4467_v54 = vadd.f32 %v4466_v51, %v11611_v13  ;;  %v9057_v1 = vld [vmem:[%s12634_s4 + $0x4e0] sm:$0xff]   ;;  %v4614_v51 = vmax.f32 %v4558_v11, 0.0  ;;  %v9063_v11 = vld [vmem:[%s12634_s4 + $0x498] sm:$0xff]  }
 0xa4b   :  { %v4468_v44 = vpop.f32.mrf.mxu0  ;;  %v4561_v46 = vpop.f32.mrf.mxu1  ;;  %8542 = vmatprep.subr.bf16.mxu0 %v9052_v23  ;;  %8594 = vmatprep.subr.bf16.mxu1 %v9053_v62  ;;  %v4560_v58 = vadd.f32 %v4559_v38, %v11614_v48  ;;  %v4465_v36 = vadd.f32 %v4464_v32, %v11617_v40 }
 0xa4c   :  { %v4469_v47 = vadd.f32 %v4468_v44, %v11617_v40  ;;  %v4562_v30 = vadd.f32 %v4561_v46, %v11620_v15  ;;  %4964 = vmatprep.mubr.bf16.mxu0 %v4649_v0  ;;  %5045 = vmatprep.mubr.bf16.mxu1 %v4651_v29  ;;  %v9058_v44 = vld [vmem:[%s12634_s4 + $0x420] sm:$0xff]  }
 0xa4d   :  { %v4470_v41 = vpop.f32.mrf.mxu0  ;;  %v4563_v23 = vpop.f32.mrf.mxu1  ;;  %4965 = vmatmul.mubr.bf16.gmra.mxu0 %v4648_v50  ;;  %5046 = vmatmul.mubr.bf16.gmra.mxu1 %v4650_v3  ;;  %v9059_v29 = vld [vmem:[%s12634_s4 + $0x4a0] sm:$0xff]   ;;  %v9060_v50 = vld [vmem:[%s12634_s4 + $0x458] sm:$0xff]   ;;  %v4613_v3 = vmax.f32 %v4467_v54, 0.0  ;;  %v4615_v56 = vmax.f32 %v4560_v58, 0.0  ;;  %v4612_v60 = vmax.f32 %v4465_v36, 0.0 }
 0xa4e   :  { %v4471_v62 = vadd.f32 %v4470_v41, %v11611_v13  ;;  %v4564_v14 = vadd.f32 %v4563_v23, %v11614_v48  ;;  %8543 = vmatpush3.bf16.msra.mxu0 %v9054_v21  ;;  %v4616_v46 = vmax.f32 %v4469_v47, 0.0  ;;  %v4618_v20 = vmax.f32 %v4562_v30, 0.0  ;;  %8595 = vmatpush3.bf16.msra.mxu1 %v9055_v43  ;;  %v9061_v21 = vld [vmem:[%s12634_s4 + $0x4d8] sm:$0xff]   ;;  %v9064_v41 = vld [vmem:[%s12634_s4 + $0x450] sm:$0xff]  }
 0xa4f   :  { %v4474_v2 = vpop.f32.mrf.mxu0  ;;  %v4567_v32 = vpop.f32.mrf.mxu1  ;;  %8544 = vmatprep.subr.bf16.mxu0 %v9056_v52  ;;  %8596 = vmatprep.subr.bf16.mxu1 %v9057_v1  ;;  %v9062_v47 = vld [vmem:[%s12634_s4 + $0x418] sm:$0xff]  }
 0xa50   :  { %v4617_v61 = vmax.f32 %v4471_v62, 0.0  ;;  %v4619_v49 = vmax.f32 %v4564_v14, 0.0  ;;  %v4652_v54 = vpack.c.bf16 %v4616_v46, %v4612_v60  ;;  %v4654_v58 = vpack.c.bf16 %v4618_v20, %v4614_v51 }
 0xa51   :  { %v4476_v38 = vpop.f32.mrf.mxu0  ;;  %v4569_v0 = vpop.f32.mrf.mxu1  ;;  %v4475_v46 = vadd.f32 %v4474_v2, %v11617_v40  ;;  %v4568_v20 = vadd.f32 %v4567_v32, %v11620_v15  ;;  %v9067_v32 = vld [vmem:[%s12634_s4 + $0x490] sm:$0xff]  }
 0xa52   :  { %v4653_v43 = vpack.c.bf16 %v4617_v61, %v4613_v3  ;;  %v4655_v52 = vpack.c.bf16 %v4619_v49, %v4615_v56  ;;  %8545 = vmatpush3.bf16.msra.mxu0 %v9058_v44  ;;  %v4477_v30 = vadd.f32 %v4476_v38, %v11611_v13  ;;  %8597 = vmatpush3.bf16.msra.mxu1 %v9059_v29  ;;  %v9065_v44 = vld [vmem:[%s12634_s4 + $0x4d0] sm:$0xff]   ;;  %v9068_v38 = vld [vmem:[%s12634_s4 + $0x448] sm:$0xff]  }
 0xa53   :  { %v4478_v1 = vpop.f32.mrf.mxu0  ;;  %v4571_v36 = vpop.f32.mrf.mxu1  ;;  %8546 = vmatprep.subr.bf16.mxu0 %v9060_v50  ;;  %v4570_v23 = vadd.f32 %v4569_v0, %v11614_v48  ;;  %8598 = vmatprep.subr.bf16.mxu1 %v9061_v21  ;;  %v9066_v61 = vld [vmem:[%s12634_s4 + $0x410] sm:$0xff]  }
 0xa54   :  { %v4479_v62 = vadd.f32 %v4478_v1, %v11617_v40  ;;  %v4572_v14 = vadd.f32 %v4571_v36, %v11620_v15  ;;  %4972 = vmatprep.mubr.bf16.mxu0 %v4653_v43  ;;  %5053 = vmatprep.mubr.bf16.mxu1 %v4655_v52  ;;  %v4621_v0 = vmax.f32 %v4477_v30, 0.0  ;;  %v9069_v36 = vld [vmem:[%s12634_s4 + $0x4c8] sm:$0xff]  }
 0xa55   :  { %v4480_v29 = vpop.f32.mrf.mxu0  ;;  %v4573_v50 = vpop.f32.mrf.mxu1  ;;  %4973 = vmatmul.mubr.bf16.gmra.mxu0 %v4652_v54  ;;  %5054 = vmatmul.mubr.bf16.gmra.mxu1 %v4654_v58  ;;  %v4623_v21 = vmax.f32 %v4570_v23, 0.0  ;;  %v4622_v54 = vmax.f32 %v4568_v20, 0.0  ;;  %v9071_v20 = vld [vmem:[%s12634_s4 + $0x488] sm:$0xff]  }
 0xa56   :  { %v4481_v3 = vadd.f32 %v4480_v29, %v11611_v13  ;;  %v4574_v56 = vadd.f32 %v4573_v50, %v11614_v48  ;;  %8547 = vmatpush3.bf16.msra.mxu0 %v9062_v47  ;;  %v4624_v49 = vmax.f32 %v4479_v62, 0.0  ;;  %v4626_v60 = vmax.f32 %v4572_v14, 0.0  ;;  %8599 = vmatpush3.bf16.msra.mxu1 %v9063_v11  ;;  %v9070_v62 = vld [vmem:[%s12634_s4 + $0x408] sm:$0xff]   ;;  %v9072_v29 = vld [vmem:[%s12634_s4 + $0x440] sm:$0xff]  }
 0xa57   :  { %v4484_v51 = vpop.f32.mrf.mxu0  ;;  %v4577_v2 = vpop.f32.mrf.mxu1  ;;  %8548 = vmatprep.subr.bf16.mxu0 %v9064_v41  ;;  %8600 = vmatprep.subr.bf16.mxu1 %v9065_v44  ;;  %v4620_v47 = vmax.f32 %v4475_v46, 0.0 }
 0xa58   :  { %v4625_v43 = vmax.f32 %v4481_v3, 0.0  ;;  %v4627_v52 = vmax.f32 %v4574_v56, 0.0  ;;  %v4658_v23 = vpack.c.bf16 %v4626_v60, %v4622_v54  ;;  %v11750_v60 = vld [vmem:[%s12632_s2 + $0x1e0] sm:$0xff]  ;;  %v11771_v54 = vrot.slane %v11501_v6, %v12750_v9 }
 0xa59   :  { %v4486_v58 = vpop.f32.mrf.mxu0  ;;  %v4579_v1 = vpop.f32.mrf.mxu1  ;;  %v4656_v30 = vpack.c.bf16 %v4624_v49, %v4620_v47  ;;  %v11745_v49 = vld [vmem:[%s12632_s2 + $0x1a0] sm:$0xff] }
 0xa5a   :  { %v4657_v11 = vpack.c.bf16 %v4625_v43, %v4621_v0  ;;  %v4659_v41 = vpack.c.bf16 %v4627_v52, %v4623_v21  ;;  %8549 = vmatpush3.bf16.msra.mxu0 %v9066_v61  ;;  %v4487_v14 = vadd.f32 %v4486_v58, %v11611_v13  ;;  %8601 = vmatpush3.bf16.msra.mxu1 %v9067_v32  ;;  %v9073_v61 = vld [vmem:[%s12634_s4 + $0x4c0] sm:$0xff]  }
 0xa5b   :  { %v4488_v44 = vpop.f32.mrf.mxu0  ;;  %v4581_v46 = vpop.f32.mrf.mxu1  ;;  %8550 = vmatprep.subr.bf16.mxu0 %v9068_v38  ;;  %v4580_v50 = vadd.f32 %v4579_v1, %v11614_v48  ;;  %v4485_v32 = vadd.f32 %v4484_v51, %v11617_v40  ;;  %v4578_v38 = vadd.f32 %v4577_v2, %v11620_v15  ;;  %8602 = vmatprep.subr.bf16.mxu1 %v9069_v36  ;;  %v9074_v47 = vld [vmem:[%s12634_s4 + $0x400] sm:$0xff]   ;;  %v11762_v51 = vld [vmem:[%s12632_s2 + $0x1a8] sm:$0xff] }
 0xa5c   :  { %v4489_v3 = vadd.f32 %v4488_v44, %v11617_v40  ;;  %v4582_v56 = vadd.f32 %v4581_v46, %v11620_v15  ;;  %4980 = vmatprep.mubr.bf16.mxu0 %v4657_v11  ;;  %5061 = vmatprep.mubr.bf16.mxu1 %v4659_v41  ;;  %v11767_v2 = vld [vmem:[%s12632_s2 + $0x1e8] sm:$0xff]  ;;  %v9075_v41 = vld [vmem:[%s12634_s4 + $0x480] sm:$0xff]   ;;  %v4057_v9 = vadd.f32 %v11519_v55, %v11771_v54 }
 0xa5d   :  { %v4490_v0 = vpop.f32.mrf.mxu0  ;;  %v4583_v21 = vpop.f32.mrf.mxu1  ;;  %4981 = vmatmul.mubr.bf16.gmra.mxu0 %v4656_v30  ;;  %5062 = vmatmul.mubr.bf16.gmra.mxu1 %v4658_v23  ;;  %v4629_v30 = vmax.f32 %v4487_v14, 0.0  ;;  %v4631_v23 = vmax.f32 %v4580_v50, 0.0 }
 0xa5e   :  { %v4491_v43 = vadd.f32 %v4490_v0, %v11611_v13  ;;  %v4584_v52 = vadd.f32 %v4583_v21, %v11614_v48  ;;  %8551 = vmatpush3.bf16.msra.mxu0 %v9070_v62  ;;  %v4632_v58 = vmax.f32 %v4489_v3, 0.0  ;;  %v4634_v1 = vmax.f32 %v4582_v56, 0.0  ;;  %8603 = vmatpush3.bf16.msra.mxu1 %v9071_v20 }
 0xa5f   :  { %v4494_v36 = vpop.f32.mrf.mxu0  ;;  %v4587_v11 = vpop.f32.mrf.mxu1  ;;  %8552 = vmatprep.subr.bf16.mxu0 %v9072_v29  ;;  %v7766_v62 = vcombine.high %v11745_v49, %v11750_v60  ;;  %8604 = vmatprep.subr.bf16.mxu1 %v9073_v61  ;;  %v4628_v0 = vmax.f32 %v4485_v32, 0.0  ;;  %v4630_v21 = vmax.f32 %v4578_v38, 0.0  ;;  %v7768_v20 = vcombine.high %v11762_v51, %v11767_v2 }
 0xa60   :  { %v4633_v44 = vmax.f32 %v4491_v43, 0.0  ;;  %v4635_v46 = vmax.f32 %v4584_v52, 0.0  ;;  %v11782_v29 = vrot.slane %v11501_v6, %v9980_v24 }
 0xa61   :  { %v4496_v3 = vpop.f32.mrf.mxu0  ;;  %v4589_v56 = vpop.f32.mrf.mxu1  ;;  %v4660_v50 = vpack.c.bf16 %v4632_v58, %v4628_v0  ;;  %v4662_v43 = vpack.c.bf16 %v4634_v1, %v4630_v21 }
 0xa62   :  { %v4661_v42 = vpack.c.bf16 %v4633_v44, %v4629_v30  ;;  %v4663_v14 = vpack.c.bf16 %v4635_v46, %v4631_v23  ;;  %8553 = vmatpush3.bf16.msra.mxu0 %v9074_v47  ;;  %v4497_v61 = vadd.f32 %v4496_v3, %v11611_v13  ;;  %8605 = vmatpush3.bf16.msra.mxu1 %v9075_v41 }
 0xa63   :  { %v4498_v32 = vpop.f32.mrf.mxu0  ;;  %v4591_v38 = vpop.f32.mrf.mxu1  ;;  %5523 = vmatprep.subr.bf16.mxu0 %v7766_v62  ;;  %v4590_v52 = vadd.f32 %v4589_v56, %v11614_v48  ;;  %v4150_v55 = vadd.f32 %v11521_v63, %v11782_v29  ;;  %v4495_v47 = vadd.f32 %v4494_v36, %v11617_v40  ;;  %5616 = vmatprep.subr.bf16.mxu1 %v7768_v20  ;;  %v4207_v63 = vmax.f32 %v4057_v9, 0.0 }
 0xa64   :  { %v4499_v8 = vadd.f32 %v4498_v32, %v11617_v40  ;;  %v4592_v6 = vadd.f32 %v4591_v38, %v11620_v15  ;;  %4988 = vmatprep.mubr.bf16.mxu0 %v4661_v42  ;;  %5069 = vmatprep.mubr.bf16.mxu1 %v4663_v14  ;;  %v4053_v41 = vadd.f32 %v11511_v33, %v11771_v54  ;;  %v4637_v44 = vmax.f32 %v4497_v61, 0.0  ;;  %v7753_v38 = vld [vmem:[%s12632_s2 + $0x120] sm:$0xff] }
 0xa65   :  { %v4500_v58 = vpop.f32.mrf.mxu0  ;;  %v4593_v1 = vpop.f32.mrf.mxu1  ;;  %4989 = vmatmul.mubr.bf16.gmra.mxu0 %v4660_v50  ;;  %v4588_v62 = vadd.f32 %v4587_v11, %v11620_v15  ;;  %5070 = vmatmul.mubr.bf16.gmra.mxu1 %v4662_v43  ;;  %v4146_v42 = vadd.f32 %v11513_v45, %v11782_v29  ;;  %v4639_v36 = vmax.f32 %v4590_v52, 0.0  ;;  %v4209_v3 = vmax.f32 %v4150_v55, 0.0 }
 0xa66   :  { %v4501_v30 = vadd.f32 %v4500_v58, %v11611_v13  ;;  %v4594_v23 = vadd.f32 %v4593_v1, %v11614_v48  ;;  %v4640_v40 = vmax.f32 %v4499_v8, 0.0  ;;  %v4642_v46 = vmax.f32 %v4592_v6, 0.0 }
 0xa67   :  { %v4636_v56 = vmax.f32 %v4495_v47, 0.0  ;;  %v4203_v33 = vmax.f32 %v4053_v41, 0.0  ;;  %v4638_v20 = vmax.f32 %v4588_v62, 0.0  ;;  %v4205_v13 = vmax.f32 %v4146_v42, 0.0 }
 0xa68   :  { %v4641_v0 = vmax.f32 %v4501_v30, 0.0  ;;  %v4643_v21 = vmax.f32 %v4594_v23, 0.0  ;;  %v4067_v9 = vadd.f32 %v11535_v17, %v11771_v54  ;;  %v4160_v8 = vadd.f32 %v11537_v5, %v11782_v29  ;;  %v7755_v17 = vld [vmem:[%s12632_s2 + $0x160] sm:$0xff] }
 0xa69   :  { %v4664_v14 = vpack.c.bf16 %v4640_v40, %v4636_v56  ;;  %v4666_v48 = vpack.c.bf16 %v4642_v46, %v4638_v20  ;;  %v4251_v50 = vpack.c.bf16 %v4207_v63, %v4203_v33  ;;  %v4253_v45 = vpack.c.bf16 %v4209_v3, %v4205_v13  ;;  %v12794_v20 = vld [vmem:[#allocation22_spill] sm:$0xff]  ;;  %v12796_v13 = vld [vmem:[#allocation13_spill] sm:$0xff] }
 0xa6a   :  { %v4665_v15 = vpack.c.bf16 %v4641_v0, %v4637_v44  ;;  %v4667_v11 = vpack.c.bf16 %v4643_v21, %v4639_v36  ;;  %v4063_v43 = vadd.f32 %v11527_v35, %v11771_v54  ;;  %v4156_v61 = vadd.f32 %v11529_v37, %v11782_v29  ;;  %v7754_v35 = vld [vmem:[%s12632_s2 + $0x128] sm:$0xff] }
 0xa6b   :  { %v4215_v32 = vmax.f32 %v4067_v9, 0.0  ;;  %v4217_v52 = vmax.f32 %v4160_v8, 0.0  ;;  %v7765_v5 = vcombine.low %v11745_v49, %v11750_v60  ;;  %v7756_v37 = vld [vmem:[%s12632_s2 + $0x168] sm:$0xff]  ;;  %v7767_v55 = vcombine.low %v11762_v51, %v11767_v2 }
 0xa6c   :  { %4996 = vmatprep.mubr.bf16.mxu0 %v4665_v15  ;;  %5077 = vmatprep.mubr.bf16.mxu1 %v4667_v11  ;;  %v4211_v6 = vmax.f32 %v4063_v43, 0.0  ;;  %v4213_v47 = vmax.f32 %v4156_v61, 0.0  ;;  %v4077_v58 = vadd.f32 %v11551_v26, %v11771_v54  ;;  %v7762_v1 = vcombine.high %v7753_v38, %v7755_v17 }
 0xa6d   :  { %4997 = vmatmul.mubr.bf16.gmra.mxu0 %v4664_v14  ;;  %5078 = vmatmul.mubr.bf16.gmra.mxu1 %v4666_v48  ;;  %v4170_v49 = vadd.f32 %v11553_v28, %v11782_v29  ;;  %v7764_v41 = vcombine.high %v7754_v35, %v7756_v37  ;;  %v4073_v62 = vadd.f32 %v11543_v25, %v11771_v54  ;;  %v12798_v48 = vld [vmem:[#allocation12_spill] sm:$0xff] }
 0xa6e   :  { %5310 = vmatprep.mubr.bf16.mxu0 %v4251_v50  ;;  %5391 = vmatprep.mubr.bf16.mxu1 %v4253_v45  ;;  %v4255_v60 = vpack.c.bf16 %v4215_v32, %v4211_v6  ;;  %v4257_v30 = vpack.c.bf16 %v4217_v52, %v4213_v47  ;;  %v7761_v51 = vcombine.low %v7753_v38, %v7755_v17  ;;  %v4223_v23 = vmax.f32 %v4077_v58, 0.0  ;;  %v12800_v32 = vld [vmem:[#allocation16_spill] sm:$0xff]  ;;  %v12801_v17 = vld [vmem:[#allocation15_spill] sm:$0xff]  ;;  %v12808_v6 = vld [vmem:[#allocation14_spill] sm:$0xff] }
 0xa6f   :  { %v4166_v2 = vadd.f32 %v11545_v7, %v11782_v29  ;;  %v7763_v26 = vcombine.low %v7754_v35, %v7756_v37  ;;  %v4219_v28 = vmax.f32 %v4073_v62, 0.0  ;;  %v4180_v63 = vadd.f32 %v11569_v59, %v11782_v29  ;;  %v12803_v52 = vld [vmem:[#allocation24_spill] sm:$0xff]  ;;  %v12807_v37 = vld [vmem:[#allocation35_spill] sm:$0xff]  ;;  %v9082_v62 = vld [vmem:[%s12634_s4 + $0x630] sm:$0xff]  }
 0xa70   :  { %v4083_v44 = vadd.f32 %v11559_v57, %v11771_v54  ;;  %v4176_v40 = vadd.f32 %v11561_v34, %v11782_v29  ;;  %v4097_v59 = vadd.f32 %v11583_v53, %v11771_v54  ;;  %v4186_v34 = vadd.f32 %v11577_v27, %v11782_v29  ;;  %v12799_v27 = vld [vmem:[#allocation18_spill] sm:$0xff]  ;;  %v12806_v35 = vld [vmem:[#allocation32_spill] sm:$0xff]  ;;  %v9077_v47 = vld [vmem:[%s12634_s4 + $0x6f8] sm:$0xff]  }
 0xa71   :  { %v4221_v42 = vmax.f32 %v4166_v2, 0.0  ;;  %v4259_v25 = vpack.c.bf16 %v4223_v23, %v4219_v28  ;;  %v4233_v46 = vmax.f32 %v4180_v63, 0.0  ;;  %v4196_v50 = vadd.f32 %v12799_v27, %v11782_v29  ;;  %v12809_v58 = vld [vmem:[#allocation23_spill] sm:$0xff]  ;;  %v9084_v2 = vld [vmem:[%s12634_s4 + $0x668] sm:$0xff]   ;;  %v9088_v28 = vld [vmem:[%s12634_s4 + $0x660] sm:$0xff]  }
 0xa72   :  { %v4229_v0 = vmax.f32 %v4176_v40, 0.0  ;;  %v4239_v3 = vmax.f32 %v4097_v59, 0.0  ;;  %v4237_v33 = vmax.f32 %v4186_v34, 0.0  ;;  %v9086_v23 = vld [vmem:[%s12634_s4 + $0x628] sm:$0xff]   ;;  %v9092_v63 = vld [vmem:[%s12634_s4 + $0x658] sm:$0xff]   ;;  %v9105_v34 = vld [vmem:[%s12634_s4 + $0x6c0] sm:$0xff]  }
 0xa73   :  { %v4245_v43 = vmax.f32 %v4196_v50, 0.0  ;;  %v9095_v40 = vld [vmem:[%s12634_s4 + $0x698] sm:$0xff]   ;;  %v9100_v59 = vld [vmem:[%s12634_s4 + $0x648] sm:$0xff]  }
 0xa74   :  { %v4265_v57 = vpack.c.bf16 %v4233_v46, %v4229_v0  ;;  %v9097_v46 = vld [vmem:[%s12634_s4 + $0x6d0] sm:$0xff]  }
 0xa75   :  { %5311 = vmatmul.mubr.bf16.vlgmr.msra.gmra.mxu0 %v11523_v19  ;;  %5392 = vmatmul.mubr.bf16.vlgmr.msra.gmra.mxu1 %v11525_v31  ;;  %v4225_v19 = vmax.f32 %v4170_v49, 0.0  ;;  %v4087_v31 = vadd.f32 %v11567_v10, %v11771_v54  ;;  %v4227_v10 = vmax.f32 %v4083_v44, 0.0  ;;  %v9079_v49 = vld [vmem:[%s12634_s4 + $0x6b8] sm:$0xff]   ;;  %v9099_v0 = vld [vmem:[%s12634_s4 + $0x690] sm:$0xff]  }
 0xa76   :  { %5524 = vmatpush1.bf16.msra.mxu0 %v7765_v5  ;;  %5617 = vmatpush1.bf16.msra.mxu1 %v7767_v55  ;;  %v12804_v5 = vmov 0   ;;  %v9076_v55 = vld [vmem:[%s12634_s4 + $0x678] sm:$0xff]  }
 0xa77   :  { %5318 = vmatprep.mubr.bf16.mxu0 %v4255_v60  ;;  %5399 = vmatprep.mubr.bf16.mxu1 %v4257_v30  ;;  %v4261_v7 = vpack.c.bf16 %v4225_v19, %v4221_v42  ;;  %v4231_v36 = vmax.f32 %v4087_v31, 0.0  ;;  %v9080_v60 = vld [vmem:[%s12634_s4 + $0x670] sm:$0xff]   ;;  %v9087_v19 = vld [vmem:[%s12634_s4 + $0x6a8] sm:$0xff]   ;;  %v9089_v42 = vld [vmem:[%s12634_s4 + $0x6e0] sm:$0xff]  }
 0xa78   :  { %5525 = vmatprep.subr.bf16.mxu0 %v7762_v1  ;;  %5618 = vmatprep.subr.bf16.mxu1 %v7764_v41  ;;  %v9078_v1 = vld [vmem:[%s12634_s4 + $0x638] sm:$0xff]   ;;  %v9081_v41 = vld [vmem:[%s12634_s4 + $0x6f0] sm:$0xff]   ;;  %v9090_v31 = vld [vmem:[%s12634_s4 + $0x620] sm:$0xff]  }
 0xa79   :  { %v4263_v21 = vpack.c.bf16 %v4231_v36, %v4227_v10  ;;  %v12810_v30 = vld [vmem:[#allocation10_spill] sm:$0xff]  ;;  %v9094_v44 = vld [vmem:[%s12634_s4 + $0x618] sm:$0xff]  }
 0xa7a   :  { %5526 = vmatpush1.bf16.msra.mxu0 %v7761_v51  ;;  %5619 = vmatpush1.bf16.msra.mxu1 %v7763_v26  ;;  %v9083_v51 = vld [vmem:[%s12634_s4 + $0x6b0] sm:$0xff]   ;;  %v9085_v26 = vld [vmem:[%s12634_s4 + $0x6e8] sm:$0xff]  }
 0xa7b   :  { %8642 = vmatprep.subr.bf16.mxu0 %v9076_v55  ;;  %8694 = vmatprep.subr.bf16.mxu1 %v9077_v47  ;;  %v9096_v36 = vld [vmem:[%s12634_s4 + $0x650] sm:$0xff]  }
 0xa7c   :  { %v9098_v10 = vld [vmem:[%s12634_s4 + $0x610] sm:$0xff]  }
 0xa7d   :  { %5319 = vmatmul.mubr.bf16.gmra.mxu0 %v11539_v4  ;;  %5400 = vmatmul.mubr.bf16.gmra.mxu1 %v11541_v39  ;;  %v4190_v4 = vadd.f32 %v11585_v18, %v11782_v29  ;;  %v4093_v39 = vadd.f32 %v11575_v22, %v11771_v54  ;;  %v4107_v18 = vadd.f32 %v12794_v20, %v11771_v54  ;;  %v12013_v20 = vld [vmem:[%s12632_s2 + $0x1b8] sm:$0xff] }
 0xa7e   :  { %5326 = vmatprep.mubr.bf16.mxu0 %v4259_v25  ;;  %5407 = vmatprep.mubr.bf16.mxu1 %v4261_v7  ;;  %v9091_v25 = vld [vmem:[%s12634_s4 + $0x6a0] sm:$0xff]   ;;  %v9093_v7 = vld [vmem:[%s12634_s4 + $0x6d8] sm:$0xff]  }
 0xa7f   :  { %v4241_v56 = vmax.f32 %v4190_v4, 0.0  ;;  %v4235_v53 = vmax.f32 %v4093_v39, 0.0  ;;  %v4247_v9 = vmax.f32 %v4107_v18, 0.0  ;;  %v9102_v4 = vld [vmem:[%s12634_s4 + $0x608] sm:$0xff]   ;;  %v9104_v39 = vld [vmem:[%s12634_s4 + $0x640] sm:$0xff]  }
 0xa81   :  { %v4267_v15 = vpack.c.bf16 %v4239_v3, %v4235_v53  ;;  %v4269_v22 = vpack.c.bf16 %v4241_v56, %v4237_v33  ;;  %v9106_v3 = vld [vmem:[%s12634_s4 + $0x600] sm:$0xff]   ;;  %v12003_v53 = vld [vmem:[%s12632_s2 + $0x1b0] sm:$0xff] }
 0xa82   :  { %v9107_v56 = vld [vmem:[%s12634_s4 + $0x680] sm:$0xff]   ;;  %v12008_v33 = vld [vmem:[%s12632_s2 + $0x1f0] sm:$0xff] }
 0xa83   :  { %v7890_v18 = vcombine.low %v12003_v53, %v12008_v33 }
 0xa85   :  { %5327 = vmatmul.mubr.bf16.gmra.mxu0 %v11555_v16  ;;  %5408 = vmatmul.mubr.bf16.gmra.mxu1 %v11557_v12  ;;  %v12795_v16 = vld [vmem:[#allocation21_spill] sm:$0xff]  ;;  %v12797_v12 = vld [vmem:[#allocation19_spill] sm:$0xff] }
 0xa86   :  { %5334 = vmatprep.mubr.bf16.mxu0 %v4263_v21  ;;  %5415 = vmatprep.mubr.bf16.mxu1 %v4265_v57  ;;  %v4200_v11 = vadd.f32 %v12795_v16, %v11782_v29  ;;  %v4103_v14 = vadd.f32 %v12797_v12, %v11771_v54  ;;  %v12802_v54 = vld [vmem:[#allocation25_spill] sm:$0xff]  ;;  %v12805_v29 = vld [vmem:[#allocation27_spill] sm:$0xff] }
 0xa87   :  { %v9101_v21 = vld [vmem:[%s12634_s4 + $0x6c8] sm:$0xff]   ;;  %v12022_v16 = vld [vmem:[%s12632_s2 + $0x1f8] sm:$0xff] }
 0xa88   :  { %v4249_v45 = vmax.f32 %v4200_v11, 0.0  ;;  %v4243_v8 = vmax.f32 %v4103_v14, 0.0  ;;  %v9103_v57 = vld [vmem:[%s12634_s4 + $0x688] sm:$0xff]   ;;  %v7892_v11 = vcombine.low %v12013_v20, %v12022_v16 }
 0xa8a   :  { %v4271_v61 = vpack.c.bf16 %v4247_v9, %v4243_v8  ;;  %v4273_v38 = vpack.c.bf16 %v4249_v45, %v4245_v43 }
 0xa8d   :  { %5335 = vmatmul.mubr.bf16.gmra.mxu0 %v12796_v13  ;;  %5416 = vmatmul.mubr.bf16.gmra.mxu1 %v12798_v48  ;;  %v7893_v13 = vcombine.high %v12013_v20, %v12022_v16 }
 0xa8e   :  { %5342 = vmatprep.mubr.bf16.mxu0 %v4267_v15  ;;  %5423 = vmatprep.mubr.bf16.mxu1 %v4269_v22  ;;  %v7891_v15 = vcombine.high %v12003_v53, %v12008_v33 }
 0xa95   :  { %5343 = vmatmul.mubr.bf16.gmra.mxu0 %v12800_v32  ;;  %5424 = vmatmul.mubr.bf16.gmra.mxu1 %v12801_v17 }
 0xa96   :  { %5350 = vmatprep.mubr.bf16.mxu0 %v4271_v61  ;;  %5431 = vmatprep.mubr.bf16.mxu1 %v4273_v38 }
 0xa9d   :  { %5351 = vmatmul.mubr.bf16.gmra.mxu0 %v12802_v54  ;;  %5432 = vmatmul.mubr.bf16.gmra.mxu1 %v12803_v52 }
 0xa9e   :  { %5543 = vmatprep.mubr.bf16.mxu0 %v12804_v5  ;;  %5636 = vmatprep.mubr.bf16.mxu1 %v12804_v5 }
 0xaa5   :  { %7769 = vmatmul.mubr.msk.bf16.vlgmr.msra.gmra.mxu0 %vm51_vm0, %v12805_v29  ;;  %7775 = vmatmul.mubr.msk.bf16.vlgmr.msra.gmra.mxu1 %vm51_vm0, %v12805_v29 }
 0xaa6   :  { %5553 = vmatprep.mubr.bf16.mxu0 %v12804_v5  ;;  %5646 = vmatprep.mubr.bf16.mxu1 %v12804_v5 }
 0xaa7   :  { %8643 = vmatpush3.bf16.msra.mxu0 %v9078_v1  ;;  %8695 = vmatpush3.bf16.msra.mxu1 %v9079_v49 }
 0xaa8   :  { %8644 = vmatprep.subr.bf16.mxu0 %v9080_v60  ;;  %8696 = vmatprep.subr.bf16.mxu1 %v9081_v41 }
 0xaab   :  { %8645 = vmatpush3.bf16.msra.mxu0 %v9082_v62  ;;  %8697 = vmatpush3.bf16.msra.mxu1 %v9083_v51 }
 0xaac   :  { %8646 = vmatprep.subr.bf16.mxu0 %v9084_v2  ;;  %8698 = vmatprep.subr.bf16.mxu1 %v9085_v26 }
 0xaad   :  { %7770 = vmatmul.mubr.msk.bf16.gmra.mxu0 %vm51_vm0, %v12806_v35  ;;  %7776 = vmatmul.mubr.msk.bf16.gmra.mxu1 %vm51_vm0, %v12806_v35 }
 0xaae   :  { %5563 = vmatprep.mubr.bf16.mxu0 %v12804_v5  ;;  %5656 = vmatprep.mubr.bf16.mxu1 %v12804_v5 }
 0xaaf   :  { %8647 = vmatpush3.bf16.msra.mxu0 %v9086_v23  ;;  %8699 = vmatpush3.bf16.msra.mxu1 %v9087_v19 }
 0xab0   :  { %8648 = vmatprep.subr.bf16.mxu0 %v9088_v28  ;;  %8700 = vmatprep.subr.bf16.mxu1 %v9089_v42 }
 0xab3   :  { %8649 = vmatpush3.bf16.msra.mxu0 %v9090_v31  ;;  %8701 = vmatpush3.bf16.msra.mxu1 %v9091_v25 }
 0xab4   :  { %8650 = vmatprep.subr.bf16.mxu0 %v9092_v63  ;;  %8702 = vmatprep.subr.bf16.mxu1 %v9093_v7 }
 0xab5   :  { %7771 = vmatmul.mubr.msk.bf16.gmra.mxu0 %vm51_vm0, %v12807_v37  ;;  %7777 = vmatmul.mubr.msk.bf16.gmra.mxu1 %vm51_vm0, %v12807_v37 }
 0xab6   :  { %5573 = vmatprep.mubr.bf16.mxu0 %v12804_v5  ;;  %5666 = vmatprep.mubr.bf16.mxu1 %v12804_v5 }
 0xab7   :  { %8651 = vmatpush3.bf16.msra.mxu0 %v9094_v44  ;;  %8703 = vmatpush3.bf16.msra.mxu1 %v9095_v40 }
 0xab8   :  { %8652 = vmatprep.subr.bf16.mxu0 %v9096_v36  ;;  %8704 = vmatprep.subr.bf16.mxu1 %v9097_v46 }
 0xabb   :  { %8653 = vmatpush3.bf16.msra.mxu0 %v9098_v10  ;;  %8705 = vmatpush3.bf16.msra.mxu1 %v9099_v0 }
 0xabc   :  { %8654 = vmatprep.subr.bf16.mxu0 %v9100_v59  ;;  %8706 = vmatprep.subr.bf16.mxu1 %v9101_v21 }
 0xabd   :  { %7772 = vmatmul.mubr.msk.bf16.gmra.mxu0 %vm51_vm0, %v12808_v6  ;;  %7778 = vmatmul.mubr.msk.bf16.gmra.mxu1 %vm51_vm0, %v12808_v6 }
 0xabe   :  { %5583 = vmatprep.mubr.bf16.mxu0 %v12804_v5  ;;  %5676 = vmatprep.mubr.bf16.mxu1 %v12804_v5 }
 0xabf   :  { %8655 = vmatpush3.bf16.msra.mxu0 %v9102_v4  ;;  %8707 = vmatpush3.bf16.msra.mxu1 %v9103_v57 }
 0xac0   :  { %8656 = vmatprep.subr.bf16.mxu0 %v9104_v39  ;;  %8708 = vmatprep.subr.bf16.mxu1 %v9105_v34 }
 0xac3   :  { %8657 = vmatpush3.bf16.msra.mxu0 %v9106_v3  ;;  %8709 = vmatpush3.bf16.msra.mxu1 %v9107_v56 }
 0xac4   :  { %6282 = vmatprep.subr.bf16.mxu0 %v7891_v15  ;;  %6375 = vmatprep.subr.bf16.mxu1 %v7893_v13 }
 0xac5   :  { %7773 = vmatmul.mubr.msk.bf16.gmra.mxu0 %vm51_vm0, %v12809_v58  ;;  %7779 = vmatmul.mubr.msk.bf16.gmra.mxu1 %vm51_vm0, %v12809_v58 }
 0xac6   :  { %5593 = vmatprep.mubr.bf16.mxu0 %v12804_v5  ;;  %5686 = vmatprep.mubr.bf16.mxu1 %v12804_v5 }
 0xacd   :  { %7774 = vmatmul.mubr.msk.bf16.gmra.mxu0 %vm51_vm0, %v12810_v30  ;;  %7780 = vmatmul.mubr.msk.bf16.gmra.mxu1 %vm51_vm0, %v12810_v30 }
 0xb05   :  { %v8450_v22 = vpop.f32.mrf.mxu0  ;;  %v8502_v12 = vpop.f32.mrf.mxu1 }
 0xb07   :  { %v8451_v14 = vpop.f32.mrf.mxu0  ;;  %v8503_v48 = vpop.f32.mrf.mxu1 }
 0xb08   :  { %v8452_v27 = vadd.f32 %v8451_v14, %v8450_v22  ;;  %v8504_v50 = vadd.f32 %v8503_v48, %v8502_v12 }
 0xb09   :  { %v8453_v9 = vpop.f32.mrf.mxu0  ;;  %v8505_v45 = vpop.f32.mrf.mxu1 }
 0xb0a   :  { %v12028_v8 = vadd.f32 %v8504_v50, %v8452_v27 }
 0xb0b   :  { %v8454_v43 = vpop.f32.mrf.mxu0  ;;  %v8506_v61 = vpop.f32.mrf.mxu1 }
 0xb0c   :  { %v8455_v32 = vadd.f32 %v8454_v43, %v8453_v9  ;;  %v8507_v38 = vadd.f32 %v8506_v61, %v8505_v45 }
 0xb0d   :  { %v8456_v17 = vpop.f32.mrf.mxu0  ;;  %v8508_v52 = vpop.f32.mrf.mxu1 }
 0xb0e   :  { %v12030_v54 = vadd.f32 %v8507_v38, %v8455_v32 }
 0xb0f   :  { %v8457_v55 = vpop.f32.mrf.mxu0  ;;  %v8509_v1 = vpop.f32.mrf.mxu1 }
 0xb10   :  { %v8458_v47 = vadd.f32 %v8457_v55, %v8456_v17  ;;  %v8510_v49 = vadd.f32 %v8509_v1, %v8508_v52 }
 0xb11   :  { %v8459_v60 = vpop.f32.mrf.mxu0  ;;  %v8511_v41 = vpop.f32.mrf.mxu1 }
 0xb12   :  { %v12032_v62 = vadd.f32 %v8510_v49, %v8458_v47 }
 0xb13   :  { %v8460_v51 = vpop.f32.mrf.mxu0  ;;  %v8512_v26 = vpop.f32.mrf.mxu1 }
 0xb14   :  { %v8461_v2 = vadd.f32 %v8460_v51, %v8459_v60  ;;  %v8513_v23 = vadd.f32 %v8512_v26, %v8511_v41 }
 0xb15   :  { %v8462_v19 = vpop.f32.mrf.mxu0  ;;  %v8514_v28 = vpop.f32.mrf.mxu1 }
 0xb16   :  { %v12034_v42 = vadd.f32 %v8513_v23, %v8461_v2 }
 0xb17   :  { %v8463_v31 = vpop.f32.mrf.mxu0  ;;  %v8515_v63 = vpop.f32.mrf.mxu1 }
 0xb18   :  { %v8464_v25 = vadd.f32 %v8463_v31, %v8462_v19  ;;  %v8516_v7 = vadd.f32 %v8515_v63, %v8514_v28 }
 0xb19   :  { %v8465_v44 = vpop.f32.mrf.mxu0  ;;  %v8517_v40 = vpop.f32.mrf.mxu1 }
 0xb1a   :  { %v12036_v36 = vadd.f32 %v8516_v7, %v8464_v25 }
 0xb1b   :  { %v8466_v46 = vpop.f32.mrf.mxu0  ;;  %v8518_v0 = vpop.f32.mrf.mxu1 }
 0xb1c   :  { %v8467_v10 = vadd.f32 %v8466_v46, %v8465_v44  ;;  %v8519_v59 = vadd.f32 %v8518_v0, %v8517_v40 }
 0xb1d   :  { %v8468_v21 = vpop.f32.mrf.mxu0  ;;  %v8520_v4 = vpop.f32.mrf.mxu1 }
 0xb1e   :  { %v12038_v57 = vadd.f32 %v8519_v59, %v8467_v10 }
 0xb1f   :  { %v8469_v39 = vpop.f32.mrf.mxu0  ;;  %v8521_v3 = vpop.f32.mrf.mxu1 }
 0xb20   :  { %v8470_v34 = vadd.f32 %v8469_v39, %v8468_v21  ;;  %v8522_v56 = vadd.f32 %v8521_v3, %v8520_v4 }
 0xb21   :  { %v8471_v15 = vpop.f32.mrf.mxu0  ;;  %v8523_v13 = vpop.f32.mrf.mxu1 }
 0xb22   :  { %v12040_v22 = vadd.f32 %v8522_v56, %v8470_v34 }
 0xb23   :  { %v8472_v12 = vpop.f32.mrf.mxu0  ;;  %v8524_v48 = vpop.f32.mrf.mxu1 }
 0xb24   :  { %v8473_v14 = vadd.f32 %v8472_v12, %v8471_v15  ;;  %v8525_v27 = vadd.f32 %v8524_v48, %v8523_v13 }
 0xb25   :  { %v8474_v50 = vpop.f32.mrf.mxu0  ;;  %v8526_v9 = vpop.f32.mrf.mxu1 }
 0xb26   :  { %v12042_v45 = vadd.f32 %v8525_v27, %v8473_v14 }
 0xb27   :  { %v8475_v43 = vpop.f32.mrf.mxu0  ;;  %v8527_v32 = vpop.f32.mrf.mxu1 }
 0xb28   :  { %v8476_v61 = vadd.f32 %v8475_v43, %v8474_v50  ;;  %v8528_v38 = vadd.f32 %v8527_v32, %v8526_v9 }
 0xb29   :  { %v8477_v17 = vpop.f32.mrf.mxu0  ;;  %v8529_v52 = vpop.f32.mrf.mxu1 }
 0xb2a   :  { %v12044_v55 = vadd.f32 %v8528_v38, %v8476_v61 }
 0xb2b   :  { %v8478_v47 = vpop.f32.mrf.mxu0  ;;  %v8530_v49 = vpop.f32.mrf.mxu1 }
 0xb2c   :  { %v8479_v1 = vadd.f32 %v8478_v47, %v8477_v17  ;;  %v8531_v60 = vadd.f32 %v8530_v49, %v8529_v52 }
 0xb2d   :  { %v8480_v41 = vpop.f32.mrf.mxu0  ;;  %v8532_v51 = vpop.f32.mrf.mxu1 }
 0xb2e   :  { %v12046_v2 = vadd.f32 %v8531_v60, %v8479_v1 }
 0xb2f   :  { %v8481_v26 = vpop.f32.mrf.mxu0  ;;  %v8533_v19 = vpop.f32.mrf.mxu1 }
 0xb30   :  { %v8482_v23 = vadd.f32 %v8481_v26, %v8480_v41  ;;  %v8534_v28 = vadd.f32 %v8533_v19, %v8532_v51 }
 0xb31   :  { %v8483_v31 = vpop.f32.mrf.mxu0  ;;  %v8535_v25 = vpop.f32.mrf.mxu1 }
 0xb32   :  { %v12048_v63 = vadd.f32 %v8534_v28, %v8482_v23 }
 0xb33   :  { %v8484_v7 = vpop.f32.mrf.mxu0  ;;  %v8536_v40 = vpop.f32.mrf.mxu1 }
 0xb34   :  { %v8485_v44 = vadd.f32 %v8484_v7, %v8483_v31  ;;  %v8537_v46 = vadd.f32 %v8536_v40, %v8535_v25 }
 0xb35   :  { %v8554_v10 = vpop.f32.mrf.mxu0  ;;  %v8606_v0 = vpop.f32.mrf.mxu1 }
 0xb36   :  { %v12050_v59 = vadd.f32 %v8537_v46, %v8485_v44 }
 0xb37   :  { %v8555_v21 = vpop.f32.mrf.mxu0  ;;  %v8607_v39 = vpop.f32.mrf.mxu1 }
 0xb38   :  { %v8556_v4 = vadd.f32 %v8555_v21, %v8554_v10  ;;  %v8608_v34 = vadd.f32 %v8607_v39, %v8606_v0 }
 0xb39   :  { %v8557_v3 = vpop.f32.mrf.mxu0  ;;  %v8609_v15 = vpop.f32.mrf.mxu1 }
 0xb3a   :  { %v5313_v56 = vadd.f32 %v8556_v4, %v12028_v8 }
 0xb3b   :  { %v8558_v13 = vpop.f32.mrf.mxu0  ;;  %v8610_v48 = vpop.f32.mrf.mxu1 }
 0xb3c   :  { %v12053_v12 = vadd.f32 %v8608_v34, %v5313_v56  ;;  %v8559_v14 = vadd.f32 %v8558_v13, %v8557_v3  ;;  %v8611_v9 = vadd.f32 %v8610_v48, %v8609_v15 }
 0xb3d   :  { %v8560_v27 = vpop.f32.mrf.mxu0  ;;  %v8612_v43 = vpop.f32.mrf.mxu1 }
 0xb3e   :  { %v5316_v50 = vadd.f32 %v8559_v14, %v12030_v54 }
 0xb3f   :  { %v8561_v61 = vpop.f32.mrf.mxu0  ;;  %v8613_v17 = vpop.f32.mrf.mxu1 }
 0xb40   :  { %v12056_v32 = vadd.f32 %v8611_v9, %v5316_v50  ;;  %v8562_v38 = vadd.f32 %v8561_v61, %v8560_v27  ;;  %v8614_v52 = vadd.f32 %v8613_v17, %v8612_v43 }
 0xb41   :  { %v8563_v47 = vpop.f32.mrf.mxu0  ;;  %v8615_v1 = vpop.f32.mrf.mxu1 }
 0xb42   :  { %v5321_v8 = vadd.f32 %v8562_v38, %v12032_v62 }
 0xb43   :  { %v8564_v49 = vpop.f32.mrf.mxu0  ;;  %v8616_v51 = vpop.f32.mrf.mxu1 }
 0xb44   :  { %v12059_v60 = vadd.f32 %v8614_v52, %v5321_v8  ;;  %v8565_v41 = vadd.f32 %v8564_v49, %v8563_v47  ;;  %v8617_v23 = vadd.f32 %v8616_v51, %v8615_v1 }
 0xb45   :  { %v8566_v26 = vpop.f32.mrf.mxu0  ;;  %v8618_v19 = vpop.f32.mrf.mxu1 }
 0xb46   :  { %v5324_v54 = vadd.f32 %v8565_v41, %v12034_v42 }
 0xb47   :  { %v8567_v28 = vpop.f32.mrf.mxu0  ;;  %v8619_v7 = vpop.f32.mrf.mxu1 }
 0xb48   :  { %v12062_v31 = vadd.f32 %v8617_v23, %v5324_v54  ;;  %v8568_v25 = vadd.f32 %v8567_v28, %v8566_v26  ;;  %v8620_v44 = vadd.f32 %v8619_v7, %v8618_v19 }
 0xb49   :  { %v8569_v40 = vpop.f32.mrf.mxu0  ;;  %v8621_v46 = vpop.f32.mrf.mxu1 }
 0xb4a   :  { %v5329_v62 = vadd.f32 %v8568_v25, %v12036_v36 }
 0xb4b   :  { %v8570_v10 = vpop.f32.mrf.mxu0  ;;  %v8622_v4 = vpop.f32.mrf.mxu1 }
 0xb4c   :  { %v12065_v0 = vadd.f32 %v8620_v44, %v5329_v62  ;;  %v8571_v21 = vadd.f32 %v8570_v10, %v8569_v40  ;;  %v8623_v39 = vadd.f32 %v8622_v4, %v8621_v46 }
 0xb4d   :  { %v8572_v34 = vpop.f32.mrf.mxu0  ;;  %v8624_v3 = vpop.f32.mrf.mxu1 }
 0xb4e   :  { %v5332_v42 = vadd.f32 %v8571_v21, %v12038_v57 }
 0xb4f   :  { %v8573_v56 = vpop.f32.mrf.mxu0  ;;  %v8625_v14 = vpop.f32.mrf.mxu1 }
 0xb50   :  { %v12068_v15 = vadd.f32 %v8623_v39, %v5332_v42  ;;  %v8574_v13 = vadd.f32 %v8573_v56, %v8572_v34  ;;  %v8626_v48 = vadd.f32 %v8625_v14, %v8624_v3 }
 0xb51   :  { %v8575_v27 = vpop.f32.mrf.mxu0  ;;  %v8627_v50 = vpop.f32.mrf.mxu1 }
 0xb52   :  { %v5337_v36 = vadd.f32 %v8574_v13, %v12040_v22 }
 0xb53   :  { %v8576_v9 = vpop.f32.mrf.mxu0  ;;  %v8628_v38 = vpop.f32.mrf.mxu1 }
 0xb54   :  { %v12071_v43 = vadd.f32 %v8626_v48, %v5337_v36  ;;  %v8577_v61 = vadd.f32 %v8576_v9, %v8575_v27  ;;  %v8629_v17 = vadd.f32 %v8628_v38, %v8627_v50  ;;  %v12811_v50 = vld [vmem:[#allocation7_spill] sm:$0xff] }
 0xb55   :  { %v8578_v52 = vpop.f32.mrf.mxu0  ;;  %v8630_v47 = vpop.f32.mrf.mxu1 }
 0xb56   :  { %v5340_v57 = vadd.f32 %v8577_v61, %v12042_v45  ;;  %v12812_v61 = vld [vmem:[#allocation6_spill] sm:$0xff] }
 0xb57   :  { %v8579_v8 = vpop.f32.mrf.mxu0  ;;  %v8631_v41 = vpop.f32.mrf.mxu1 }
 0xb58   :  { %v12074_v1 = vadd.f32 %v8629_v17, %v5340_v57  ;;  %v8580_v49 = vadd.f32 %v8579_v8, %v8578_v52  ;;  %v8632_v51 = vadd.f32 %v8631_v41, %v8630_v47  ;;  %v12813_v57 = vld [vmem:[#allocation8_spill] sm:$0xff] }
 0xb59   :  { %v8581_v26 = vpop.f32.mrf.mxu0  ;;  %v8633_v54 = vpop.f32.mrf.mxu1 }
 0xb5a   :  { %v5345_v22 = vadd.f32 %v8580_v49, %v12044_v55 }
 0xb5b   :  { %v8582_v23 = vpop.f32.mrf.mxu0  ;;  %v8634_v25 = vpop.f32.mrf.mxu1 }
 0xb5c   :  { %v12077_v19 = vadd.f32 %v8632_v51, %v5345_v22  ;;  %v8583_v28 = vadd.f32 %v8582_v23, %v8581_v26  ;;  %v8635_v7 = vadd.f32 %v8634_v25, %v8633_v54 }
 0xb5d   :  { %v8584_v44 = vpop.f32.mrf.mxu0  ;;  %v8636_v40 = vpop.f32.mrf.mxu1 }
 0xb5e   :  { %v5348_v45 = vadd.f32 %v8583_v28, %v12046_v2  ;;  %v7752_v2 = vld [vmem:[%s12633_s3 + $0x11] ss:$2 sm:$0xf] }
 0xb5f   :  { %v8585_v62 = vpop.f32.mrf.mxu0  ;;  %v8637_v21 = vpop.f32.mrf.mxu1  ;;  %v12090_v9 = vrot.slane %v7752_v2, %v12811_v50  ;;  %v12096_v17 = vrot.slane %v7752_v2, %v9980_v24  ;;  %v12101_v47 = vrot.slane %v7752_v2, %v12813_v57 }
 0xb60   :  { %v12080_v46 = vadd.f32 %v8635_v7, %v5348_v45  ;;  %v8586_v10 = vadd.f32 %v8585_v62, %v8584_v44  ;;  %v8638_v4 = vadd.f32 %v8637_v21, %v8636_v40 }
 0xb61   :  { %v8587_v39 = vpop.f32.mrf.mxu0  ;;  %v8639_v34 = vpop.f32.mrf.mxu1 }
 0xb62   :  { %v5353_v55 = vadd.f32 %v8586_v10, %v12048_v63  ;;  %v12093_v63 = vrot.slane %v7752_v2, %v12812_v61  ;;  %v7879_v2 = vld [vmem:[%s12632_s2 + $0x138] sm:$0xff] }
 0xb63   :  { %v8588_v42 = vpop.f32.mrf.mxu0  ;;  %v8640_v13 = vpop.f32.mrf.mxu1 }
 0xb64   :  { %v12083_v3 = vadd.f32 %v8638_v4, %v5353_v55  ;;  %v8589_v56 = vadd.f32 %v8588_v42, %v8587_v39  ;;  %v8641_v14 = vadd.f32 %v8640_v13, %v8639_v34  ;;  %v7878_v39 = vld [vmem:[%s12632_s2 + $0x130] sm:$0xff] }
 0xb65   :  { %v5545_v48 = vpop.f32.mrf.mxu0  ;;  %v5638_v36 = vpop.f32.mrf.mxu1  ;;  %v7880_v55 = vld [vmem:[%s12632_s2 + $0x170] sm:$0xff] }
 0xb66   :  { %v5356_v27 = vadd.f32 %v8589_v56, %v12050_v59  ;;  %v5546_v26 = vadd.f32 %v5545_v48, %v12093_v63  ;;  %v5639_v28 = vadd.f32 %v5638_v36, %v12101_v47 }
 0xb67   :  { %v5547_v38 = vpop.f32.mrf.mxu0  ;;  %v5640_v8 = vpop.f32.mrf.mxu1 }
 0xb68   :  { %v12098_v52 = vadd.f32 %v8641_v14, %v5356_v27  ;;  %v5548_v59 = vadd.f32 %v5547_v38, %v12090_v9  ;;  %v5641_v22 = vadd.f32 %v5640_v8, %v12096_v17  ;;  %v5697_v34 = vmax.f32 %v5546_v26, 0.0  ;;  %v7881_v14 = vld [vmem:[%s12632_s2 + $0x178] sm:$0xff] }
 0xb69   :  { %v5549_v49 = vpop.f32.mrf.mxu0  ;;  %v5642_v51 = vpop.f32.mrf.mxu1  ;;  %v5699_v48 = vmax.f32 %v5639_v28, 0.0 }
 0xb6a   :  { %v5550_v41 = vadd.f32 %v5549_v49, %v12093_v63  ;;  %v5643_v54 = vadd.f32 %v5642_v51, %v12101_v47  ;;  %v5698_v62 = vmax.f32 %v5548_v59, 0.0  ;;  %v5700_v42 = vmax.f32 %v5641_v22, 0.0 }
 0xb6b   :  { %v5551_v23 = vpop.f32.mrf.mxu0  ;;  %v5644_v7 = vpop.f32.mrf.mxu1  ;;  %v7887_v59 = vcombine.high %v7878_v39, %v7880_v55 }
 0xb6c   :  { %v5552_v25 = vadd.f32 %v5551_v23, %v12090_v9  ;;  %v5701_v44 = vmax.f32 %v5550_v41, 0.0  ;;  %v5645_v45 = vadd.f32 %v5644_v7, %v12096_v17  ;;  %v5703_v10 = vmax.f32 %v5643_v54, 0.0 }
 0xb6d   :  { %v5555_v40 = vpop.f32.mrf.mxu0  ;;  %v5648_v4 = vpop.f32.mrf.mxu1  ;;  %v7889_v54 = vcombine.high %v7879_v2, %v7881_v14 }
 0xb6e   :  { %v5702_v21 = vmax.f32 %v5552_v25, 0.0  ;;  %v5704_v56 = vmax.f32 %v5645_v45, 0.0  ;;  %v5745_v38 = vpack.c.bf16 %v5701_v44, %v5697_v34  ;;  %v5747_v41 = vpack.c.bf16 %v5703_v10, %v5699_v48 }
 0xb6f   :  { %v5557_v13 = vpop.f32.mrf.mxu0  ;;  %v5650_v36 = vpop.f32.mrf.mxu1  ;;  %v5556_v23 = vadd.f32 %v5555_v40, %v12093_v63  ;;  %v5649_v44 = vadd.f32 %v5648_v4, %v12101_v47  ;;  %v7886_v10 = vcombine.low %v7878_v39, %v7880_v55 }
 0xb70   :  { %v5746_v27 = vpack.c.bf16 %v5702_v21, %v5698_v62  ;;  %v5748_v8 = vpack.c.bf16 %v5704_v56, %v5700_v42  ;;  %v5558_v51 = vadd.f32 %v5557_v13, %v12090_v9  ;;  %v5651_v25 = vadd.f32 %v5650_v36, %v12096_v17 }
 0xb71   :  { %v5559_v49 = vpop.f32.mrf.mxu0  ;;  %v5652_v22 = vpop.f32.mrf.mxu1  ;;  %v7888_v42 = vcombine.low %v7879_v2, %v7881_v14 }
 0xb72   :  { %v5560_v26 = vadd.f32 %v5559_v49, %v12093_v63  ;;  %6057 = vmatprep.mubr.bf16.mxu0 %v5746_v27  ;;  %v5653_v28 = vadd.f32 %v5652_v22, %v12101_v47  ;;  %6138 = vmatprep.mubr.bf16.mxu1 %v5748_v8  ;;  %v5706_v4 = vmax.f32 %v5558_v51, 0.0  ;;  %v5705_v27 = vmax.f32 %v5556_v23, 0.0 }
 0xb73   :  { %v5561_v7 = vpop.f32.mrf.mxu0  ;;  %6058 = vmatmul.mubr.bf16.vlgmr.msra.gmra.mxu0 %v5745_v38  ;;  %v5654_v62 = vpop.f32.mrf.mxu1  ;;  %6139 = vmatmul.mubr.bf16.vlgmr.msra.gmra.mxu1 %v5747_v41  ;;  %v5708_v36 = vmax.f32 %v5651_v25, 0.0 }
 0xb74   :  { %v5562_v45 = vadd.f32 %v5561_v7, %v12090_v9  ;;  %6283 = vmatpush1.bf16.msra.mxu0 %v7890_v18  ;;  %v5709_v21 = vmax.f32 %v5560_v26, 0.0  ;;  %v5655_v40 = vadd.f32 %v5654_v62, %v12096_v17  ;;  %6376 = vmatpush1.bf16.msra.mxu1 %v7892_v11  ;;  %v5711_v56 = vmax.f32 %v5653_v28, 0.0 }
 0xb75   :  { %v5565_v34 = vpop.f32.mrf.mxu0  ;;  %6284 = vmatprep.subr.bf16.mxu0 %v7887_v59  ;;  %v5658_v48 = vpop.f32.mrf.mxu1  ;;  %6377 = vmatprep.subr.bf16.mxu1 %v7889_v54  ;;  %v5707_v18 = vmax.f32 %v5649_v44, 0.0 }
 0xb76   :  { %v5710_v13 = vmax.f32 %v5562_v45, 0.0  ;;  %v5712_v53 = vmax.f32 %v5655_v40, 0.0  ;;  %v5749_v38 = vpack.c.bf16 %v5709_v21, %v5705_v27  ;;  %v5566_v49 = vadd.f32 %v5565_v34, %v12093_v63 }
 0xb77   :  { %v5567_v33 = vpop.f32.mrf.mxu0  ;;  %v5660_v55 = vpop.f32.mrf.mxu1  ;;  %v5751_v16 = vpack.c.bf16 %v5711_v56, %v5707_v18  ;;  %v5659_v26 = vadd.f32 %v5658_v48, %v12101_v47 }
 0xb78   :  { %v5750_v39 = vpack.c.bf16 %v5710_v13, %v5706_v4  ;;  %6285 = vmatpush1.bf16.msra.mxu0 %v7886_v10  ;;  %v5752_v8 = vpack.c.bf16 %v5712_v53, %v5708_v36  ;;  %6378 = vmatpush1.bf16.msra.mxu1 %v7888_v42  ;;  %v5568_v11 = vadd.f32 %v5567_v33, %v12090_v9  ;;  %v5713_v10 = vmax.f32 %v5566_v49, 0.0 }
 0xb79   :  { %v5569_v20 = vpop.f32.mrf.mxu0  ;;  %v5662_v14 = vpop.f32.mrf.mxu1  ;;  %v5661_v59 = vadd.f32 %v5660_v55, %v12096_v17  ;;  %v5715_v42 = vmax.f32 %v5659_v26, 0.0 }
 0xb7a   :  { %v5570_v2 = vadd.f32 %v5569_v20, %v12093_v63  ;;  %6065 = vmatprep.mubr.bf16.mxu0 %v5750_v39  ;;  %v5663_v41 = vadd.f32 %v5662_v14, %v12101_v47  ;;  %6146 = vmatprep.mubr.bf16.mxu1 %v5752_v8  ;;  %v5714_v7 = vmax.f32 %v5568_v11, 0.0 }
 0xb7b   :  { %v5571_v51 = vpop.f32.mrf.mxu0  ;;  %6066 = vmatmul.mubr.bf16.gmra.mxu0 %v5749_v38  ;;  %v5664_v54 = vpop.f32.mrf.mxu1  ;;  %6147 = vmatmul.mubr.bf16.gmra.mxu1 %v5751_v16  ;;  %v5716_v21 = vmax.f32 %v5661_v59, 0.0 }
 0xb7c   :  { %v5572_v22 = vadd.f32 %v5571_v51, %v12090_v9  ;;  %v5717_v23 = vmax.f32 %v5570_v2, 0.0  ;;  %v5665_v25 = vadd.f32 %v5664_v54, %v12096_v17  ;;  %v5719_v44 = vmax.f32 %v5663_v41, 0.0 }
 0xb7d   :  { %v5575_v28 = vpop.f32.mrf.mxu0  ;;  %v5668_v62 = vpop.f32.mrf.mxu1 }
 0xb7e   :  { %v5718_v45 = vmax.f32 %v5572_v22, 0.0  ;;  %v5720_v40 = vmax.f32 %v5665_v25, 0.0  ;;  %v5753_v13 = vpack.c.bf16 %v5717_v23, %v5713_v10  ;;  %v5755_v36 = vpack.c.bf16 %v5719_v44, %v5715_v42 }
 0xb7f   :  { %v5577_v34 = vpop.f32.mrf.mxu0  ;;  %v5670_v56 = vpop.f32.mrf.mxu1  ;;  %v5576_v39 = vadd.f32 %v5575_v28, %v12093_v63  ;;  %v5669_v20 = vadd.f32 %v5668_v62, %v12101_v47 }
 0xb80   :  { %v5754_v4 = vpack.c.bf16 %v5718_v45, %v5714_v7  ;;  %v5756_v48 = vpack.c.bf16 %v5720_v40, %v5716_v21  ;;  %v5578_v53 = vadd.f32 %v5577_v34, %v12090_v9  ;;  %v5671_v55 = vadd.f32 %v5670_v56, %v12096_v17 }
 0xb81   :  { %v5579_v27 = vpop.f32.mrf.mxu0  ;;  %v5672_v18 = vpop.f32.mrf.mxu1  ;;  %v5721_v22 = vmax.f32 %v5576_v39, 0.0  ;;  %v5723_v28 = vmax.f32 %v5669_v20, 0.0 }
 0xb82   :  { %v5580_v33 = vadd.f32 %v5579_v27, %v12093_v63  ;;  %6073 = vmatprep.mubr.bf16.mxu0 %v5754_v4  ;;  %v5673_v38 = vadd.f32 %v5672_v18, %v12101_v47  ;;  %6154 = vmatprep.mubr.bf16.mxu1 %v5756_v48  ;;  %v5722_v59 = vmax.f32 %v5578_v53, 0.0  ;;  %v5724_v54 = vmax.f32 %v5671_v55, 0.0 }
 0xb83   :  { %v5581_v8 = vpop.f32.mrf.mxu0  ;;  %6074 = vmatmul.mubr.bf16.gmra.mxu0 %v5753_v13  ;;  %v5674_v11 = vpop.f32.mrf.mxu1  ;;  %6155 = vmatmul.mubr.bf16.gmra.mxu1 %v5755_v36 }
 0xb84   :  { %v5582_v16 = vadd.f32 %v5581_v8, %v12090_v9  ;;  %v5725_v2 = vmax.f32 %v5580_v33, 0.0  ;;  %v5675_v14 = vadd.f32 %v5674_v11, %v12096_v17  ;;  %v5727_v41 = vmax.f32 %v5673_v38, 0.0 }
 0xb85   :  { %v5585_v49 = vpop.f32.mrf.mxu0  ;;  %v5678_v26 = vpop.f32.mrf.mxu1 }
 0xb86   :  { %v5726_v51 = vmax.f32 %v5582_v16, 0.0  ;;  %v5728_v23 = vmax.f32 %v5675_v14, 0.0  ;;  %v5757_v45 = vpack.c.bf16 %v5725_v2, %v5721_v22  ;;  %v5759_v21 = vpack.c.bf16 %v5727_v41, %v5723_v28 }
 0xb87   :  { %v5587_v25 = vpop.f32.mrf.mxu0  ;;  %v5680_v44 = vpop.f32.mrf.mxu1  ;;  %v5586_v4 = vadd.f32 %v5585_v49, %v12093_v63  ;;  %v5679_v27 = vadd.f32 %v5678_v26, %v12101_v47 }
 0xb88   :  { %v5758_v7 = vpack.c.bf16 %v5726_v51, %v5722_v59  ;;  %v5760_v62 = vpack.c.bf16 %v5728_v23, %v5724_v54  ;;  %v5588_v40 = vadd.f32 %v5587_v25, %v12090_v9  ;;  %v5681_v56 = vadd.f32 %v5680_v44, %v12096_v17 }
 0xb89   :  { %v5589_v10 = vpop.f32.mrf.mxu0  ;;  %v5682_v42 = vpop.f32.mrf.mxu1  ;;  %v5729_v16 = vmax.f32 %v5586_v4, 0.0  ;;  %v5731_v49 = vmax.f32 %v5679_v27, 0.0 }
 0xb8a   :  { %v5590_v34 = vadd.f32 %v5589_v10, %v12093_v63  ;;  %6081 = vmatprep.mubr.bf16.mxu0 %v5758_v7  ;;  %v5683_v13 = vadd.f32 %v5682_v42, %v12101_v47  ;;  %6162 = vmatprep.mubr.bf16.mxu1 %v5760_v62  ;;  %v5730_v55 = vmax.f32 %v5588_v40, 0.0  ;;  %v5732_v11 = vmax.f32 %v5681_v56, 0.0 }
 0xb8b   :  { %v5591_v48 = vpop.f32.mrf.mxu0  ;;  %6082 = vmatmul.mubr.bf16.gmra.mxu0 %v5757_v45  ;;  %v5684_v53 = vpop.f32.mrf.mxu1  ;;  %6163 = vmatmul.mubr.bf16.gmra.mxu1 %v5759_v21 }
 0xb8c   :  { %v5592_v36 = vadd.f32 %v5591_v48, %v12090_v9  ;;  %v5733_v33 = vmax.f32 %v5590_v34, 0.0  ;;  %v5685_v18 = vadd.f32 %v5684_v53, %v12096_v17  ;;  %v5735_v38 = vmax.f32 %v5683_v13, 0.0 }
 0xb8d   :  { %v5595_v39 = vpop.f32.mrf.mxu0  ;;  %v5688_v20 = vpop.f32.mrf.mxu1 }
 0xb8e   :  { %v5734_v8 = vmax.f32 %v5592_v36, 0.0  ;;  %v5736_v2 = vmax.f32 %v5685_v18, 0.0  ;;  %v5761_v51 = vpack.c.bf16 %v5733_v33, %v5729_v16  ;;  %v5763_v54 = vpack.c.bf16 %v5735_v38, %v5731_v49  ;;  %v9119_v38 = vld [vmem:[%s12634_s4 + $0x7a8] sm:$0xff]   ;;  %v9122_v16 = vld [vmem:[%s12634_s4 + $0x720] sm:$0xff]   ;;  %v9126_v49 = vld [vmem:[%s12634_s4 + $0x718] sm:$0xff]  }
 0xb8f   :  { %v5597_v14 = vpop.f32.mrf.mxu0  ;;  %v5690_v41 = vpop.f32.mrf.mxu1  ;;  %v5596_v7 = vadd.f32 %v5595_v39, %v12093_v63  ;;  %v5689_v10 = vadd.f32 %v5688_v20, %v12101_v47  ;;  %v9121_v20 = vld [vmem:[%s12634_s4 + $0x7e0] sm:$0xff]  }
 0xb90   :  { %v5762_v59 = vpack.c.bf16 %v5734_v8, %v5730_v55  ;;  %v5764_v26 = vpack.c.bf16 %v5736_v2, %v5732_v11  ;;  %v5598_v23 = vadd.f32 %v5597_v14, %v12090_v9  ;;  %v5691_v44 = vadd.f32 %v5690_v41, %v12096_v17  ;;  %v9117_v55 = vld [vmem:[%s12634_s4 + $0x7e8] sm:$0xff]   ;;  %v9120_v8 = vld [vmem:[%s12634_s4 + $0x760] sm:$0xff]   ;;  %v9124_v2 = vld [vmem:[%s12634_s4 + $0x758] sm:$0xff]  }
 0xb91   :  { %v5599_v22 = vpop.f32.mrf.mxu0  ;;  %v5692_v28 = vpop.f32.mrf.mxu1  ;;  %v5739_v36 = vmax.f32 %v5689_v10, 0.0  ;;  %v9123_v11 = vld [vmem:[%s12634_s4 + $0x7a0] sm:$0xff]   ;;  %v9125_v14 = vld [vmem:[%s12634_s4 + $0x7d8] sm:$0xff]   ;;  %v9128_v41 = vld [vmem:[%s12634_s4 + $0x750] sm:$0xff]  }
 0xb92   :  { %v5600_v25 = vadd.f32 %v5599_v22, %v12093_v63  ;;  %6089 = vmatprep.mubr.bf16.mxu0 %v5762_v59  ;;  %v5693_v45 = vadd.f32 %v5692_v28, %v12101_v47  ;;  %6170 = vmatprep.mubr.bf16.mxu1 %v5764_v26  ;;  %v5738_v4 = vmax.f32 %v5598_v23, 0.0  ;;  %v5737_v63 = vmax.f32 %v5596_v7, 0.0  ;;  %v9116_v47 = vld [vmem:[%s12634_s4 + $0x768] sm:$0xff]   ;;  %v9127_v59 = vld [vmem:[%s12634_s4 + $0x798] sm:$0xff]   ;;  %v9130_v26 = vld [vmem:[%s12634_s4 + $0x710] sm:$0xff]  }
 0xb93   :  { %v5601_v62 = vpop.f32.mrf.mxu0  ;;  %6090 = vmatmul.mubr.bf16.gmra.mxu0 %v5761_v51  ;;  %v5694_v40 = vpop.f32.mrf.mxu1  ;;  %6171 = vmatmul.mubr.bf16.gmra.mxu1 %v5763_v54  ;;  %v5740_v48 = vmax.f32 %v5691_v44, 0.0  ;;  %v9129_v51 = vld [vmem:[%s12634_s4 + $0x7d0] sm:$0xff]   ;;  %v9132_v54 = vld [vmem:[%s12634_s4 + $0x748] sm:$0xff]   ;;  %v9136_v7 = vld [vmem:[%s12634_s4 + $0x740] sm:$0xff]  }
 0xb94   :  { %v5602_v21 = vadd.f32 %v5601_v62, %v12090_v9  ;;  %v5741_v34 = vmax.f32 %v5600_v25, 0.0  ;;  %v5695_v42 = vadd.f32 %v5694_v40, %v12096_v17  ;;  %v5743_v56 = vmax.f32 %v5693_v45, 0.0  ;;  %v9114_v9 = vld [vmem:[%s12634_s4 + $0x730] sm:$0xff]   ;;  %v9133_v23 = vld [vmem:[%s12634_s4 + $0x7c8] sm:$0xff]   ;;  %v9137_v44 = vld [vmem:[%s12634_s4 + $0x7c0] sm:$0xff]  }
 0xb95   :  { %v9115_v17 = vld [vmem:[%s12634_s4 + $0x7b0] sm:$0xff]   ;;  %v9134_v25 = vld [vmem:[%s12634_s4 + $0x708] sm:$0xff]   ;;  %v9138_v45 = vld [vmem:[%s12634_s4 + $0x700] sm:$0xff]  }
 0xb96   :  { %v5742_v13 = vmax.f32 %v5602_v21, 0.0  ;;  %v5744_v27 = vmax.f32 %v5695_v42, 0.0  ;;  %v5765_v33 = vpack.c.bf16 %v5741_v34, %v5737_v63  ;;  %v5767_v39 = vpack.c.bf16 %v5743_v56, %v5739_v36  ;;  %v9131_v22 = vld [vmem:[%s12634_s4 + $0x790] sm:$0xff]   ;;  %v9135_v28 = vld [vmem:[%s12634_s4 + $0x788] sm:$0xff]   ;;  %v9139_v62 = vld [vmem:[%s12634_s4 + $0x780] sm:$0xff]  }
 0xb98   :  { %v5766_v53 = vpack.c.bf16 %v5742_v13, %v5738_v4  ;;  %v5768_v18 = vpack.c.bf16 %v5744_v27, %v5740_v48 }
 0xb9a   :  { %6097 = vmatprep.mubr.bf16.mxu0 %v5766_v53  ;;  %6178 = vmatprep.mubr.bf16.mxu1 %v5768_v18 }
 0xb9b   :  { %6098 = vmatmul.mubr.bf16.gmra.mxu0 %v5765_v33  ;;  %6179 = vmatmul.mubr.bf16.gmra.mxu1 %v5767_v39 }
 0xb9c   :  { %6302 = vmatprep.mubr.bf16.mxu0 %v12804_v5  ;;  %6395 = vmatprep.mubr.bf16.mxu1 %v12804_v5 }
 0xba3   :  { %7894 = vmatmul.mubr.msk.bf16.vlgmr.msra.gmra.mxu0 %vm51_vm0, %v12805_v29  ;;  %7900 = vmatmul.mubr.msk.bf16.vlgmr.msra.gmra.mxu1 %vm51_vm0, %v12805_v29  ;;  %v9108_v29 = vld [vmem:[%s12634_s4 + $0x778] sm:$0xff]  }
 0xba4   :  { %6312 = vmatprep.mubr.bf16.mxu0 %v12804_v5  ;;  %6405 = vmatprep.mubr.bf16.mxu1 %v12804_v5 }
 0xba5   :  { %8746 = vmatprep.subr.bf16.mxu0 %v9108_v29 }
 0xbab   :  { %7895 = vmatmul.mubr.msk.bf16.gmra.mxu0 %vm51_vm0, %v12806_v35  ;;  %7901 = vmatmul.mubr.msk.bf16.gmra.mxu1 %vm51_vm0, %v12806_v35  ;;  %v9109_v35 = vld [vmem:[%s12634_s4 + $0x7f8] sm:$0xff]  }
 0xbac   :  { %6322 = vmatprep.mubr.bf16.mxu0 %v12804_v5  ;;  %6415 = vmatprep.mubr.bf16.mxu1 %v12804_v5 }
 0xbad   :  { %8798 = vmatprep.subr.bf16.mxu1 %v9109_v35 }
 0xbb3   :  { %7896 = vmatmul.mubr.msk.bf16.gmra.mxu0 %vm51_vm0, %v12807_v37  ;;  %7902 = vmatmul.mubr.msk.bf16.gmra.mxu1 %vm51_vm0, %v12807_v37  ;;  %v9110_v37 = vld [vmem:[%s12634_s4 + $0x738] sm:$0xff]  }
 0xbb4   :  { %6332 = vmatprep.mubr.bf16.mxu0 %v12804_v5  ;;  %6425 = vmatprep.mubr.bf16.mxu1 %v12804_v5 }
 0xbb5   :  { %8747 = vmatpush3.bf16.msra.mxu0 %v9110_v37 }
 0xbbb   :  { %7897 = vmatmul.mubr.msk.bf16.gmra.mxu0 %vm51_vm0, %v12808_v6  ;;  %7903 = vmatmul.mubr.msk.bf16.gmra.mxu1 %vm51_vm0, %v12808_v6  ;;  %v9111_v6 = vld [vmem:[%s12634_s4 + $0x7b8] sm:$0xff]  }
 0xbbc   :  { %6342 = vmatprep.mubr.bf16.mxu0 %v12804_v5  ;;  %6435 = vmatprep.mubr.bf16.mxu1 %v12804_v5 }
 0xbbd   :  { %8799 = vmatpush3.bf16.msra.mxu1 %v9111_v6 }
 0xbc3   :  { %7898 = vmatmul.mubr.msk.bf16.gmra.mxu0 %vm51_vm0, %v12809_v58  ;;  %7904 = vmatmul.mubr.msk.bf16.gmra.mxu1 %vm51_vm0, %v12809_v58  ;;  %v9112_v58 = vld [vmem:[%s12634_s4 + $0x770] sm:$0xff]  }
 0xbc4   :  { %6352 = vmatprep.mubr.bf16.mxu0 %v12804_v5  ;;  %6445 = vmatprep.mubr.bf16.mxu1 %v12804_v5  ;;  %v9113_v5 = vld [vmem:[%s12634_s4 + $0x7f0] sm:$0xff]  }
 0xbc5   :  { %8748 = vmatprep.subr.bf16.mxu0 %v9112_v58  ;;  %8800 = vmatprep.subr.bf16.mxu1 %v9113_v5 }
 0xbc6   :  { %8749 = vmatpush3.bf16.msra.mxu0 %v9114_v9  ;;  %8801 = vmatpush3.bf16.msra.mxu1 %v9115_v17 }
 0xbc7   :  { %8750 = vmatprep.subr.bf16.mxu0 %v9116_v47  ;;  %8802 = vmatprep.subr.bf16.mxu1 %v9117_v55 }
 0xbca   :  { %8803 = vmatpush3.bf16.msra.mxu1 %v9119_v38 }
 0xbcb   :  { %7899 = vmatmul.mubr.msk.bf16.gmra.mxu0 %vm51_vm0, %v12810_v30  ;;  %7905 = vmatmul.mubr.msk.bf16.gmra.mxu1 %vm51_vm0, %v12810_v30  ;;  %v9118_v30 = vld [vmem:[%s12634_s4 + $0x728] sm:$0xff]  }
 0xbcc   :  { %8751 = vmatpush3.bf16.msra.mxu0 %v9118_v30  ;;  %8804 = vmatprep.subr.bf16.mxu1 %v9121_v20 }
 0xbcd   :  { %8752 = vmatprep.subr.bf16.mxu0 %v9120_v8 }
 0xbce   :  { %8805 = vmatpush3.bf16.msra.mxu1 %v9123_v11 }
 0xbcf   :  { %8806 = vmatprep.subr.bf16.mxu1 %v9125_v14 }
 0xbd0   :  { %8753 = vmatpush3.bf16.msra.mxu0 %v9122_v16 }
 0xbd1   :  { %8754 = vmatprep.subr.bf16.mxu0 %v9124_v2 }
 0xbd2   :  { %8807 = vmatpush3.bf16.msra.mxu1 %v9127_v59 }
 0xbd3   :  { %8808 = vmatprep.subr.bf16.mxu1 %v9129_v51 }
 0xbd4   :  { %8755 = vmatpush3.bf16.msra.mxu0 %v9126_v49 }
 0xbd5   :  { %8756 = vmatprep.subr.bf16.mxu0 %v9128_v41 }
 0xbd6   :  { %8809 = vmatpush3.bf16.msra.mxu1 %v9131_v22 }
 0xbd7   :  { %8810 = vmatprep.subr.bf16.mxu1 %v9133_v23 }
 0xbd8   :  { %8757 = vmatpush3.bf16.msra.mxu0 %v9130_v26 }
 0xbd9   :  { %8758 = vmatprep.subr.bf16.mxu0 %v9132_v54 }
 0xbda   :  { %8811 = vmatpush3.bf16.msra.mxu1 %v9135_v28 }
 0xbdb   :  { %8812 = vmatprep.subr.bf16.mxu1 %v9137_v44 }
 0xbdc   :  { %8759 = vmatpush3.bf16.msra.mxu0 %v9134_v25 }
 0xbdd   :  { %8760 = vmatprep.subr.bf16.mxu0 %v9136_v7 }
 0xbde   :  { %8813 = vmatpush3.bf16.msra.mxu1 %v9139_v62 }
 0xbe0   :  { %8761 = vmatpush3.bf16.msra.mxu0 %v9138_v45 }
 0xc33   :  { %v8658_v10 = vpop.f32.mrf.mxu0  ;;  %v8710_v21 = vpop.f32.mrf.mxu1 }
 0xc35   :  { %v8659_v40 = vpop.f32.mrf.mxu0  ;;  %v8711_v42 = vpop.f32.mrf.mxu1 }
 0xc36   :  { %v8660_v34 = vadd.f32 %v8659_v40, %v8658_v10  ;;  %v8712_v4 = vadd.f32 %v8711_v42, %v8710_v21 }
 0xc37   :  { %v8661_v56 = vpop.f32.mrf.mxu0  ;;  %v8713_v13 = vpop.f32.mrf.mxu1 }
 0xc38   :  { %v6141_v63 = vadd.f32 %v8712_v4, %v8660_v34 }
 0xc39   :  { %v8662_v48 = vpop.f32.mrf.mxu0  ;;  %v8714_v36 = vpop.f32.mrf.mxu1 }
 0xc3a   :  { %v8663_v27 = vadd.f32 %v8662_v48, %v8661_v56  ;;  %v12302_v53 = vadd.f32 %v6141_v63, %v12053_v12  ;;  %v8715_v33 = vadd.f32 %v8714_v36, %v8713_v13 }
 0xc3b   :  { %v8664_v18 = vpop.f32.mrf.mxu0  ;;  %v8716_v39 = vpop.f32.mrf.mxu1 }
 0xc3c   :  { %v6144_v29 = vadd.f32 %v8715_v33, %v8663_v27 }
 0xc3d   :  { %v8665_v35 = vpop.f32.mrf.mxu0  ;;  %v8717_v6 = vpop.f32.mrf.mxu1 }
 0xc3e   :  { %v8666_v37 = vadd.f32 %v8665_v35, %v8664_v18  ;;  %v12305_v58 = vadd.f32 %v6144_v29, %v12056_v32  ;;  %v8718_v5 = vadd.f32 %v8717_v6, %v8716_v39 }
 0xc3f   :  { %v8667_v9 = vpop.f32.mrf.mxu0  ;;  %v8719_v17 = vpop.f32.mrf.mxu1 }
 0xc40   :  { %v6149_v47 = vadd.f32 %v8718_v5, %v8666_v37 }
 0xc41   :  { %v8668_v55 = vpop.f32.mrf.mxu0  ;;  %v8720_v38 = vpop.f32.mrf.mxu1 }
 0xc42   :  { %v8669_v30 = vadd.f32 %v8668_v55, %v8667_v9  ;;  %v12308_v12 = vadd.f32 %v6149_v47, %v12059_v60  ;;  %v8721_v8 = vadd.f32 %v8720_v38, %v8719_v17 }
 0xc43   :  { %v8670_v20 = vpop.f32.mrf.mxu0  ;;  %v8722_v16 = vpop.f32.mrf.mxu1 }
 0xc44   :  { %v6152_v11 = vadd.f32 %v8721_v8, %v8669_v30 }
 0xc45   :  { %v8671_v2 = vpop.f32.mrf.mxu0  ;;  %v8723_v49 = vpop.f32.mrf.mxu1 }
 0xc46   :  { %v8672_v14 = vadd.f32 %v8671_v2, %v8670_v20  ;;  %v12311_v32 = vadd.f32 %v6152_v11, %v12062_v31  ;;  %v8724_v59 = vadd.f32 %v8723_v49, %v8722_v16 }
 0xc47   :  { %v8673_v41 = vpop.f32.mrf.mxu0  ;;  %v8725_v51 = vpop.f32.mrf.mxu1 }
 0xc48   :  { %v6157_v26 = vadd.f32 %v8724_v59, %v8672_v14 }
 0xc49   :  { %v8674_v22 = vpop.f32.mrf.mxu0  ;;  %v8726_v23 = vpop.f32.mrf.mxu1 }
 0xc4a   :  { %v8675_v54 = vadd.f32 %v8674_v22, %v8673_v41  ;;  %v12314_v60 = vadd.f32 %v6157_v26, %v12065_v0  ;;  %v8727_v25 = vadd.f32 %v8726_v23, %v8725_v51 }
 0xc4b   :  { %v8676_v28 = vpop.f32.mrf.mxu0  ;;  %v8728_v7 = vpop.f32.mrf.mxu1 }
 0xc4c   :  { %v6160_v44 = vadd.f32 %v8727_v25, %v8675_v54 }
 0xc4d   :  { %v8677_v45 = vpop.f32.mrf.mxu0  ;;  %v8729_v10 = vpop.f32.mrf.mxu1 }
 0xc4e   :  { %v8678_v62 = vadd.f32 %v8677_v45, %v8676_v28  ;;  %v12317_v31 = vadd.f32 %v6160_v44, %v12068_v15  ;;  %v8730_v21 = vadd.f32 %v8729_v10, %v8728_v7 }
 0xc4f   :  { %v8679_v40 = vpop.f32.mrf.mxu0  ;;  %v8731_v34 = vpop.f32.mrf.mxu1 }
 0xc50   :  { %v6165_v42 = vadd.f32 %v8730_v21, %v8678_v62 }
 0xc51   :  { %v8680_v4 = vpop.f32.mrf.mxu0  ;;  %v8732_v13 = vpop.f32.mrf.mxu1 }
 0xc52   :  { %v8681_v56 = vadd.f32 %v8680_v4, %v8679_v40  ;;  %v12320_v0 = vadd.f32 %v6165_v42, %v12071_v43  ;;  %v8733_v63 = vadd.f32 %v8732_v13, %v8731_v34 }
 0xc53   :  { %v8682_v48 = vpop.f32.mrf.mxu0  ;;  %v8734_v27 = vpop.f32.mrf.mxu1 }
 0xc54   :  { %v6168_v36 = vadd.f32 %v8733_v63, %v8681_v56 }
 0xc55   :  { %v8683_v33 = vpop.f32.mrf.mxu0  ;;  %v8735_v39 = vpop.f32.mrf.mxu1 }
 0xc56   :  { %v8684_v18 = vadd.f32 %v8683_v33, %v8682_v48  ;;  %v12323_v15 = vadd.f32 %v6168_v36, %v12074_v1  ;;  %v8736_v29 = vadd.f32 %v8735_v39, %v8734_v27 }
 0xc57   :  { %v8685_v35 = vpop.f32.mrf.mxu0  ;;  %v8737_v37 = vpop.f32.mrf.mxu1 }
 0xc58   :  { %v6173_v6 = vadd.f32 %v8736_v29, %v8684_v18 }
 0xc59   :  { %v8686_v5 = vpop.f32.mrf.mxu0  ;;  %v8738_v17 = vpop.f32.mrf.mxu1 }
 0xc5a   :  { %v8687_v9 = vadd.f32 %v8686_v5, %v8685_v35  ;;  %v12326_v43 = vadd.f32 %v6173_v6, %v12077_v19  ;;  %v8739_v47 = vadd.f32 %v8738_v17, %v8737_v37  ;;  %v7877_v19 = vld [vmem:[%s12633_s3 + $0x19] ss:$2 sm:$0xf] }
 0xc5b   :  { %v8688_v55 = vpop.f32.mrf.mxu0  ;;  %v8740_v30 = vpop.f32.mrf.mxu1  ;;  %v12341_v28 = vrot.slane %v7877_v19, %v12812_v61  ;;  %v12344_v44 = vrot.slane %v7877_v19, %v9980_v24  ;;  %v12347_v45 = vrot.slane %v7877_v19, %v12813_v57 }
 0xc5c   :  { %v6176_v38 = vadd.f32 %v8739_v47, %v8687_v9 }
 0xc5d   :  { %v8689_v8 = vpop.f32.mrf.mxu0  ;;  %v8741_v16 = vpop.f32.mrf.mxu1 }
 0xc5e   :  { %v8690_v20 = vadd.f32 %v8689_v8, %v8688_v55  ;;  %v12329_v1 = vadd.f32 %v6176_v38, %v12080_v46  ;;  %v8742_v11 = vadd.f32 %v8741_v16, %v8740_v30  ;;  %v12338_v46 = vrot.slane %v7877_v19, %v12811_v50 }
 0xc5f   :  { %v8691_v2 = vpop.f32.mrf.mxu0  ;;  %v8743_v14 = vpop.f32.mrf.mxu1 }
 0xc60   :  { %v6181_v49 = vadd.f32 %v8742_v11, %v8690_v20 }
 0xc61   :  { %v8692_v59 = vpop.f32.mrf.mxu0  ;;  %v8744_v51 = vpop.f32.mrf.mxu1 }
 0xc62   :  { %v8693_v41 = vadd.f32 %v8692_v59, %v8691_v2  ;;  %v12335_v26 = vadd.f32 %v6181_v49, %v12083_v3  ;;  %v8745_v22 = vadd.f32 %v8744_v51, %v8743_v14 }
 0xc63   :  { %v6304_v54 = vpop.f32.mrf.mxu0  ;;  %v6397_v23 = vpop.f32.mrf.mxu1 }
 0xc64   :  { %v6184_v25 = vadd.f32 %v8745_v22, %v8693_v41  ;;  %v6305_v61 = vadd.f32 %v6304_v54, %v12341_v28  ;;  %v6398_v57 = vadd.f32 %v6397_v23, %v12347_v45 }
 0xc65   :  { %v6306_v7 = vpop.f32.mrf.mxu0  ;;  %v6399_v62 = vpop.f32.mrf.mxu1 }
 0xc66   :  { %v12350_v3 = vadd.f32 %v6184_v25, %v12098_v52  ;;  %v6307_v21 = vadd.f32 %v6306_v7, %v12338_v46  ;;  %v6400_v34 = vadd.f32 %v6399_v62, %v12344_v44  ;;  %v6456_v39 = vmax.f32 %v6305_v61, 0.0 }
 0xc67   :  { %v6308_v10 = vpop.f32.mrf.mxu0  ;;  %v6401_v40 = vpop.f32.mrf.mxu1  ;;  %v6458_v6 = vmax.f32 %v6398_v57, 0.0 }
 0xc68   :  { %v6309_v50 = vadd.f32 %v6308_v10, %v12341_v28  ;;  %v6402_v42 = vadd.f32 %v6401_v40, %v12347_v45  ;;  %v6457_v27 = vmax.f32 %v6307_v21, 0.0  ;;  %v6459_v29 = vmax.f32 %v6400_v34, 0.0 }
 0xc69   :  { %v6310_v4 = vpop.f32.mrf.mxu0  ;;  %v6403_v13 = vpop.f32.mrf.mxu1 }
 0xc6a   :  { %v6311_v56 = vadd.f32 %v6310_v4, %v12338_v46  ;;  %v6460_v52 = vmax.f32 %v6309_v50, 0.0  ;;  %v6404_v63 = vadd.f32 %v6403_v13, %v12344_v44  ;;  %v6462_v36 = vmax.f32 %v6402_v42, 0.0 }
 0xc6b   :  { %v6314_v48 = vpop.f32.mrf.mxu0  ;;  %v6407_v18 = vpop.f32.mrf.mxu1 }
 0xc6c   :  { %v6461_v33 = vmax.f32 %v6311_v56, 0.0  ;;  %v6463_v35 = vmax.f32 %v6404_v63, 0.0  ;;  %v6504_v17 = vpack.c.bf16 %v6460_v52, %v6456_v39  ;;  %v6506_v30 = vpack.c.bf16 %v6462_v36, %v6458_v6 }
 0xc6d   :  { %v6316_v37 = vpop.f32.mrf.mxu0  ;;  %v6409_v9 = vpop.f32.mrf.mxu1  ;;  %v6315_v16 = vadd.f32 %v6314_v48, %v12341_v28  ;;  %v6408_v49 = vadd.f32 %v6407_v18, %v12347_v45 }
 0xc6e   :  { %v6505_v5 = vpack.c.bf16 %v6461_v33, %v6457_v27  ;;  %v6507_v47 = vpack.c.bf16 %v6463_v35, %v6459_v29  ;;  %v6317_v38 = vadd.f32 %v6316_v37, %v12338_v46  ;;  %v6410_v11 = vadd.f32 %v6409_v9, %v12344_v44 }
 0xc6f   :  { %v6318_v55 = vpop.f32.mrf.mxu0  ;;  %v6411_v20 = vpop.f32.mrf.mxu1  ;;  %v6464_v62 = vmax.f32 %v6315_v16, 0.0  ;;  %v6466_v40 = vmax.f32 %v6408_v49, 0.0 }
 0xc70   :  { %v6319_v8 = vadd.f32 %v6318_v55, %v12341_v28  ;;  %6816 = vmatprep.mubr.bf16.mxu0 %v6505_v5  ;;  %v6412_v2 = vadd.f32 %v6411_v20, %v12347_v45  ;;  %6897 = vmatprep.mubr.bf16.mxu1 %v6507_v47  ;;  %v6465_v54 = vmax.f32 %v6317_v38, 0.0  ;;  %v6467_v10 = vmax.f32 %v6410_v11, 0.0 }
 0xc71   :  { %v6320_v14 = vpop.f32.mrf.mxu0  ;;  %6817 = vmatmul.mubr.bf16.vlgmr.msra.gmra.mxu0 %v6504_v17  ;;  %v6413_v41 = vpop.f32.mrf.mxu1  ;;  %6898 = vmatmul.mubr.bf16.vlgmr.msra.gmra.mxu1 %v6506_v30 }
 0xc72   :  { %v6321_v59 = vadd.f32 %v6320_v14, %v12338_v46  ;;  %v6468_v51 = vmax.f32 %v6319_v8, 0.0  ;;  %v6414_v19 = vadd.f32 %v6413_v41, %v12344_v44  ;;  %v6470_v23 = vmax.f32 %v6412_v2, 0.0 }
 0xc73   :  { %v6324_v22 = vpop.f32.mrf.mxu0  ;;  %v6417_v7 = vpop.f32.mrf.mxu1 }
 0xc74   :  { %v6469_v25 = vmax.f32 %v6321_v59, 0.0  ;;  %v6471_v21 = vmax.f32 %v6414_v19, 0.0  ;;  %v6508_v42 = vpack.c.bf16 %v6468_v51, %v6464_v62  ;;  %v6510_v56 = vpack.c.bf16 %v6470_v23, %v6466_v40 }
 0xc75   :  { %v6326_v50 = vpop.f32.mrf.mxu0  ;;  %v6419_v34 = vpop.f32.mrf.mxu1  ;;  %v6325_v48 = vadd.f32 %v6324_v22, %v12341_v28  ;;  %v6418_v18 = vadd.f32 %v6417_v7, %v12347_v45 }
 0xc76   :  { %v6509_v61 = vpack.c.bf16 %v6469_v25, %v6465_v54  ;;  %v6511_v4 = vpack.c.bf16 %v6471_v21, %v6467_v10  ;;  %v6327_v13 = vadd.f32 %v6326_v50, %v12338_v46  ;;  %v6420_v27 = vadd.f32 %v6419_v34, %v12344_v44 }
 0xc77   :  { %v6328_v57 = vpop.f32.mrf.mxu0  ;;  %v6421_v63 = vpop.f32.mrf.mxu1  ;;  %v6472_v55 = vmax.f32 %v6325_v48, 0.0  ;;  %v6474_v20 = vmax.f32 %v6418_v18, 0.0 }
 0xc78   :  { %v6329_v52 = vadd.f32 %v6328_v57, %v12341_v28  ;;  %6824 = vmatprep.mubr.bf16.mxu0 %v6509_v61  ;;  %v6422_v36 = vadd.f32 %v6421_v63, %v12347_v45  ;;  %6905 = vmatprep.mubr.bf16.mxu1 %v6511_v4  ;;  %v6473_v5 = vmax.f32 %v6327_v13, 0.0  ;;  %v6475_v30 = vmax.f32 %v6420_v27, 0.0 }
 0xc79   :  { %v6330_v33 = vpop.f32.mrf.mxu0  ;;  %6825 = vmatmul.mubr.bf16.gmra.mxu0 %v6508_v42  ;;  %v6423_v29 = vpop.f32.mrf.mxu1  ;;  %6906 = vmatmul.mubr.bf16.gmra.mxu1 %v6510_v56 }
 0xc7a   :  { %v6331_v39 = vadd.f32 %v6330_v33, %v12338_v46  ;;  %v6476_v35 = vmax.f32 %v6329_v52, 0.0  ;;  %v6424_v37 = vadd.f32 %v6423_v29, %v12344_v44  ;;  %v6478_v9 = vmax.f32 %v6422_v36, 0.0 }
 0xc7b   :  { %v6334_v6 = vpop.f32.mrf.mxu0  ;;  %v6427_v47 = vpop.f32.mrf.mxu1 }
 0xc7c   :  { %v6477_v17 = vmax.f32 %v6331_v39, 0.0  ;;  %v6479_v38 = vmax.f32 %v6424_v37, 0.0  ;;  %v6512_v2 = vpack.c.bf16 %v6476_v35, %v6472_v55  ;;  %v6514_v59 = vpack.c.bf16 %v6478_v9, %v6474_v20 }
 0xc7d   :  { %v6336_v8 = vpop.f32.mrf.mxu0  ;;  %v6429_v11 = vpop.f32.mrf.mxu1  ;;  %v6335_v22 = vadd.f32 %v6334_v6, %v12341_v28  ;;  %v6428_v7 = vadd.f32 %v6427_v47, %v12347_v45 }
 0xc7e   :  { %v6513_v16 = vpack.c.bf16 %v6477_v17, %v6473_v5  ;;  %v6515_v14 = vpack.c.bf16 %v6479_v38, %v6475_v30  ;;  %v6337_v41 = vadd.f32 %v6336_v8, %v12338_v46  ;;  %v6430_v54 = vadd.f32 %v6429_v11, %v12344_v44 }
 0xc7f   :  { %v6338_v49 = vpop.f32.mrf.mxu0  ;;  %v6431_v19 = vpop.f32.mrf.mxu1  ;;  %v6480_v57 = vmax.f32 %v6335_v22, 0.0  ;;  %v6482_v63 = vmax.f32 %v6428_v7, 0.0 }
 0xc80   :  { %v6339_v51 = vadd.f32 %v6338_v49, %v12341_v28  ;;  %6832 = vmatprep.mubr.bf16.mxu0 %v6513_v16  ;;  %v6432_v23 = vadd.f32 %v6431_v19, %v12347_v45  ;;  %6913 = vmatprep.mubr.bf16.mxu1 %v6515_v14  ;;  %v6481_v61 = vmax.f32 %v6337_v41, 0.0  ;;  %v6483_v56 = vmax.f32 %v6430_v54, 0.0 }
 0xc81   :  { %v6340_v25 = vpop.f32.mrf.mxu0  ;;  %6833 = vmatmul.mubr.bf16.gmra.mxu0 %v6512_v2  ;;  %v6433_v10 = vpop.f32.mrf.mxu1  ;;  %6914 = vmatmul.mubr.bf16.gmra.mxu1 %v6514_v59 }
 0xc82   :  { %v6341_v62 = vadd.f32 %v6340_v25, %v12338_v46  ;;  %v6484_v21 = vmax.f32 %v6339_v51, 0.0  ;;  %v6434_v50 = vadd.f32 %v6433_v10, %v12344_v44  ;;  %v6486_v34 = vmax.f32 %v6432_v23, 0.0 }
 0xc83   :  { %v6344_v40 = vpop.f32.mrf.mxu0  ;;  %v6437_v4 = vpop.f32.mrf.mxu1 }
 0xc84   :  { %v6485_v42 = vmax.f32 %v6341_v62, 0.0  ;;  %v6487_v13 = vmax.f32 %v6434_v50, 0.0  ;;  %v6516_v36 = vpack.c.bf16 %v6484_v21, %v6480_v57  ;;  %v6518_v39 = vpack.c.bf16 %v6486_v34, %v6482_v63 }
 0xc85   :  { %v6346_v52 = vpop.f32.mrf.mxu0  ;;  %v6439_v27 = vpop.f32.mrf.mxu1  ;;  %v6345_v6 = vadd.f32 %v6344_v40, %v12341_v28  ;;  %v6438_v47 = vadd.f32 %v6437_v4, %v12347_v45 }
 0xc86   :  { %v6517_v48 = vpack.c.bf16 %v6485_v42, %v6481_v61  ;;  %v6519_v33 = vpack.c.bf16 %v6487_v13, %v6483_v56  ;;  %v6347_v29 = vadd.f32 %v6346_v52, %v12338_v46  ;;  %v6440_v5 = vadd.f32 %v6439_v27, %v12344_v44 }
 0xc87   :  { %v6348_v18 = vpop.f32.mrf.mxu0  ;;  %v6441_v37 = vpop.f32.mrf.mxu1  ;;  %v6488_v49 = vmax.f32 %v6345_v6, 0.0  ;;  %v6490_v19 = vmax.f32 %v6438_v47, 0.0 }
 0xc88   :  { %v6349_v35 = vadd.f32 %v6348_v18, %v12341_v28  ;;  %6840 = vmatprep.mubr.bf16.mxu0 %v6517_v48  ;;  %v6442_v9 = vadd.f32 %v6441_v37, %v12347_v45  ;;  %6921 = vmatprep.mubr.bf16.mxu1 %v6519_v33  ;;  %v6489_v16 = vmax.f32 %v6347_v29, 0.0  ;;  %v6491_v59 = vmax.f32 %v6440_v5, 0.0 }
 0xc89   :  { %v6350_v17 = vpop.f32.mrf.mxu0  ;;  %6841 = vmatmul.mubr.bf16.gmra.mxu0 %v6516_v36  ;;  %v6443_v30 = vpop.f32.mrf.mxu1  ;;  %6922 = vmatmul.mubr.bf16.gmra.mxu1 %v6518_v39 }
 0xc8a   :  { %v6351_v55 = vadd.f32 %v6350_v17, %v12338_v46  ;;  %v6492_v38 = vmax.f32 %v6349_v35, 0.0  ;;  %v6444_v8 = vadd.f32 %v6443_v30, %v12344_v44  ;;  %v6494_v11 = vmax.f32 %v6442_v9, 0.0 }
 0xc8b   :  { %v6354_v20 = vpop.f32.mrf.mxu0  ;;  %v6447_v14 = vpop.f32.mrf.mxu1 }
 0xc8c   :  { %v6493_v2 = vmax.f32 %v6351_v55, 0.0  ;;  %v6495_v41 = vmax.f32 %v6444_v8, 0.0  ;;  %v6520_v23 = vpack.c.bf16 %v6492_v38, %v6488_v49  ;;  %v6522_v62 = vpack.c.bf16 %v6494_v11, %v6490_v19 }
 0xc8d   :  { %v6356_v51 = vpop.f32.mrf.mxu0  ;;  %v6449_v54 = vpop.f32.mrf.mxu1  ;;  %v6355_v40 = vadd.f32 %v6354_v20, %v12341_v28  ;;  %v6448_v4 = vadd.f32 %v6447_v14, %v12347_v45 }
 0xc8e   :  { %v6521_v22 = vpack.c.bf16 %v6493_v2, %v6489_v16  ;;  %v6523_v25 = vpack.c.bf16 %v6495_v41, %v6491_v59  ;;  %v6357_v10 = vadd.f32 %v6356_v51, %v12338_v46  ;;  %v6450_v61 = vadd.f32 %v6449_v54, %v12344_v44  ;;  %v12404_v2 = vld [vmem:[%s12631_s1 + $0x28] sm:$0xff]  ;;  %s9299_s1 = smov [#allocation2]  }
 0xc8f   :  { %v6358_v7 = vpop.f32.mrf.mxu0  ;;  %v6451_v50 = vpop.f32.mrf.mxu1  ;;  %v6498_v18 = vmax.f32 %v6448_v4, 0.0  ;;  %v12408_v14 = vrot.slane %v12404_v2, %v9980_v24  ;;  %v12814_v51 = vld [vmem:[#allocation33_spill] sm:$0xff]  ;;  %s7266_s15 = sshll.u32 %s9299_s1, 4  ;;  %s7267_s15 = int_to_ptr.vmem [resolvable:$true] %s7266_s15 }
 0xc90   :  { %v6359_v21 = vadd.f32 %v6358_v7, %v12341_v28  ;;  %6848 = vmatprep.mubr.bf16.mxu0 %v6521_v22  ;;  %v6452_v34 = vadd.f32 %v6451_v50, %v12347_v45  ;;  %6929 = vmatprep.mubr.bf16.mxu1 %v6523_v25  ;;  %v6497_v63 = vmax.f32 %v6357_v10, 0.0  ;;  %v6496_v28 = vmax.f32 %v6355_v40, 0.0  ;;  %v12815_v50 = vld [vmem:[#allocation34_spill] sm:$0xff]  ;;  %s9276_s16 = scalar_lea.vmem %s7267_s15, 128  ;;  %p9281_p1 = scmp.lt.s32.totalorder %s7267_s15, %s7267_s15 }
 0xc91   :  { %v6360_v42 = vpop.f32.mrf.mxu0  ;;  %6849 = vmatmul.mubr.bf16.gmra.mxu0 %v6520_v23  ;;  %v6453_v56 = vpop.f32.mrf.mxu1  ;;  %6930 = vmatmul.mubr.bf16.gmra.mxu1 %v6522_v62  ;;  %v6499_v36 = vmax.f32 %v6450_v61, 0.0  ;;  %p9277_p0 = scmp.ne.s32.totalorder %s7267_s15, %s9276_s16  ;;  %p9282_p2 = scmp.lt.s32.totalorder %s9276_s16, %s9276_s16 }
 0xc92   :  { %v6361_v57 = vadd.f32 %v6360_v42, %v12338_v46  ;;  %v6500_v13 = vmax.f32 %v6359_v21, 0.0  ;;  %v6454_v52 = vadd.f32 %v6453_v56, %v12344_v44  ;;  %v6502_v48 = vmax.f32 %v6452_v34, 0.0 }
 0xc93   :  { %p9283_p3 = por %p9282_p2, %p9281_p1 }
 0xc94   :  { %v6501_v27 = vmax.f32 %v6361_v57, 0.0  ;;  %v6503_v33 = vmax.f32 %v6454_v52, 0.0  ;;  %v6524_v29 = vpack.c.bf16 %v6500_v13, %v6496_v28  ;;  %v6526_v37 = vpack.c.bf16 %v6502_v48, %v6498_v18  ;;  %v12816_v48 = vld [vmem:[#allocation28_spill] sm:$0xff] }
 0xc95   :  { %p9284_p4 = pnand %p9283_p3, %p9277_p0 }
 0xc96   :  { %v6525_v39 = vpack.c.bf16 %v6501_v27, %v6497_v63  ;;  %v6527_v35 = vpack.c.bf16 %v6503_v33, %v6499_v36 }
 0xc98   :  { %6856 = vmatprep.mubr.bf16.mxu0 %v6525_v39  ;;  %6937 = vmatprep.mubr.bf16.mxu1 %v6527_v35 }
 0xc99   :  { %6857 = vmatmul.mubr.bf16.gmra.mxu0 %v6524_v29  ;;  %6938 = vmatmul.mubr.bf16.gmra.mxu1 %v6526_v37 }
 0xd31   :  { %v8762_v46 = vpop.f32.mrf.mxu0  ;;  %v8814_v45 = vpop.f32.mrf.mxu1 }
 0xd33   :  { %v8763_v6 = vpop.f32.mrf.mxu0  ;;  %v8815_v44 = vpop.f32.mrf.mxu1 }
 0xd34   :  { %v8764_v5 = vadd.f32 %v8763_v6, %v8762_v46  ;;  %v8816_v9 = vadd.f32 %v8815_v44, %v8814_v45  ;;  %v12817_v45 = vld [vmem:[#allocation31_spill] sm:$0xff] }
 0xd35   :  { %v8765_v17 = vpop.f32.mrf.mxu0  ;;  %v8817_v47 = vpop.f32.mrf.mxu1 }
 0xd36   :  { %v6900_v55 = vadd.f32 %v8816_v9, %v8764_v5 }
 0xd37   :  { %v8766_v30 = vpop.f32.mrf.mxu0  ;;  %v8818_v8 = vpop.f32.mrf.mxu1 }
 0xd38   :  { %v8767_v38 = vadd.f32 %v8766_v30, %v8765_v17  ;;  %v6946_v20 = vadd.f32 %v6900_v55, %v12302_v53  ;;  %v8819_v16 = vadd.f32 %v8818_v8, %v8817_v47 }
 0xd39   :  { %v8768_v11 = vpop.f32.mrf.mxu0  ;;  %v8820_v49 = vpop.f32.mrf.mxu1 }
 0xd3a   :  { %v6903_v59 = vadd.f32 %v8819_v16, %v8767_v38  ;;  %v6958_v19 = vadd.f32 %v6946_v20, %v12814_v51  ;;  %v12818_v20 = vld [vmem:[#allocation29_spill] sm:$0xff] }
 0xd3b   :  { %v8769_v41 = vpop.f32.mrf.mxu0  ;;  %v8821_v54 = vpop.f32.mrf.mxu1 }
 0xd3c   :  { %v8770_v22 = vadd.f32 %v8769_v41, %v8768_v11  ;;  %v6947_v53 = vadd.f32 %v6903_v59, %v12305_v58  ;;  %v8822_v23 = vadd.f32 %v8821_v54, %v8820_v49  ;;  %v12413_v7 = vadd.f32 %v12408_v14, %v6958_v19 }
 0xd3d   :  { %v8771_v25 = vpop.f32.mrf.mxu0  ;;  %v8823_v62 = vpop.f32.mrf.mxu1 }
 0xd3e   :  { %v6908_v10 = vadd.f32 %v8822_v23, %v8770_v22  ;;  %v6986_v24 = vsel %vm51_vm0, %v12413_v7, 0.0  ;;  %v6959_v40 = vadd.f32 %v6947_v53, %v12815_v50  ;;  %v12819_v23 = vld [vmem:[#allocation30_spill] sm:$0xff] }
 0xd3f   :  { %v8772_v21 = vpop.f32.mrf.mxu0  ;;  %v8824_v34 = vpop.f32.mrf.mxu1  ;;  %6987 = vadd.xlane.f32.xlu0 %v6986_v24 }
 0xd40   :  { %v8773_v61 = vadd.f32 %v8772_v21, %v8771_v25  ;;  %v6948_v42 = vadd.f32 %v6908_v10, %v12308_v12  ;;  %v8825_v4 = vadd.f32 %v8824_v34, %v8823_v62  ;;  %v12420_v57 = vadd.f32 %v12408_v14, %v6959_v40 }
 0xd41   :  { %v8774_v58 = vpop.f32.mrf.mxu0  ;;  %v8826_v56 = vpop.f32.mrf.mxu1 }
 0xd42   :  { %v6911_v13 = vadd.f32 %v8825_v4, %v8773_v61  ;;  %v6989_v63 = vsel %vm51_vm0, %v12420_v57, 0.0  ;;  %v6960_v27 = vadd.f32 %v6948_v42, %v12816_v48  ;;  %v12820_v4 = vld [vmem:[#allocation11_spill] sm:$0xff] }
 0xd43   :  { %v8775_v52 = vpop.f32.mrf.mxu0  ;;  %v8827_v36 = vpop.f32.mrf.mxu1  ;;  %6990 = vadd.xlane.f32.xlu1 %v6989_v63 }
 0xd44   :  { %v8776_v28 = vadd.f32 %v8775_v52, %v8774_v58  ;;  %v6949_v33 = vadd.f32 %v6911_v13, %v12311_v32  ;;  %v8828_v18 = vadd.f32 %v8827_v36, %v8826_v56  ;;  %v12427_v39 = vadd.f32 %v12408_v14, %v6960_v27 }
 0xd45   :  { %v8777_v12 = vpop.f32.mrf.mxu0  ;;  %v8829_v29 = vpop.f32.mrf.mxu1 }
 0xd46   :  { %v6916_v35 = vadd.f32 %v8828_v18, %v8776_v28  ;;  %v6992_v46 = vsel %vm51_vm0, %v12427_v39, 0.0  ;;  %v6961_v6 = vadd.f32 %v6949_v33, %v12817_v45  ;;  %v12821_v18 = vld [vmem:[#allocation36_spill] sm:$0xff] }
 0xd47   :  { %v8778_v37 = vpop.f32.mrf.mxu0  ;;  %v8830_v44 = vpop.f32.mrf.mxu1  ;;  %6993 = vadd.xlane.f32.xlu0 %v6992_v46 }
 0xd48   :  { %v8779_v5 = vadd.f32 %v8778_v37, %v8777_v12  ;;  %v6950_v9 = vadd.f32 %v6916_v35, %v12314_v60  ;;  %v8831_v17 = vadd.f32 %v8830_v44, %v8829_v29  ;;  %v12434_v47 = vadd.f32 %v12408_v14, %v6961_v6 }
 0xd49   :  { %v8780_v32 = vpop.f32.mrf.mxu0  ;;  %v8832_v55 = vpop.f32.mrf.mxu1 }
 0xd4a   :  { %v6919_v30 = vadd.f32 %v8831_v17, %v8779_v5  ;;  %v6995_v8 = vsel %vm51_vm0, %v12434_v47, 0.0  ;;  %v6962_v16 = vadd.f32 %v6950_v9, %v12818_v20  ;;  %v12822_v17 = vld [vmem:[#allocation17_spill] sm:$0xff] }
 0xd4b   :  { %v8781_v38 = vpop.f32.mrf.mxu0  ;;  %v8833_v49 = vpop.f32.mrf.mxu1  ;;  %6996 = vadd.xlane.f32.xlu1 %v6995_v8 }
 0xd4c   :  { %v8782_v11 = vadd.f32 %v8781_v38, %v8780_v32  ;;  %v6951_v59 = vadd.f32 %v6919_v30, %v12317_v31  ;;  %v8834_v41 = vadd.f32 %v8833_v49, %v8832_v55  ;;  %v12441_v51 = vadd.f32 %v12408_v14, %v6962_v16 }
 0xd4d   :  { %v8783_v60 = vpop.f32.mrf.mxu0  ;;  %v8835_v19 = vpop.f32.mrf.mxu1 }
 0xd4e   :  { %v6924_v22 = vadd.f32 %v8834_v41, %v8782_v11  ;;  %v6998_v53 = vsel %vm51_vm0, %v12441_v51, 0.0  ;;  %v6963_v25 = vadd.f32 %v6951_v59, %v12819_v23  ;;  %v12823_v41 = vld [vmem:[#allocation20_spill] sm:$0xff] }
 0xd4f   :  { %v8784_v54 = vpop.f32.mrf.mxu0  ;;  %v8836_v10 = vpop.f32.mrf.mxu1  ;;  %6999 = vadd.xlane.f32.xlu0 %v6998_v53 }
 0xd50   :  { %v8785_v62 = vadd.f32 %v8784_v54, %v8783_v60  ;;  %v6952_v21 = vadd.f32 %v6924_v22, %v12320_v0  ;;  %v8837_v24 = vadd.f32 %v8836_v10, %v8835_v19  ;;  %v12448_v50 = vadd.f32 %v12408_v14, %v6963_v25 }
 0xd51   :  { %v8786_v31 = vpop.f32.mrf.mxu0  ;;  %v8838_v40 = vpop.f32.mrf.mxu1 }
 0xd52   :  { %v6927_v61 = vadd.f32 %v8837_v24, %v8785_v62  ;;  %v7001_v42 = vsel %vm51_vm0, %v12448_v50, 0.0  ;;  %v6964_v58 = vadd.f32 %v6952_v21, %v12820_v4  ;;  %v12824_v62 = vld [vmem:[#allocation9_spill] sm:$0xff] }
 0xd53   :  { %v8787_v34 = vpop.f32.mrf.mxu0  ;;  %v8839_v13 = vpop.f32.mrf.mxu1  ;;  %7002 = vadd.xlane.f32.xlu1 %v7001_v42 }
 0xd54   :  { %v8788_v56 = vadd.f32 %v8787_v34, %v8786_v31  ;;  %v6953_v52 = vadd.f32 %v6927_v61, %v12323_v15  ;;  %v8840_v63 = vadd.f32 %v8839_v13, %v8838_v40  ;;  %v12455_v48 = vadd.f32 %v12408_v14, %v6964_v58 }
 0xd55   :  { %v8789_v0 = vpop.f32.mrf.mxu0  ;;  %v8841_v27 = vpop.f32.mrf.mxu1 }
 0xd56   :  { %v6932_v28 = vadd.f32 %v8840_v63, %v8788_v56  ;;  %v7004_v33 = vsel %vm51_vm0, %v12455_v48, 0.0  ;;  %v6965_v12 = vadd.f32 %v6953_v52, %v12821_v18 }
 0xd57   :  { %v8790_v36 = vpop.f32.mrf.mxu0  ;;  %v8842_v35 = vpop.f32.mrf.mxu1  ;;  %7005 = vadd.xlane.f32.xlu0 %v7004_v33 }
 0xd58   :  { %v8791_v29 = vadd.f32 %v8790_v36, %v8789_v0  ;;  %v6954_v37 = vadd.f32 %v6932_v28, %v12326_v43  ;;  %v8843_v46 = vadd.f32 %v8842_v35, %v8841_v27  ;;  %v12462_v45 = vadd.f32 %v12408_v14, %v6965_v12 }
 0xd59   :  { %v8792_v15 = vpop.f32.mrf.mxu0  ;;  %v8844_v6 = vpop.f32.mrf.mxu1 }
 0xd5a   :  { %v6935_v5 = vadd.f32 %v8843_v46, %v8791_v29  ;;  %v7007_v9 = vsel %vm51_vm0, %v12462_v45, 0.0  ;;  %v6966_v32 = vadd.f32 %v6954_v37, %v12822_v17 }
 0xd5b   :  { %v8793_v44 = vpop.f32.mrf.mxu0  ;;  %v8845_v30 = vpop.f32.mrf.mxu1  ;;  %7008 = vadd.xlane.f32.xlu1 %v7007_v9 }
 0xd5c   :  { %v8794_v55 = vadd.f32 %v8793_v44, %v8792_v15  ;;  %v6955_v38 = vadd.f32 %v6935_v5, %v12329_v1  ;;  %v8846_v8 = vadd.f32 %v8845_v30, %v8844_v6  ;;  %v12469_v20 = vadd.f32 %v12408_v14, %v6966_v32 }
 0xd5d   :  { %v8795_v43 = vpop.f32.mrf.mxu0  ;;  %v8847_v16 = vpop.f32.mrf.mxu1 }
 0xd5e   :  { %v6940_v11 = vadd.f32 %v8846_v8, %v8794_v55  ;;  %v7010_v59 = vsel %vm51_vm0, %v12469_v20, 0.0  ;;  %v6967_v60 = vadd.f32 %v6955_v38, %v12823_v41 }
 0xd5f   :  { %v8796_v49 = vpop.f32.mrf.mxu0  ;;  %v8848_v22 = vpop.f32.mrf.mxu1  ;;  %7011 = vadd.xlane.f32.xlu0 %v7010_v59 }
 0xd60   :  { %v8797_v19 = vadd.f32 %v8796_v49, %v8795_v43  ;;  %v6956_v54 = vadd.f32 %v6940_v11, %v12335_v26  ;;  %v8849_v53 = vadd.f32 %v8848_v22, %v8847_v16  ;;  %v12476_v1 = vadd.f32 %v12408_v14, %v6967_v60  ;;  %v12825_v26 = vld [vmem:[#allocation26_spill] sm:$0xff] }
 0xd62   :  { %v6943_v23 = vadd.f32 %v8849_v53, %v8797_v19  ;;  %v7013_v25 = vsel %vm51_vm0, %v12476_v1, 0.0  ;;  %v6968_v10 = vadd.f32 %v6956_v54, %v12824_v62 }
 0xd63   :  { %7014 = vadd.xlane.f32.xlu1 %v7013_v25 }
 0xd64   :  { %v6957_v21 = vadd.f32 %v6943_v23, %v12350_v3  ;;  %v12483_v24 = vadd.f32 %v12408_v14, %v6968_v10 }
 0xd66   :  { %v7016_v31 = vsel %vm51_vm0, %v12483_v24, 0.0  ;;  %v6969_v40 = vadd.f32 %v6957_v21, %v12825_v26 }
 0xd67   :  { %7017 = vadd.xlane.f32.xlu0 %v7016_v31 }
 0xd68   :  { %v12489_v61 = vadd.f32 %v12408_v14, %v6969_v40 }
 0xd6a   :  { %v7019_v34 = vsel %vm51_vm0, %v12489_v61, 0.0 }
 0xd6b   :  { %7020 = vadd.xlane.f32.xlu1 %v7019_v34 }
 0xdc8   :  { %v6988_v42 = vpop.xlane.xlu0 %6987 }
 0xdc9   :  { %v7022_v4 = vmul.f32 0.03125, %v6988_v42 }
 0xdcb   :  { %v12494_v3 = vsub.f32 %v12413_v7, %v7022_v4 }
 0xdcc   :  { %v6991_v58 = vpop.xlane.xlu1 %6990 }
 0xdcd   :  { %v7023_v56 = vmul.f32 0.03125, %v6991_v58  ;;  %v7046_v13 = vmul.f32 %v12494_v3, %v12494_v3 }
 0xdcf   :  { %v12499_v52 = vsub.f32 %v12420_v57, %v7023_v56  ;;  %v7058_v14 = vsel %vm51_vm0, %v7046_v13, 0.0 }
 0xdd0   :  { %v6994_v63 = vpop.xlane.xlu0 %6993  ;;  %7059 = vadd.xlane.f32.xlu0 %v7058_v14 }
 0xdd1   :  { %v7024_v0 = vmul.f32 0.03125, %v6994_v63  ;;  %v7047_v27 = vmul.f32 %v12499_v52, %v12499_v52 }
 0xdd3   :  { %v12505_v28 = vsub.f32 %v12427_v39, %v7024_v0  ;;  %v7061_v7 = vsel %vm51_vm0, %v7047_v27, 0.0 }
 0xdd4   :  { %v6997_v36 = vpop.xlane.xlu1 %6996  ;;  %7062 = vadd.xlane.f32.xlu1 %v7061_v7 }
 0xdd5   :  { %v7025_v33 = vmul.f32 0.03125, %v6997_v36  ;;  %v7048_v57 = vmul.f32 %v12505_v28, %v12505_v28 }
 0xdd7   :  { %v12511_v18 = vsub.f32 %v12434_v47, %v7025_v33  ;;  %v7064_v12 = vsel %vm51_vm0, %v7048_v57, 0.0 }
 0xdd8   :  { %v7000_v29 = vpop.xlane.xlu0 %6999  ;;  %7065 = vadd.xlane.f32.xlu0 %v7064_v12 }
 0xdd9   :  { %v7026_v35 = vmul.f32 0.03125, %v7000_v29  ;;  %v7049_v39 = vmul.f32 %v12511_v18, %v12511_v18 }
 0xddb   :  { %v12517_v37 = vsub.f32 %v12441_v51, %v7026_v35  ;;  %v7067_v46 = vsel %vm51_vm0, %v7049_v39, 0.0 }
 0xddc   :  { %v7003_v15 = vpop.xlane.xlu1 %7002  ;;  %7068 = vadd.xlane.f32.xlu1 %v7067_v46 }
 0xddd   :  { %v7027_v6 = vmul.f32 0.03125, %v7003_v15  ;;  %v7050_v47 = vmul.f32 %v12517_v37, %v12517_v37 }
 0xddf   :  { %v12523_v5 = vsub.f32 %v12448_v50, %v7027_v6  ;;  %v7070_v44 = vsel %vm51_vm0, %v7050_v47, 0.0 }
 0xde0   :  { %v7006_v9 = vpop.xlane.xlu0 %7005  ;;  %7071 = vadd.xlane.f32.xlu0 %v7070_v44 }
 0xde1   :  { %v7028_v17 = vmul.f32 0.03125, %v7006_v9  ;;  %v7051_v51 = vmul.f32 %v12523_v5, %v12523_v5 }
 0xde3   :  { %v12529_v32 = vsub.f32 %v12455_v48, %v7028_v17  ;;  %v7073_v55 = vsel %vm51_vm0, %v7051_v51, 0.0 }
 0xde4   :  { %v7009_v30 = vpop.xlane.xlu1 %7008  ;;  %7074 = vadd.xlane.f32.xlu1 %v7073_v55 }
 0xde5   :  { %v7029_v38 = vmul.f32 0.03125, %v7009_v30  ;;  %v7052_v50 = vmul.f32 %v12529_v32, %v12529_v32 }
 0xde7   :  { %v12535_v8 = vsub.f32 %v12462_v45, %v7029_v38  ;;  %v7076_v43 = vsel %vm51_vm0, %v7052_v50, 0.0 }
 0xde8   :  { %v7012_v16 = vpop.xlane.xlu0 %7011  ;;  %7077 = vadd.xlane.f32.xlu0 %v7076_v43 }
 0xde9   :  { %v7030_v11 = vmul.f32 0.03125, %v7012_v16  ;;  %v7053_v48 = vmul.f32 %v12535_v8, %v12535_v8 }
 0xdeb   :  { %v12541_v49 = vsub.f32 %v12469_v20, %v7030_v11  ;;  %v7079_v59 = vsel %vm51_vm0, %v7053_v48, 0.0 }
 0xdec   :  { %v7015_v41 = vpop.xlane.xlu1 %7014  ;;  %7080 = vadd.xlane.f32.xlu1 %v7079_v59 }
 0xded   :  { %v7031_v60 = vmul.f32 0.03125, %v7015_v41  ;;  %v7054_v45 = vmul.f32 %v12541_v49, %v12541_v49 }
 0xdef   :  { %v12547_v19 = vsub.f32 %v12476_v1, %v7031_v60  ;;  %v7082_v22 = vsel %vm51_vm0, %v7054_v45, 0.0 }
 0xdf0   :  { %7083 = vadd.xlane.f32.xlu0 %v7082_v22  ;;  %v7018_v54 = vpop.xlane.xlu0 %7017 }
 0xdf1   :  { %v7032_v53 = vmul.f32 0.03125, %v7018_v54  ;;  %v7055_v20 = vmul.f32 %v12547_v19, %v12547_v19 }
 0xdf3   :  { %v12553_v23 = vsub.f32 %v12483_v24, %v7032_v53  ;;  %v7085_v25 = vsel %vm51_vm0, %v7055_v20, 0.0 }
 0xdf4   :  { %7086 = vadd.xlane.f32.xlu1 %v7085_v25  ;;  %v7021_v62 = vpop.xlane.xlu1 %7020 }
 0xdf5   :  { %v7033_v10 = vmul.f32 0.03125, %v7021_v62  ;;  %v7056_v1 = vmul.f32 %v12553_v23, %v12553_v23 }
 0xdf7   :  { %v12559_v21 = vsub.f32 %v12489_v61, %v7033_v10  ;;  %v7088_v31 = vsel %vm51_vm0, %v7056_v1, 0.0 }
 0xdf8   :  { %7089 = vadd.xlane.f32.xlu0 %v7088_v31  ;;  %v12826_v31 = vld [vmem:[#allocation5_spill] sm:$0xff] }
 0xdf9   :  { %v7057_v26 = vmul.f32 %v12559_v21, %v12559_v21 }
 0xdfb   :  { %v7091_v24 = vsel %vm51_vm0, %v7057_v26, 0.0  ;;  %v12827_v26 = vsub.s32 4, %v12826_v31 }
 0xdfc   :  { %7092 = vadd.xlane.f32.xlu1 %v7091_v24 }
 0xdfd   :  { %v7145_v24 = vrot.slane %v12404_v2, %v12827_v26 }
 0xe59   :  { %v7060_v40 = vpop.xlane.xlu0 %7059 }
 0xe5a   :  { %v7094_v56 = vmul.f32 0.03125, %v7060_v40 }
 0xe5c   :  { %v7106_v27 = vadd.f32 1e-05, %v7094_v56 }
 0xe5d   :  { %v7063_v34 = vpop.xlane.xlu1 %7062 }
 0xe5e   :  { %v7095_v13 = vmul.f32 0.03125, %v7063_v34  ;;  %9212 = vrsqrt.f32 %v7106_v27 }
 0xe60   :  { %v7107_v36 = vadd.f32 1e-05, %v7095_v13 }
 0xe61   :  { %v7066_v42 = vpop.xlane.xlu0 %7065 }
 0xe62   :  { %v7096_v63 = vmul.f32 0.03125, %v7066_v42  ;;  %9214 = vrsqrt.f32 %v7107_v36 }
 0xe64   :  { %v7108_v12 = vadd.f32 1e-05, %v7096_v63  ;;  %v12828_v63 = vsub.s32 5, %v12826_v31 }
 0xe65   :  { %v7069_v4 = vpop.xlane.xlu1 %7068 }
 0xe66   :  { %v7097_v35 = vmul.f32 0.03125, %v7069_v4  ;;  %9216 = vrsqrt.f32 %v7108_v12 }
 0xe68   :  { %v7109_v9 = vadd.f32 1e-05, %v7097_v35 }
 0xe69   :  { %v7072_v58 = vpop.xlane.xlu0 %7071 }
 0xe6a   :  { %v7098_v0 = vmul.f32 0.03125, %v7072_v58 }
 0xe6b   :  { %v9213_v16 = vpop.eup %9212 }
 0xe6c   :  { %v7110_v39 = vadd.f32 1e-05, %v7098_v0  ;;  %v7130_v4 = vmul.f32 %v9213_v16, %v12494_v3 }
 0xe6d   :  { %v7075_v14 = vpop.xlane.xlu1 %7074 }
 0xe6e   :  { %v7099_v7 = vmul.f32 0.03125, %v7075_v14  ;;  %9218 = vrsqrt.f32 %v7110_v39  ;;  %v7146_v3 = vmul.f32 %v7145_v24, %v7130_v4 }
 0xe6f   :  { %v9215_v48 = vpop.eup %9214 }
 0xe70   :  { %v7111_v46 = vadd.f32 1e-05, %v7099_v7  ;;  %v7131_v10 = vmul.f32 %v9215_v48, %v12499_v52 }
 0xe71   :  { %v7078_v61 = vpop.xlane.xlu0 %7077 }
 0xe72   :  { %v7100_v33 = vmul.f32 0.03125, %v7078_v61  ;;  %9220 = vrsqrt.f32 %v7111_v46  ;;  %v7147_v13 = vmul.f32 %v7145_v24, %v7131_v10 }
 0xe73   :  { %v9217_v41 = vpop.eup %9216 }
 0xe74   :  { %v7112_v15 = vadd.f32 1e-05, %v7100_v33  ;;  %v7132_v58 = vmul.f32 %v9217_v41, %v12505_v28 }
 0xe75   :  { %v7081_v57 = vpop.xlane.xlu1 %7080 }
 0xe76   :  { %v7101_v29 = vmul.f32 0.03125, %v7081_v57  ;;  %9222 = vrsqrt.f32 %v7112_v15  ;;  %v7148_v7 = vmul.f32 %v7145_v24, %v7132_v58 }
 0xe78   :  { %v7113_v47 = vadd.f32 1e-05, %v7101_v29 }
 0xe79   :  { %v7084_v6 = vpop.xlane.xlu0 %7083 }
 0xe7a   :  { %v7102_v44 = vmul.f32 0.03125, %v7084_v6  ;;  %9224 = vrsqrt.f32 %v7113_v47 }
 0xe7b   :  { %9226 = vrsqrt.f32 %v7109_v9  ;;  %v9219_v60 = vpop.eup %9218 }
 0xe7c   :  { %v7114_v17 = vadd.f32 1e-05, %v7102_v44  ;;  %v7134_v1 = vmul.f32 %v9219_v60, %v12517_v37 }
 0xe7d   :  { %v7087_v51 = vpop.xlane.xlu1 %7086 }
 0xe7e   :  { %v7103_v55 = vmul.f32 0.03125, %v7087_v51  ;;  %9228 = vrsqrt.f32 %v7114_v17  ;;  %v7150_v14 = vmul.f32 %v7145_v24, %v7134_v1 }
 0xe7f   :  { %v9221_v22 = vpop.eup %9220 }
 0xe80   :  { %v7115_v30 = vadd.f32 1e-05, %v7103_v55  ;;  %v7135_v25 = vmul.f32 %v9221_v22, %v12523_v5 }
 0xe81   :  { %v7090_v38 = vpop.xlane.xlu0 %7089 }
 0xe82   :  { %9230 = vrsqrt.f32 %v7115_v30  ;;  %v7104_v50 = vmul.f32 0.03125, %v7090_v38  ;;  %v7151_v56 = vmul.f32 %v7145_v24, %v7135_v25 }
 0xe83   :  { %v9223_v54 = vpop.eup %9222 }
 0xe84   :  { %v7116_v43 = vadd.f32 1e-05, %v7104_v50  ;;  %v7136_v40 = vmul.f32 %v9223_v54, %v12529_v32  ;;  %v7161_v32 = vrot.slane %v12404_v2, %v12828_v63 }
 0xe85   :  { %v7093_v11 = vpop.xlane.xlu1 %7092 }
 0xe86   :  { %9232 = vrsqrt.f32 %v7116_v43  ;;  %v7105_v59 = vmul.f32 0.03125, %v7093_v11  ;;  %v7152_v61 = vmul.f32 %v7145_v24, %v7136_v40  ;;  %v7167_v36 = vadd.f32 %v7161_v32, %v7151_v56 }
 0xe87   :  { %v9225_v53 = vpop.eup %9224  ;;  %v7166_v57 = vadd.f32 %v7161_v32, %v7150_v14  ;;  %v7162_v2 = vadd.f32 %v7161_v32, %v7146_v3  ;;  %v7164_v46 = vadd.f32 %v7161_v32, %v7148_v7 }
 0xe88   :  { %v7117_v45 = vadd.f32 1e-05, %v7105_v59  ;;  %v9227_v20 = vpop.eup %9226  ;;  %v7137_v34 = vmul.f32 %v9225_v53, %v12535_v8  ;;  %v7180_v6 = vsel %vm51_vm0, %v7167_v36, -inf }
 0xe89   :  { %v7133_v5 = vmul.f32 %v9227_v20, %v12511_v18  ;;  %v7174_v50 = vsel %vm51_vm0, %v7162_v2, -inf  ;;  %v7176_v43 = vsel %vm51_vm0, %v7164_v46, -inf }
 0xe8a   :  { %9234 = vrsqrt.f32 %v7117_v45  ;;  %v7153_v8 = vmul.f32 %v7145_v24, %v7137_v34 }
 0xe8b   :  { %v9229_v62 = vpop.eup %9228  ;;  %v7149_v28 = vmul.f32 %v7145_v24, %v7133_v5 }
 0xe8c   :  { %v7138_v52 = vmul.f32 %v9229_v62, %v12541_v49  ;;  %v7163_v49 = vadd.f32 %v7161_v32, %v7147_v13  ;;  %v7169_v12 = vadd.f32 %v7161_v32, %v7153_v8 }
 0xe8d   :  { %v7165_v15 = vadd.f32 %v7161_v32, %v7149_v28 }
 0xe8e   :  { %v7154_v18 = vmul.f32 %v7145_v24, %v7138_v52  ;;  %v7175_v17 = vsel %vm51_vm0, %v7163_v49, -inf  ;;  %v7184_v55 = vsel %vm51_vm0, %v7169_v12, -inf }
 0xe8f   :  { %v9231_v42 = vpop.eup %9230  ;;  %v7181_v16 = vmax.f32 %v7175_v17, %v7180_v6  ;;  %v7177_v11 = vsel %vm51_vm0, %v7165_v15, -inf }
 0xe90   :  { %v7139_v37 = vmul.f32 %v9231_v42, %v12547_v19  ;;  %v7168_v19 = vadd.f32 %v7161_v32, %v7152_v61  ;;  %v7170_v47 = vadd.f32 %v7161_v32, %v7154_v18  ;;  %v7185_v45 = vmax.f32 %v7177_v11, %v7184_v55 }
 0xe92   :  { %v7155_v0 = vmul.f32 %v7145_v24, %v7139_v37  ;;  %v7182_v51 = vsel %vm51_vm0, %v7168_v19, -inf }
 0xe93   :  { %v9233_v27 = vpop.eup %9232  ;;  %v7183_v60 = vmax.f32 %v7176_v43, %v7182_v51 }
 0xe94   :  { %v7140_v33 = vmul.f32 %v9233_v27, %v12553_v23  ;;  %v12582_v29 = vadd.f32 %v7161_v32, %v7155_v0  ;;  %v7178_v23 = vsel %vm51_vm0, %v7166_v57, -inf }
 0xe95   :  { %v7179_v41 = vmax.f32 %v7174_v50, %v7178_v23 }
 0xe96   :  { %v7156_v35 = vmul.f32 %v7145_v24, %v7140_v33  ;;  %v7188_v30 = vsel %vm51_vm0, %v12582_v29, -inf }
 0xe97   :  { %v9235_v39 = vpop.eup %9234  ;;  %v7189_v22 = vmax.f32 %v7181_v16, %v7188_v30 }
 0xe98   :  { %v7172_v44 = vadd.f32 %v7161_v32, %v7156_v35  ;;  %v7141_v9 = vmul.f32 %v9235_v39, %v12559_v21  ;;  %v7186_v21 = vsel %vm51_vm0, %v7170_v47, -inf }
 0xe99   :  { %v7187_v53 = vmax.f32 %v7179_v41, %v7186_v21 }
 0xe9a   :  { %v7157_v38 = vmul.f32 %v7145_v24, %v7141_v9  ;;  %v7190_v48 = vsel %vm51_vm0, %v7172_v44, -inf }
 0xe9b   :  { %v7191_v20 = vmax.f32 %v7183_v60, %v7190_v48  ;;  %v7194_v62 = vmax.f32 %v7187_v53, %v7189_v22 }
 0xe9c   :  { %v7173_v59 = vadd.f32 %v7161_v32, %v7157_v38 }
 0xe9e   :  { %v7192_v54 = vsel %vm51_vm0, %v7173_v59, -inf }
 0xe9f   :  { %v7193_v25 = vmax.f32 %v7185_v45, %v7192_v54 }
 0xea1   :  { %v7195_v10 = vmax.f32 %v7191_v20, %v7193_v25 }
 0xea3   :  { %v12598_v1 = vmax.f32 %v7194_v62, %v7195_v10 }
 0xea5   :  { %v7197_v31 = vsub.f32 %v7162_v2, %v12598_v1  ;;  %v7198_v26 = vsub.f32 %v7163_v49, %v12598_v1  ;;  %v7199_v24 = vsub.f32 %v7164_v46, %v12598_v1  ;;  %v7200_v40 = vsub.f32 %v7165_v15, %v12598_v1 }
 0xea6   :  { %v7201_v34 = vsub.f32 %v7166_v57, %v12598_v1  ;;  %v7202_v5 = vsub.f32 %v7167_v36, %v12598_v1  ;;  %v7203_v52 = vsub.f32 %v7168_v19, %v12598_v1  ;;  %v7204_v13 = vsub.f32 %v7169_v12, %v12598_v1 }
 0xea7   :  { %v7209_v42 = vmul.f32 1.442695, %v7197_v31  ;;  %v7211_v4 = vmul.f32 1.442695, %v7198_v26  ;;  %v7213_v58 = vmul.f32 1.442695, %v7199_v24  ;;  %v7205_v63 = vsub.f32 %v7170_v47, %v12598_v1 }
 0xea8   :  { %v7215_v56 = vmul.f32 1.442695, %v7200_v40  ;;  %v7217_v37 = vmul.f32 1.442695, %v7201_v34  ;;  %v7219_v14 = vmul.f32 1.442695, %v7202_v5  ;;  %v7206_v61 = vsub.f32 %v12582_v29, %v12598_v1 }
 0xea9   :  { %9236 = vpow2.f32 %v7209_v42  ;;  %v7221_v32 = vmul.f32 1.442695, %v7203_v52  ;;  %v7223_v8 = vmul.f32 1.442695, %v7204_v13  ;;  %v7207_v0 = vsub.f32 %v7172_v44, %v12598_v1 }
 0xeaa   :  { %9238 = vpow2.f32 %v7211_v4  ;;  %v7225_v27 = vmul.f32 1.442695, %v7205_v63  ;;  %v7208_v3 = vsub.f32 %v7173_v59, %v12598_v1  ;;  %v7227_v7 = vmul.f32 1.442695, %v7206_v61 }
 0xeab   :  { %9240 = vpow2.f32 %v7213_v58  ;;  %v7229_v36 = vmul.f32 1.442695, %v7207_v0 }
 0xeac   :  { %9242 = vpow2.f32 %v7215_v56  ;;  %v7231_v57 = vmul.f32 1.442695, %v7208_v3 }
 0xead   :  { %9244 = vpow2.f32 %v7217_v37 }
 0xeae   :  { %9246 = vpow2.f32 %v7219_v14 }
 0xeaf   :  { %9248 = vpow2.f32 %v7221_v32 }
 0xeb0   :  { %9250 = vpow2.f32 %v7223_v8 }
 0xeb1   :  { %9252 = vpow2.f32 %v7225_v27 }
 0xeb2   :  { %9254 = vpow2.f32 %v7227_v7 }
 0xeb3   :  { %9256 = vpow2.f32 %v7229_v36 }
 0xeb4   :  { %9258 = vpow2.f32 %v7231_v57 }
 0xeb6   :  { %v9237_v28 = vpop.eup %9236 }
 0xeb7   :  { %v9239_v18 = vpop.eup %9238  ;;  %v7233_v33 = vsel %vm51_vm0, %v9237_v28, 0.0 }
 0xeb8   :  { %v9241_v49 = vpop.eup %9240  ;;  %v7234_v19 = vsel %vm51_vm0, %v9239_v18, 0.0 }
 0xeb9   :  { %v9243_v12 = vpop.eup %9242  ;;  %v7235_v29 = vadd.f32 %v7234_v19, %v7233_v33  ;;  %v7236_v35 = vsel %vm51_vm0, %v9241_v49, 0.0 }
 0xeba   :  { %v9245_v39 = vpop.eup %9244  ;;  %v7238_v46 = vsel %vm51_vm0, %v9243_v12, 0.0 }
 0xebb   :  { %v7237_v2 = vadd.f32 %v7236_v35, %v7235_v29  ;;  %v9247_v15 = vpop.eup %9246  ;;  %v7240_v47 = vsel %vm51_vm0, %v9245_v39, 0.0 }
 0xebc   :  { %v9249_v44 = vpop.eup %9248  ;;  %v7242_v17 = vsel %vm51_vm0, %v9247_v15, 0.0 }
 0xebd   :  { %v7239_v6 = vadd.f32 %v7238_v46, %v7237_v2  ;;  %v9251_v23 = vpop.eup %9250  ;;  %v7244_v55 = vsel %vm51_vm0, %v9249_v44, 0.0 }
 0xebe   :  { %v9253_v30 = vpop.eup %9252  ;;  %v7246_v50 = vsel %vm51_vm0, %v9251_v23, 0.0 }
 0xebf   :  { %v7241_v9 = vadd.f32 %v7240_v47, %v7239_v6  ;;  %v9255_v43 = vpop.eup %9254  ;;  %v7248_v11 = vsel %vm51_vm0, %v9253_v30, 0.0 }
 0xec0   :  { %v9257_v21 = vpop.eup %9256  ;;  %v7250_v59 = vsel %vm51_vm0, %v9255_v43, 0.0 }
 0xec1   :  { %v7243_v51 = vadd.f32 %v7242_v17, %v7241_v9  ;;  %v9259_v41 = vpop.eup %9258  ;;  %v7252_v45 = vsel %vm51_vm0, %v9257_v21, 0.0 }
 0xec2   :  { %v7254_v54 = vsel %vm51_vm0, %v9259_v41, 0.0 }
 0xec3   :  { %v7245_v38 = vadd.f32 %v7244_v55, %v7243_v51 }
 0xec5   :  { %v7247_v16 = vadd.f32 %v7246_v50, %v7245_v38 }
 0xec7   :  { %v7249_v48 = vadd.f32 %v7248_v11, %v7247_v16 }
 0xec9   :  { %v7251_v60 = vadd.f32 %v7250_v59, %v7249_v48 }
 0xecb   :  { %v7253_v22 = vadd.f32 %v7252_v45, %v7251_v60 }
 0xecd   :  { %v7255_v53 = vadd.f32 %v7254_v54, %v7253_v22 }
 0xecf   :  { %9260 = vlog2.f32 %v7255_v53 }
 0xedc   :  { %v9261_v20 = vpop.eup %9260 }
 0xedd   :  { %v7257_v25 = vmul.f32 0.6931472, %v9261_v20 }
 0xedf   :  { %v7258_v62 = vadd.f32 %v7257_v25, %v12598_v1 }
 0xee1   :  { %7259 = vst.msk [vmem:[#allocation2] sm:$0xff] %vm51_vm0, %v7258_v62 }
 0xee2   :  { %9287 = shalt.err (!%p9284_p4)
}
 0xee3   :  { %7269 = dma.vmem_to_hbm [thread:$0]  %s7267_s15, 128, %s12635_s5, [#allocation3]  }
 0xee4   :  { %9296 = dma.done.wait [#allocation3], 128  }
 0xee5   :  { %9297 = vsyncadd [#allocation3], 4294967168 }
 0xee6   :  { %7273 = vsyncpa [#allocation3], 1 }

</bundles_post_ra>
